<compile_context>
chip_gen: v5e
topology: v5e:2x2
jax: 0.10.0
libtpu: 0.0.40
codegen_flags: <defaults>
</compile_context>

<pallas_src>
import functools
import math

import jax
import jax.numpy as jnp
from jax import lax
from jax.experimental import pallas as pl
from jax.experimental.pallas import tpu as pltpu


# --------------------------------- kernels -----------------------------------

def _conv_bn_1x1_kernel(x_ref, w_ref, b_ref, o_ref):
    """Pointwise conv + folded BN.  No padding scratch needed.

    x_ref: (F,H,W,Cin) bf16   w_ref: (Cin,Cout) bf16 (BN scale folded)
    b_ref: (1,Cout) f32       o_ref: (F,H,W,Cout) bf16
    """
    F, H, W, CIN = x_ref.shape
    COUT = o_ref.shape[-1]
    acc = jnp.dot(x_ref[...].reshape(F * H * W, CIN), w_ref[...],
                  preferred_element_type=jnp.float32)
    o_ref[...] = (acc + b_ref[...]).reshape(F, H, W, COUT).astype(o_ref.dtype)


def _conv_bn_spatial_kernel(x_ref, w_ref, b_ref, o_ref, pad_ref, *, kh, kw):
    """Spatial (1,KH,KW) conv + folded BN for one block of F (n,d) frames.

    x_ref   : (F,H,W,Cin)              bf16 activations
    w_ref   : (KH*KW*Cin, Cout)        bf16 im2col-layout weight (scale folded)
    b_ref   : (1,Cout)                 f32 folded BN bias
    o_ref   : (F,H,W,Cout)             bf16 output
    pad_ref : (F,H+KH-1,Wp,Cin)        bf16 zero-halo scratch, Wp = rnd8(W+KW-1)
    """
    F, H, W, CIN = x_ref.shape
    COUT = o_ref.shape[-1]
    ph, pw = (kh - 1) // 2, (kw - 1) // 2
    wpad = W + 2 * pw   # logical padded width (scratch may be wider / aligned)

    # Zero only the O(perimeter) halo strips.  Re-zeroed every step on
    # purpose: under a megacore split a core may never execute program_id==0,
    # so "zero once at step 0" would leave its scratch halo uninitialized.
    if ph > 0:
        zrow = jnp.zeros((F, ph, wpad, CIN), pad_ref.dtype)
        pad_ref[:, 0:ph, 0:wpad, :] = zrow
        pad_ref[:, ph + H:2 * ph + H, 0:wpad, :] = zrow
    if pw > 0:
        zcol = jnp.zeros((F, H + 2 * ph, pw, CIN), pad_ref.dtype)
        pad_ref[:, 0:H + 2 * ph, 0:pw, :] = zcol
        pad_ref[:, 0:H + 2 * ph, pw + W:wpad, :] = zcol

    # Interior straight from the DMA'd input block (bf16 -> bf16).
    # TODO(synk): replace with a direct HBM->scratch-interior DMA.
    pad_ref[:, ph:ph + H, pw:pw + W, :] = x_ref[...]

    # Row-grouped im2col: one MXU matmul per kernel row, K = KW*Cin, f32 acc.
    acc = None
    for di in range(kh):
        taps = [pad_ref[:, di:di + H, dj:dj + W, :] for dj in range(kw)]
        col = jnp.concatenate(taps, axis=-1).reshape(F * H * W, kw * CIN)
        w_blk = w_ref[di * kw * CIN:(di + 1) * kw * CIN, :]
        part = jnp.dot(col, w_blk, preferred_element_type=jnp.float32)
        acc = part if acc is None else acc + part

    o_ref[...] = (acc + b_ref[...]).reshape(F, H, W, COUT).astype(o_ref.dtype)


# ------------------------------ block selection -------------------------------

def _pick_frames_per_block(nd, per_frame_bytes, budget_bytes, min_steps):
    """Largest divisor F of nd s.t. the block fits the VMEM budget and the grid
    keeps >= min_steps steps (>=2 per TC on megacore parts, >=2 total so
    BlockSpec double-buffering has something to overlap)."""
    # TODO(synk): remainder-block / padded-ND path for awkward (prime) nd.
    min_steps = max(1, min(min_steps, nd))
    best = 1
    for f in range(1, nd + 1):
        if nd % f:
            continue
        if nd // f < min_steps:
            continue
        if f > 1 and f * per_frame_bytes > budget_bytes:
            continue
        best = max(best, f)
    return best


# ------------------------------ pallas wrappers -------------------------------

def conv3d_bn_pallas_ndhwc(x_nd, w_col, bn_bias, kh, kw):
    """Channels-last entry point for layer chaining (no transposes).

    x_nd  : (N*D, H, W, Cin) bf16
    w_col : (KH*KW*Cin, Cout) bf16, im2col (di,dj,cin) order, BN scale folded
    bn_bias : (Cout,) f32 folded BN bias
    returns (N*D, H, W, Cout) bf16
    """
    ND, H, W, Cin = x_nd.shape
    Cout = w_col.shape[1]
    ph, pw = (kh - 1) // 2, (kw - 1) // 2
    wp_pad = -(-(W + 2 * pw) // 8) * 8      # sublane-aligned scratch width

    try:
        vmem_cap = int(pltpu.get_tpu_info().vmem_capacity_bytes)
    except Exception:
        vmem_cap = 64 * 1024 * 1024         # conservative (v7x per-TC VMEM)

    spatial = not (kh == 1 and kw == 1)
    per_frame = (
        2 * H * W * Cin * 2                                       # x block x2, bf16
        + 2 * H * W * Cout * 2                                    # out block x2, bf16
        + ((H + 2 * ph) * wp_pad * Cin * 2 if spatial else 0)     # pad scratch
        + (H * W * kw * Cin * 2 if spatial else 0)                # row im2col slab
        + H * W * Cout * 4)                                       # f32 accumulator
    fixed = 2 * (kh * kw * Cin * Cout * 2) + 2 * (Cout * 4)       # weights + bias

    F = _pick_frames_per_block(ND, per_frame, budget_bytes=vmem_cap // 4,
                               min_steps=min(ND, 4))

    if spatial:
        kern = functools.partial(_conv_bn_spatial_kernel, kh=kh, kw=kw)
        scratch = [pltpu.VMEM((F, H + 2 * ph, wp_pad, Cin), jnp.bfloat16)]
    else:
        kern = _conv_bn_1x1_kernel
        scratch = []

    vmem_limit = int(min(vmem_cap * 3 // 4,
                         max(16 * 1024 * 1024, 2 * (fixed + F * per_frame))))

    return pl.pallas_call(
        kern,
        out_shape=jax.ShapeDtypeStruct((ND, H, W, Cout), jnp.bfloat16),
        grid=(ND // F,),
        in_specs=[
            pl.BlockSpec((F, H, W, Cin), lambda i: (i, 0, 0, 0)),
            pl.BlockSpec((kh * kw * Cin, Cout), lambda i: (0, 0)),
            pl.BlockSpec((1, Cout), lambda i: (0, 0)),
        ],
        out_specs=pl.BlockSpec((F, H, W, Cout), lambda i: (i, 0, 0, 0)),
        scratch_shapes=scratch,
        compiler_params=pltpu.CompilerParams(
            dimension_semantics=("parallel",),
            vmem_limit_bytes=vmem_limit),
    )(x_nd, w_col, bn_bias.reshape(1, Cout).astype(jnp.float32))


def conv3d_bn_pallas(x_ncdhw, w_pt, bn_scale, bn_bias):
    """Module-equivalent NCDHW interface:
    FrozenBatchNorm3d(Conv3d(x; kernels=(1,KH,KW), stride=1, SAME spatial pad,
    no bias)).  x: (N,Cin,D,H,W) f32; w_pt: (Cout,Cin,1,KH,KW) f32.

    NOTE: in a full backbone keep activations channels-last ((N*D,H,W,C) bf16)
    between Conv3dBN layers and call conv3d_bn_pallas_ndhwc directly — each
    NCDHW<->NDHWC transpose below is a full extra HBM pass.
    """
    N, Cin, D, H, W = x_ncdhw.shape
    Cout, Cin_w, KD, KH, KW = w_pt.shape
    assert Cin_w == Cin and KD == 1 and KH % 2 == 1 and KW % 2 == 1

    x_nd = jnp.transpose(x_ncdhw, (0, 2, 3, 4, 1)).reshape(N * D, H, W, Cin)
    x_nd = x_nd.astype(jnp.bfloat16)

    # Fold the frozen-BN per-channel scale into the f32 weight, THEN cast bf16.
    w_scaled = w_pt[:, :, 0] * bn_scale[:, None, None, None]      # (Cout,Cin,KH,KW)
    w_col = jnp.transpose(w_scaled, (2, 3, 1, 0)).reshape(KH * KW * Cin, Cout)
    w_col = w_col.astype(jnp.bfloat16)

    out = conv3d_bn_pallas_ndhwc(x_nd, w_col, bn_bias, KH, KW)
    out = out.reshape(N, D, H, W, Cout).astype(jnp.float32)
    return jnp.transpose(out, (0, 4, 1, 2, 3))


# ------------------------------ pure-JAX reference ----------------------------

def conv3d_bn_ref(x_ncdhw, w_pt, bn_scale, bn_bias):
    """Reference consuming the SAME bf16-rounded inputs the kernel sees."""
    N, Cin, D, H, W = x_ncdhw.shape
    Cout, _, _, KH, KW = w_pt.shape
    ph, pw = (KH - 1) // 2, (KW - 1) // 2
    x = jnp.transpose(x_ncdhw, (0, 2, 3, 4, 1)).reshape(N * D, H, W, Cin)
    x = x.astype(jnp.bfloat16).astype(jnp.float32)
    w_scaled = w_pt[:, :, 0] * bn_scale[:, None, None, None]      # fold scale first
    wsp = w_scaled.astype(jnp.bfloat16).astype(jnp.float32)       # (Cout,Cin,KH,KW)
    xp = jnp.pad(x, ((0, 0), (ph, ph), (pw, pw), (0, 0)))
    acc = jnp.zeros((N * D, H, W, Cout), jnp.float32)
    for di in range(KH):
        for dj in range(KW):
            acc = acc + jnp.einsum('nhwc,kc->nhwk',
                                   xp[:, di:di + H, dj:dj + W, :],
                                   wsp[:, :, di, dj],
                                   precision=lax.Precision.HIGHEST)
    y = acc + bn_bias.reshape(1, 1, 1, Cout)
    return jnp.transpose(y.reshape(N, D, H, W, Cout), (0, 4, 1, 2, 3))


# ----------------------------------- main --------------------------------------

if __name__ == "__main__":
    key = jax.random.PRNGKey(0)
    keys = jax.random.split(key, 7)

    # Small but lane-dense demo config (Cin = Cout = 128), 1x3x3 spatial conv.
    N, Cin, D, H, W = 2, 128, 4, 16, 16
    Cout, KH, KW = 128, 3, 3
    eps = 1e-5

    x = jax.random.normal(keys[0], (N, Cin, D, H, W), jnp.float32)
    # PyTorch Conv3d weight layout (Cout, Cin, kD, kH, kW), kaiming-normal init.
    fan_in = Cin * 1 * KH * KW
    w_pt = math.sqrt(2.0 / fan_in) * jax.random.normal(
        keys[1], (Cout, Cin, 1, KH, KW), jnp.float32)

    # Frozen / eval BatchNorm: fold (gamma, beta, running_mean, running_var)
    # into per-channel scale + bias.
    gamma = 1.0 + 0.1 * jax.random.normal(keys[2], (Cout,), jnp.float32)
    beta = 0.05 * jax.random.normal(keys[3], (Cout,), jnp.float32)
    rmean = 0.1 * jax.random.normal(keys[4], (Cout,), jnp.float32)
    rvar = 0.5 + jnp.abs(jax.random.normal(keys[5], (Cout,), jnp.float32))
    scale = gamma / jnp.sqrt(rvar + eps)
    bias = beta - rmean * scale

    # 1x3x3 spatial path
    out = jax.block_until_ready(conv3d_bn_pallas(x, w_pt, scale, bias))
    ref = jax.block_until_ready(conv3d_bn_ref(x, w_pt, scale, bias))
    assert out.shape == (N, Cout, D, H, W)
    err = float(jnp.max(jnp.abs(out - ref)))
    assert bool(jnp.allclose(out, ref, atol=6e-2, rtol=2e-2)), (
        f"3x3 mismatch vs reference (max abs err {err})")

    # 1x1x1 pointwise path (no pad scratch)
    w1 = math.sqrt(2.0 / Cin) * jax.random.normal(
        keys[6], (Cout, Cin, 1, 1, 1), jnp.float32)
    out1 = jax.block_until_ready(conv3d_bn_pallas(x, w1, scale, bias))
    ref1 = jax.block_until_ready(conv3d_bn_ref(x, w1, scale, bias))
    err1 = float(jnp.max(jnp.abs(out1 - ref1)))
    assert bool(jnp.allclose(out1, ref1, atol=6e-2, rtol=2e-2)), (
        f"1x1 mismatch vs reference (max abs err {err1})")

    print("KERNEL_OK")
</pallas_src>

<mosaic_0001>
module attributes {stable_mosaic.version = 11 : i64} {
  func.func @_conv_bn_spatial_kernel(%arg0: i32, %arg1: memref<2x16x16x128xbf16, #tpu.memory_space<vmem>>, %arg2: memref<1152x128xbf16, #tpu.memory_space<vmem>>, %arg3: memref<1x128xf32, #tpu.memory_space<vmem>>, %arg4: memref<2x16x16x128xbf16, #tpu.memory_space<vmem>>, %arg5: memref<2x18x24x128xbf16, #tpu.memory_space<vmem>>) attributes {dimension_semantics = [#tpu.dimension_semantics<parallel>], iteration_bounds = array<i64: 4>, scalar_prefetch = 0 : i64, scratch_operands = 1 : i64, tpu.core_type = #tpu.core_type<tc>, window_params = [{transform_indices = @transform_0, window_bounds = array<i64: 2, 16, 16, 128>}, {pipeline_mode = #tpu.pipeline_mode<synchronous>, transform_indices = @transform_1, window_bounds = array<i64: 1152, 128>}, {pipeline_mode = #tpu.pipeline_mode<synchronous>, transform_indices = @transform_2, window_bounds = array<i64: 1, 128>}, {transform_indices = @transform_3, window_bounds = array<i64: 2, 16, 16, 128>}]} {
    %cst = arith.constant 0.000000e+00 : bf16
    %0 = vector.broadcast %cst : bf16 to vector<2x1x18x128xbf16>
    %c0 = arith.constant 0 : index
    %c0_0 = arith.constant 0 : index
    %c0_1 = arith.constant 0 : index
    %c0_2 = arith.constant 0 : index
    %1 = vector.load %arg5[%c0, %c0_0, %c0_1, %c0_2] : memref<2x18x24x128xbf16, #tpu.memory_space<vmem>>, vector<2x1x18x128xbf16>
    tpu.vector_store %arg5[%c0, %c0_0, %c0_1, %c0_2], %0 {strides = array<i32>} : memref<2x18x24x128xbf16, #tpu.memory_space<vmem>>, vector<2x1x18x128xbf16>,
    %c0_3 = arith.constant 0 : index
    %c17 = arith.constant 17 : index
    %c0_4 = arith.constant 0 : index
    %c0_5 = arith.constant 0 : index
    %2 = vector.load %arg5[%c0_3, %c17, %c0_4, %c0_5] : memref<2x18x24x128xbf16, #tpu.memory_space<vmem>>, vector<2x1x18x128xbf16>
    tpu.vector_store %arg5[%c0_3, %c17, %c0_4, %c0_5], %0 {strides = array<i32>} : memref<2x18x24x128xbf16, #tpu.memory_space<vmem>>, vector<2x1x18x128xbf16>,
    %cst_6 = arith.constant 0.000000e+00 : bf16
    %3 = vector.broadcast %cst_6 : bf16 to vector<2x18x1x128xbf16>
    %c0_7 = arith.constant 0 : index
    %c0_8 = arith.constant 0 : index
    %c0_9 = arith.constant 0 : index
    %c0_10 = arith.constant 0 : index
    %4 = vector.load %arg5[%c0_7, %c0_8, %c0_9, %c0_10] : memref<2x18x24x128xbf16, #tpu.memory_space<vmem>>, vector<2x18x1x128xbf16>
    tpu.vector_store %arg5[%c0_7, %c0_8, %c0_9, %c0_10], %3 {strides = array<i32>} : memref<2x18x24x128xbf16, #tpu.memory_space<vmem>>, vector<2x18x1x128xbf16>,
    %c0_11 = arith.constant 0 : index
    %c0_12 = arith.constant 0 : index
    %c17_13 = arith.constant 17 : index
    %c0_14 = arith.constant 0 : index
    %5 = vector.load %arg5[%c0_11, %c0_12, %c17_13, %c0_14] : memref<2x18x24x128xbf16, #tpu.memory_space<vmem>>, vector<2x18x1x128xbf16>
    tpu.vector_store %arg5[%c0_11, %c0_12, %c17_13, %c0_14], %3 {strides = array<i32>} : memref<2x18x24x128xbf16, #tpu.memory_space<vmem>>, vector<2x18x1x128xbf16>,
    %c0_15 = arith.constant 0 : index
    %c0_16 = arith.constant 0 : index
    %c0_17 = arith.constant 0 : index
    %c0_18 = arith.constant 0 : index
    %6 = vector.load %arg1[%c0_15, %c0_16, %c0_17, %c0_18] : memref<2x16x16x128xbf16, #tpu.memory_space<vmem>>, vector<2x16x16x128xbf16>
    %c0_19 = arith.constant 0 : index
    %c1 = arith.constant 1 : index
    %c1_20 = arith.constant 1 : index
    %c0_21 = arith.constant 0 : index
    %7 = vector.load %arg5[%c0_19, %c1, %c1_20, %c0_21] : memref<2x18x24x128xbf16, #tpu.memory_space<vmem>>, vector<2x16x16x128xbf16>
    tpu.vector_store %arg5[%c0_19, %c1, %c1_20, %c0_21], %6 {strides = array<i32>} : memref<2x18x24x128xbf16, #tpu.memory_space<vmem>>, vector<2x16x16x128xbf16>,
    %c0_22 = arith.constant 0 : index
    %c0_23 = arith.constant 0 : index
    %c0_24 = arith.constant 0 : index
    %c0_25 = arith.constant 0 : index
    %8 = vector.load %arg5[%c0_22, %c0_23, %c0_24, %c0_25] : memref<2x18x24x128xbf16, #tpu.memory_space<vmem>>, vector<2x16x16x128xbf16>
    %c0_26 = arith.constant 0 : index
    %c0_27 = arith.constant 0 : index
    %c1_28 = arith.constant 1 : index
    %c0_29 = arith.constant 0 : index
    %9 = vector.load %arg5[%c0_26, %c0_27, %c1_28, %c0_29] : memref<2x18x24x128xbf16, #tpu.memory_space<vmem>>, vector<2x16x16x128xbf16>
    %c0_30 = arith.constant 0 : index
    %c0_31 = arith.constant 0 : index
    %c2 = arith.constant 2 : index
    %c0_32 = arith.constant 0 : index
    %10 = vector.load %arg5[%c0_30, %c0_31, %c2, %c0_32] : memref<2x18x24x128xbf16, #tpu.memory_space<vmem>>, vector<2x16x16x128xbf16>
    %11 = tpu.concatenate %8, %9, %10 in 3 : vector<2x16x16x128xbf16>, vector<2x16x16x128xbf16>, vector<2x16x16x128xbf16> -> vector<2x16x16x384xbf16>
    %12 = vector.shape_cast %11 : vector<2x16x16x384xbf16> to vector<512x384xbf16>
    %c0_33 = arith.constant 0 : index
    %c0_34 = arith.constant 0 : index
    %13 = vector.load %arg2[%c0_33, %c0_34] : memref<1152x128xbf16, #tpu.memory_space<vmem>>, vector<384x128xbf16>
    %cst_35 = arith.constant dense<0.000000e+00> : vector<512x128xf32>
    %14 = tpu.matmul %12, %13, %cst_35 {dimension_numbers = #tpu.dot_dimension_numbers<[1], [0], [0], [1], [0, 0, 1, 1], [], []>} : vector<512x384xbf16>, vector<384x128xbf16>, vector<512x128xf32> -> vector<512x128xf32>
    %c0_36 = arith.constant 0 : index
    %c1_37 = arith.constant 1 : index
    %c0_38 = arith.constant 0 : index
    %c0_39 = arith.constant 0 : index
    %15 = vector.load %arg5[%c0_36, %c1_37, %c0_38, %c0_39] : memref<2x18x24x128xbf16, #tpu.memory_space<vmem>>, vector<2x16x16x128xbf16>
    %c0_40 = arith.constant 0 : index
    %c1_41 = arith.constant 1 : index
    %c1_42 = arith.constant 1 : index
    %c0_43 = arith.constant 0 : index
    %16 = vector.load %arg5[%c0_40, %c1_41, %c1_42, %c0_43] : memref<2x18x24x128xbf16, #tpu.memory_space<vmem>>, vector<2x16x16x128xbf16>
    %c0_44 = arith.constant 0 : index
    %c1_45 = arith.constant 1 : index
    %c2_46 = arith.constant 2 : index
    %c0_47 = arith.constant 0 : index
    %17 = vector.load %arg5[%c0_44, %c1_45, %c2_46, %c0_47] : memref<2x18x24x128xbf16, #tpu.memory_space<vmem>>, vector<2x16x16x128xbf16>
    %18 = tpu.concatenate %15, %16, %17 in 3 : vector<2x16x16x128xbf16>, vector<2x16x16x128xbf16>, vector<2x16x16x128xbf16> -> vector<2x16x16x384xbf16>
    %19 = vector.shape_cast %18 : vector<2x16x16x384xbf16> to vector<512x384xbf16>
    %c384 = arith.constant 384 : index
    %c0_48 = arith.constant 0 : index
    %20 = vector.load %arg2[%c384, %c0_48] : memref<1152x128xbf16, #tpu.memory_space<vmem>>, vector<384x128xbf16>
    %cst_49 = arith.constant dense<0.000000e+00> : vector<512x128xf32>
    %21 = tpu.matmul %19, %20, %cst_49 {dimension_numbers = #tpu.dot_dimension_numbers<[1], [0], [0], [1], [0, 0, 1, 1], [], []>} : vector<512x384xbf16>, vector<384x128xbf16>, vector<512x128xf32> -> vector<512x128xf32>
    %22 = arith.addf %14, %21 : vector<512x128xf32>
    %c0_50 = arith.constant 0 : index
    %c2_51 = arith.constant 2 : index
    %c0_52 = arith.constant 0 : index
    %c0_53 = arith.constant 0 : index
    %23 = vector.load %arg5[%c0_50, %c2_51, %c0_52, %c0_53] : memref<2x18x24x128xbf16, #tpu.memory_space<vmem>>, vector<2x16x16x128xbf16>
    %c0_54 = arith.constant 0 : index
    %c2_55 = arith.constant 2 : index
    %c1_56 = arith.constant 1 : index
    %c0_57 = arith.constant 0 : index
    %24 = vector.load %arg5[%c0_54, %c2_55, %c1_56, %c0_57] : memref<2x18x24x128xbf16, #tpu.memory_space<vmem>>, vector<2x16x16x128xbf16>
    %c0_58 = arith.constant 0 : index
    %c2_59 = arith.constant 2 : index
    %c2_60 = arith.constant 2 : index
    %c0_61 = arith.constant 0 : index
    %25 = vector.load %arg5[%c0_58, %c2_59, %c2_60, %c0_61] : memref<2x18x24x128xbf16, #tpu.memory_space<vmem>>, vector<2x16x16x128xbf16>
    %26 = tpu.concatenate %23, %24, %25 in 3 : vector<2x16x16x128xbf16>, vector<2x16x16x128xbf16>, vector<2x16x16x128xbf16> -> vector<2x16x16x384xbf16>
    %27 = vector.shape_cast %26 : vector<2x16x16x384xbf16> to vector<512x384xbf16>
    %c768 = arith.constant 768 : index
    %c0_62 = arith.constant 0 : index
    %28 = vector.load %arg2[%c768, %c0_62] : memref<1152x128xbf16, #tpu.memory_space<vmem>>, vector<384x128xbf16>
    %cst_63 = arith.constant dense<0.000000e+00> : vector<512x128xf32>
    %29 = tpu.matmul %27, %28, %cst_63 {dimension_numbers = #tpu.dot_dimension_numbers<[1], [0], [0], [1], [0, 0, 1, 1], [], []>} : vector<512x384xbf16>, vector<384x128xbf16>, vector<512x128xf32> -> vector<512x128xf32>
    %30 = arith.addf %22, %29 : vector<512x128xf32>
    %c0_64 = arith.constant 0 : index
    %c0_65 = arith.constant 0 : index
    %31 = vector.load %arg3[%c0_64, %c0_65] : memref<1x128xf32, #tpu.memory_space<vmem>>, vector<1x128xf32>
    %32 = vector.broadcast %31 : vector<1x128xf32> to vector<512x128xf32>
    %33 = arith.addf %30, %32 : vector<512x128xf32>
    %34 = vector.shape_cast %33 : vector<512x128xf32> to vector<2x16x16x128xf32>
    %35 = arith.truncf %34 : vector<2x16x16x128xf32> to vector<2x16x16x128xbf16>
    %c0_66 = arith.constant 0 : index
    %c0_67 = arith.constant 0 : index
    %c0_68 = arith.constant 0 : index
    %c0_69 = arith.constant 0 : index
    %36 = vector.load %arg4[%c0_66, %c0_67, %c0_68, %c0_69] : memref<2x16x16x128xbf16, #tpu.memory_space<vmem>>, vector<2x16x16x128xbf16>
    tpu.vector_store %arg4[%c0_66, %c0_67, %c0_68, %c0_69], %35 {strides = array<i32>} : memref<2x16x16x128xbf16, #tpu.memory_space<vmem>>, vector<2x16x16x128xbf16>,
    return
  }
  func.func @transform_0(%arg0: i32) -> (i32, i32, i32, i32) {
    %c0_i32 = arith.constant 0 : i32
    %c0_i32_0 = arith.constant 0 : i32
    %c0_i32_1 = arith.constant 0 : i32
    %c0_i32_2 = arith.constant 0 : i32
    return %arg0, %c0_i32, %c0_i32_0, %c0_i32_1 : i32, i32, i32, i32
  }
  func.func @transform_1(%arg0: i32) -> (i32, i32) {
    %c0_i32 = arith.constant 0 : i32
    %c0_i32_0 = arith.constant 0 : i32
    %c0_i32_1 = arith.constant 0 : i32
    return %c0_i32, %c0_i32_0 : i32, i32
  }
  func.func @transform_2(%arg0: i32) -> (i32, i32) {
    %c0_i32 = arith.constant 0 : i32
    %c0_i32_0 = arith.constant 0 : i32
    %c0_i32_1 = arith.constant 0 : i32
    return %c0_i32, %c0_i32_0 : i32, i32
  }
  func.func @transform_3(%arg0: i32) -> (i32, i32, i32, i32) {
    %c0_i32 = arith.constant 0 : i32
    %c0_i32_0 = arith.constant 0 : i32
    %c0_i32_1 = arith.constant 0 : i32
    %c0_i32_2 = arith.constant 0 : i32
    return %arg0, %c0_i32, %c0_i32_0, %c0_i32_1 : i32, i32, i32, i32
  }
}

</mosaic_0001>

<bundles_post_ra>
// kernel: tpu_custom_call.1
= control target key start
LH: loop header
LB: loop body
LE: loop exit
PB: predicated region body
PF: predicated region fallthrough
CT: control target
= control target key end

     0   :  { %8 = vsyncpa [#allocation4], 0  ;;  %s10242_s0 = inlined_call_operand.hbm [shape: bf16[8,16,16,128], index: 0, kind: input, shape index: {}]   ;;  %s10243_s1 = inlined_call_operand.hbm [shape: bf16[1152,128], index: 1, kind: input, shape index: {}]   ;;  %s10244_s2 = inlined_call_operand.vmem [shape: f32[1,128], index: 2, kind: input, shape index: {}]   ;;  %s10245_s3 = inlined_call_operand.hbm [shape: bf16[8,16,16,128], index: 3, kind: output, shape index: {}]  }
   0x1   :  { %10 = vsyncpa [#allocation4 + $0x1], 0 }
   0x2   :  { %11 = vsyncpa [#allocation7], 0 }
   0x3   :  { %12 = vsyncpa [#allocation5], 0 }
   0x4   :  { %14 = vsyncpa [#allocation5 + $0x1], 0  ;;  %s8368_s12 = smov 0   ;;  %s8370_s13 = smov 0  }
   0x5   :  { %s8372_s14 = smov 0   ;;  %s8374_s15 = smov 0  }
   0x6 LB: > { %s8389_s16 = sadd.s32 4294967295, %s8340_s15   ;;  %s7007_s17 = sadd.s32 4294967294, %s8340_s15   ;;  %s8340_s15 = sphi %s8374_s15, %s10609_s15   ;;  %s8336_s14 = sphi %s8372_s14, %s10608_s14   ;;  %s8332_s13 = sphi %s8370_s13, %s10607_s13   ;;  %s8328_s12 = sphi %s8368_s12, %s10606_s12  }
   0x7   : > { %p40_p0 = scmp.ne.s32.totalorder %s8332_s13, %s8328_s12  ;;  %p41_p1 = scmp.eq.s32.totalorder %s8389_s16, 0 }
   0x8   : > { %p106_p2 = scmp.eq.s32.totalorder %s8389_s16, 3  ;;  %p112_p3 = scmp.eq.s32.totalorder %s7007_s17, 3 }
   0x9   : > { %p8398_p4 = por %p41_p1, %p40_p0  ;;  %p7008_p5 = scmp.ge.s32.totalorder %s8340_s15, 1 }
   0xa   : > { %p8403_p6 = por %p112_p3, %p40_p0  ;;  %p119_p7 = scmp.lt.s32.totalorder %s8340_s15, 5 }
   0xb   : > { %s130_s22 = sshll.u32 %s10243_s1, 4  ;;  %s8342_s24 = smov [#allocation6]   ;;  %s131_s22 = int_to_ptr.hbm [resolvable:$true] %s130_s22 }
   0xc   : > { %p8411_p8 = pnand %p7008_p5, %p119_p7  ;;  %s132_s25 = sshll.u32 %s8342_s24, 4  ;;  %s133_s25 = int_to_ptr.vmem [resolvable:$true] %s132_s25 }
   0xd   : > { %s8420_s26 = sadd.s32 1, %s8340_s15   ;;  %s8343_s27 = smov 64  }
   0xe   : > { %p7994_p9 = pneg %p8411_p8  ;;  %s8344_s28 = smov 4  }
   0xf   : > { %s24_s29 = ssub.s32 %s8340_s15, %s8420_s26  ;;  %s27_s30 = sadd.s32 1, %s8336_s14 }
  0x10   : > { %p7995_p10 = pnand %p7994_p9, %p41_p1  ;;  %p25_p11 = scmp.eq.s32.totalorder %s24_s29, 0 }
  0x11   : > { %p34_p12 = scmp.ne.s32.totalorder %s8336_s14, %s8332_s13  ;;  %p35_p13 = scmp.eq.s32.totalorder %s8340_s15, 0 }
  0x12   : > { %7997 = dma.hbm_to_vmem [thread:$0]  (!%p7995_p10), %s131_s22, 9216, %s133_s25, [#allocation7], %s8343_s27, %s8343_s27, %s8344_s28  }
  0x13   : > { %s8432_s4 = scalar_select %p25_p11, %s8336_s14, %s27_s30  }
  0x14   : > { %p8436_p0 = por %p106_p2, %p34_p12  ;;  %p8007_p3 = scmp.lt.s32.totalorder %s8340_s15, 4 }
  0x15   : > { %s149_s6 = sand.u32 1, %s8336_s14   ;;  %s7314_s7 = sshll.u32 %s8340_s15, 8 }
  0x16   : > { %p36_p5 = por %p35_p13, %p34_p12  ;;  %s7011_s8 = sshll.u32 %s149_s6, 8 }
  0x17   : > { %s159_s11 = scalar_lea.hbm %s10242_s0, %s7314_s7  ;;  %s153_s20 = scalar_lea.vmem [#allocation3], %s7011_s8 }
  0x18   : > { %s160_s17 = sshll.u32 %s159_s11, 4  ;;  %s162_s21 = sshll.u32 %s153_s20, 4  ;;  %s161_s17 = int_to_ptr.hbm [resolvable:$true] %s160_s17  ;;  %s163_s21 = int_to_ptr.vmem [resolvable:$true] %s162_s21 }
  0x19   : > { %p8446_p7 = pnand %p8007_p3, %p36_p5  ;;  %s150_s24 = scalar_lea.sflag [#allocation4], %s149_s6 }
  0x1a   : > { %s8240_s25 = sshra.s32 %s161_s17, 4  ;;  %s8247_s8 = scalar_lea.hbm %s10242_s0, 1024  ;;  %s8241_s25 = int_to_ptr.hbm [resolvable:$true] %s8240_s25 }
  0x1b   : > { %s8242_s29 = scalar_lea.hbm %s8241_s25, 256  ;;  %p8244_p9 = pneg %p8446_p7 }
  0x1c   : > { %p8243_p2 = scmp.ne.s32.totalorder %s8241_s25, %s8242_s29  ;;  %p8248_p12 = scmp.lt.s32.totalorder %s8241_s25, %s10242_s0 }
  0x1d   : > { %p8249_p13 = scmp.lt.s32.totalorder %s8247_s8, %s8242_s29 }
  0x1e   : > { %p8245_p10 = pnand %p8244_p9, %p8243_p2 }
  0x1f   : > { %p8250_p3 = por %p8249_p13, %p8248_p12 }
  0x20   : > { %p8246_p11 = pneg %p8245_p10 }
  0x22   : > { %p8251_p5 = pnand %p8250_p3, %p8246_p11 }
  0x24   : > { %8254 = shalt.err (!%p8251_p5)
}
  0x25   : > { %8001 = dma.hbm_to_vmem [thread:$0]  (!%p8446_p7), %s161_s17, 4096, %s163_s21, %s150_s24, %s8343_s27, %s8343_s27, %s8344_s28  }
  0x26   : > { %174 = sbr.rel (%p8411_p8) target bundleno = 1387 (0x56b), region = 32 }
  0x2b   : > { %s8466_s6 = sand.u32 1, %s8332_s13  }
  0x2c   : > { %s7016_s11 = sshll.u32 %s8466_s6, 8  ;;  %s177_s20 = scalar_lea.sflag [#allocation4], %s8466_s6 }
  0x2d   : > { %s8472_s25 = scalar_lea.vmem [#allocation3], %s7016_s11 }
  0x2e   : > { %8315 = dma.done.wait (%p8398_p4), %s177_s20, 4096  }
  0x2f   : > { %8317 = vsyncadd (%p8398_p4), %s177_s20, 4294963200 }
  0x30   : > { %8319 = dma.done.wait (%p41_p1), [#allocation7], 9216  }
  0x31   : > { %8321 = vsyncadd (%p41_p1), [#allocation7], 4294958080  ;;  %vm225_vm0 = vcmask 1040384   ;;  %vm226_vm1 = vsmask.f32 256  ;;  %v7346_v1 = vld [vmem:[#allocation6 + $0xf8] sm:$0xff] }
  0x32   : > { %vm336_vm2 = vsmask.f32 7938  ;;  %vm8488_vm4 = vmand %vm225_vm0, %vm226_vm1  ;;  %3733 = vmatpush.bf16.msra.mxu0 %v7346_v1  ;;  %7962 = vmatpush.bf16.msra.mxu1 %v7346_v1  ;;  %v7345_v3 = vld [vmem:[#allocation6 + $0xf0] sm:$0xff]  ;;  %v231_v4 = vld [vmem:[#allocation2 + $0xc] sm:$0x1]  ;;  %vm1153_vm6 = vcmask 1043456  }
  0x33   : > { %vm8483_vm3 = vmand %vm225_vm0, %vm336_vm2  ;;  %vm510_vm5 = vsmask.f32 4368  ;;  %7963 = vmatpush.bf16.msra.mxu2 %v7346_v1  ;;  %7964 = vmatpush.bf16.msra.mxu3 %v7346_v1  ;;  %v232_v5 = vsel %vm8488_vm4, 0, %v231_v4  ;;  %v446_v6 = vld [vmem:[%s8472_s25] sm:$0xf]  ;;  %v7344_v8 = vld [vmem:[#allocation6 + $0xe8] sm:$0xff] }
  0x34   : > { %v447_v7 = vld [vmem:[%s8472_s25 + $0x4] sm:$0xf]  ;;  %233 = vst [vmem:[#allocation2 + $0xc] sm:$0x1] %v232_v5  ;;  %v513_v9 = vshrl.u32 %v446_v6, 16  ;;  %v516_v10 = vshll.u32 %v446_v6, 16  ;;  %vm8504_vm7 = vmor %vm226_vm1, %vm510_vm5 }
  0x35   : > { %v521_v11 = vshrl.u32 %v447_v7, 16  ;;  %v524_v12 = vshll.u32 %v447_v7, 16  ;;  %v255_v13 = vld [vmem:[#allocation2 + $0x6c] sm:$0x1]  ;;  %v462_v14 = vld [vmem:[%s8472_s25 + $0x40] sm:$0xf]  ;;  %vm8514_vm8 = vmand %vm1153_vm6, %vm336_vm2 }
  0x36   : > { %v463_v15 = vld [vmem:[%s8472_s25 + $0x44] sm:$0xf]  ;;  %3734 = vmatpush.bf16.msra.mxu0 %v7345_v3  ;;  %7965 = vmatpush.bf16.msra.mxu1 %v7345_v3  ;;  %v515_v16 = vrot.slane %v513_v9, 7  ;;  %v256_v18 = vsel %vm8488_vm4, 0, %v255_v13  ;;  %v649_v19 = vshrl.u32 %v462_v14, 16  ;;  %v652_v22 = vshll.u32 %v462_v14, 16 }
  0x37   : > { %v8498_v17 = vrot.slane %v521_v11, 7  ;;  %v285_v20 = vld [vmem:[#allocation2 + $0xe4] sm:$0x1]  ;;  %7966 = vmatpush.bf16.msra.mxu2 %v7345_v3  ;;  %7967 = vmatpush.bf16.msra.mxu3 %v7345_v3  ;;  %257 = vst [vmem:[#allocation2 + $0x6c] sm:$0x1] %v256_v18  ;;  %v657_v23 = vshrl.u32 %v463_v15, 16 }
  0x38   : > { %v660_v24 = vshll.u32 %v463_v15, 16  ;;  %v286_v25 = vsel %vm8488_vm4, 0, %v285_v20  ;;  %v7343_v26 = vld [vmem:[#allocation6 + $0xe0] sm:$0xff]  ;;  %v518_v27 = vor.u32 %v516_v10, %v515_v16  ;;  %v519_v28 = vrot.slane %v515_v16, 4  ;;  %v309_v40 = vld [vmem:[#allocation2 + $0x144] sm:$0x1] }
  0x39   : > { %v526_v29 = vor.u32 %v524_v12, %v8498_v17  ;;  %287 = vst [vmem:[#allocation2 + $0xe4] sm:$0x1] %v286_v25  ;;  %v478_v30 = vld [vmem:[%s8472_s25 + $0x80] sm:$0xf]  ;;  %v651_v32 = vrot.slane %v649_v19, 7  ;;  %v8518_v33 = vrot.slane %v657_v23, 7 }
  0x3a   : > { %v479_v34 = vld [vmem:[%s8472_s25 + $0x84] sm:$0xf]  ;;  %v785_v35 = vshrl.u32 %v478_v30, 16  ;;  %v788_v36 = vshll.u32 %v478_v30, 16  ;;  %3735 = vmatpush.bf16.msra.mxu0 %v7344_v8  ;;  %7968 = vmatpush.bf16.msra.mxu1 %v7344_v8  ;;  %v494_v41 = vld [vmem:[%s8472_s25 + $0xc0] sm:$0xf] }
  0x3b   : > { %v527_v37 = vsel %vm8504_vm7, %v519_v28, %v526_v29  ;;  %v793_v38 = vshrl.u32 %v479_v34, 16  ;;  %v796_v39 = vshll.u32 %v479_v34, 16  ;;  %7969 = vmatpush.bf16.msra.mxu2 %v7344_v8  ;;  %7970 = vmatpush.bf16.msra.mxu3 %v7344_v8  ;;  %v1155_v42 = vld [vmem:[#allocation2 + $0xc] sm:$0xf]  ;;  %v654_v43 = vor.u32 %v652_v22, %v651_v32  ;;  %v495_v50 = vld [vmem:[%s8472_s25 + $0xc4] sm:$0xf] }
  0x3c   : > { %1158 = vst [vmem:[#allocation2 + $0x10] sm:$0xf] %v527_v37  ;;  %v655_v44 = vrot.slane %v651_v32, 4  ;;  %v662_v45 = vor.u32 %v660_v24, %v8518_v33  ;;  %v1156_v46 = vsel %vm8514_vm8, %v518_v27, %v1155_v42  ;;  %v787_v47 = vrot.slane %v785_v35, 7  ;;  %v7342_v51 = vld [vmem:[#allocation6 + $0xd8] sm:$0xff]  ;;  %v7341_v7 = vld [vmem:[#allocation6 + $0xd0] sm:$0xff] }
  0x3d   : > { %v8527_v48 = vrot.slane %v793_v38, 7  ;;  %v310_v49 = vsel %vm8488_vm4, 0, %v309_v40  ;;  %1157 = vst [vmem:[#allocation2 + $0xc] sm:$0xf] %v1156_v46  ;;  %v921_v53 = vshrl.u32 %v494_v41, 16  ;;  %v929_v54 = vshrl.u32 %v495_v50, 16 }
  0x3e   : > { %v663_v52 = vsel %vm8504_vm7, %v655_v44, %v662_v45  ;;  %3736 = vmatpush.bf16.msra.mxu0 %v7343_v26  ;;  %7971 = vmatpush.bf16.msra.mxu1 %v7343_v26  ;;  %v1211_v55 = vld [vmem:[#allocation2 + $0x6c] sm:$0xf]  ;;  %v790_v56 = vor.u32 %v788_v36, %v787_v47  ;;  %v791_v57 = vrot.slane %v787_v47, 4  ;;  %v924_v59 = vshll.u32 %v494_v41, 16  ;;  %311 = vst [vmem:[#allocation2 + $0x144] sm:$0x1] %v310_v49 }
  0x3f   : > { %1214 = vst [vmem:[#allocation2 + $0x70] sm:$0xf] %v663_v52  ;;  %v798_v58 = vor.u32 %v796_v39, %v8527_v48  ;;  %7972 = vmatpush.bf16.msra.mxu2 %v7343_v26  ;;  %7973 = vmatpush.bf16.msra.mxu3 %v7343_v26  ;;  %v1212_v60 = vsel %vm8514_vm8, %v654_v43, %v1211_v55  ;;  %v923_v62 = vrot.slane %v921_v53, 7  ;;  %v8537_v63 = vrot.slane %v929_v54, 7  ;;  %v234_v6 = vld [vmem:[#allocation2 + $0x18] sm:$0x1] }
  0x40   : > { %v1267_v61 = vld [vmem:[#allocation2 + $0xe4] sm:$0xf]  ;;  %1213 = vst [vmem:[#allocation2 + $0x6c] sm:$0xf] %v1212_v60  ;;  %v932_v4 = vshll.u32 %v495_v50, 16  ;;  %v235_v9 = vsel %vm8488_vm4, 0, %v234_v6 }
  0x41   : > { %10308 = vst [vmem:[#allocation12_spill] sm:$0xff] %v8537_v63  ;;  %v799_v1 = vsel %vm8504_vm7, %v791_v57, %v798_v58  ;;  %v1268_v3 = vsel %vm8514_vm8, %v790_v56, %v1267_v61  ;;  %v927_v5 = vrot.slane %v923_v62, 4  ;;  %v448_v10 = vld [vmem:[%s8472_s25 + $0x8] sm:$0xf]  ;;  %v926_v11 = vor.u32 %v924_v59, %v923_v62  ;;  %v449_v12 = vld [vmem:[%s8472_s25 + $0xc] sm:$0xf] }
  0x42   : > { %1269 = vst [vmem:[#allocation2 + $0xe4] sm:$0xf] %v1268_v3  ;;  %3737 = vmatpush.bf16.msra.mxu0 %v7342_v51  ;;  %7974 = vmatpush.bf16.msra.mxu1 %v7342_v51  ;;  %v934_v8 = vor.u32 %v932_v4, %v8537_v63  ;;  %v530_v13 = vshrl.u32 %v448_v10, 16  ;;  %v533_v14 = vshll.u32 %v448_v10, 16  ;;  %v7340_v15 = vld [vmem:[#allocation6 + $0xc8] sm:$0xff]  ;;  %v538_v20 = vshrl.u32 %v449_v12, 16 }
  0x43   : > { %1270 = vst [vmem:[#allocation2 + $0xe8] sm:$0xf] %v799_v1  ;;  %7975 = vmatpush.bf16.msra.mxu2 %v7342_v51  ;;  %7976 = vmatpush.bf16.msra.mxu3 %v7342_v51  ;;  %v8550_v18 = vld [vmem:[#allocation2 + $0xc] sm:$0xf0]  ;;  %v541_v22 = vshll.u32 %v449_v12, 16  ;;  %v7362_v51 = vld [vmem:[#allocation6 + $0x178] sm:$0xff] }
  0x44   : > { %236 = vst [vmem:[#allocation2 + $0x18] sm:$0x1] %v235_v9  ;;  %v8548_v16 = vld [vmem:[#allocation2 + $0xc] sm:$0xff]   ;;  %v935_v19 = vsel %vm8504_vm7, %v927_v5, %v934_v8  ;;  %v258_v23 = vld [vmem:[#allocation2 + $0x78] sm:$0x1]  ;;  %v532_v24 = vrot.slane %v530_v13, 7 }
  0x45   : > { %1326 = vst [vmem:[#allocation2 + $0x148] sm:$0xf] %v935_v19  ;;  %v259_v25 = vsel %vm8488_vm4, 0, %v258_v23  ;;  %v464_v26 = vld [vmem:[%s8472_s25 + $0x48] sm:$0xf]  ;;  %v8557_v28 = vrot.slane %v538_v20, 7 }
  0x46   : > { %3738 = vmatpush.bf16.msra.mxu0 %v7341_v7  ;;  %7977 = vmatpush.bf16.msra.mxu1 %v7341_v7  ;;  %v1323_v27 = vld [vmem:[#allocation2 + $0x144] sm:$0xf]  ;;  %260 = vst [vmem:[#allocation2 + $0x78] sm:$0x1] %v259_v25  ;;  %v666_v29 = vshrl.u32 %v464_v26, 16  ;;  %v535_v35 = vor.u32 %v533_v14, %v532_v24  ;;  %v536_v36 = vrot.slane %v532_v24, 4 }
  0x47   : > { %7978 = vmatpush.bf16.msra.mxu2 %v7341_v7  ;;  %7979 = vmatpush.bf16.msra.mxu3 %v7341_v7  ;;  %v8559_v30 = vld [vmem:[#allocation2 + $0x6c] sm:$0xff]   ;;  %v1324_v34 = vsel %vm8514_vm8, %v926_v11, %v1323_v27  ;;  %v465_v37 = vld [vmem:[%s8472_s25 + $0x4c] sm:$0xf]  ;;  %v543_v39 = vor.u32 %v541_v22, %v8557_v28  ;;  %v669_v43 = vshll.u32 %v464_v26, 16  ;;  %v480_v49 = vld [vmem:[%s8472_s25 + $0x88] sm:$0xf] }
  0x48   : > { %v8561_v32 = vld [vmem:[#allocation2 + $0x6c] sm:$0xf0]  ;;  %1325 = vst [vmem:[#allocation2 + $0x144] sm:$0xf] %v1324_v34  ;;  %v668_v42 = vrot.slane %v666_v29, 7  ;;  %v674_v44 = vshrl.u32 %v465_v37, 16 }
  0x49   : > { %v7339_v38 = vld [vmem:[#allocation6 + $0xc0] sm:$0xff]  ;;  %v544_v46 = vsel %vm8504_vm7, %v536_v36, %v543_v39  ;;  %v481_v50 = vld [vmem:[%s8472_s25 + $0x8c] sm:$0xf]  ;;  %v7322_v56 = vld [vmem:[#allocation6 + $0x38] sm:$0xff]  ;;  %v677_v58 = vshll.u32 %v465_v37, 16  ;;  %v802_v62 = vshrl.u32 %v480_v49, 16 }
  0x4a   : > { %v8567_v40 = vld [vmem:[#allocation2 + $0xe4] sm:$0xff]   ;;  %v288_v45 = vld [vmem:[#allocation2 + $0xf0] sm:$0x1]  ;;  %3739 = vmatpush.bf16.msra.mxu0 %v7340_v15  ;;  %7980 = vmatpush.bf16.msra.mxu1 %v7340_v15  ;;  %1165 = vst [vmem:[#allocation2 + $0x1c] sm:$0xf] %v544_v46  ;;  %v671_v53 = vor.u32 %v669_v43, %v668_v42  ;;  %v8577_v54 = vrot.slane %v674_v44, 7 }
  0x4b   : > { %v8569_v41 = vld [vmem:[#allocation2 + $0xe4] sm:$0xf0]  ;;  %v1162_v47 = vld [vmem:[#allocation2 + $0x18] sm:$0xf]  ;;  %7981 = vmatpush.bf16.msra.mxu2 %v7340_v15  ;;  %7982 = vmatpush.bf16.msra.mxu3 %v7340_v15  ;;  %v312_v55 = vld [vmem:[#allocation2 + $0x150] sm:$0x1] }
  0x4c   : > { %10309 = vst [vmem:[#allocation13_spill] sm:$0xff] %v8569_v41  ;;  %v1163_v52 = vsel %vm8514_vm8, %v535_v35, %v1162_v47  ;;  %v672_v57 = vrot.slane %v668_v42, 4  ;;  %v289_v59 = vsel %vm8488_vm4, 0, %v288_v45  ;;  %v7354_v60 = vld [vmem:[#allocation6 + $0x138] sm:$0xff]  ;;  %v679_v3 = vor.u32 %v677_v58, %v8577_v54  ;;  %v496_v6 = vld [vmem:[%s8472_s25 + $0xc8] sm:$0xf] }
  0x4d   : > { %1164 = vst [vmem:[#allocation2 + $0x18] sm:$0xf] %v1163_v52  ;;  %v1218_v61 = vld [vmem:[#allocation2 + $0x78] sm:$0xf]  ;;  %v7330_v1 = vld [vmem:[#allocation6 + $0x78] sm:$0xff]  ;;  %v805_v5 = vshll.u32 %v480_v49, 16 }
  0x4e   : > { %290 = vst [vmem:[#allocation2 + $0xf0] sm:$0x1] %v289_v59  ;;  %3740 = vmatpush.bf16.msra.mxu0 %v7339_v38  ;;  %7983 = vmatpush.bf16.msra.mxu1 %v7339_v38  ;;  %v1219_v4 = vsel %vm8514_vm8, %v671_v53, %v1218_v61  ;;  %v497_v7 = vld [vmem:[%s8472_s25 + $0xcc] sm:$0xf]  ;;  %v8588_v9 = vld [vmem:[#allocation2 + $0x144] sm:$0xf0]  ;;  %v680_v13 = vsel %vm8504_vm7, %v672_v57, %v679_v3 }
  0x4f   : > { %7984 = vmatpush.bf16.msra.mxu2 %v7339_v38  ;;  %7985 = vmatpush.bf16.msra.mxu3 %v7339_v38  ;;  %v8586_v8 = vld [vmem:[#allocation2 + $0x144] sm:$0xff]   ;;  %10311 = vst [vmem:[#allocation15_spill] sm:$0xff] %v8588_v9  ;;  %v804_v10 = vrot.slane %v802_v62, 7  ;;  %v810_v11 = vshrl.u32 %v481_v50, 16  ;;  %v813_v12 = vshll.u32 %v481_v50, 16  ;;  %v313_v14 = vsel %vm8488_vm4, 0, %v312_v55 }
  0x50   : > { %10310 = vst [vmem:[#allocation14_spill] sm:$0xff] %v8586_v8  ;;  %v7361_v15 = vld [vmem:[#allocation6 + $0x170] sm:$0xff]  ;;  %v938_v24 = vshrl.u32 %v496_v6, 16  ;;  %v941_v26 = vshll.u32 %v496_v6, 16  ;;  %v946_v27 = vshrl.u32 %v497_v7, 16  ;;  %v949_v29 = vshll.u32 %v497_v7, 16 }
  0x51   : > { %1220 = vst [vmem:[#allocation2 + $0x78] sm:$0xf] %v1219_v4  ;;  %v237_v19 = vld [vmem:[#allocation2 + $0x24] sm:$0x1]  ;;  %3741 = vmatmul.bf16.vlgmr.msra.gmra.mxu0 %v8548_v16  ;;  %3781 = vmatmul.bf16.vlgmr.msra.gmra.mxu1 %v8559_v30  ;;  %v807_v20 = vor.u32 %v805_v5, %v804_v10  ;;  %v808_v22 = vrot.slane %v804_v10, 4  ;;  %v8596_v23 = vrot.slane %v810_v11, 7 }
  0x52   : > { %1221 = vst [vmem:[#allocation2 + $0x7c] sm:$0xf] %v680_v13  ;;  %v7321_v25 = vld [vmem:[#allocation6 + $0x30] sm:$0xff]  ;;  %3821 = vmatmul.bf16.vlgmr.msra.gmra.mxu2 %v8567_v40  ;;  %3902 = vmatpush.bf16.msrb.mxu1 %v7354_v60  ;;  %v940_v36 = vrot.slane %v938_v24, 7  ;;  %v238_v38 = vsel %vm8488_vm4, 0, %v237_v19  ;;  %v8604_v43 = vrot.slane %v946_v27, 7 }
  0x53   : > { %4071 = vmatpush.bf16.msrb.mxu2 %v7362_v51  ;;  %4384 = vmatpush.bf16.msrb.mxu3 %v7322_v56  ;;  %314 = vst [vmem:[#allocation2 + $0x150] sm:$0x1] %v313_v14  ;;  %v7353_v34 = vld [vmem:[#allocation6 + $0x130] sm:$0xff]  ;;  %v815_v35 = vor.u32 %v813_v12, %v8596_v23  ;;  %v291_v6 = vld [vmem:[#allocation2 + $0xfc] sm:$0x1]  ;;  %vm2308_vm9 = vcmask 1046528  }
  0x54   : > { %4553 = vmatpush.bf16.msrb.mxu0 %v7330_v1  ;;  %v7329_v37 = vld [vmem:[#allocation6 + $0x70] sm:$0xff]  ;;  %3861 = vmatmul.bf16.vlgmr.msra.gmra.mxu3 %v8586_v8  ;;  %10312 = vst [vmem:[#allocation16_spill] sm:$0xff] %v8604_v43  ;;  %v944_v47 = vrot.slane %v940_v36, 4  ;;  %v943_v50 = vor.u32 %v941_v26, %v940_v36  ;;  %v951_v51 = vor.u32 %v949_v29, %v8604_v43  ;;  %v7804_v12 = vld [vmem:[#allocation2 + $0x18] sm:$0xff]   ;;  %v292_v19 = vsel %vm8488_vm4, 0, %v291_v6  ;;  %s9846_s27 = scalar_lea.vmem [#allocation8], %s7016_s11 }
  0x55   : > { %v450_v39 = vld [vmem:[%s8472_s25 + $0x10] sm:$0xf]  ;;  %v1274_v42 = vld [vmem:[#allocation2 + $0xf0] sm:$0xf]  ;;  %v451_v44 = vld [vmem:[%s8472_s25 + $0x14] sm:$0xf]  ;;  %v816_v45 = vsel %vm8504_vm7, %v808_v22, %v815_v35 }
  0x56   : > { %v1275_v46 = vsel %vm8514_vm8, %v807_v20, %v1274_v42  ;;  %239 = vst [vmem:[#allocation2 + $0x24] sm:$0x1] %v238_v38  ;;  %v261_v49 = vld [vmem:[#allocation2 + $0x84] sm:$0x1]  ;;  %3903 = vmatpush.bf16.msrb.mxu1 %v7353_v34  ;;  %v547_v52 = vshrl.u32 %v450_v39, 16  ;;  %v550_v53 = vshll.u32 %v450_v39, 16  ;;  %v952_v57 = vsel %vm8504_vm7, %v944_v47, %v951_v51 }
  0x57   : > { %4072 = vmatpush.bf16.msrb.mxu2 %v7361_v15  ;;  %4385 = vmatpush.bf16.msrb.mxu3 %v7321_v25  ;;  %1276 = vst [vmem:[#allocation2 + $0xf0] sm:$0xf] %v1275_v46  ;;  %v555_v55 = vshrl.u32 %v451_v44, 16  ;;  %v262_v56 = vsel %vm8488_vm4, 0, %v261_v49  ;;  %v558_v59 = vshll.u32 %v451_v44, 16  ;;  %v7360_v20 = vld [vmem:[#allocation6 + $0x168] sm:$0xff] }
  0x58   : > { %1277 = vst [vmem:[#allocation2 + $0xf4] sm:$0xf] %v816_v45  ;;  %4554 = vmatpush.bf16.msrb.mxu0 %v7329_v37  ;;  %v549_v58 = vrot.slane %v547_v52, 7  ;;  %v466_v60 = vld [vmem:[%s8472_s25 + $0x50] sm:$0xf]  ;;  %v7320_v39 = vld [vmem:[#allocation6 + $0x28] sm:$0xff] }
  0x59   : > { %263 = vst [vmem:[#allocation2 + $0x84] sm:$0x1] %v262_v56  ;;  %v8619_v4 = vrot.slane %v555_v55, 7  ;;  %v467_v5 = vld [vmem:[%s8472_s25 + $0x54] sm:$0xf]  ;;  %v683_v7 = vshrl.u32 %v466_v60, 16 }
  0x5a   : > { %v1330_v61 = vld [vmem:[#allocation2 + $0x150] sm:$0xf]  ;;  %1333 = vst [vmem:[#allocation2 + $0x154] sm:$0xf] %v952_v57  ;;  %v552_v1 = vor.u32 %v550_v53, %v549_v58  ;;  %v553_v3 = vrot.slane %v549_v58, 4  ;;  %v686_v10 = vshll.u32 %v466_v60, 16 }
  0x5b   : > { %v1331_v62 = vsel %vm8514_vm8, %v943_v50, %v1330_v61  ;;  %v691_v11 = vshrl.u32 %v467_v5, 16  ;;  %v560_v13 = vor.u32 %v558_v59, %v8619_v4  ;;  %v694_v15 = vshll.u32 %v467_v5, 16  ;;  %293 = vst [vmem:[#allocation2 + $0xfc] sm:$0x1] %v292_v19  ;;  %v482_v26 = vld [vmem:[%s8472_s25 + $0x90] sm:$0xf]  ;;  %4073 = vmatpush.bf16.msrb.mxu2 %v7360_v20  ;;  %4386 = vmatpush.bf16.msrb.mxu3 %v7320_v39 }
  0x5c   : > { %1332 = vst [vmem:[#allocation2 + $0x150] sm:$0xf] %v1331_v62  ;;  %v685_v24 = vrot.slane %v683_v7, 7  ;;  %v7808_v27 = vld [vmem:[#allocation2 + $0x78] sm:$0xff]   ;;  %v483_v34 = vld [vmem:[%s8472_s25 + $0x94] sm:$0xf] }
  0x5d   : > { %v1169_v14 = vld [vmem:[#allocation2 + $0x24] sm:$0xf]  ;;  %v8627_v25 = vrot.slane %v691_v11, 7  ;;  %v561_v29 = vsel %vm8504_vm7, %v553_v3, %v560_v13  ;;  %v819_v35 = vshrl.u32 %v482_v26, 16  ;;  %v822_v46 = vshll.u32 %v482_v26, 16  ;;  %v7352_v47 = vld [vmem:[#allocation6 + $0x128] sm:$0xff] }
  0x5e   : > { %v1170_v22 = vsel %vm8514_vm8, %v552_v1, %v1169_v14  ;;  %1172 = vst [vmem:[#allocation2 + $0x28] sm:$0xf] %v561_v29  ;;  %v688_v37 = vor.u32 %v686_v10, %v685_v24  ;;  %v689_v38 = vrot.slane %v685_v24, 4  ;;  %v827_v50 = vshrl.u32 %v483_v34, 16  ;;  %v315_v52 = vld [vmem:[#allocation2 + $0x15c] sm:$0x1]  ;;  %3904 = vmatpush.bf16.msrb.mxu1 %v7352_v47 }
  0x5f   : > { %1171 = vst [vmem:[#allocation2 + $0x24] sm:$0xf] %v1170_v22  ;;  %v7812_v36 = vld [vmem:[#allocation2 + $0xf0] sm:$0xff]   ;;  %v696_v42 = vor.u32 %v694_v15, %v8627_v25  ;;  %v821_v45 = vrot.slane %v819_v35, 7  ;;  %v830_v51 = vshll.u32 %v483_v34, 16  ;;  %v7328_v53 = vld [vmem:[#allocation6 + $0x68] sm:$0xff] }
  0x60   : > { %v1225_v44 = vld [vmem:[#allocation2 + $0x84] sm:$0xf]  ;;  %v316_v58 = vsel %vm8488_vm4, 0, %v315_v52  ;;  %v8640_v60 = vrot.slane %v827_v50, 7  ;;  %4555 = vmatpush.bf16.msrb.mxu0 %v7328_v53  ;;  %v498_v62 = vld [vmem:[%s8472_s25 + $0xd0] sm:$0xf] }
  0x61   : > { %3746 = vmatmul.bf16.gmra.mxu0 %v7804_v12  ;;  %3786 = vmatmul.bf16.gmra.mxu1 %v7808_v27  ;;  %v1226_v49 = vsel %vm8514_vm8, %v688_v37, %v1225_v44  ;;  %v697_v56 = vsel %vm8504_vm7, %v689_v38, %v696_v42  ;;  %v824_v57 = vor.u32 %v822_v46, %v821_v45  ;;  %v825_v59 = vrot.slane %v821_v45, 4  ;;  %v499_v5 = vld [vmem:[%s8472_s25 + $0xd4] sm:$0xf]  ;;  %v240_v6 = vld [vmem:[#allocation2 + $0x30] sm:$0x1]  ;;  %s7388_s24 = sshll.u32 %s8389_s16, 8 }
  0x62   : > { %3826 = vmatmul.bf16.gmra.mxu2 %v7812_v36  ;;  %1227 = vst [vmem:[#allocation2 + $0x84] sm:$0xf] %v1226_v49  ;;  %v1281_v61 = vld [vmem:[#allocation2 + $0xfc] sm:$0xf]  ;;  %v832_v1 = vor.u32 %v830_v51, %v8640_v60  ;;  %v955_v11 = vshrl.u32 %v498_v62, 16  ;;  %v958_v12 = vshll.u32 %v498_v62, 16  ;;  %s6920_s7 = scalar_lea.hbm %s10245_s3, %s7388_s24 }
  0x63   : > { %v7816_v55 = vld [vmem:[#allocation2 + $0x150] sm:$0xff]   ;;  %1228 = vst [vmem:[#allocation2 + $0x88] sm:$0xf] %v697_v56  ;;  %v1282_v3 = vsel %vm8514_vm8, %v824_v57, %v1281_v61  ;;  %v963_v13 = vshrl.u32 %v499_v5, 16  ;;  %v452_v15 = vld [vmem:[%s8472_s25 + $0x18] sm:$0xf] }
  0x64   : > { %3866 = vmatmul.bf16.gmra.mxu3 %v7816_v55  ;;  %317 = vst [vmem:[#allocation2 + $0x15c] sm:$0x1] %v316_v58  ;;  %v833_v14 = vsel %vm8504_vm7, %v825_v59, %v832_v1  ;;  %v453_v19 = vld [vmem:[%s8472_s25 + $0x1c] sm:$0xf]  ;;  %v264_v20 = vld [vmem:[#allocation2 + $0x90] sm:$0x1] }
  0x65   : > { %v8649_v10 = vld [vmem:[#allocation2 + $0x24] sm:$0xf0]  ;;  %1283 = vst [vmem:[#allocation2 + $0xfc] sm:$0xf] %v1282_v3  ;;  %v957_v22 = vrot.slane %v955_v11, 7  ;;  %v8655_v24 = vrot.slane %v963_v13, 7 }
  0x66   : > { %v8647_v7 = vld [vmem:[#allocation2 + $0x24] sm:$0xff]   ;;  %1284 = vst [vmem:[#allocation2 + $0x100] sm:$0xf] %v833_v14  ;;  %v966_v26 = vshll.u32 %v499_v5, 16  ;;  %v241_v27 = vsel %vm8488_vm4, 0, %v240_v6  ;;  %v564_v29 = vshrl.u32 %v452_v15, 16 }
  0x67   : > { %10313 = vst [vmem:[#allocation17_spill] sm:$0xff] %v8655_v24  ;;  %v567_v34 = vshll.u32 %v452_v15, 16  ;;  %v572_v35 = vshrl.u32 %v453_v19, 16  ;;  %v960_v38 = vor.u32 %v958_v12, %v957_v22  ;;  %v961_v39 = vrot.slane %v957_v22, 4  ;;  %v468_v44 = vld [vmem:[%s8472_s25 + $0x58] sm:$0xf] }
  0x68   : > { %242 = vst [vmem:[#allocation2 + $0x30] sm:$0x1] %v241_v27  ;;  %v968_v42 = vor.u32 %v966_v26, %v8655_v24  ;;  %v566_v46 = vrot.slane %v564_v29, 7  ;;  %v469_v49 = vld [vmem:[%s8472_s25 + $0x5c] sm:$0xf]  ;;  %v575_v52 = vshll.u32 %v453_v19, 16 }
  0x69   : > { %v8665_v47 = vrot.slane %v572_v35, 7  ;;  %v265_v53 = vsel %vm8488_vm4, 0, %v264_v20  ;;  %v294_v55 = vld [vmem:[#allocation2 + $0x108] sm:$0x1]  ;;  %v485_v59 = vld [vmem:[%s8472_s25 + $0x9c] sm:$0xf] }
  0x6a   : > { %v8659_v36 = vld [vmem:[#allocation2 + $0x84] sm:$0xff]   ;;  %v969_v50 = vsel %vm8504_vm7, %v961_v39, %v968_v42  ;;  %v569_v57 = vor.u32 %v567_v34, %v566_v46  ;;  %v570_v58 = vrot.slane %v566_v46, 4  ;;  %v700_v62 = vshrl.u32 %v468_v44, 16  ;;  %v7359_v3 = vld [vmem:[#allocation6 + $0x160] sm:$0xff]  ;;  %266 = vst [vmem:[#allocation2 + $0x90] sm:$0x1] %v265_v53 }
  0x6b   : > { %v8661_v37 = vld [vmem:[#allocation2 + $0x84] sm:$0xf0]  ;;  %v1337_v45 = vld [vmem:[#allocation2 + $0x15c] sm:$0xf]  ;;  %1340 = vst [vmem:[#allocation2 + $0x160] sm:$0xf] %v969_v50  ;;  %v577_v61 = vor.u32 %v575_v52, %v8665_v47  ;;  %4074 = vmatpush.bf16.msrb.mxu2 %v7359_v3 }
  0x6c   : > { %v1338_v51 = vsel %vm8514_vm8, %v960_v38, %v1337_v45  ;;  %v484_v56 = vld [vmem:[%s8472_s25 + $0x98] sm:$0xf]  ;;  %v708_v1 = vshrl.u32 %v469_v49, 16  ;;  %v703_v11 = vshll.u32 %v468_v44, 16  ;;  %v711_v12 = vshll.u32 %v469_v49, 16  ;;  %v7319_v20 = vld [vmem:[#allocation6 + $0x20] sm:$0xff] }
  0x6d   : > { %1339 = vst [vmem:[#allocation2 + $0x15c] sm:$0xf] %v1338_v51  ;;  %v8677_v5 = vld [vmem:[#allocation2 + $0xfc] sm:$0xff]   ;;  %v295_v13 = vsel %vm8488_vm4, 0, %v294_v55  ;;  %v578_v14 = vsel %vm8504_vm7, %v570_v58, %v577_v61  ;;  %v702_v19 = vrot.slane %v700_v62, 7  ;;  %v836_v27 = vshrl.u32 %v484_v56, 16  ;;  %4387 = vmatpush.bf16.msrb.mxu3 %v7319_v20 }
  0x6e   : > { %10314 = vst [vmem:[#allocation18_spill] sm:$0xff] %v8677_v5  ;;  %v8679_v6 = vld [vmem:[#allocation2 + $0xfc] sm:$0xf0]  ;;  %v8689_v26 = vrot.slane %v708_v1, 7  ;;  %v839_v29 = vshll.u32 %v484_v56, 16  ;;  %v7351_v34 = vld [vmem:[#allocation6 + $0x120] sm:$0xff] }
  0x6f   : > { %10315 = vst [vmem:[#allocation19_spill] sm:$0xff] %v8679_v6  ;;  %v1176_v15 = vld [vmem:[#allocation2 + $0x30] sm:$0xf]  ;;  %v706_v35 = vrot.slane %v702_v19, 4  ;;  %v844_v38 = vshrl.u32 %v485_v59, 16  ;;  %v705_v42 = vor.u32 %v703_v11, %v702_v19  ;;  %v838_v45 = vrot.slane %v836_v27, 7  ;;  %3905 = vmatpush.bf16.msrb.mxu1 %v7351_v34 }
  0x70   : > { %296 = vst [vmem:[#allocation2 + $0x108] sm:$0x1] %v295_v13  ;;  %v1177_v22 = vsel %vm8514_vm8, %v569_v57, %v1176_v15  ;;  %v318_v39 = vld [vmem:[#allocation2 + $0x168] sm:$0x1]  ;;  %v713_v44 = vor.u32 %v711_v12, %v8689_v26  ;;  %v847_v46 = vshll.u32 %v485_v59, 16  ;;  %v7327_v50 = vld [vmem:[#allocation6 + $0x60] sm:$0xff] }
  0x71   : > { %3751 = vmatmul.bf16.gmra.mxu0 %v8647_v7  ;;  %3791 = vmatmul.bf16.gmra.mxu1 %v8659_v36  ;;  %1179 = vst [vmem:[#allocation2 + $0x34] sm:$0xf] %v578_v14  ;;  %v500_v49 = vld [vmem:[%s8472_s25 + $0xd8] sm:$0xf]  ;;  %v8694_v51 = vrot.slane %v844_v38, 7  ;;  %v319_v52 = vsel %vm8488_vm4, 0, %v318_v39  ;;  %v841_v59 = vor.u32 %v839_v29, %v838_v45 }
  0x72   : > { %1178 = vst [vmem:[#allocation2 + $0x30] sm:$0xf] %v1177_v22  ;;  %3831 = vmatmul.bf16.gmra.mxu2 %v8677_v5  ;;  %v501_v53 = vld [vmem:[%s8472_s25 + $0xdc] sm:$0xf]  ;;  %v972_v55 = vshrl.u32 %v500_v49, 16  ;;  %v714_v58 = vsel %vm8504_vm7, %v706_v35, %v713_v44  ;;  %v842_v61 = vrot.slane %v838_v45, 4  ;;  %4556 = vmatpush.bf16.msrb.mxu0 %v7327_v50 }
  0x73   : > { %10316 = vst [vmem:[#allocation20_spill] sm:$0xff] %v8694_v51  ;;  %v8701_v57 = vld [vmem:[#allocation2 + $0x15c] sm:$0xf0]  ;;  %v975_v62 = vshll.u32 %v500_v49, 16  ;;  %v1232_v1 = vld [vmem:[#allocation2 + $0x90] sm:$0xf]  ;;  %v849_v3 = vor.u32 %v847_v46, %v8694_v51 }
  0x74   : > { %v8699_v56 = vld [vmem:[#allocation2 + $0x15c] sm:$0xff]   ;;  %10318 = vst [vmem:[#allocation22_spill] sm:$0xff] %v8701_v57  ;;  %v1233_v11 = vsel %vm8514_vm8, %v705_v42, %v1232_v1  ;;  %v974_v13 = vrot.slane %v972_v55, 7  ;;  %v980_v14 = vshrl.u32 %v501_v53, 16  ;;  %v983_v15 = vshll.u32 %v501_v53, 16  ;;  %v7355_v5 = vld [vmem:[#allocation6 + $0x140] sm:$0xff] }
  0x75   : > { %10317 = vst [vmem:[#allocation21_spill] sm:$0xff] %v8699_v56  ;;  %v850_v19 = vsel %vm8504_vm7, %v842_v61, %v849_v3  ;;  %v243_v22 = vld [vmem:[#allocation2 + $0x3c] sm:$0x1]  ;;  %v454_v27 = vld [vmem:[%s8472_s25 + $0x20] sm:$0xf]  ;;  %3871 = vmatmul.bf16.gmra.mxu3 %v8699_v56  ;;  %v7349_v57 = vld [vmem:[#allocation6 + $0x110] sm:$0xff] }
  0x76   : > { %320 = vst [vmem:[#allocation2 + $0x168] sm:$0x1] %v319_v52  ;;  %v977_v29 = vor.u32 %v975_v62, %v974_v13  ;;  %v978_v34 = vrot.slane %v974_v13, 4  ;;  %v8713_v35 = vrot.slane %v980_v14, 7  ;;  %v244_v38 = vsel %vm8488_vm4, 0, %v243_v22  ;;  %v7358_v22 = vld [vmem:[#allocation6 + $0x158] sm:$0xff] }
  0x77   : > { %1235 = vst [vmem:[#allocation2 + $0x94] sm:$0xf] %v714_v58  ;;  %v1288_v12 = vld [vmem:[#allocation2 + $0x108] sm:$0xf]  ;;  %v581_v39 = vshrl.u32 %v454_v27, 16  ;;  %v584_v45 = vshll.u32 %v454_v27, 16  ;;  %4075 = vmatpush.bf16.msrb.mxu2 %v7358_v22 }
  0x78   : > { %1234 = vst [vmem:[#allocation2 + $0x90] sm:$0xf] %v1233_v11  ;;  %v1289_v20 = vsel %vm8514_vm8, %v841_v59, %v1288_v12  ;;  %v985_v42 = vor.u32 %v983_v15, %v8713_v35  ;;  %v455_v44 = vld [vmem:[%s8472_s25 + $0x24] sm:$0xf]  ;;  %v267_v58 = vld [vmem:[#allocation2 + $0x9c] sm:$0x1] }
  0x79   : > { %1290 = vst [vmem:[#allocation2 + $0x108] sm:$0xf] %v1289_v20  ;;  %v583_v49 = vrot.slane %v581_v39, 7  ;;  %v589_v50 = vshrl.u32 %v455_v44, 16  ;;  %v592_v52 = vshll.u32 %v455_v44, 16  ;;  %v7805_v62 = vld [vmem:[#allocation2 + $0x30] sm:$0xff]  }
  0x7a   : > { %10319 = vst [vmem:[#allocation23_spill] sm:$0xff] %v8713_v35  ;;  %v986_v53 = vsel %vm8504_vm7, %v978_v34, %v985_v42  ;;  %v470_v59 = vld [vmem:[%s8472_s25 + $0x60] sm:$0xf]  ;;  %v471_v61 = vld [vmem:[%s8472_s25 + $0x64] sm:$0xf]  ;;  %v268_v11 = vsel %vm8488_vm4, 0, %v267_v58 }
  0x7b   : > { %1291 = vst [vmem:[#allocation2 + $0x10c] sm:$0xf] %v850_v19  ;;  %v587_v1 = vrot.slane %v583_v49, 4  ;;  %v8726_v3 = vrot.slane %v589_v50, 7  ;;  %v586_v13 = vor.u32 %v584_v45, %v583_v49  ;;  %v717_v14 = vshrl.u32 %v470_v59, 16  ;;  %v7318_v45 = vld [vmem:[#allocation6 + $0x18] sm:$0xff] }
  0x7c   : > { %245 = vst [vmem:[#allocation2 + $0x3c] sm:$0x1] %v244_v38  ;;  %v725_v15 = vshrl.u32 %v471_v61, 16  ;;  %v720_v20 = vshll.u32 %v470_v59, 16  ;;  %v728_v38 = vshll.u32 %v471_v61, 16  ;;  %4388 = vmatpush.bf16.msrb.mxu3 %v7318_v45  ;;  %v7326_v59 = vld [vmem:[#allocation6 + $0x58] sm:$0xff] }
  0x7d   : > { %v1344_v46 = vld [vmem:[#allocation2 + $0x168] sm:$0xf]  ;;  %1347 = vst [vmem:[#allocation2 + $0x16c] sm:$0xf] %v986_v53  ;;  %v594_v19 = vor.u32 %v592_v52, %v8726_v3  ;;  %v297_v39 = vld [vmem:[#allocation2 + $0x114] sm:$0x1]  ;;  %4557 = vmatpush.bf16.msrb.mxu0 %v7326_v59 }
  0x7e   : > { %v1345_v55 = vsel %vm8514_vm8, %v977_v29, %v1344_v46  ;;  %269 = vst [vmem:[#allocation2 + $0x9c] sm:$0x1] %v268_v11  ;;  %v719_v29 = vrot.slane %v717_v14, 7  ;;  %v8731_v34 = vrot.slane %v725_v15, 7  ;;  %v486_v52 = vld [vmem:[%s8472_s25 + $0xa0] sm:$0xf] }
  0x7f   : > { %1346 = vst [vmem:[#allocation2 + $0x168] sm:$0xf] %v1345_v55  ;;  %v7809_v12 = vld [vmem:[#allocation2 + $0x90] sm:$0xff]   ;;  %v595_v42 = vsel %vm8504_vm7, %v587_v1, %v594_v19  ;;  %v7350_v53 = vld [vmem:[#allocation6 + $0x118] sm:$0xff]  ;;  %v298_v58 = vsel %vm8488_vm4, 0, %v297_v39  ;;  %v853_v1 = vshrl.u32 %v486_v52, 16 }
  0x80   : > { %1186 = vst [vmem:[#allocation2 + $0x40] sm:$0xf] %v595_v42  ;;  %v723_v49 = vrot.slane %v719_v29, 4  ;;  %v730_v50 = vor.u32 %v728_v38, %v8731_v34  ;;  %v722_v55 = vor.u32 %v720_v20, %v719_v29  ;;  %v856_v11 = vshll.u32 %v486_v52, 16  ;;  %3906 = vmatpush.bf16.msrb.mxu1 %v7350_v53  ;;  %v502_v29 = vld [vmem:[%s8472_s25 + $0xe0] sm:$0xf] }
  0x81   : > { %3756 = vmatmul.bf16.gmra.mxu0 %v7805_v62  ;;  %3796 = vmatmul.bf16.gmra.mxu1 %v7809_v12  ;;  %299 = vst [vmem:[#allocation2 + $0x114] sm:$0x1] %v298_v58  ;;  %v487_v62 = vld [vmem:[%s8472_s25 + $0xa4] sm:$0xf]  ;;  %v855_v19 = vrot.slane %v853_v1, 7  ;;  %v992_v52 = vshll.u32 %v502_v29, 16 }
  0x82   : > { %v7813_v27 = vld [vmem:[#allocation2 + $0x108] sm:$0xff]   ;;  %v731_v61 = vsel %vm8504_vm7, %v723_v49, %v730_v50  ;;  %v861_v12 = vshrl.u32 %v487_v62, 16  ;;  %v503_v45 = vld [vmem:[%s8472_s25 + $0xe4] sm:$0xf]  ;;  %v456_v1 = vld [vmem:[%s8472_s25 + $0x28] sm:$0xf] }
  0x83   : > { %v1183_v44 = vld [vmem:[#allocation2 + $0x3c] sm:$0xf]  ;;  %3836 = vmatmul.bf16.gmra.mxu2 %v7813_v27  ;;  %1242 = vst [vmem:[#allocation2 + $0xa0] sm:$0xf] %v731_v61  ;;  %v321_v27 = vld [vmem:[#allocation2 + $0x174] sm:$0x1]  ;;  %v858_v38 = vor.u32 %v856_v11, %v855_v19 }
  0x84   : > { %v1184_v46 = vsel %vm8514_vm8, %v586_v13, %v1183_v44  ;;  %v864_v13 = vshll.u32 %v487_v62, 16  ;;  %v8746_v22 = vrot.slane %v861_v12, 7  ;;  %v859_v39 = vrot.slane %v855_v19, 4  ;;  %v246_v58 = vld [vmem:[#allocation2 + $0x48] sm:$0x1]  ;;  %3907 = vmatpush.bf16.msrb.mxu1 %v7349_v57  ;;  %s6921_s8 = sshll.u32 %s9846_s27, 4  ;;  %s6922_s8 = int_to_ptr.vmem [resolvable:$true] %s6921_s8 }
  0x85   : > { %1185 = vst [vmem:[#allocation2 + $0x3c] sm:$0xf] %v1184_v46  ;;  %v1239_v15 = vld [vmem:[#allocation2 + $0x9c] sm:$0xf]  ;;  %v322_v42 = vsel %vm8488_vm4, 0, %v321_v27  ;;  %v989_v46 = vshrl.u32 %v502_v29, 16 }
  0x86   : > { %v7817_v14 = vld [vmem:[#allocation2 + $0x168] sm:$0xff]   ;;  %v1240_v20 = vsel %vm8514_vm8, %v722_v55, %v1239_v15  ;;  %10320 = vst [vmem:[#allocation24_spill] sm:$0xff] %v8746_v22  ;;  %v866_v44 = vor.u32 %v864_v13, %v8746_v22  ;;  %v997_v53 = vshrl.u32 %v503_v45, 16  ;;  %v1000_v55 = vshll.u32 %v503_v45, 16  ;;  %v324_v57 = vld [vmem:[#allocation2 + $0x180] sm:$0x1] }
  0x87   : > { %1241 = vst [vmem:[#allocation2 + $0x9c] sm:$0xf] %v1240_v20  ;;  %3876 = vmatmul.bf16.gmra.mxu3 %v7817_v14  ;;  %v8755_v50 = vld [vmem:[#allocation2 + $0x3c] sm:$0xf0]  ;;  %v991_v62 = vrot.slane %v989_v46, 7  ;;  %v247_v13 = vsel %vm8488_vm4, 0, %v246_v58 }
  0x88   : > { %323 = vst [vmem:[#allocation2 + $0x174] sm:$0x1] %v322_v42  ;;  %v867_v59 = vsel %vm8504_vm7, %v859_v39, %v866_v44  ;;  %v1295_v61 = vld [vmem:[#allocation2 + $0x114] sm:$0xf]  ;;  %v8762_v12 = vrot.slane %v997_v53, 7  ;;  %v598_v20 = vshrl.u32 %v456_v1, 16 }
  0x89   : > { %v1296_v11 = vsel %vm8514_vm8, %v858_v38, %v1295_v61  ;;  %1298 = vst [vmem:[#allocation2 + $0x118] sm:$0xf] %v867_v59  ;;  %v457_v14 = vld [vmem:[%s8472_s25 + $0x2c] sm:$0xf]  ;;  %v994_v15 = vor.u32 %v992_v52, %v991_v62  ;;  %v995_v19 = vrot.slane %v991_v62, 4  ;;  %v601_v39 = vshll.u32 %v456_v1, 16 }
  0x8a   : > { %10321 = vst [vmem:[#allocation25_spill] sm:$0xff] %v8762_v12  ;;  %v270_v27 = vld [vmem:[#allocation2 + $0xa8] sm:$0x1]  ;;  %v1002_v29 = vor.u32 %v1000_v55, %v8762_v12  ;;  %v606_v42 = vshrl.u32 %v457_v14, 16  ;;  %v8770_v38 = vld [vmem:[#allocation2 + $0x9c] sm:$0xf0] }
  0x8b   : > { %1297 = vst [vmem:[#allocation2 + $0x114] sm:$0xf] %v1296_v11  ;;  %v600_v45 = vrot.slane %v598_v20, 7  ;;  %v609_v46 = vshll.u32 %v457_v14, 16  ;;  %v271_v53 = vsel %vm8488_vm4, 0, %v270_v27  ;;  %v7357_v59 = vld [vmem:[#allocation6 + $0x150] sm:$0xff] }
  0x8c   : > { %v8753_v49 = vld [vmem:[#allocation2 + $0x3c] sm:$0xff]   ;;  %248 = vst [vmem:[#allocation2 + $0x48] sm:$0x1] %v247_v13  ;;  %v1003_v52 = vsel %vm8504_vm7, %v995_v19, %v1002_v29  ;;  %v8777_v58 = vrot.slane %v606_v42, 7  ;;  %v472_v1 = vld [vmem:[%s8472_s25 + $0x68] sm:$0xf]  ;;  %4076 = vmatpush.bf16.msrb.mxu2 %v7357_v59 }
  0x8d   : > { %272 = vst [vmem:[#allocation2 + $0xa8] sm:$0x1] %v271_v53  ;;  %v604_v62 = vrot.slane %v600_v45, 4  ;;  %v7317_v11 = vld [vmem:[#allocation6 + $0x10] sm:$0xff]  ;;  %v603_v13 = vor.u32 %v601_v39, %v600_v45  ;;  %v473_v20 = vld [vmem:[%s8472_s25 + $0x6c] sm:$0xf] }
  0x8e   : > { %v8768_v44 = vld [vmem:[#allocation2 + $0x9c] sm:$0xff]   ;;  %1354 = vst [vmem:[#allocation2 + $0x178] sm:$0xf] %v1003_v52  ;;  %v611_v14 = vor.u32 %v609_v46, %v8777_v58  ;;  %v734_v27 = vshrl.u32 %v472_v1, 16  ;;  %v737_v19 = vshll.u32 %v472_v1, 16  ;;  %v742_v29 = vshrl.u32 %v473_v20, 16  ;;  %4389 = vmatpush.bf16.msrb.mxu3 %v7317_v11 }
  0x8f   : > { %v1351_v55 = vld [vmem:[#allocation2 + $0x174] sm:$0xf]  ;;  %v745_v42 = vshll.u32 %v473_v20, 16  ;;  %v300_v53 = vld [vmem:[#allocation2 + $0x120] sm:$0x1]  ;;  %s6923_s16 = sshll.u32 %s6920_s7, 4  ;;  %s6924_s16 = int_to_ptr.hbm [resolvable:$true] %s6923_s16 }
  0x90   : > { %v1352_v61 = vsel %vm8514_vm8, %v994_v15, %v1351_v55  ;;  %v8787_v52 = vld [vmem:[#allocation2 + $0x114] sm:$0xf0]  ;;  %v612_v39 = vsel %vm8504_vm7, %v604_v62, %v611_v14  ;;  %v736_v45 = vrot.slane %v734_v27, 7  ;;  %v301_v46 = vsel %vm8488_vm4, 0, %v300_v53  ;;  %v489_v12 = vld [vmem:[%s8472_s25 + $0xac] sm:$0xf] }
  0x91   : > { %3761 = vmatmul.bf16.gmra.mxu0 %v8753_v49  ;;  %1353 = vst [vmem:[#allocation2 + $0x174] sm:$0xf] %v1352_v61  ;;  %3801 = vmatmul.bf16.gmra.mxu1 %v8768_v44  ;;  %v488_v55 = vld [vmem:[%s8472_s25 + $0xa8] sm:$0xf]  ;;  %v8794_v61 = vrot.slane %v742_v29, 7  ;;  %v881_v35 = vshll.u32 %v489_v12, 16 }
  0x92   : > { %v8785_v15 = vld [vmem:[#allocation2 + $0x114] sm:$0xff]   ;;  %10323 = vst [vmem:[#allocation27_spill] sm:$0xff] %v8787_v52  ;;  %v870_v1 = vshrl.u32 %v488_v55, 16  ;;  %v739_v20 = vor.u32 %v737_v19, %v736_v45  ;;  %v740_v56 = vrot.slane %v736_v45, 4  ;;  %v873_v62 = vshll.u32 %v488_v55, 16  ;;  %v7325_v55 = vld [vmem:[#allocation6 + $0x50] sm:$0xff] }
  0x93   : > { %10322 = vst [vmem:[#allocation26_spill] sm:$0xff] %v8785_v15  ;;  %v1190_v59 = vld [vmem:[#allocation2 + $0x48] sm:$0xf]  ;;  %v747_v14 = vor.u32 %v745_v42, %v8794_v61  ;;  %v504_v9 = vld [vmem:[%s8472_s25 + $0xe8] sm:$0xf]  ;;  %3841 = vmatmul.bf16.gmra.mxu2 %v8785_v15  ;;  %4558 = vmatpush.bf16.msrb.mxu0 %v7325_v55  ;;  %s6908_s9 = scalar_lea.sflag [#allocation5], %s8466_s6 }
  0x94   : > { %1193 = vst [vmem:[#allocation2 + $0x4c] sm:$0xf] %v612_v39  ;;  %v1191_v11 = vsel %vm8514_vm8, %v603_v13, %v1190_v59  ;;  %v1246_v27 = vld [vmem:[#allocation2 + $0xa8] sm:$0xf]  ;;  %v872_v53 = vrot.slane %v870_v1, 7  ;;  %v878_v39 = vshrl.u32 %v489_v12, 16 }
  0x95   : > { %302 = vst [vmem:[#allocation2 + $0x120] sm:$0x1] %v301_v46  ;;  %v1247_v29 = vsel %vm8514_vm8, %v739_v20, %v1246_v27  ;;  %v8806_v19 = vld [vmem:[#allocation2 + $0x174] sm:$0xf0]  ;;  %v748_v45 = vsel %vm8504_vm7, %v740_v56, %v747_v14  ;;  %v325_v12 = vsel %vm8488_vm4, 0, %v324_v57  ;;  %v1009_v20 = vshll.u32 %v504_v9, 16 }
  0x96   : > { %1192 = vst [vmem:[#allocation2 + $0x48] sm:$0xf] %v1191_v11  ;;  %v875_v42 = vor.u32 %v873_v62, %v872_v53  ;;  %v876_v46 = vrot.slane %v872_v53, 4  ;;  %v8810_v59 = vrot.slane %v878_v39, 7  ;;  %v505_v1 = vld [vmem:[%s8472_s25 + $0xec] sm:$0xf] }
  0x97   : > { %10325 = vst [vmem:[#allocation29_spill] sm:$0xff] %v8806_v19  ;;  %v1006_v11 = vshrl.u32 %v504_v9, 16  ;;  %v1014_v27 = vshrl.u32 %v505_v1, 16  ;;  %v1017_v14 = vshll.u32 %v505_v1, 16  ;;  %v458_v62 = vld [vmem:[%s8472_s25 + $0x30] sm:$0xf] }
  0x98   : > { %v8804_v13 = vld [vmem:[#allocation2 + $0x174] sm:$0xff]   ;;  %1248 = vst [vmem:[#allocation2 + $0xa8] sm:$0xf] %v1247_v29  ;;  %v883_v56 = vor.u32 %v881_v35, %v8810_v59  ;;  %v615_v57 = vshrl.u32 %v458_v62, 16  ;;  %v459_v55 = vld [vmem:[%s8472_s25 + $0x34] sm:$0xf] }
  0x99   : > { %10324 = vst [vmem:[#allocation28_spill] sm:$0xff] %v8804_v13  ;;  %v249_v29 = vld [vmem:[#allocation2 + $0x54] sm:$0x1]  ;;  %v1008_v19 = vrot.slane %v1006_v11, 7  ;;  %3881 = vmatmul.bf16.gmra.mxu3 %v8804_v13  ;;  %v618_v13 = vshll.u32 %v458_v62, 16  ;;  %v623_v24 = vshrl.u32 %v459_v55, 16 }
  0x9a   : > { %1249 = vst [vmem:[#allocation2 + $0xac] sm:$0xf] %v748_v45  ;;  %v8817_v45 = vrot.slane %v1014_v27, 7  ;;  %v250_v39 = vsel %vm8488_vm4, 0, %v249_v29  ;;  %v884_v9 = vsel %vm8504_vm7, %v876_v46, %v883_v56  ;;  %v617_v29 = vrot.slane %v615_v57, 7  ;;  %s8284_s10 = sshra.s32 %s6924_s16, 4  ;;  %s8285_s10 = int_to_ptr.hbm [resolvable:$true] %s8284_s10 }
  0x9b   : > { %10326 = vst [vmem:[#allocation30_spill] sm:$0xff] %v8810_v59  ;;  %v1011_v1 = vor.u32 %v1009_v20, %v1008_v19  ;;  %v1012_v11 = vrot.slane %v1008_v19, 4  ;;  %v626_v46 = vshll.u32 %v459_v55, 16  ;;  %v273_v56 = vld [vmem:[#allocation2 + $0xb4] sm:$0x1]  ;;  %s8286_s11 = scalar_lea.hbm %s8285_s10, 256  ;;  %p8291_p7 = scmp.lt.s32.totalorder %s8285_s10, %s10245_s3 }
  0x9c   : > { %326 = vst [vmem:[#allocation2 + $0x180] sm:$0x1] %v325_v12  ;;  %v1302_v53 = vld [vmem:[#allocation2 + $0x120] sm:$0xf]  ;;  %v1019_v27 = vor.u32 %v1017_v14, %v8817_v45  ;;  %v621_v20 = vrot.slane %v617_v29, 4  ;;  %v274_v62 = vsel %vm8488_vm4, 0, %v273_v56  ;;  %p8287_p1 = scmp.ne.s32.totalorder %s8285_s10, %s8286_s11 }
  0x9d   : > { %10327 = vst [vmem:[#allocation31_spill] sm:$0xff] %v8817_v45  ;;  %v8822_v12 = vld [vmem:[#allocation2 + $0x48] sm:$0xff]   ;;  %v1303_v35 = vsel %vm8514_vm8, %v875_v42, %v1302_v53  ;;  %v475_v14 = vld [vmem:[%s8472_s25 + $0x74] sm:$0xf]  ;;  %vm1795_vm10 = vsmask.f32 7424 }
  0x9e   : > { %251 = vst [vmem:[#allocation2 + $0x54] sm:$0x1] %v250_v39  ;;  %v1020_v42 = vsel %vm8504_vm7, %v1012_v11, %v1019_v27  ;;  %v620_v39 = vor.u32 %v618_v13, %v617_v29  ;;  %v759_v27 = vshrl.u32 %v475_v14, 16  ;;  %v460_v52 = vld [vmem:[%s8472_s25 + $0x38] sm:$0xf]  ;;  %p8288_p4 = pnand %p8287_p1, %p8436_p0  ;;  %s8290_s18 = scalar_lea.hbm %s10245_s3, 1024 }
  0x9f   : > { %1304 = vst [vmem:[#allocation2 + $0x120] sm:$0xf] %v1303_v35  ;;  %v474_v35 = vld [vmem:[%s8472_s25 + $0x70] sm:$0xf]  ;;  %v461_v15 = vld [vmem:[%s8472_s25 + $0x3c] sm:$0xf]  ;;  %p8292_p2 = scmp.lt.s32.totalorder %s8290_s18, %s8286_s11 }
  0xa0   : > { %1305 = vst [vmem:[#allocation2 + $0x124] sm:$0xf] %v884_v9  ;;  %v8836_v9 = vrot.slane %v623_v24, 7  ;;  %v751_v57 = vshrl.u32 %v474_v35, 16  ;;  %v754_v13 = vshll.u32 %v474_v35, 16  ;;  %v8847_v56 = vrot.slane %v759_v27, 7  ;;  %p8289_p8 = pneg %p8288_p4 }
  0xa1   : > { %3766 = vmatmul.bf16.gmra.mxu0 %v8822_v12  ;;  %v7810_v8 = vld [vmem:[#allocation2 + $0xa8] sm:$0xff]   ;;  %1361 = vst [vmem:[#allocation2 + $0x184] sm:$0xf] %v1020_v42  ;;  %v762_v42 = vshll.u32 %v475_v14, 16  ;;  %p8293_p9 = por %p8292_p2, %p8291_p7 }
  0xa2   : > { %3806 = vmatmul.bf16.gmra.mxu1 %v7810_v8  ;;  %v628_v55 = vor.u32 %v626_v46, %v8836_v9  ;;  %275 = vst [vmem:[#allocation2 + $0xb4] sm:$0x1] %v274_v62  ;;  %v753_v29 = vrot.slane %v751_v57, 7  ;;  %v303_v24 = vld [vmem:[#allocation2 + $0x12c] sm:$0x1] }
  0xa3   : > { %v1358_v53 = vld [vmem:[#allocation2 + $0x180] sm:$0xf]  ;;  %v304_v46 = vsel %vm8488_vm4, 0, %v303_v24  ;;  %v764_v57 = vor.u32 %v762_v42, %v8847_v56  ;;  %v492_v6 = vld [vmem:[%s8472_s25 + $0xb8] sm:$0xf]  ;;  %p8294_p10 = pnand %p8293_p9, %p8289_p8 }
  0xa4   : > { %v1359_v19 = vsel %vm8514_vm8, %v1011_v1, %v1358_v53  ;;  %v490_v53 = vld [vmem:[%s8472_s25 + $0xb0] sm:$0xf]  ;;  %v757_v62 = vrot.slane %v753_v29, 4  ;;  %v756_v14 = vor.u32 %v754_v13, %v753_v29  ;;  %305 = vst [vmem:[#allocation2 + $0x12c] sm:$0x1] %v304_v46  ;;  %v7316_v13 = vld [vmem:[#allocation6 + $0x8] sm:$0xff] }
  0xa5   : > { %1360 = vst [vmem:[#allocation2 + $0x180] sm:$0xf] %v1359_v19  ;;  %v1197_v11 = vld [vmem:[#allocation2 + $0x54] sm:$0xf]  ;;  %v629_v19 = vsel %vm8504_vm7, %v621_v20, %v628_v55  ;;  %v887_v35 = vshrl.u32 %v490_v53, 16  ;;  %v890_v43 = vshll.u32 %v490_v53, 16  ;;  %4390 = vmatpush.bf16.msrb.mxu3 %v7316_v13 }
  0xa6   : > { %v1198_v1 = vsel %vm8514_vm8, %v620_v39, %v1197_v11  ;;  %1200 = vst [vmem:[#allocation2 + $0x58] sm:$0xf] %v629_v19  ;;  %v7356_v39 = vld [vmem:[#allocation6 + $0x148] sm:$0xff]  ;;  %v491_v11 = vld [vmem:[%s8472_s25 + $0xb4] sm:$0xf] }
  0xa7   : > { %v7814_v8 = vld [vmem:[#allocation2 + $0x120] sm:$0xff]   ;;  %1199 = vst [vmem:[#allocation2 + $0x54] sm:$0xf] %v1198_v1  ;;  %v889_v45 = vrot.slane %v887_v35, 7  ;;  %v895_v20 = vshrl.u32 %v491_v11, 16  ;;  %4077 = vmatpush.bf16.msrb.mxu2 %v7356_v39  ;;  %v765_v1 = vsel %vm8504_vm7, %v757_v62, %v764_v57  ;;  %v898_v24 = vshll.u32 %v491_v11, 16 }
  0xa8   : > { %3846 = vmatmul.bf16.gmra.mxu2 %v7814_v8  ;;  %v327_v55 = vld [vmem:[#allocation2 + $0x18c] sm:$0x1]  ;;  %v506_v8 = vld [vmem:[%s8472_s25 + $0xf0] sm:$0xf]  ;;  %1256 = vst [vmem:[#allocation2 + $0xb8] sm:$0xf] %v765_v1 }
  0xa9   : > { %v328_v19 = vsel %vm8488_vm4, 0, %v327_v55  ;;  %v1253_v29 = vld [vmem:[#allocation2 + $0xb4] sm:$0xf]  ;;  %v893_v42 = vrot.slane %v889_v45, 4  ;;  %v892_v46 = vor.u32 %v890_v43, %v889_v45  ;;  %v8860_v35 = vrot.slane %v895_v20, 7  ;;  %v7348_v45 = vld [vmem:[#allocation6 + $0x108] sm:$0xff] }
  0xaa   : > { %v1254_v53 = vsel %vm8514_vm8, %v756_v14, %v1253_v29  ;;  %329 = vst [vmem:[#allocation2 + $0x18c] sm:$0x1] %v328_v19  ;;  %v507_v39 = vld [vmem:[%s8472_s25 + $0xf4] sm:$0xf]  ;;  %v1023_v63 = vshrl.u32 %v506_v8, 16  ;;  %v1026_v62 = vshll.u32 %v506_v8, 16  ;;  %3908 = vmatpush.bf16.msrb.mxu1 %v7348_v45 }
  0xab   : > { %10328 = vst [vmem:[#allocation32_spill] sm:$0xff] %v8860_v35  ;;  %v1031_v57 = vshrl.u32 %v507_v39, 16  ;;  %v1034_v11 = vshll.u32 %v507_v39, 16  ;;  %v900_v14 = vor.u32 %v898_v24, %v8860_v35  ;;  %v7324_v20 = vld [vmem:[#allocation6 + $0x48] sm:$0xff]  ;;  %v1309_v19 = vld [vmem:[#allocation2 + $0x12c] sm:$0xf]  ;;  %4078 = vmatpush.bf16.msrb.mxu2 %v7355_v5 }
  0xac   : > { %v7818_v27 = vld [vmem:[#allocation2 + $0x180] sm:$0xff]   ;;  %1255 = vst [vmem:[#allocation2 + $0xb4] sm:$0xf] %v1254_v53  ;;  %v1025_v43 = vrot.slane %v1023_v63, 7  ;;  %v1310_v8 = vsel %vm8514_vm8, %v892_v46, %v1309_v19  ;;  %4559 = vmatpush.bf16.msrb.mxu0 %v7324_v20  ;;  %v632_v35 = vshrl.u32 %v460_v52, 16  ;;  %v643_v46 = vshll.u32 %v461_v15, 16 }
  0xad   : > { %3886 = vmatmul.bf16.gmra.mxu3 %v7818_v27  ;;  %v8865_v1 = vld [vmem:[#allocation2 + $0x54] sm:$0xf0]  ;;  %v8868_v29 = vrot.slane %v1031_v57, 7  ;;  %v252_v13 = vld [vmem:[#allocation2 + $0x60] sm:$0x1]  ;;  %v901_v27 = vsel %vm8504_vm7, %v893_v42, %v900_v14  ;;  %v635_v42 = vshll.u32 %v460_v52, 16 }
  0xae   : > { %v8863_v55 = vld [vmem:[#allocation2 + $0x54] sm:$0xff]   ;;  %v1028_v53 = vor.u32 %v1026_v62, %v1025_v43  ;;  %v1029_v39 = vrot.slane %v1025_v43, 4  ;;  %1311 = vst [vmem:[#allocation2 + $0x12c] sm:$0xf] %v1310_v8  ;;  %v253_v24 = vsel %vm8488_vm4, 0, %v252_v13  ;;  %v640_v14 = vshrl.u32 %v461_v15, 16 }
  0xaf   : > { %10329 = vst [vmem:[#allocation33_spill] sm:$0xff] %v8868_v29  ;;  %v1036_v63 = vor.u32 %v1034_v11, %v8868_v29  ;;  %v276_v57 = vld [vmem:[#allocation2 + $0xc0] sm:$0x1]  ;;  %v8886_v20 = vld [vmem:[#allocation2 + $0xb4] sm:$0xf0]  ;;  %v634_v15 = vrot.slane %v632_v35, 7 }
  0xb0   : > { %1312 = vst [vmem:[#allocation2 + $0x130] sm:$0xf] %v901_v27  ;;  %v277_v11 = vsel %vm8488_vm4, 0, %v276_v57  ;;  %v8890_v19 = vrot.slane %v640_v14, 7  ;;  %v476_v13 = vld [vmem:[%s8472_s25 + $0x78] sm:$0xf] }
  0xb1   : > { %3771 = vmatmul.bf16.gmra.mxu0 %v8863_v55  ;;  %v1037_v62 = vsel %vm8504_vm7, %v1029_v39, %v1036_v63  ;;  %v1365_v43 = vld [vmem:[#allocation2 + $0x18c] sm:$0xf]  ;;  %254 = vst [vmem:[#allocation2 + $0x60] sm:$0x1] %v253_v24  ;;  %v637_v8 = vor.u32 %v635_v42, %v634_v15  ;;  %v638_v39 = vrot.slane %v634_v15, 4  ;;  %v768_v57 = vshrl.u32 %v476_v13, 16 }
  0xb2   : > { %v1366_v52 = vsel %vm8514_vm8, %v1028_v53, %v1365_v43  ;;  %1368 = vst [vmem:[#allocation2 + $0x190] sm:$0xf] %v1037_v62  ;;  %v477_v27 = vld [vmem:[%s8472_s25 + $0x7c] sm:$0xf]  ;;  %v645_v63 = vor.u32 %v643_v46, %v8890_v19  ;;  %v306_v24 = vld [vmem:[#allocation2 + $0x138] sm:$0x1] }
  0xb3   : > { %v8884_v45 = vld [vmem:[#allocation2 + $0xb4] sm:$0xff]   ;;  %1367 = vst [vmem:[#allocation2 + $0x18c] sm:$0xf] %v1366_v52  ;;  %v771_v29 = vshll.u32 %v476_v13, 16  ;;  %v776_v59 = vshrl.u32 %v477_v27, 16  ;;  %v779_v53 = vshll.u32 %v477_v27, 16 }
  0xb4   : > { %278 = vst [vmem:[#allocation2 + $0xc0] sm:$0x1] %v277_v11  ;;  %v646_v35 = vsel %vm8504_vm7, %v638_v39, %v645_v63  ;;  %v307_v14 = vsel %vm8488_vm4, 0, %v306_v24  ;;  %v493_v62 = vld [vmem:[%s8472_s25 + $0xbc] sm:$0xf]  ;;  %v904_v43 = vshrl.u32 %v492_v6, 16  ;;  %3811 = vmatmul.bf16.gmra.mxu1 %v8884_v45 }
  0xb5   : > { %v7315_v42 = vld [vmem:[#allocation6] sm:$0xff]  ;;  %1207 = vst [vmem:[#allocation2 + $0x64] sm:$0xf] %v646_v35  ;;  %v770_v52 = vrot.slane %v768_v57, 7  ;;  %v8906_v15 = vrot.slane %v776_v59, 7  ;;  %v907_v39 = vshll.u32 %v492_v6, 16 }
  0xb6   : > { %308 = vst [vmem:[#allocation2 + $0x138] sm:$0x1] %v307_v14  ;;  %v906_v27 = vrot.slane %v904_v43, 7  ;;  %4391 = vmatpush.bf16.msrb.mxu3 %v7315_v42  ;;  %v7347_v35 = vld [vmem:[#allocation6 + $0x100] sm:$0xff]  ;;  %v508_v14 = vld [vmem:[%s8472_s25 + $0xf8] sm:$0xf] }
  0xb7   : > { %v8902_v46 = vld [vmem:[#allocation2 + $0x12c] sm:$0xff]   ;;  %v773_v24 = vor.u32 %v771_v29, %v770_v52  ;;  %v774_v22 = vrot.slane %v770_v52, 4  ;;  %v781_v51 = vor.u32 %v779_v53, %v8906_v15  ;;  %v912_v41 = vshrl.u32 %v493_v62, 16  ;;  %3909 = vmatpush.bf16.msrb.mxu1 %v7347_v35 }
  0xb8   : > { %10330 = vst [vmem:[#allocation34_spill] sm:$0xff] %v8902_v46  ;;  %v8904_v11 = vld [vmem:[#allocation2 + $0x12c] sm:$0xf0]  ;;  %v1204_v13 = vld [vmem:[#allocation2 + $0x60] sm:$0xf]  ;;  %v909_v5 = vor.u32 %v907_v39, %v906_v27  ;;  %3851 = vmatmul.bf16.gmra.mxu2 %v8902_v46  ;;  %v910_v53 = vrot.slane %v906_v27, 4 }
  0xb9   : > { %10331 = vst [vmem:[#allocation35_spill] sm:$0xff] %v8904_v11  ;;  %v1205_v63 = vsel %vm8514_vm8, %v637_v8, %v1204_v13  ;;  %v330_v11 = vld [vmem:[#allocation2 + $0x198] sm:$0x1]  ;;  %v8913_v59 = vld [vmem:[#allocation2 + $0x18c] sm:$0xf0]  ;;  %v782_v6 = vsel %vm8504_vm7, %v774_v22, %v781_v51  ;;  %v915_v52 = vshll.u32 %v493_v62, 16 }
  0xba   : > { %v8911_v57 = vld [vmem:[#allocation2 + $0x18c] sm:$0xff]   ;;  %10333 = vst [vmem:[#allocation37_spill] sm:$0xff] %v8913_v59  ;;  %v331_v13 = vsel %vm8488_vm4, 0, %v330_v11  ;;  %v8924_v39 = vrot.slane %v912_v41, 7  ;;  %v1040_v51 = vshrl.u32 %v508_v14, 16  ;;  %v1043_v22 = vshll.u32 %v508_v14, 16 }
  0xbb   : > { %10332 = vst [vmem:[#allocation36_spill] sm:$0xff] %v8911_v57  ;;  %v7323_v43 = vld [vmem:[#allocation6 + $0x40] sm:$0xff]  ;;  %v1260_v42 = vld [vmem:[#allocation2 + $0xc0] sm:$0xf]  ;;  %v509_v8 = vld [vmem:[%s8472_s25 + $0xfc] sm:$0xf] }
  0xbc   : > { %1206 = vst [vmem:[#allocation2 + $0x60] sm:$0xf] %v1205_v63  ;;  %v1261_v29 = vsel %vm8514_vm8, %v773_v24, %v1260_v42  ;;  %4560 = vmatpush.bf16.msrb.mxu0 %v7323_v43  ;;  %v1048_v63 = vshrl.u32 %v509_v8, 16  ;;  %v1051_v35 = vshll.u32 %v509_v8, 16  ;;  %v341_v59 = vld [vmem:[#allocation2 + $0x14] sm:$0x1]  ;;  %v917_v24 = vor.u32 %v915_v52, %v8924_v39 }
  0xbd   : > { %1263 = vst [vmem:[#allocation2 + $0xc4] sm:$0xf] %v782_v6  ;;  %3891 = vmatmul.bf16.gmra.mxu3 %v8911_v57  ;;  %v1316_v6 = vld [vmem:[#allocation2 + $0x138] sm:$0xf]  ;;  %v1042_v27 = vrot.slane %v1040_v51, 7  ;;  %v342_v41 = vsel %vm8483_vm3, 0, %v341_v59 }
  0xbe   : > { %1262 = vst [vmem:[#allocation2 + $0xc0] sm:$0xf] %v1261_v29  ;;  %v1317_v62 = vsel %vm8514_vm8, %v909_v5, %v1316_v6  ;;  %v8930_v11 = vrot.slane %v1048_v63, 7  ;;  %v918_v14 = vsel %vm8504_vm7, %v910_v53, %v917_v24  ;;  %v7370_v51 = vld [vmem:[#allocation6 + $0x1b8] sm:$0xff] }
  0xbf   : > { %10334 = vst [vmem:[#allocation38_spill] sm:$0xff] %v8924_v39  ;;  %v1046_v42 = vrot.slane %v1042_v27, 4  ;;  %v1045_v8 = vor.u32 %v1043_v22, %v1042_v27  ;;  %v7378_v63 = vld [vmem:[#allocation6 + $0x1f8] sm:$0xff]  ;;  %v528_v22 = vrot.slane %v8498_v17, 4  ;;  %6140 = vmatpush.bf16.msra.mxu2 %v7370_v51 }
  0xc0   : > { %332 = vst [vmem:[#allocation2 + $0x198] sm:$0x1] %v331_v13  ;;  %v1053_v29 = vor.u32 %v1051_v35, %v8930_v11  ;;  %v8345_v13 = vmov 0   ;;  %v7338_v24 = vld [vmem:[#allocation6 + $0xb8] sm:$0xff]  ;;  %6309 = vmatpush.bf16.msra.mxu3 %v7378_v63 }
  0xc1   : > { %10335 = vst [vmem:[#allocation39_spill] sm:$0xff] %v8930_v11  ;;  %v7386_v35 = vld [vmem:[#allocation6 + $0x238] sm:$0xff]  ;;  %4722 = vmatpush.bf16.msra.mxu1 %v7338_v24 }
  0xc2   : > { %1318 = vst [vmem:[#allocation2 + $0x138] sm:$0xf] %v1317_v62  ;;  %v1054_v52 = vsel %vm8504_vm7, %v1046_v42, %v1053_v29  ;;  %6478 = vmatpush.bf16.msra.mxu0 %v7386_v35  ;;  %v8067_v17 = vld [vmem:[#allocation2 + $0xc] sm:$0xe]  ;;  %v344_v29 = vld [vmem:[#allocation2 + $0x20] sm:$0x1] }
  0xc3   : > { %v8934_v43 = vld [vmem:[#allocation2 + $0x60] sm:$0xff]   ;;  %1319 = vst [vmem:[#allocation2 + $0x13c] sm:$0xf] %v918_v14  ;;  %v8068_v51 = vor.u32 %v8067_v17, %v8550_v18 }
  0xc4   : > { %3776 = vmatmul.bf16.gmra.mxu0 %v8934_v43  ;;  %343 = vst [vmem:[#allocation2 + $0x14] sm:$0x1] %v342_v41 }
  0xc5   : > { %v7811_v5 = vld [vmem:[#allocation2 + $0xc0] sm:$0xff]   ;;  %212 = vst [vmem:[#allocation2] sm:$0xf] %v8345_v13 }
  0xc6   : > { %1375 = vst [vmem:[#allocation2 + $0x19c] sm:$0xf] %v1054_v52  ;;  %3816 = vmatmul.bf16.gmra.mxu1 %v7811_v5  ;;  %v2904_v5 = vshll.u32 %v8548_v16, 16  ;;  %v347_v52 = vld [vmem:[#allocation2 + $0x2c] sm:$0x1] }
  0xc7   : > { %v1372_v59 = vld [vmem:[#allocation2 + $0x198] sm:$0xf]  ;;  %213 = vst [vmem:[#allocation2 + $0x4] sm:$0xf] %v8345_v13 }
  0xc8   : > { %v1373_v53 = vsel %vm8514_vm8, %v1045_v8, %v1372_v59  ;;  %214 = vst [vmem:[#allocation2 + $0x8] sm:$0x1] %v8345_v13 }
  0xc9   : > { %1374 = vst [vmem:[#allocation2 + $0x198] sm:$0xf] %v1373_v53 }
  0xca   : > { %v7815_v21 = vld [vmem:[#allocation2 + $0x138] sm:$0xff]   ;;  %215 = vst [vmem:[#allocation2 + $0xd8] sm:$0xf] %v8345_v13 }
  0xcb   : > { %v1159_v27 = vld [vmem:[#allocation2 + $0x14] sm:$0x1]  ;;  %216 = vst [vmem:[#allocation2 + $0xdc] sm:$0xf] %v8345_v13  ;;  %3856 = vmatmul.bf16.gmra.mxu2 %v7815_v21 }
  0xcc   : > { %v1160_v62 = vsel %vm8488_vm4, %v528_v22, %v1159_v27  ;;  %v228_v41 = vld [vmem:[#allocation2] sm:$0x1]  ;;  %217 = vst [vmem:[#allocation2 + $0xe0] sm:$0x1] %v8345_v13  ;;  %v345_v22 = vsel %vm8483_vm3, 0, %v344_v29  ;;  %v348_v27 = vsel %vm8483_vm3, 0, %v347_v52 }
  0xcd   : > { %1161 = vst [vmem:[#allocation2 + $0x14] sm:$0x1] %v1160_v62  ;;  %v229_v14 = vsel %vm8488_vm4, 0, %v228_v41  ;;  %v2902_v41 = vshrl.u32 %v8548_v16, 16  ;;  %v350_v52 = vld [vmem:[#allocation2 + $0x38] sm:$0x1] }
  0xce   : > { %v8945_v6 = vpop.f32.mrf.mxu0  ;;  %v8947_v31 = vpop.f32.mrf.mxu1  ;;  %230 = vst [vmem:[#allocation2] sm:$0x1] %v229_v14  ;;  %v2906_v14 = vrot.slane %v2904_v5, 1  ;;  %v562_v16 = vrot.slane %v8619_v4, 4 }
  0xcf   : > { %219 = vst [vmem:[#allocation2 + $0xcc] sm:$0xf] %v8345_v13  ;;  %v338_v8 = vld [vmem:[#allocation2 + $0x8] sm:$0x1] }
  0xd0   : > { %v7819_v42 = vld [vmem:[#allocation2 + $0x198] sm:$0xff]   ;;  %220 = vst [vmem:[#allocation2 + $0xd0] sm:$0xf] %v8345_v13  ;;  %v339_v59 = vsel %vm8483_vm3, 0, %v338_v8  ;;  %v2907_v8 = vor.u32 %v2906_v14, %v2902_v41 }
  0xd1   : > { %3896 = vmatmul.bf16.gmra.mxu3 %v7819_v42  ;;  %221 = vst [vmem:[#allocation2 + $0xd4] sm:$0x1] %v8345_v13  ;;  %v3413_v42 = vrot.slane %v8068_v51, 1 }
  0xd2   : > { %222 = vst [vmem:[#allocation2 + $0x1a4] sm:$0xf] %v8345_v13 }
  0xd3   : > { %223 = vst [vmem:[#allocation2 + $0x1a8] sm:$0xf] %v8345_v13 }
  0xd4   : > { %v2549_v35 = vld [vmem:[#allocation2 + $0x14] sm:$0x1]  ;;  %224 = vst [vmem:[#allocation2 + $0x1ac] sm:$0x1] %v8345_v13 }
  0xd5   : > { %v8956_v53 = vpop.f32.mrf.mxu2  ;;  %v2837_v62 = vunpack.c.l.b16 %v2549_v35  ;;  %340 = vst [vmem:[#allocation2 + $0x8] sm:$0x1] %v339_v59  ;;  %v7390_v18 = vld [vmem:[#allocation2] sm:$0xff]   ;;  %v8979_v35 = vld [vmem:[#allocation2 + $0xc] sm:$0xff]  }
  0xd6   : > { %10336 = vst [vmem:[#allocation40_spill] sm:$0xff] %v8956_v53  ;;  %v8959_v63 = vpop.f32.mrf.mxu0  ;;  %v8961_v24 = vpop.f32.mrf.mxu1  ;;  %v1799_v13 = vshll.u32 %v7390_v18, 16  ;;  %v1797_v14 = vshrl.u32 %v7390_v18, 16 }
  0xd7   : > { %v8965_v21 = vpop.f32.mrf.mxu3  ;;  %346 = vst [vmem:[#allocation2 + $0x20] sm:$0x1] %v345_v22  ;;  %v2869_v17 = vpack.c.b16 %v2837_v62, %v2837_v62 }
  0xd8   : > { %10337 = vst [vmem:[#allocation41_spill] sm:$0xff] %v8965_v21  ;;  %v545_v21 = vrot.slane %v8557_v28, 4  ;;  %v351_v28 = vsel %vm8483_vm3, 0, %v350_v52 }
  0xd9   : > { %349 = vst [vmem:[#allocation2 + $0x2c] sm:$0x1] %v348_v27  ;;  %v2909_v29 = vshll.u32 %v2869_v17, 16  ;;  %v3414_v57 = vrot.slane %v2869_v17, 1  ;;  %v8981_v27 = vld [vmem:[#allocation2 + $0xc] sm:$0xf0] }
  0xda   : > { %10339 = vst [vmem:[#allocation43_spill] sm:$0xff] %v8981_v27 }
  0xdb   : > { %v2911_v5 = vrot.slane %v2909_v29, 1  ;;  %v3415_v59 = vsel %vm2308_vm9, %v3413_v42, %v3414_v57  ;;  %352 = vst [vmem:[#allocation2 + $0x38] sm:$0x1] %v351_v28  ;;  %v1801_v57 = vrot.slane %v1799_v13, 1  ;;  %v579_v28 = vrot.slane %v8665_v47, 4 }
  0xdc   : > { %v1443_v62 = vld [vmem:[#allocation2 + $0x8] sm:$0x1]  ;;  %4079 = vmatmul.bf16.vlgmr.msrb.gmra.mxu2 %v3415_v59  ;;  %v7820_v59 = vld [vmem:[#allocation2 + $0x18] sm:$0xf0] }
  0xdd   : > { %v8971_v11 = vpop.f32.mrf.mxu2  ;;  %v2912_v4 = vsel %vm1795_vm10, %v2907_v8, %v2911_v5  ;;  %v1731_v17 = vunpack.c.l.b16 %v1443_v62  ;;  %v1444_v8 = vld [vmem:[#allocation2 + $0x14] sm:$0x1]  ;;  %v1802_v5 = vor.u32 %v1801_v57, %v1797_v14  ;;  %v7821_v62 = vld [vmem:[#allocation2 + $0x18] sm:$0xe]  ;;  %v1811_v57 = vshll.u32 %v8979_v35, 16 }
  0xde   : > { %10338 = vst [vmem:[#allocation42_spill] sm:$0xff] %v8971_v11  ;;  %v8975_v22 = vpop.f32.mrf.mxu0  ;;  %v8977_v51 = vpop.f32.mrf.mxu1  ;;  %v1166_v42 = vld [vmem:[#allocation2 + $0x20] sm:$0x1]  ;;  %3910 = vmatmul.bf16.vlgmr.msrb.gmra.mxu1 %v2912_v4 }
  0xdf   : > { %v8985_v41 = vpop.f32.mrf.mxu3  ;;  %v1167_v29 = vsel %vm8488_vm4, %v545_v21, %v1166_v42  ;;  %v8990_v27 = vpack.c.b16 %v1731_v17, %v1731_v17  ;;  %v8049_v21 = vld [vmem:[#allocation2 + $0x18] sm:$0xff]  }
  0xe0   : > { %10340 = vst [vmem:[#allocation44_spill] sm:$0xff] %v8985_v41  ;;  %v1173_v11 = vld [vmem:[#allocation2 + $0x2c] sm:$0x1]  ;;  %v2916_v42 = vshll.u32 %v8049_v21, 16  ;;  %v1732_v41 = vunpack.c.l.b16 %v1444_v8 }
  0xe1   : > { %10341 = vst [vmem:[#allocation45_spill] sm:$0xff] %v8990_v27  ;;  %v1174_v52 = vsel %vm8488_vm4, %v562_v16, %v1173_v11  ;;  %4392 = vmatmul.bf16.vlgmr.msrb.gmra.mxu3 %v7390_v18  ;;  %v1804_v13 = vshll.u32 %v8990_v27, 16  ;;  %v7822_v16 = vor.u32 %v7821_v62, %v7820_v59 }
  0xe2   : > { %1168 = vst [vmem:[#allocation2 + $0x20] sm:$0x1] %v1167_v29  ;;  %v1180_v11 = vld [vmem:[#allocation2 + $0x38] sm:$0x1]  ;;  %v2918_v8 = vrot.slane %v2916_v42, 1 }
  0xe3   : > { %1175 = vst [vmem:[#allocation2 + $0x2c] sm:$0x1] %v1174_v52  ;;  %v1806_v17 = vrot.slane %v1804_v13, 1  ;;  %v1181_v47 = vsel %vm8488_vm4, %v579_v28, %v1180_v11  ;;  %v2914_v13 = vshrl.u32 %v8049_v21, 16  ;;  %v3416_v39 = vrot.slane %v7822_v16, 1 }
  0xe4   : > { %1182 = vst [vmem:[#allocation2 + $0x38] sm:$0x1] %v1181_v47  ;;  %v1813_v28 = vrot.slane %v1811_v57, 1  ;;  %v8070_v42 = vld [vmem:[#allocation2 + $0x24] sm:$0xe] }
  0xe5   : > { %v8996_v4 = vpop.f32.mrf.mxu2  ;;  %v1807_v18 = vsel %vm1795_vm10, %v1802_v5, %v1806_v17  ;;  %v2919_v59 = vor.u32 %v2918_v8, %v2914_v13 }
  0xe6   : > { %10342 = vst [vmem:[#allocation46_spill] sm:$0xff] %v8996_v4  ;;  %v8998_v29 = vpop.f32.mrf.mxu0  ;;  %v9000_v53 = vpop.f32.mrf.mxu1  ;;  %4561 = vmatmul.bf16.vlgmr.msrb.gmra.mxu0 %v1807_v18  ;;  %v9008_v4 = vpack.c.b16 %v1732_v41, %v1732_v41  ;;  %v353_v41 = vld [vmem:[#allocation2 + $0x44] sm:$0x1] }
  0xe7   : > { %10343 = vst [vmem:[#allocation47_spill] sm:$0xff] %v9000_v53  ;;  %v9006_v52 = vpop.f32.mrf.mxu3  ;;  %v1809_v53 = vshrl.u32 %v8979_v35, 16 }
  0xe8   : > { %10344 = vst [vmem:[#allocation48_spill] sm:$0xff] %v9006_v52  ;;  %v1816_v47 = vshll.u32 %v9008_v4, 16 }
  0xe9   : > { %v2550_v14 = vld [vmem:[#allocation2 + $0x20] sm:$0x1]  ;;  %10345 = vst [vmem:[#allocation49_spill] sm:$0xff] %v9008_v4  ;;  %v1814_v57 = vor.u32 %v1813_v28, %v1809_v53  ;;  %v8071_v53 = vor.u32 %v8070_v42, %v8649_v10 }
  0xea   : > { %v2838_v27 = vunpack.c.l.b16 %v2550_v14  ;;  %v2551_v5 = vld [vmem:[#allocation2 + $0x2c] sm:$0x1]  ;;  %v1445_v8 = vld [vmem:[#allocation2 + $0x20] sm:$0x1] }
  0xeb   : > { %v2839_v16 = vunpack.c.l.b16 %v2551_v5  ;;  %v1733_v28 = vunpack.c.l.b16 %v1445_v8 }
  0xec   : > { %v2870_v46 = vpack.c.b16 %v2838_v27, %v2838_v27 }
  0xed   : > { %v9011_v11 = vpop.f32.mrf.mxu2  ;;  %v2871_v4 = vpack.c.b16 %v2839_v16, %v2839_v16 }
  0xee   : > { %10346 = vst [vmem:[#allocation50_spill] sm:$0xff] %v9011_v11  ;;  %v2921_v62 = vshll.u32 %v2870_v46, 16  ;;  %v3417_v17 = vrot.slane %v2870_v46, 1  ;;  %v9014_v18 = vpop.f32.mrf.mxu0  ;;  %v9016_v21 = vpop.f32.mrf.mxu1  ;;  %v1818_v11 = vrot.slane %v1816_v47, 1  ;;  %v354_v46 = vsel %vm8483_vm3, 0, %v353_v41 }
  0xef   : > { %10347 = vst [vmem:[#allocation51_spill] sm:$0xff] %v9016_v21  ;;  %v9023_v13 = vpop.f32.mrf.mxu3  ;;  %v2933_v41 = vshll.u32 %v2871_v4, 16  ;;  %v3420_v16 = vrot.slane %v2871_v4, 1 }
  0xf0   : > { %v2923_v14 = vrot.slane %v2921_v62, 1  ;;  %v3418_v27 = vsel %vm2308_vm9, %v3416_v39, %v3417_v17  ;;  %10348 = vst [vmem:[#allocation52_spill] sm:$0xff] %v9023_v13  ;;  %v2928_v62 = vshll.u32 %v8647_v7, 16  ;;  %v1819_v39 = vsel %vm1795_vm10, %v1814_v57, %v1818_v11 }
  0xf1   : > { %4084 = vmatmul.bf16.gmra.mxu2 %v3418_v27  ;;  %4397 = vmatmul.bf16.gmra.mxu3 %v8979_v35  ;;  %355 = vst [vmem:[#allocation2 + $0x44] sm:$0x1] %v354_v46  ;;  %v2926_v35 = vshrl.u32 %v8647_v7, 16  ;;  %v3419_v27 = vrot.slane %v8071_v53, 1  ;;  %v9036_v57 = vpack.c.b16 %v1733_v28, %v1733_v28  ;;  %v2935_v46 = vrot.slane %v2933_v41, 1 }
  0xf2   : > { %v2924_v52 = vsel %vm1795_vm10, %v2919_v59, %v2923_v14  ;;  %v7741_v59 = vld [vmem:[#allocation2 + $0x18] sm:$0xff]   ;;  %v2930_v47 = vrot.slane %v2928_v62, 1  ;;  %v356_v62 = vld [vmem:[#allocation2 + $0x50] sm:$0x1] }
  0xf3   : > { %3915 = vmatmul.bf16.gmra.mxu1 %v2924_v52  ;;  %v596_v52 = vrot.slane %v8726_v3, 4  ;;  %v1823_v11 = vshll.u32 %v7741_v59, 16  ;;  %10351 = vst [vmem:[#allocation55_spill] sm:$0xff] %v9036_v57  ;;  %v1821_v8 = vshrl.u32 %v7741_v59, 16  ;;  %v2552_v7 = vld [vmem:[#allocation2 + $0x38] sm:$0x1] }
  0xf4   : > { %v2931_v42 = vor.u32 %v2930_v47, %v2926_v35  ;;  %v1828_v4 = vshll.u32 %v9036_v57, 16  ;;  %v357_v28 = vsel %vm8483_vm3, 0, %v356_v62  ;;  %v9050_v47 = vld [vmem:[#allocation2 + $0x24] sm:$0xff]   ;;  %v2840_v41 = vunpack.c.l.b16 %v2552_v7  ;;  %v7823_v62 = vld [vmem:[#allocation2 + $0x30] sm:$0xf0] }
  0xf5   : > { %v9030_v17 = vpop.f32.mrf.mxu2  ;;  %358 = vst [vmem:[#allocation2 + $0x50] sm:$0x1] %v357_v28  ;;  %v1446_v57 = vld [vmem:[#allocation2 + $0x2c] sm:$0x1] }
  0xf6   : > { %v9028_v5 = vpop.f32.mrf.mxu1  ;;  %10350 = vst [vmem:[#allocation54_spill] sm:$0xff] %v9030_v17  ;;  %v9034_v14 = vpop.f32.mrf.mxu0  ;;  %4566 = vmatmul.bf16.gmra.mxu0 %v1819_v39  ;;  %v3421_v17 = vsel %vm2308_vm9, %v3419_v27, %v3420_v16  ;;  %v1825_v39 = vrot.slane %v1823_v11, 1  ;;  %v613_v27 = vrot.slane %v8777_v58, 4  ;;  %v1830_v11 = vrot.slane %v1828_v4, 1 }
  0xf7   : > { %10349 = vst [vmem:[#allocation53_spill] sm:$0xff] %v9028_v5  ;;  %v2872_v5 = vpack.c.b16 %v2840_v41, %v2840_v41  ;;  %v1734_v7 = vunpack.c.l.b16 %v1446_v57  ;;  %v7377_v41 = vld [vmem:[#allocation6 + $0x1f0] sm:$0xff]  ;;  %v1835_v57 = vshll.u32 %v9050_v47, 16 }
  0xf8   : > { %v1187_v10 = vld [vmem:[#allocation2 + $0x44] sm:$0x1]  ;;  %v9040_v3 = vpop.f32.mrf.mxu3  ;;  %v1826_v16 = vor.u32 %v1825_v39, %v1821_v8  ;;  %6310 = vmatpush.bf16.msra.mxu3 %v7377_v41 }
  0xf9   : > { %v1188_v13 = vsel %vm8488_vm4, %v596_v52, %v1187_v10  ;;  %10352 = vst [vmem:[#allocation56_spill] sm:$0xff] %v9040_v3  ;;  %v9052_v52 = vld [vmem:[#allocation2 + $0x24] sm:$0xf0]  ;;  %v7824_v3 = vld [vmem:[#allocation2 + $0x30] sm:$0xe]  ;;  %v2945_v4 = vshll.u32 %v2872_v5, 16 }
  0xfa   : > { %1189 = vst [vmem:[#allocation2 + $0x44] sm:$0x1] %v1188_v13  ;;  %v2936_v13 = vsel %vm1795_vm10, %v2931_v42, %v2935_v46  ;;  %v1831_v42 = vsel %vm1795_vm10, %v1826_v16, %v1830_v11  ;;  %v7825_v46 = vor.u32 %v7824_v3, %v7823_v62  ;;  %v3423_v16 = vrot.slane %v2872_v5, 1  ;;  %v7385_v11 = vld [vmem:[#allocation6 + $0x230] sm:$0xff] }
  0xfb   : > { %10355 = vst [vmem:[#allocation59_spill] sm:$0xff] %v9052_v52  ;;  %v9067_v3 = vpack.c.b16 %v1734_v7, %v1734_v7  ;;  %6479 = vmatpush.bf16.msra.mxu0 %v7385_v11  ;;  %v1833_v62 = vshrl.u32 %v9050_v47, 16  ;;  %v1837_v5 = vrot.slane %v1835_v57, 1  ;;  %v1447_v57 = vld [vmem:[#allocation2 + $0x38] sm:$0x1] }
  0xfc   : > { %v1194_v58 = vld [vmem:[#allocation2 + $0x50] sm:$0x1]  ;;  %v3422_v21 = vrot.slane %v7825_v46, 1 }
  0xfd   : > { %v9048_v35 = vpop.f32.mrf.mxu2  ;;  %10358 = vst [vmem:[#allocation62_spill] sm:$0xff] %v9067_v3  ;;  %v1840_v7 = vshll.u32 %v9067_v3, 16 }
  0xfe   : > { %v9044_v53 = vpop.f32.mrf.mxu1  ;;  %10354 = vst [vmem:[#allocation58_spill] sm:$0xff] %v9048_v35  ;;  %v9056_v10 = vpop.f32.mrf.mxu0  ;;  %v8050_v35 = vld [vmem:[#allocation2 + $0x30] sm:$0xff]   ;;  %v3424_v46 = vsel %vm2308_vm9, %v3422_v21, %v3423_v16  ;;  %v630_v21 = vrot.slane %v8836_v9, 4 }
  0xff   : > { %10353 = vst [vmem:[#allocation57_spill] sm:$0xff] %v9044_v53  ;;  %v2940_v53 = vshll.u32 %v8050_v35, 16  ;;  %v2938_v8 = vshrl.u32 %v8050_v35, 16  ;;  %v2947_v35 = vrot.slane %v2945_v4, 1  ;;  %v1838_v4 = vor.u32 %v1837_v5, %v1833_v62 }
 0x100   : > { %v9058_v52 = vpop.f32.mrf.mxu3  ;;  %v1842_v41 = vrot.slane %v1840_v7, 1  ;;  %v1735_v62 = vunpack.c.l.b16 %v1447_v57 }
 0x101   : > { %4089 = vmatmul.bf16.gmra.mxu2 %v3421_v17  ;;  %4402 = vmatmul.bf16.gmra.mxu3 %v7741_v59  ;;  %10356 = vst [vmem:[#allocation60_spill] sm:$0xff] %v9058_v52  ;;  %v1195_v17 = vsel %vm8488_vm4, %v613_v27, %v1194_v58  ;;  %v2942_v39 = vrot.slane %v2940_v53, 1  ;;  %v7337_v52 = vld [vmem:[#allocation6 + $0xb0] sm:$0xff]  ;;  %v359_v58 = vld [vmem:[#allocation2 + $0x5c] sm:$0x1] }
 0x102   : > { %1196 = vst [vmem:[#allocation2 + $0x50] sm:$0x1] %v1195_v17  ;;  %4723 = vmatpush.bf16.msra.mxu1 %v7337_v52  ;;  %v9096_v3 = vpack.c.b16 %v1735_v62, %v1735_v62 }
 0x103   : > { %3920 = vmatmul.bf16.gmra.mxu1 %v2936_v13  ;;  %v7369_v13 = vld [vmem:[#allocation6 + $0x1b0] sm:$0xff]  ;;  %v2943_v53 = vor.u32 %v2942_v39, %v2938_v8  ;;  %v8073_v8 = vld [vmem:[#allocation2 + $0x3c] sm:$0xe] }
 0x104   : > { %6141 = vmatpush.bf16.msra.mxu2 %v7369_v13  ;;  %v360_v13 = vsel %vm8483_vm3, 0, %v359_v58  ;;  %v2952_v58 = vshll.u32 %v8753_v49, 16  ;;  %10362 = vst [vmem:[#allocation66_spill] sm:$0xff] %v9096_v3 }
 0x105   : > { %361 = vst [vmem:[#allocation2 + $0x5c] sm:$0x1] %v360_v13  ;;  %v2948_v39 = vsel %vm1795_vm10, %v2943_v53, %v2947_v35  ;;  %v1843_v13 = vsel %vm1795_vm10, %v1838_v4, %v1842_v41  ;;  %v8074_v35 = vor.u32 %v8073_v8, %v8755_v50 }
 0x106   : > { %v9063_v59 = vpop.f32.mrf.mxu1  ;;  %4571 = vmatmul.bf16.gmra.mxu0 %v1831_v42  ;;  %v9065_v28 = vpop.f32.mrf.mxu2  ;;  %v2553_v42 = vld [vmem:[#allocation2 + $0x44] sm:$0x1]  ;;  %v2954_v7 = vrot.slane %v2952_v58, 1 }
 0x107   : > { %10357 = vst [vmem:[#allocation61_spill] sm:$0xff] %v9065_v28  ;;  %v9070_v27 = vpop.f32.mrf.mxu0  ;;  %v2841_v52 = vunpack.c.l.b16 %v2553_v42 }
 0x10a   : > { %v9075_v17 = vpop.f32.mrf.mxu3 }
 0x10b   : > { %10359 = vst [vmem:[#allocation63_spill] sm:$0xff] %v9075_v17  ;;  %v2873_v17 = vpack.c.b16 %v2841_v52, %v2841_v52  ;;  %v3425_v52 = vrot.slane %v8074_v35, 1  ;;  %v9106_v35 = vld [vmem:[#allocation2 + $0x3c] sm:$0xf0] }
 0x10c   : > { %v1201_v42 = vld [vmem:[#allocation2 + $0x5c] sm:$0x1]  ;;  %10364 = vst [vmem:[#allocation68_spill] sm:$0xff] %v9106_v35  ;;  %v2964_v35 = vshll.u32 %v8822_v12, 16 }
 0x10d   : > { %v1202_v9 = vsel %vm8488_vm4, %v630_v21, %v1201_v42  ;;  %v3426_v4 = vrot.slane %v2873_v17, 1  ;;  %v2554_v21 = vld [vmem:[#allocation2 + $0x50] sm:$0x1]  ;;  %v362_v42 = vld [vmem:[#allocation2 + $0x68] sm:$0x1] }
 0x10e   : > { %v9080_v11 = vpop.f32.mrf.mxu1  ;;  %v9084_v16 = vpop.f32.mrf.mxu2  ;;  %1203 = vst [vmem:[#allocation2 + $0x5c] sm:$0x1] %v1202_v9  ;;  %v1852_v9 = vshll.u32 %v9096_v3, 16  ;;  %v1448_v3 = vld [vmem:[#allocation2 + $0x44] sm:$0x1] }
 0x10f   : > { %10360 = vst [vmem:[#allocation64_spill] sm:$0xff] %v9084_v16  ;;  %v9088_v53 = vpop.f32.mrf.mxu0 }
 0x111   : > { %4094 = vmatmul.bf16.gmra.mxu2 %v3424_v46  ;;  %4407 = vmatmul.bf16.gmra.mxu3 %v9050_v47  ;;  %v7742_v46 = vld [vmem:[#allocation2 + $0x30] sm:$0xff]   ;;  %v2950_v47 = vshrl.u32 %v8753_v49, 16  ;;  %v3427_v49 = vsel %vm2308_vm9, %v3425_v52, %v3426_v4  ;;  %v1854_v52 = vrot.slane %v1852_v9, 1  ;;  %v8051_v9 = vld [vmem:[#allocation2 + $0x48] sm:$0xff]  }
 0x112   : > { %v9093_v5 = vpop.f32.mrf.mxu3  ;;  %v1847_v41 = vshll.u32 %v7742_v46, 16  ;;  %v1845_v16 = vshrl.u32 %v7742_v46, 16 }
 0x113   : > { %3925 = vmatmul.bf16.gmra.mxu1 %v2948_v39  ;;  %10361 = vst [vmem:[#allocation65_spill] sm:$0xff] %v9093_v5  ;;  %v2957_v39 = vshll.u32 %v2873_v17, 16  ;;  %v2955_v8 = vor.u32 %v2954_v7, %v2950_v47  ;;  %v363_v17 = vsel %vm8483_vm3, 0, %v362_v42  ;;  %v2842_v7 = vunpack.c.l.b16 %v2554_v21  ;;  %v7827_v42 = vld [vmem:[#allocation2 + $0x48] sm:$0xe] }
 0x114   : > { %v1849_v58 = vrot.slane %v1847_v41, 1  ;;  %364 = vst [vmem:[#allocation2 + $0x68] sm:$0x1] %v363_v17  ;;  %v7826_v41 = vld [vmem:[#allocation2 + $0x48] sm:$0xf0] }
 0x115   : > { %v2959_v57 = vrot.slane %v2957_v39, 1  ;;  %v647_v39 = vrot.slane %v8890_v19, 4  ;;  %v7828_v19 = vor.u32 %v7827_v42, %v7826_v41  ;;  %v2555_v42 = vld [vmem:[#allocation2 + $0x5c] sm:$0x1] }
 0x116   : > { %4576 = vmatmul.bf16.gmra.mxu0 %v1843_v13  ;;  %v9098_v50 = vpop.f32.mrf.mxu1  ;;  %v9100_v28 = vpop.f32.mrf.mxu2  ;;  %v1389_v13 = vld [vmem:[#allocation2 + $0x3c] sm:$0xff]   ;;  %v1850_v5 = vor.u32 %v1849_v58, %v1845_v16 }
 0x117   : > { %10363 = vst [vmem:[#allocation67_spill] sm:$0xff] %v9100_v28  ;;  %v2960_v62 = vsel %vm1795_vm10, %v2955_v8, %v2959_v57  ;;  %v9109_v47 = vpop.f32.mrf.mxu0  ;;  %v2874_v8 = vpack.c.b16 %v2842_v7, %v2842_v7  ;;  %v3428_v7 = vrot.slane %v7828_v19, 1  ;;  %v1857_v41 = vshrl.u32 %v1389_v13, 16 }
 0x118   : > { %v1855_v21 = vsel %vm1795_vm10, %v1850_v5, %v1854_v52 }
 0x11b   : > { %v1208_v16 = vld [vmem:[#allocation2 + $0x68] sm:$0x1] }
 0x11c   : > { %v9112_v4 = vpop.f32.mrf.mxu3  ;;  %v1209_v58 = vsel %vm8488_vm4, %v647_v39, %v1208_v16  ;;  %v365_v39 = vld [vmem:[#allocation2 + $0x74] sm:$0x1] }
 0x11d   : > { %10365 = vst [vmem:[#allocation69_spill] sm:$0xff] %v9112_v4  ;;  %v2969_v4 = vshll.u32 %v2874_v8, 16 }
 0x11e   : > { %v9117_v57 = vpop.f32.mrf.mxu2  ;;  %1210 = vst [vmem:[#allocation2 + $0x68] sm:$0x1] %v1209_v58 }
 0x11f   : > { %v9115_v17 = vpop.f32.mrf.mxu1  ;;  %10367 = vst [vmem:[#allocation71_spill] sm:$0xff] %v9117_v57  ;;  %v9124_v28 = vpop.f32.mrf.mxu0  ;;  %v3429_v57 = vrot.slane %v2874_v8, 1  ;;  %v2971_v52 = vrot.slane %v2969_v4, 1  ;;  %v8076_v8 = vld [vmem:[#allocation2 + $0x54] sm:$0xe]  ;;  %v2843_v4 = vunpack.c.l.b16 %v2555_v42 }
 0x120   : > { %10366 = vst [vmem:[#allocation70_spill] sm:$0xff] %v9115_v17  ;;  %v1859_v17 = vshll.u32 %v1389_v13, 16 }
 0x121   : > { %4099 = vmatmul.bf16.gmra.mxu2 %v3427_v49  ;;  %4412 = vmatmul.bf16.gmra.mxu3 %v7742_v46  ;;  %v1736_v49 = vunpack.c.l.b16 %v1448_v3  ;;  %v2962_v46 = vshrl.u32 %v8051_v9, 16  ;;  %v3430_v16 = vsel %vm2308_vm9, %v3428_v7, %v3429_v57  ;;  %v366_v9 = vsel %vm8483_vm3, 0, %v365_v39  ;;  %v1449_v57 = vld [vmem:[#allocation2 + $0x50] sm:$0x1] }
 0x122   : > { %367 = vst [vmem:[#allocation2 + $0x74] sm:$0x1] %v366_v9  ;;  %v2976_v7 = vshll.u32 %v8863_v55, 16 }
 0x123   : > { %3930 = vmatmul.bf16.gmra.mxu1 %v2960_v62  ;;  %v2966_v62 = vrot.slane %v2964_v35, 1  ;;  %v9126_v5 = vpack.c.b16 %v1736_v49, %v1736_v49  ;;  %v1861_v35 = vrot.slane %v1859_v17, 1  ;;  %v664_v17 = vrot.slane %v8518_v33, 4 }
 0x124   : > { %v9122_v12 = vpop.f32.mrf.mxu3  ;;  %v2974_v33 = vshrl.u32 %v8863_v55, 16 }
 0x125   : > { %10368 = vst [vmem:[#allocation72_spill] sm:$0xff] %v9122_v12  ;;  %v2967_v3 = vor.u32 %v2966_v62, %v2962_v46  ;;  %v1864_v58 = vshll.u32 %v9126_v5, 16  ;;  %v1862_v46 = vor.u32 %v1861_v35, %v1857_v41  ;;  %v7743_v41 = vld [vmem:[#allocation2 + $0x48] sm:$0xff]  }
 0x126   : > { %4581 = vmatmul.bf16.gmra.mxu0 %v1855_v21  ;;  %10369 = vst [vmem:[#allocation73_spill] sm:$0xff] %v9126_v5  ;;  %v2875_v5 = vpack.c.b16 %v2843_v4, %v2843_v4 }
 0x127   : > { %v9130_v21 = vpop.f32.mrf.mxu1  ;;  %v2972_v49 = vsel %vm1795_vm10, %v2967_v3, %v2971_v52  ;;  %v1866_v62 = vrot.slane %v1864_v58, 1  ;;  %v9141_v39 = vpop.f32.mrf.mxu0  ;;  %v8077_v3 = vor.u32 %v8076_v8, %v8865_v1  ;;  %v1737_v52 = vunpack.c.l.b16 %v1449_v57 }
 0x128   : > { %10370 = vst [vmem:[#allocation74_spill] sm:$0xff] %v9130_v21  ;;  %v2981_v58 = vshll.u32 %v2875_v5, 16 }
 0x129   : > { %v1867_v9 = vsel %vm1795_vm10, %v1862_v46, %v1866_v62  ;;  %v1215_v42 = vld [vmem:[#allocation2 + $0x74] sm:$0x1]  ;;  %v3431_v4 = vrot.slane %v8077_v3, 1  ;;  %v3432_v46 = vrot.slane %v2875_v5, 1  ;;  %v1871_v62 = vshll.u32 %v7743_v41, 16 }
 0x12a   : > { %v9152_v1 = vpack.c.b16 %v1737_v52, %v1737_v52  ;;  %v9162_v3 = vld [vmem:[#allocation2 + $0x54] sm:$0xff]  }
 0x12b   : > { %v9134_v19 = vpop.f32.mrf.mxu2  ;;  %v3433_v55 = vsel %vm2308_vm9, %v3431_v4, %v3432_v46  ;;  %v9164_v52 = vld [vmem:[#allocation2 + $0x54] sm:$0xf0] }
 0x12c   : > { %10371 = vst [vmem:[#allocation75_spill] sm:$0xff] %v9134_v19  ;;  %v368_v19 = vld [vmem:[#allocation2 + $0x80] sm:$0x1] }
 0x12d   : > { %10375 = vst [vmem:[#allocation79_spill] sm:$0xff] %v9152_v1  ;;  %v369_v5 = vsel %vm8483_vm3, 0, %v368_v19  ;;  %v7829_v19 = vld [vmem:[#allocation2 + $0x60] sm:$0xf0] }
 0x12e   : > { %10377 = vst [vmem:[#allocation81_spill] sm:$0xff] %v9164_v52  ;;  %v2988_v52 = vshll.u32 %v8934_v43, 16 }
 0x12f   : > { %370 = vst [vmem:[#allocation2 + $0x80] sm:$0x1] %v369_v5 }
 0x130   : > { %v9137_v12 = vpop.f32.mrf.mxu3 }
 0x131   : > { %4104 = vmatmul.bf16.gmra.mxu2 %v3430_v16  ;;  %10372 = vst [vmem:[#allocation76_spill] sm:$0xff] %v9137_v12  ;;  %4417 = vmatmul.bf16.gmra.mxu3 %v1389_v13  ;;  %v1216_v16 = vsel %vm8488_vm4, %v664_v17, %v1215_v42  ;;  %v9147_v35 = vpop.f32.mrf.mxu1  ;;  %v2978_v13 = vrot.slane %v2976_v7, 1  ;;  %v2983_v12 = vrot.slane %v2981_v58, 1  ;;  %v1869_v17 = vshrl.u32 %v7743_v41, 16  ;;  %v2556_v42 = vld [vmem:[#allocation2 + $0x68] sm:$0x1] }
 0x132   : > { %10373 = vst [vmem:[#allocation77_spill] sm:$0xff] %v9147_v35  ;;  %v9156_v35 = vpop.f32.mrf.mxu0  ;;  %v1873_v7 = vrot.slane %v1871_v62, 1  ;;  %v681_v58 = vrot.slane %v8577_v54, 4 }
 0x133   : > { %3935 = vmatmul.bf16.gmra.mxu1 %v2972_v49  ;;  %1217 = vst [vmem:[#allocation2 + $0x74] sm:$0x1] %v1216_v16  ;;  %v9150_v49 = vpop.f32.mrf.mxu2  ;;  %v2979_v57 = vor.u32 %v2978_v13, %v2974_v33  ;;  %v2844_v13 = vunpack.c.l.b16 %v2556_v42 }
 0x134   : > { %10374 = vst [vmem:[#allocation78_spill] sm:$0xff] %v9150_v49  ;;  %v1874_v4 = vor.u32 %v1873_v7, %v1869_v17 }
 0x135   : > { %v2984_v16 = vsel %vm1795_vm10, %v2979_v57, %v2983_v12  ;;  %v2876_v5 = vpack.c.b16 %v2844_v13, %v2844_v13  ;;  %v7376_v13 = vld [vmem:[#allocation6 + $0x1e8] sm:$0xff] }
 0x136   : > { %4586 = vmatmul.bf16.gmra.mxu0 %v1867_v9  ;;  %v1876_v9 = vshll.u32 %v9152_v1, 16  ;;  %v7830_v1 = vld [vmem:[#allocation2 + $0x60] sm:$0xe]  ;;  %v1222_v54 = vld [vmem:[#allocation2 + $0x80] sm:$0x1]  ;;  %6311 = vmatpush.bf16.msra.mxu3 %v7376_v13 }
 0x137   : > { %v7831_v42 = vor.u32 %v7830_v1, %v7829_v19  ;;  %v1223_v17 = vsel %vm8488_vm4, %v681_v58, %v1222_v54  ;;  %v1883_v1 = vshll.u32 %v9162_v3, 16  ;;  %v1881_v58 = vshrl.u32 %v9162_v3, 16 }
 0x138   : > { %v9154_v8 = vpop.f32.mrf.mxu3  ;;  %v1878_v46 = vrot.slane %v1876_v9, 1  ;;  %v2993_v9 = vshll.u32 %v2876_v5, 16  ;;  %1224 = vst [vmem:[#allocation2 + $0x80] sm:$0x1] %v1223_v17 }
 0x139   : > { %10376 = vst [vmem:[#allocation80_spill] sm:$0xff] %v9154_v8  ;;  %v9167_v33 = vpop.f32.mrf.mxu1  ;;  %v1450_v8 = vld [vmem:[#allocation2 + $0x5c] sm:$0x1] }
 0x13a   : > { %10378 = vst [vmem:[#allocation82_spill] sm:$0xff] %v9167_v33  ;;  %v1879_v12 = vsel %vm1795_vm10, %v1874_v4, %v1878_v46  ;;  %v1738_v49 = vunpack.c.l.b16 %v1450_v8  ;;  %v9179_v7 = vpop.f32.mrf.mxu0  ;;  %v3434_v4 = vrot.slane %v7831_v42, 1  ;;  %v3435_v46 = vrot.slane %v2876_v5, 1  ;;  %v2557_v54 = vld [vmem:[#allocation2 + $0x74] sm:$0x1] }
 0x13b   : > { %v9170_v62 = vpop.f32.mrf.mxu2  ;;  %v1885_v42 = vrot.slane %v1883_v1, 1  ;;  %v715_v33 = vrot.slane %v8689_v26, 4 }
 0x13c   : > { %10379 = vst [vmem:[#allocation83_spill] sm:$0xff] %v9170_v62  ;;  %v9184_v8 = vpack.c.b16 %v1738_v49, %v1738_v49  ;;  %v7384_v49 = vld [vmem:[#allocation6 + $0x228] sm:$0xff] }
 0x13d   : > { %6480 = vmatpush.bf16.msra.mxu0 %v7384_v49  ;;  %v1886_v13 = vor.u32 %v1885_v42, %v1881_v58  ;;  %v2998_v42 = vshrl.u32 %v8559_v30, 16 }
 0x13e   : > { %10382 = vst [vmem:[#allocation86_spill] sm:$0xff] %v9184_v8  ;;  %v1888_v5 = vshll.u32 %v9184_v8, 16 }
 0x140   : > { %v9174_v57 = vpop.f32.mrf.mxu3 }
 0x141   : > { %4109 = vmatmul.bf16.gmra.mxu2 %v3433_v55  ;;  %4422 = vmatmul.bf16.gmra.mxu3 %v7743_v41  ;;  %10380 = vst [vmem:[#allocation84_spill] sm:$0xff] %v9174_v57  ;;  %v2986_v41 = vshrl.u32 %v8934_v43, 16  ;;  %v2990_v55 = vrot.slane %v2988_v52, 1  ;;  %v2995_v52 = vrot.slane %v2993_v9, 1  ;;  %v3436_v57 = vsel %vm2308_vm9, %v3434_v4, %v3435_v46 }
 0x142   : > { %v9196_v9 = vpop.f32.mrf.mxu0  ;;  %v1890_v4 = vrot.slane %v1888_v5, 1  ;;  %v698_v46 = vrot.slane %v8627_v25, 4  ;;  %v7744_v25 = vld [vmem:[#allocation2 + $0x60] sm:$0xff]  }
 0x143   : > { %3940 = vmatmul.bf16.gmra.mxu1 %v2984_v16  ;;  %v7368_v16 = vld [vmem:[#allocation6 + $0x1a8] sm:$0xff]  ;;  %v9181_v62 = vpop.f32.mrf.mxu1  ;;  %v9186_v19 = vpop.f32.mrf.mxu2  ;;  %v2991_v43 = vor.u32 %v2990_v55, %v2986_v41  ;;  %v2845_v55 = vunpack.c.l.b16 %v2557_v54 }
 0x144   : > { %10381 = vst [vmem:[#allocation85_spill] sm:$0xff] %v9181_v62  ;;  %6142 = vmatpush.bf16.msra.mxu2 %v7368_v16  ;;  %v7336_v62 = vld [vmem:[#allocation6 + $0xa8] sm:$0xff]  ;;  %v8079_v16 = vld [vmem:[#allocation2 + $0x6c] sm:$0xe] }
 0x145   : > { %10383 = vst [vmem:[#allocation87_spill] sm:$0xff] %v9186_v19  ;;  %v2996_v41 = vsel %vm1795_vm10, %v2991_v43, %v2995_v52  ;;  %4724 = vmatpush.bf16.msra.mxu1 %v7336_v62  ;;  %v2877_v43 = vpack.c.b16 %v2845_v55, %v2845_v55  ;;  %v1891_v62 = vsel %vm1795_vm10, %v1886_v13, %v1890_v4 }
 0x146   : > { %4591 = vmatmul.bf16.gmra.mxu0 %v1879_v12  ;;  %v371_v12 = vld [vmem:[#allocation2 + $0x8c] sm:$0x1]  ;;  %v8080_v52 = vor.u32 %v8079_v16, %v8561_v32 }
 0x147   : > { %v372_v19 = vsel %vm8483_vm3, 0, %v371_v12  ;;  %v1451_v12 = vld [vmem:[#allocation2 + $0x68] sm:$0x1]  ;;  %v3005_v49 = vshll.u32 %v2877_v43, 16  ;;  %v3438_v55 = vrot.slane %v2877_v43, 1 }
 0x148   : > { %v9189_v17 = vpop.f32.mrf.mxu3  ;;  %373 = vst [vmem:[#allocation2 + $0x8c] sm:$0x1] %v372_v19  ;;  %v3000_v19 = vshll.u32 %v8559_v30, 16  ;;  %v1739_v58 = vunpack.c.l.b16 %v1451_v12 }
 0x149   : > { %10384 = vst [vmem:[#allocation88_spill] sm:$0xff] %v9189_v17  ;;  %v1895_v17 = vshll.u32 %v7744_v25, 16  ;;  %v3007_v12 = vrot.slane %v3005_v49, 1 }
 0x14a   : > { %v3002_v5 = vrot.slane %v3000_v19, 1  ;;  %v9212_v13 = vpack.c.b16 %v1739_v58, %v1739_v58  ;;  %v9216_v32 = vpop.f32.mrf.mxu0  ;;  %v9224_v58 = vld [vmem:[#allocation2 + $0x6c] sm:$0xf0] }
 0x14b   : > { %v9203_v8 = vpop.f32.mrf.mxu1  ;;  %10391 = vst [vmem:[#allocation95_spill] sm:$0xff] %v9224_v58 }
 0x14c   : > { %10386 = vst [vmem:[#allocation90_spill] sm:$0xff] %v9203_v8  ;;  %v3003_v16 = vor.u32 %v3002_v5, %v2998_v42  ;;  %v1900_v43 = vshll.u32 %v9212_v13, 16  ;;  %v8052_v8 = vld [vmem:[#allocation2 + $0x78] sm:$0xff]  }
 0x14d   : > { %10388 = vst [vmem:[#allocation92_spill] sm:$0xff] %v9212_v13  ;;  %v1452_v13 = vld [vmem:[#allocation2 + $0x74] sm:$0x1]  ;;  %v3012_v58 = vshll.u32 %v8052_v8, 16 }
 0x14e   : > { %v9200_v1 = vpop.f32.mrf.mxu2  ;;  %v3008_v42 = vsel %vm1795_vm10, %v3003_v16, %v3007_v12 }
 0x14f   : > { %10385 = vst [vmem:[#allocation89_spill] sm:$0xff] %v9200_v1  ;;  %v1229_v54 = vld [vmem:[#allocation2 + $0x8c] sm:$0x1]  ;;  %v2558_v1 = vld [vmem:[#allocation2 + $0x80] sm:$0x1] }
 0x150   : > { %v2846_v5 = vunpack.c.l.b16 %v2558_v1 }
 0x151   : > { %4114 = vmatmul.bf16.gmra.mxu2 %v3436_v57  ;;  %4427 = vmatmul.bf16.gmra.mxu3 %v9162_v3  ;;  %v1230_v3 = vsel %vm8488_vm4, %v698_v46, %v1229_v54  ;;  %v374_v46 = vld [vmem:[#allocation2 + $0x98] sm:$0x1] }
 0x152   : > { %1231 = vst [vmem:[#allocation2 + $0x8c] sm:$0x1] %v1230_v3  ;;  %v375_v3 = vsel %vm8483_vm3, 0, %v374_v46 }
 0x153   : > { %3945 = vmatmul.bf16.gmra.mxu1 %v2996_v41  ;;  %v3437_v41 = vrot.slane %v8080_v52, 1  ;;  %v9222_v52 = vld [vmem:[#allocation2 + $0x6c] sm:$0xff]   ;;  %376 = vst [vmem:[#allocation2 + $0x98] sm:$0x1] %v375_v3  ;;  %v2878_v3 = vpack.c.b16 %v2846_v5, %v2846_v5 }
 0x154   : > { %v9206_v57 = vpop.f32.mrf.mxu3  ;;  %v1907_v26 = vshll.u32 %v9222_v52, 16 }
 0x155   : > { %10387 = vst [vmem:[#allocation91_spill] sm:$0xff] %v9206_v57  ;;  %v1893_v57 = vshrl.u32 %v7744_v25, 16  ;;  %v3439_v19 = vsel %vm2308_vm9, %v3437_v41, %v3438_v55  ;;  %v7832_v41 = vld [vmem:[#allocation2 + $0x78] sm:$0xf0]  ;;  %v7833_v55 = vld [vmem:[#allocation2 + $0x78] sm:$0xe] }
 0x156   : > { %4596 = vmatmul.bf16.gmra.mxu0 %v1891_v62  ;;  %v9214_v4 = vpop.f32.mrf.mxu2  ;;  %v1897_v62 = vrot.slane %v1895_v17, 1  ;;  %v7834_v12 = vor.u32 %v7833_v55, %v7832_v41  ;;  %v1905_v55 = vshrl.u32 %v9222_v52, 16 }
 0x157   : > { %10389 = vst [vmem:[#allocation93_spill] sm:$0xff] %v9214_v4  ;;  %v1902_v4 = vrot.slane %v1900_v43, 1  ;;  %v3017_v43 = vshll.u32 %v2878_v3, 16 }
 0x15b   : > { %v3911_v30 = vpop.f32.mrf.mxu1 }
 0x15c   : > { %v9218_v54 = vpop.f32.mrf.mxu3  ;;  %v3912_v49 = vadd.f32 %v3911_v30, %v8945_v6  ;;  %v1740_v6 = vunpack.c.l.b16 %v1452_v13 }
 0x15d   : > { %10390 = vst [vmem:[#allocation94_spill] sm:$0xff] %v9218_v54  ;;  %v1898_v54 = vor.u32 %v1897_v62, %v1893_v57  ;;  %v1236_v57 = vld [vmem:[#allocation2 + $0x98] sm:$0x1]  ;;  %v3014_v62 = vrot.slane %v3012_v58, 1  ;;  %v3019_v58 = vrot.slane %v3017_v43, 1 }
 0x15e   : > { %v9238_v13 = vpack.c.b16 %v1740_v6, %v1740_v6 }
 0x15f   : > { %v4080_v17 = vpop.f32.mrf.mxu2  ;;  %v1903_v1 = vsel %vm1795_vm10, %v1898_v54, %v1902_v4  ;;  %v3440_v54 = vrot.slane %v7834_v12, 1  ;;  %v8082_v12 = vld [vmem:[#allocation2 + $0x84] sm:$0xe] }
 0x160   : > { %v4081_v46 = vadd.f32 %v4080_v17, %v3912_v49  ;;  %v3441_v49 = vrot.slane %v2878_v3, 1 }
 0x161   : > { %4119 = vmatmul.bf16.gmra.mxu2 %v3439_v19  ;;  %4432 = vmatmul.bf16.gmra.mxu3 %v7744_v25  ;;  %v3010_v25 = vshrl.u32 %v8052_v8, 16 }
 0x163   : > { %3950 = vmatmul.bf16.gmra.mxu1 %v3008_v42  ;;  %v4562_v21 = vpop.f32.mrf.mxu0  ;;  %v3913_v19 = vpop.f32.mrf.mxu1  ;;  %v1237_v42 = vsel %vm8488_vm4, %v715_v33, %v1236_v57  ;;  %v3015_v41 = vor.u32 %v3014_v62, %v3010_v25  ;;  %v377_v33 = vld [vmem:[#allocation2 + $0xa4] sm:$0x1]  ;;  %v3442_v57 = vsel %vm2308_vm9, %v3440_v54, %v3441_v49  ;;  %v1453_v54 = vld [vmem:[#allocation2 + $0x80] sm:$0x1]  ;;  %v3024_v49 = vshll.u32 %v8659_v36, 16 }
 0x164   : > { %v4393_v16 = vpop.f32.mrf.mxu3  ;;  %1238 = vst [vmem:[#allocation2 + $0x98] sm:$0x1] %v1237_v42  ;;  %v3914_v4 = vadd.f32 %v3913_v19, %v8959_v63  ;;  %v378_v63 = vsel %vm8483_vm3, 0, %v377_v33 }
 0x165   : > { %v4394_v30 = vadd.f32 %v4393_v16, %v4081_v46  ;;  %v2559_v46 = vld [vmem:[#allocation2 + $0x8c] sm:$0x1]  ;;  %379 = vst [vmem:[#allocation2 + $0xa4] sm:$0x1] %v378_v63  ;;  %v3020_v19 = vsel %vm1795_vm10, %v3015_v41, %v3019_v58 }
 0x166   : > { %4601 = vmatmul.bf16.gmra.mxu0 %v1903_v1  ;;  %v2847_v25 = vunpack.c.l.b16 %v2559_v46 }
 0x167   : > { %v9235_v5 = vadd.f32 %v4562_v21, %v4394_v30  ;;  %v4082_v17 = vpop.f32.mrf.mxu2  ;;  %v1909_v21 = vrot.slane %v1907_v26, 1  ;;  %v1912_v30 = vshll.u32 %v9238_v13, 16 }
 0x168   : > { %v4083_v8 = vadd.f32 %v4082_v17, %v3914_v4  ;;  %v732_v4 = vrot.slane %v8731_v34, 4 }
 0x169   : > { %v1910_v43 = vor.u32 %v1909_v21, %v1905_v55  ;;  %v1914_v42 = vrot.slane %v1912_v30, 1  ;;  %v8083_v55 = vor.u32 %v8082_v12, %v8661_v37  ;;  %v3022_v21 = vshrl.u32 %v8659_v36, 16  ;;  %v380_v36 = vld [vmem:[#allocation2 + $0xb0] sm:$0x1] }
 0x16a   : > { %v3026_v30 = vrot.slane %v3024_v49, 1 }
 0x16b   : > { %v4564_v1 = vpop.f32.mrf.mxu0  ;;  %v1915_v58 = vsel %vm1795_vm10, %v1910_v43, %v1914_v42 }
 0x16c   : > { %v4395_v16 = vpop.f32.mrf.mxu3  ;;  %v3027_v42 = vor.u32 %v3026_v30, %v3022_v21 }
 0x16d   : > { %v4396_v3 = vadd.f32 %v4395_v16, %v4083_v8  ;;  %v2879_v8 = vpack.c.b16 %v2847_v25, %v2847_v25  ;;  %v1243_v16 = vld [vmem:[#allocation2 + $0xa4] sm:$0x1] }
 0x16f   : > { %v9246_v62 = vadd.f32 %v4564_v1, %v4396_v3  ;;  %v1741_v1 = vunpack.c.l.b16 %v1453_v54  ;;  %v3029_v63 = vshll.u32 %v2879_v8, 16 }
 0x170   : > { %v3916_v6 = vpop.f32.mrf.mxu1 }
 0x171   : > { %4124 = vmatmul.bf16.gmra.mxu2 %v3442_v57  ;;  %v3917_v26 = vadd.f32 %v3916_v6, %v8975_v22  ;;  %4437 = vmatmul.bf16.gmra.mxu3 %v9222_v52  ;;  %v7745_v57 = vld [vmem:[#allocation2 + $0x78] sm:$0xff]   ;;  %v1244_v22 = vsel %vm8488_vm4, %v732_v4, %v1243_v16  ;;  %v3443_v6 = vrot.slane %v8083_v55, 1  ;;  %v9259_v37 = vpack.c.b16 %v1741_v1, %v1741_v1  ;;  %v9266_v1 = vld [vmem:[#allocation2 + $0x84] sm:$0xff]  }
 0x172   : > { %1245 = vst [vmem:[#allocation2 + $0xa4] sm:$0x1] %v1244_v22  ;;  %v1919_v25 = vshll.u32 %v7745_v57, 16  ;;  %v1917_v54 = vshrl.u32 %v7745_v57, 16 }
 0x173   : > { %3955 = vmatmul.bf16.gmra.mxu1 %v3020_v19  ;;  %v4567_v41 = vpop.f32.mrf.mxu0  ;;  %v3444_v19 = vrot.slane %v2879_v8, 1  ;;  %v381_v8 = vsel %vm8483_vm3, 0, %v380_v36 }
 0x174   : > { %v4085_v17 = vpop.f32.mrf.mxu2  ;;  %v4398_v46 = vpop.f32.mrf.mxu3  ;;  %382 = vst [vmem:[#allocation2 + $0xb0] sm:$0x1] %v381_v8 }
 0x175   : > { %v4086_v33 = vadd.f32 %v4085_v17, %v3917_v26  ;;  %v3031_v26 = vrot.slane %v3029_v63, 1  ;;  %v2560_v17 = vld [vmem:[#allocation2 + $0x98] sm:$0x1] }
 0x176   : > { %4606 = vmatmul.bf16.gmra.mxu0 %v1915_v58  ;;  %v3445_v58 = vsel %vm2308_vm9, %v3443_v6, %v3444_v19  ;;  %v2848_v22 = vunpack.c.l.b16 %v2560_v17  ;;  %v7835_v19 = vld [vmem:[#allocation2 + $0x90] sm:$0xf0] }
 0x177   : > { %v4399_v34 = vadd.f32 %v4398_v46, %v4086_v33  ;;  %v1924_v46 = vshll.u32 %v9259_v37, 16 }
 0x178   : > { %v3918_v52 = vpop.f32.mrf.mxu1 }
 0x179   : > { %v9257_v3 = vadd.f32 %v4567_v41, %v4399_v34  ;;  %v3919_v12 = vadd.f32 %v3918_v52, %v8998_v29  ;;  %v1921_v41 = vrot.slane %v1919_v25, 1  ;;  %v9268_v29 = vld [vmem:[#allocation2 + $0x84] sm:$0xf0]  ;;  %v3032_v34 = vsel %vm1795_vm10, %v3027_v42, %v3031_v26  ;;  %v7836_v25 = vld [vmem:[#allocation2 + $0x90] sm:$0xe] }
 0x17a   : > { %v749_v52 = vrot.slane %v8794_v61, 4  ;;  %v1926_v63 = vrot.slane %v1924_v46, 1 }
 0x17b   : > { %v4569_v49 = vpop.f32.mrf.mxu0  ;;  %v1922_v30 = vor.u32 %v1921_v41, %v1917_v54  ;;  %v1250_v54 = vld [vmem:[#allocation2 + $0xb0] sm:$0x1] }
 0x17c   : > { %v4087_v43 = vpop.f32.mrf.mxu2  ;;  %v4400_v33 = vpop.f32.mrf.mxu3 }
 0x17d   : > { %v4088_v4 = vadd.f32 %v4087_v43, %v3919_v12  ;;  %v1454_v12 = vld [vmem:[#allocation2 + $0x8c] sm:$0x1]  ;;  %v8053_v43 = vld [vmem:[#allocation2 + $0x90] sm:$0xff]   ;;  %v1927_v61 = vsel %vm1795_vm10, %v1922_v30, %v1926_v63  ;;  %v1931_v63 = vshll.u32 %v9266_v1, 16 }
 0x17f   : > { %v4401_v55 = vadd.f32 %v4400_v33, %v4088_v4  ;;  %v3036_v4 = vshll.u32 %v8053_v43, 16  ;;  %v2880_v33 = vpack.c.b16 %v2848_v22, %v2848_v22 }
 0x180   : > { %v3921_v16 = vpop.f32.mrf.mxu1 }
 0x181   : > { %4129 = vmatmul.bf16.gmra.mxu2 %v3445_v58  ;;  %v9272_v21 = vadd.f32 %v4569_v49, %v4401_v55  ;;  %v3922_v6 = vadd.f32 %v3921_v16, %v9014_v18  ;;  %4442 = vmatmul.bf16.gmra.mxu3 %v7745_v57  ;;  %v7837_v49 = vor.u32 %v7836_v25, %v7835_v19  ;;  %v1742_v58 = vunpack.c.l.b16 %v1454_v12  ;;  %v7367_v16 = vld [vmem:[#allocation6 + $0x1a0] sm:$0xff] }
 0x182   : > { %v1251_v18 = vsel %vm8488_vm4, %v749_v52, %v1250_v54  ;;  %v3034_v57 = vshrl.u32 %v8053_v43, 16  ;;  %v3038_v46 = vrot.slane %v3036_v4, 1  ;;  %v3041_v55 = vshll.u32 %v2880_v33, 16  ;;  %6143 = vmatpush.bf16.msra.mxu2 %v7367_v16  ;;  %v7335_v54 = vld [vmem:[#allocation6 + $0xa0] sm:$0xff] }
 0x183   : > { %3960 = vmatmul.bf16.gmra.mxu1 %v3032_v34  ;;  %v4572_v26 = vpop.f32.mrf.mxu0  ;;  %1252 = vst [vmem:[#allocation2 + $0xb0] sm:$0x1] %v1251_v18  ;;  %v7375_v34 = vld [vmem:[#allocation6 + $0x1e0] sm:$0xff]  ;;  %v3447_v30 = vrot.slane %v2880_v33, 1  ;;  %v9281_v19 = vpack.c.b16 %v1742_v58, %v1742_v58 }
 0x184   : > { %v4090_v36 = vpop.f32.mrf.mxu2  ;;  %v4403_v17 = vpop.f32.mrf.mxu3  ;;  %6312 = vmatpush.bf16.msra.mxu3 %v7375_v34  ;;  %v3039_v52 = vor.u32 %v3038_v46, %v3034_v57  ;;  %v3043_v43 = vrot.slane %v3041_v55, 1  ;;  %v8085_v57 = vld [vmem:[#allocation2 + $0x9c] sm:$0xe]  ;;  %4725 = vmatpush.bf16.msra.mxu1 %v7335_v54 }
 0x185   : > { %v4091_v42 = vadd.f32 %v4090_v36, %v3922_v6  ;;  %v3446_v6 = vrot.slane %v7837_v49, 1  ;;  %v1929_v36 = vshrl.u32 %v9266_v1, 16  ;;  %v1933_v49 = vrot.slane %v1931_v63, 1 }
 0x186   : > { %4611 = vmatmul.bf16.gmra.mxu0 %v1927_v61  ;;  %v383_v61 = vld [vmem:[#allocation2 + $0xbc] sm:$0x1]  ;;  %v1936_v58 = vshll.u32 %v9281_v19, 16 }
 0x187   : > { %v4404_v41 = vadd.f32 %v4403_v17, %v4091_v42  ;;  %v2561_v42 = vld [vmem:[#allocation2 + $0xa4] sm:$0x1]  ;;  %v3448_v33 = vsel %vm2308_vm9, %v3446_v6, %v3447_v30  ;;  %v1934_v34 = vor.u32 %v1933_v49, %v1929_v36  ;;  %v766_v30 = vrot.slane %v8847_v56, 4  ;;  %v7746_v49 = vld [vmem:[#allocation2 + $0x90] sm:$0xff]  }
 0x188   : > { %v3923_v8 = vpop.f32.mrf.mxu1  ;;  %v2849_v55 = vunpack.c.l.b16 %v2561_v42  ;;  %v1938_v6 = vrot.slane %v1936_v58, 1  ;;  %v8086_v36 = vor.u32 %v8085_v57, %v8770_v38  ;;  %v3046_v58 = vshrl.u32 %v8768_v44, 16 }
 0x189   : > { %v9278_v22 = vadd.f32 %v4572_v26, %v4404_v41  ;;  %v3924_v25 = vadd.f32 %v3923_v8, %v9034_v14  ;;  %v7383_v41 = vld [vmem:[#allocation6 + $0x220] sm:$0xff]  ;;  %v384_v14 = vsel %vm8483_vm3, 0, %v383_v61  ;;  %v3044_v8 = vsel %vm1795_vm10, %v3039_v52, %v3043_v43 }
 0x18a   : > { %385 = vst [vmem:[#allocation2 + $0xbc] sm:$0x1] %v384_v14  ;;  %6481 = vmatpush.bf16.msra.mxu0 %v7383_v41  ;;  %v2881_v52 = vpack.c.b16 %v2849_v55, %v2849_v55  ;;  %v1939_v61 = vsel %vm1795_vm10, %v1934_v34, %v1938_v6 }
 0x18b   : > { %v4574_v26 = vpop.f32.mrf.mxu0 }
 0x18c   : > { %v4092_v12 = vpop.f32.mrf.mxu2  ;;  %v4405_v17 = vpop.f32.mrf.mxu3  ;;  %v3053_v41 = vshll.u32 %v2881_v52, 16 }
 0x18d   : > { %v4093_v4 = vadd.f32 %v4092_v12, %v3924_v25  ;;  %v1455_v25 = vld [vmem:[#allocation2 + $0x98] sm:$0x1]  ;;  %v3048_v12 = vshll.u32 %v8768_v44, 16  ;;  %v386_v44 = vld [vmem:[#allocation2 + $0xc8] sm:$0x1] }
 0x18e   : > { %v3055_v6 = vrot.slane %v3053_v41, 1 }
 0x18f   : > { %v4406_v18 = vadd.f32 %v4405_v17, %v4093_v4  ;;  %v1743_v17 = vunpack.c.l.b16 %v1455_v25  ;;  %v3050_v54 = vrot.slane %v3048_v12, 1  ;;  %v2562_v25 = vld [vmem:[#allocation2 + $0xb0] sm:$0x1] }
 0x190   : > { %v3926_v46 = vpop.f32.mrf.mxu1 }
 0x191   : > { %4134 = vmatmul.bf16.gmra.mxu2 %v3448_v33  ;;  %v9290_v16 = vadd.f32 %v4574_v26, %v4406_v18  ;;  %v3927_v63 = vadd.f32 %v3926_v46, %v9056_v10  ;;  %4447 = vmatmul.bf16.gmra.mxu3 %v9266_v1  ;;  %v1257_v33 = vld [vmem:[#allocation2 + $0xbc] sm:$0x1]  ;;  %v3449_v18 = vrot.slane %v8086_v36, 1  ;;  %v3450_v46 = vrot.slane %v2881_v52, 1 }
 0x192   : > { %v1258_v10 = vsel %vm8488_vm4, %v766_v30, %v1257_v33  ;;  %v9303_v38 = vpack.c.b16 %v1743_v17, %v1743_v17  ;;  %v3051_v34 = vor.u32 %v3050_v54, %v3046_v58  ;;  %v387_v52 = vsel %vm8483_vm3, 0, %v386_v44  ;;  %v9310_v36 = vld [vmem:[#allocation2 + $0x9c] sm:$0xff]  }
 0x193   : > { %3965 = vmatmul.bf16.gmra.mxu1 %v3044_v8  ;;  %v4577_v42 = vpop.f32.mrf.mxu0  ;;  %1259 = vst [vmem:[#allocation2 + $0xbc] sm:$0x1] %v1258_v10  ;;  %v1943_v8 = vshll.u32 %v7746_v49, 16  ;;  %v783_v10 = vrot.slane %v8906_v15, 4 }
 0x194   : > { %v4095_v4 = vpop.f32.mrf.mxu2  ;;  %v4408_v26 = vpop.f32.mrf.mxu3  ;;  %388 = vst [vmem:[#allocation2 + $0xc8] sm:$0x1] %v387_v52  ;;  %v3056_v33 = vsel %vm1795_vm10, %v3051_v34, %v3055_v6 }
 0x195   : > { %v4096_v43 = vadd.f32 %v4095_v4, %v3927_v63  ;;  %v1941_v63 = vshrl.u32 %v7746_v49, 16 }
 0x196   : > { %4616 = vmatmul.bf16.gmra.mxu0 %v1939_v61  ;;  %v1948_v61 = vshll.u32 %v9303_v38, 16 }
 0x197   : > { %v4409_v56 = vadd.f32 %v4408_v26, %v4096_v43  ;;  %v3451_v43 = vsel %vm2308_vm9, %v3449_v18, %v3450_v46  ;;  %v7838_v18 = vld [vmem:[#allocation2 + $0xa8] sm:$0xf0]  ;;  %v7839_v46 = vld [vmem:[#allocation2 + $0xa8] sm:$0xe] }
 0x198   : > { %v3928_v1 = vpop.f32.mrf.mxu1  ;;  %v1950_v54 = vrot.slane %v1948_v61, 1 }
 0x199   : > { %v9301_v14 = vadd.f32 %v4577_v42, %v4409_v56  ;;  %v3929_v57 = vadd.f32 %v3928_v1, %v9070_v27  ;;  %v1945_v42 = vrot.slane %v1943_v8, 1  ;;  %v9312_v27 = vld [vmem:[#allocation2 + $0x9c] sm:$0xf0]  ;;  %v2850_v56 = vunpack.c.l.b16 %v2562_v25  ;;  %v1456_v8 = vld [vmem:[#allocation2 + $0xa4] sm:$0x1] }
 0x19b   : > { %v4579_v12 = vpop.f32.mrf.mxu0  ;;  %v1946_v58 = vor.u32 %v1945_v42, %v1941_v63  ;;  %v2882_v44 = vpack.c.b16 %v2850_v56, %v2850_v56  ;;  %v1264_v63 = vld [vmem:[#allocation2 + $0xc8] sm:$0x1]  ;;  %v1955_v56 = vshll.u32 %v9310_v36, 16 }
 0x19c   : > { %v4097_v55 = vpop.f32.mrf.mxu2  ;;  %v4410_v4 = vpop.f32.mrf.mxu3 }
 0x19d   : > { %v4098_v30 = vadd.f32 %v4097_v55, %v3929_v57  ;;  %v8054_v57 = vld [vmem:[#allocation2 + $0xa8] sm:$0xff]   ;;  %v1951_v15 = vsel %vm1795_vm10, %v1946_v58, %v1950_v54  ;;  %v3065_v52 = vshll.u32 %v2882_v44, 16 }
 0x19e   : > { %v3060_v55 = vshll.u32 %v8054_v57, 16 }
 0x19f   : > { %v4411_v26 = vadd.f32 %v4410_v4, %v4098_v30  ;;  %v1744_v4 = vunpack.c.l.b16 %v1456_v8  ;;  %v1953_v8 = vshrl.u32 %v9310_v36, 16 }
 0x1a0   : > { %v3931_v17 = vpop.f32.mrf.mxu1  ;;  %v3062_v42 = vrot.slane %v3060_v55, 1  ;;  %v395_v55 = vld [vmem:[#allocation2 + $0xec] sm:$0x1] }
 0x1a1   : > { %4139 = vmatmul.bf16.gmra.mxu2 %v3451_v43  ;;  %v9316_v1 = vadd.f32 %v4579_v12, %v4411_v26  ;;  %v3932_v41 = vadd.f32 %v3931_v17, %v9088_v53  ;;  %4452 = vmatmul.bf16.gmra.mxu3 %v7746_v49  ;;  %v7840_v12 = vor.u32 %v7839_v46, %v7838_v18  ;;  %v3058_v49 = vshrl.u32 %v8054_v57, 16  ;;  %v2563_v57 = vld [vmem:[#allocation2 + $0xbc] sm:$0x1] }
 0x1a2   : > { %v1265_v53 = vsel %vm8488_vm4, %v783_v10, %v1264_v63  ;;  %v9325_v58 = vpack.c.b16 %v1744_v4, %v1744_v4  ;;  %v3067_v46 = vrot.slane %v3065_v52, 1  ;;  %v3072_v52 = vshll.u32 %v8884_v45, 16 }
 0x1a3   : > { %3970 = vmatmul.bf16.gmra.mxu1 %v3056_v33  ;;  %v4582_v6 = vpop.f32.mrf.mxu0  ;;  %1266 = vst [vmem:[#allocation2 + $0xc8] sm:$0x1] %v1265_v53  ;;  %v3452_v17 = vrot.slane %v7840_v12, 1  ;;  %v3453_v33 = vrot.slane %v2882_v44, 1 }
 0x1a4   : > { %v4100_v30 = vpop.f32.mrf.mxu2  ;;  %v4413_v25 = vpop.f32.mrf.mxu3  ;;  %v1960_v44 = vshll.u32 %v9325_v58, 16 }
 0x1a5   : > { %v4101_v34 = vadd.f32 %v4100_v30, %v3932_v41  ;;  %v3063_v41 = vor.u32 %v3062_v42, %v3058_v49 }
 0x1a6   : > { %4621 = vmatmul.bf16.gmra.mxu0 %v1951_v15  ;;  %v1957_v15 = vrot.slane %v1955_v56, 1  ;;  %v1962_v42 = vrot.slane %v1960_v44, 1 }
 0x1a7   : > { %v4414_v43 = vadd.f32 %v4413_v25, %v4101_v34  ;;  %v396_v25 = vsel %vm8483_vm3, 0, %v395_v55  ;;  %v3068_v63 = vsel %vm1795_vm10, %v3063_v41, %v3067_v46 }
 0x1a8   : > { %v3933_v61 = vpop.f32.mrf.mxu1  ;;  %397 = vst [vmem:[#allocation2 + $0xec] sm:$0x1] %v396_v25  ;;  %v1958_v49 = vor.u32 %v1957_v15, %v1953_v8  ;;  %v282_v25 = vld [vmem:[#allocation2 + $0xd8] sm:$0x1] }
 0x1a9   : > { %v9322_v26 = vadd.f32 %v4582_v6, %v4414_v43  ;;  %v3934_v54 = vadd.f32 %v3933_v61, %v9109_v47  ;;  %v3454_v6 = vsel %vm2308_vm9, %v3452_v17, %v3453_v33  ;;  %v8088_v47 = vld [vmem:[#allocation2 + $0xb4] sm:$0xe]  ;;  %v2851_v43 = vunpack.c.l.b16 %v2563_v57  ;;  %v1457_v33 = vld [vmem:[#allocation2 + $0xb0] sm:$0x1] }
 0x1aa   : > { %v800_v61 = vrot.slane %v8527_v48, 4  ;;  %v1963_v46 = vsel %vm1795_vm10, %v1958_v49, %v1962_v42  ;;  %v8089_v8 = vor.u32 %v8088_v47, %v8886_v20  ;;  %v1745_v57 = vunpack.c.l.b16 %v1457_v33 }
 0x1ab   : > { %v4584_v30 = vpop.f32.mrf.mxu0  ;;  %v283_v20 = vsel %vm8488_vm4, 0, %v282_v25 }
 0x1ac   : > { %v4102_v18 = vpop.f32.mrf.mxu2  ;;  %v4415_v34 = vpop.f32.mrf.mxu3  ;;  %284 = vst [vmem:[#allocation2 + $0xd8] sm:$0x1] %v283_v20  ;;  %v7841_v20 = vld [vmem:[#allocation2 + $0xc0] sm:$0xf0] }
 0x1ad   : > { %v4103_v10 = vadd.f32 %v4102_v18, %v3934_v54  ;;  %v2883_v54 = vpack.c.b16 %v2851_v43, %v2851_v43  ;;  %v9351_v43 = vpack.c.b16 %v1745_v57, %v1745_v57 }
 0x1af   : > { %v4416_v12 = vadd.f32 %v4415_v34, %v4103_v10  ;;  %v1271_v55 = vld [vmem:[#allocation2 + $0xec] sm:$0x1]  ;;  %v3074_v34 = vrot.slane %v3072_v52, 1  ;;  %v3077_v44 = vshll.u32 %v2883_v54, 16 }
 0x1b0   : > { %v3936_v4 = vpop.f32.mrf.mxu1 }
 0x1b1   : > { %4144 = vmatmul.bf16.gmra.mxu2 %v3454_v6  ;;  %v9334_v53 = vadd.f32 %v4584_v30, %v4416_v12  ;;  %v3937_v17 = vadd.f32 %v3936_v4, %v9124_v28  ;;  %4457 = vmatmul.bf16.gmra.mxu3 %v9310_v36  ;;  %v3070_v30 = vshrl.u32 %v8884_v45, 16  ;;  %v7747_v28 = vld [vmem:[#allocation2 + $0xa8] sm:$0xff]   ;;  %v1272_v36 = vsel %vm8488_vm4, %v800_v61, %v1271_v55  ;;  %v392_v6 = vld [vmem:[#allocation2 + $0xe0] sm:$0x1] }
 0x1b2   : > { %1273 = vst [vmem:[#allocation2 + $0xec] sm:$0x1] %v1272_v36  ;;  %v393_v12 = vsel %vm8483_vm3, 0, %v392_v6  ;;  %v3455_v45 = vrot.slane %v8089_v8, 1  ;;  %v3456_v4 = vrot.slane %v2883_v54, 1  ;;  %v3079_v52 = vrot.slane %v3077_v44, 1 }
 0x1b3   : > { %3975 = vmatmul.bf16.gmra.mxu1 %v3068_v63  ;;  %v4587_v41 = vpop.f32.mrf.mxu0  ;;  %394 = vst [vmem:[#allocation2 + $0xe0] sm:$0x1] %v393_v12  ;;  %v1967_v63 = vshll.u32 %v7747_v28, 16  ;;  %v3075_v61 = vor.u32 %v3074_v34, %v3070_v30  ;;  %v1965_v33 = vshrl.u32 %v7747_v28, 16  ;;  %v1972_v54 = vshll.u32 %v9351_v43, 16 }
 0x1b4   : > { %v4105_v56 = vpop.f32.mrf.mxu2  ;;  %v4418_v10 = vpop.f32.mrf.mxu3  ;;  %v817_v6 = vrot.slane %v8596_v23, 4 }
 0x1b5   : > { %v4106_v18 = vadd.f32 %v4105_v56, %v3937_v17  ;;  %v2564_v56 = vld [vmem:[#allocation2 + $0xc8] sm:$0x1]  ;;  %v1969_v55 = vrot.slane %v1967_v63, 1  ;;  %v3080_v34 = vsel %vm1795_vm10, %v3075_v61, %v3079_v52  ;;  %v1974_v25 = vrot.slane %v1972_v54, 1  ;;  %v8055_v63 = vld [vmem:[#allocation2 + $0xc0] sm:$0xff]  }
 0x1b6   : > { %4626 = vmatmul.bf16.gmra.mxu0 %v1963_v46  ;;  %v2852_v36 = vunpack.c.l.b16 %v2564_v56 }
 0x1b7   : > { %v4419_v48 = vadd.f32 %v4418_v10, %v4106_v18  ;;  %v398_v18 = vld [vmem:[#allocation2 + $0xf8] sm:$0x1]  ;;  %v1970_v44 = vor.u32 %v1969_v55, %v1965_v33 }
 0x1b8   : > { %v3938_v15 = vpop.f32.mrf.mxu1  ;;  %v399_v8 = vsel %vm8483_vm3, 0, %v398_v18 }
 0x1b9   : > { %v9349_v47 = vadd.f32 %v4587_v41, %v4419_v48  ;;  %v3939_v49 = vadd.f32 %v3938_v15, %v9141_v39  ;;  %v3457_v41 = vsel %vm2308_vm9, %v3455_v45, %v3456_v4  ;;  %v9358_v48 = vld [vmem:[#allocation2 + $0xb4] sm:$0xff]   ;;  %400 = vst [vmem:[#allocation2 + $0xf8] sm:$0x1] %v399_v8  ;;  %v7842_v45 = vld [vmem:[#allocation2 + $0xc0] sm:$0xe]  ;;  %v1975_v23 = vsel %vm1795_vm10, %v1970_v44, %v1974_v25  ;;  %v7366_v8 = vld [vmem:[#allocation6 + $0x198] sm:$0xff] }
 0x1ba   : > { %v9360_v39 = vld [vmem:[#allocation2 + $0xb4] sm:$0xf0]  ;;  %v1458_v4 = vld [vmem:[#allocation2 + $0xbc] sm:$0x1]  ;;  %v7843_v18 = vor.u32 %v7842_v45, %v7841_v20  ;;  %v1979_v44 = vshll.u32 %v9358_v48, 16  ;;  %6144 = vmatpush.bf16.msra.mxu2 %v7366_v8 }
 0x1bb   : > { %v4589_v46 = vpop.f32.mrf.mxu0 }
 0x1bc   : > { %v4107_v42 = vpop.f32.mrf.mxu2  ;;  %v4420_v10 = vpop.f32.mrf.mxu3 }
 0x1bd   : > { %v4108_v17 = vadd.f32 %v4107_v42, %v3939_v49  ;;  %v3084_v49 = vshll.u32 %v8055_v63, 16 }
 0x1bf   : > { %v4421_v57 = vadd.f32 %v4420_v10, %v4108_v17  ;;  %v2884_v17 = vpack.c.b16 %v2852_v36, %v2852_v36 }
 0x1c0   : > { %v3941_v30 = vpop.f32.mrf.mxu1  ;;  %v1278_v33 = vld [vmem:[#allocation2 + $0xf8] sm:$0x1] }
 0x1c1   : > { %4149 = vmatmul.bf16.gmra.mxu2 %v3457_v41  ;;  %v9364_v15 = vadd.f32 %v4589_v46, %v4421_v57  ;;  %v3942_v12 = vadd.f32 %v3941_v30, %v9156_v35  ;;  %4462 = vmatmul.bf16.gmra.mxu3 %v7747_v28  ;;  %v1746_v46 = vunpack.c.l.b16 %v1458_v4  ;;  %v1279_v35 = vsel %vm8488_vm4, %v817_v6, %v1278_v33  ;;  %v7374_v57 = vld [vmem:[#allocation6 + $0x1d8] sm:$0xff] }
 0x1c2   : > { %v3082_v28 = vshrl.u32 %v8055_v63, 16  ;;  %v3086_v41 = vrot.slane %v3084_v49, 1  ;;  %v3089_v54 = vshll.u32 %v2884_v17, 16  ;;  %1280 = vst [vmem:[#allocation2 + $0xf8] sm:$0x1] %v1279_v35  ;;  %v3459_v36 = vrot.slane %v2884_v17, 1  ;;  %6313 = vmatpush.bf16.msra.mxu3 %v7374_v57 }
 0x1c3   : > { %3980 = vmatmul.bf16.gmra.mxu1 %v3080_v34  ;;  %v4592_v52 = vpop.f32.mrf.mxu0  ;;  %v3458_v34 = vrot.slane %v7843_v18, 1  ;;  %v9373_v25 = vpack.c.b16 %v1746_v46, %v1746_v46  ;;  %v1977_v63 = vshrl.u32 %v9358_v48, 16  ;;  %v2565_v49 = vld [vmem:[#allocation2 + $0xec] sm:$0x1]  ;;  %v834_v57 = vrot.slane %v8640_v60, 4 }
 0x1c4   : > { %v4110_v42 = vpop.f32.mrf.mxu2  ;;  %v4423_v56 = vpop.f32.mrf.mxu3  ;;  %v3087_v6 = vor.u32 %v3086_v41, %v3082_v28  ;;  %v3091_v45 = vrot.slane %v3089_v54, 1  ;;  %v7334_v18 = vld [vmem:[#allocation6 + $0x98] sm:$0xff]  ;;  %v2853_v41 = vunpack.c.l.b16 %v2565_v49 }
 0x1c5   : > { %v4111_v61 = vadd.f32 %v4110_v42, %v3942_v12  ;;  %v401_v42 = vld [vmem:[#allocation2 + $0x104] sm:$0x1]  ;;  %v3460_v17 = vsel %vm2308_vm9, %v3458_v34, %v3459_v36  ;;  %v7382_v46 = vld [vmem:[#allocation6 + $0x218] sm:$0xff]  ;;  %4726 = vmatpush.bf16.msra.mxu1 %v7334_v18  ;;  %v1459_v36 = vld [vmem:[#allocation2 + $0xe0] sm:$0x1] }
 0x1c6   : > { %4631 = vmatmul.bf16.gmra.mxu0 %v1975_v23  ;;  %v1981_v23 = vrot.slane %v1979_v44, 1  ;;  %v3092_v28 = vsel %vm1795_vm10, %v3087_v6, %v3091_v45  ;;  %v3096_v44 = vshll.u32 %v8567_v40, 16  ;;  %v2885_v6 = vpack.c.b16 %v2853_v41, %v2853_v41 }
 0x1c7   : > { %v4424_v10 = vadd.f32 %v4423_v56, %v4111_v61  ;;  %v1984_v56 = vshll.u32 %v9373_v25, 16  ;;  %6482 = vmatpush.bf16.msra.mxu0 %v7382_v46 }
 0x1c8   : > { %v3943_v55 = vpop.f32.mrf.mxu1  ;;  %v1982_v54 = vor.u32 %v1981_v23, %v1977_v63  ;;  %v3094_v23 = vshrl.u32 %v8567_v40, 16  ;;  %v3101_v18 = vshll.u32 %v2885_v6, 16  ;;  %v404_v40 = vld [vmem:[#allocation2 + $0x110] sm:$0x1] }
 0x1c9   : > { %v9370_v30 = vadd.f32 %v4592_v52, %v4424_v10  ;;  %v3944_v12 = vadd.f32 %v3943_v55, %v9179_v7  ;;  %v402_v7 = vsel %vm8483_vm3, 0, %v401_v42  ;;  %v8091_v10 = vld [vmem:[#allocation2 + $0xe4] sm:$0xe]  ;;  %v1986_v8 = vrot.slane %v1984_v56, 1  ;;  %v10392_v42 = vld [vmem:[#allocation13_spill] sm:$0xff] }
 0x1ca   : > { %403 = vst [vmem:[#allocation2 + $0x104] sm:$0x1] %v402_v7  ;;  %v8092_v63 = vor.u32 %v8091_v10, %v10392_v42  ;;  %v3098_v56 = vrot.slane %v3096_v44, 1  ;;  %v9402_v42 = vld [vmem:[#allocation2 + $0xe4] sm:$0xff]  }
 0x1cb   : > { %v4594_v61 = vpop.f32.mrf.mxu0 }
 0x1cc   : > { %v4112_v20 = vpop.f32.mrf.mxu2  ;;  %v4425_v52 = vpop.f32.mrf.mxu3  ;;  %v3461_v7 = vrot.slane %v8092_v63, 1 }
 0x1cd   : > { %v4113_v4 = vadd.f32 %v4112_v20, %v3944_v12 }
 0x1cf   : > { %v4426_v33 = vadd.f32 %v4425_v52, %v4113_v4  ;;  %v1987_v4 = vsel %vm1795_vm10, %v1982_v54, %v1986_v8  ;;  %v3099_v54 = vor.u32 %v3098_v56, %v3094_v23  ;;  %v3103_v8 = vrot.slane %v3101_v18, 1 }
 0x1d0   : > { %v3946_v35 = vpop.f32.mrf.mxu1 }
 0x1d1   : > { %4154 = vmatmul.bf16.gmra.mxu2 %v3460_v17  ;;  %v9382_v55 = vadd.f32 %v4594_v61, %v4426_v33  ;;  %v3947_v34 = vadd.f32 %v3946_v35, %v9196_v9  ;;  %4467 = vmatmul.bf16.gmra.mxu3 %v9358_v48  ;;  %v1747_v61 = vunpack.c.l.b16 %v1459_v36  ;;  %v1285_v52 = vld [vmem:[#allocation2 + $0x104] sm:$0x1]  ;;  %v7748_v17 = vld [vmem:[#allocation2 + $0xd8] sm:$0xff]   ;;  %v3462_v33 = vrot.slane %v2885_v6, 1 }
 0x1d2   : > { %v1286_v9 = vsel %vm8488_vm4, %v834_v57, %v1285_v52  ;;  %v1991_v35 = vshll.u32 %v7748_v17, 16  ;;  %v2566_v36 = vld [vmem:[#allocation2 + $0xf8] sm:$0x1]  ;;  %v405_v6 = vsel %vm8483_vm3, 0, %v404_v40 }
 0x1d3   : > { %3985 = vmatmul.bf16.gmra.mxu1 %v3092_v28  ;;  %v4597_v45 = vpop.f32.mrf.mxu0  ;;  %1287 = vst [vmem:[#allocation2 + $0x104] sm:$0x1] %v1286_v9  ;;  %v9395_v10 = vpack.c.b16 %v1747_v61, %v1747_v61  ;;  %v3104_v61 = vsel %vm1795_vm10, %v3099_v54, %v3103_v8  ;;  %v2854_v52 = vunpack.c.l.b16 %v2566_v36 }
 0x1d4   : > { %v4115_v12 = vpop.f32.mrf.mxu2  ;;  %v4428_v49 = vpop.f32.mrf.mxu3  ;;  %406 = vst [vmem:[#allocation2 + $0x110] sm:$0x1] %v405_v6 }
 0x1d5   : > { %v4116_v20 = vadd.f32 %v4115_v12, %v3947_v34  ;;  %v1989_v34 = vshrl.u32 %v7748_v17, 16  ;;  %v2886_v40 = vpack.c.b16 %v2854_v52, %v2854_v52 }
 0x1d6   : > { %4636 = vmatmul.bf16.gmra.mxu0 %v1987_v4  ;;  %v1996_v4 = vshll.u32 %v9395_v10, 16 }
 0x1d7   : > { %v4429_v60 = vadd.f32 %v4428_v49, %v4116_v20  ;;  %v3463_v20 = vsel %vm2308_vm9, %v3461_v7, %v3462_v33  ;;  %v7844_v7 = vld [vmem:[#allocation2 + $0xf0] sm:$0xf0]  ;;  %v7845_v33 = vld [vmem:[#allocation2 + $0xf0] sm:$0xe]  ;;  %v3465_v52 = vrot.slane %v2886_v40, 1 }
 0x1d8   : > { %v3948_v48 = vpop.f32.mrf.mxu1  ;;  %v1998_v56 = vrot.slane %v1996_v4, 1 }
 0x1d9   : > { %v9393_v46 = vadd.f32 %v4597_v45, %v4429_v60  ;;  %v3949_v28 = vadd.f32 %v3948_v48, %v9216_v32  ;;  %v1993_v45 = vrot.slane %v1991_v35, 1  ;;  %v9404_v32 = vld [vmem:[#allocation2 + $0xe4] sm:$0xf0]  ;;  %v10393_v60 = vld [vmem:[#allocation20_spill] sm:$0xff]  ;;  %v1460_v35 = vld [vmem:[#allocation2 + $0xec] sm:$0x1] }
 0x1da   : > { %v851_v9 = vrot.slane %v10393_v60, 4  ;;  %v2003_v60 = vshll.u32 %v9402_v42, 16 }
 0x1db   : > { %v4599_v44 = vpop.f32.mrf.mxu0  ;;  %v1994_v23 = vor.u32 %v1993_v45, %v1989_v34  ;;  %v1292_v34 = vld [vmem:[#allocation2 + $0x110] sm:$0x1] }
 0x1dc   : > { %v4117_v41 = vpop.f32.mrf.mxu2  ;;  %v4430_v12 = vpop.f32.mrf.mxu3 }
 0x1dd   : > { %v4118_v57 = vadd.f32 %v4117_v41, %v3949_v28  ;;  %v8056_v28 = vld [vmem:[#allocation2 + $0xf0] sm:$0xff]   ;;  %v1999_v36 = vsel %vm1795_vm10, %v1994_v23, %v1998_v56 }
 0x1de   : > { %v3108_v41 = vshll.u32 %v8056_v28, 16 }
 0x1df   : > { %v4431_v49 = vadd.f32 %v4430_v12, %v4118_v57 }
 0x1e0   : > { %v3951_v63 = vpop.f32.mrf.mxu1  ;;  %v3110_v4 = vrot.slane %v3108_v41, 1  ;;  %v407_v41 = vld [vmem:[#allocation2 + $0x11c] sm:$0x1] }
 0x1e1   : > { %4159 = vmatmul.bf16.gmra.mxu2 %v3463_v20  ;;  %v9408_v48 = vadd.f32 %v4599_v44, %v4431_v49  ;;  %v3952_v18 = vadd.f32 %v3951_v63, %v8947_v31  ;;  %4472 = vmatmul.bf16.gmra.mxu3 %v7748_v17  ;;  %v7846_v44 = vor.u32 %v7845_v33, %v7844_v7  ;;  %v1748_v20 = vunpack.c.l.b16 %v1460_v35 }
 0x1e2   : > { %v1293_v31 = vsel %vm8488_vm4, %v851_v9, %v1292_v34  ;;  %v3106_v17 = vshrl.u32 %v8056_v28, 16  ;;  %v3113_v49 = vshll.u32 %v2886_v40, 16  ;;  %v2001_v35 = vshrl.u32 %v9402_v42, 16  ;;  %v2567_v28 = vld [vmem:[#allocation2 + $0x104] sm:$0x1] }
 0x1e3   : > { %3990 = vmatmul.bf16.gmra.mxu1 %v3104_v61  ;;  %v4602_v8 = vpop.f32.mrf.mxu0  ;;  %1294 = vst [vmem:[#allocation2 + $0x110] sm:$0x1] %v1293_v31  ;;  %v3464_v61 = vrot.slane %v7846_v44, 1  ;;  %v9417_v23 = vpack.c.b16 %v1748_v20, %v1748_v20 }
 0x1e4   : > { %v4120_v57 = vpop.f32.mrf.mxu2  ;;  %v4433_v12 = vpop.f32.mrf.mxu3  ;;  %v3115_v33 = vrot.slane %v3113_v49, 1 }
 0x1e5   : > { %v4121_v54 = vadd.f32 %v4120_v57, %v3952_v18  ;;  %v3111_v18 = vor.u32 %v3110_v4, %v3106_v17  ;;  %v2008_v40 = vshll.u32 %v9417_v23, 16 }
 0x1e6   : > { %4641 = vmatmul.bf16.gmra.mxu0 %v1999_v36  ;;  %v2005_v36 = vrot.slane %v2003_v60, 1  ;;  %v10395_v60 = vld [vmem:[#allocation18_spill] sm:$0xff] }
 0x1e7   : > { %v4434_v45 = vadd.f32 %v4433_v12, %v4121_v54  ;;  %v408_v12 = vsel %vm8483_vm3, 0, %v407_v41  ;;  %v3116_v34 = vsel %vm1795_vm10, %v3111_v18, %v3115_v33  ;;  %v2010_v4 = vrot.slane %v2008_v40, 1  ;;  %v7749_v40 = vld [vmem:[#allocation2 + $0xf0] sm:$0xff]  }
 0x1e8   : > { %v3953_v6 = vpop.f32.mrf.mxu1  ;;  %409 = vst [vmem:[#allocation2 + $0x11c] sm:$0x1] %v408_v12  ;;  %v2006_v17 = vor.u32 %v2005_v36, %v2001_v35  ;;  %v3118_v12 = vshrl.u32 %v10395_v60, 16 }
 0x1e9   : > { %v9414_v63 = vadd.f32 %v4602_v8, %v4434_v45  ;;  %v3954_v56 = vadd.f32 %v3953_v6, %v8961_v24  ;;  %v3466_v8 = vsel %vm2308_vm9, %v3464_v61, %v3465_v52  ;;  %v8094_v24 = vld [vmem:[#allocation2 + $0xfc] sm:$0xe]  ;;  %v2855_v45 = vunpack.c.l.b16 %v2567_v28  ;;  %v10394_v6 = vld [vmem:[#allocation24_spill] sm:$0xff]  ;;  %v1461_v52 = vld [vmem:[#allocation2 + $0xf8] sm:$0x1] }
 0x1ea   : > { %v868_v49 = vrot.slane %v10394_v6, 4  ;;  %v2011_v33 = vsel %vm1795_vm10, %v2006_v17, %v2010_v4  ;;  %v2015_v4 = vshll.u32 %v7749_v40, 16  ;;  %v10399_v6 = vld [vmem:[#allocation47_spill] sm:$0xff] }
 0x1eb   : > { %v4604_v57 = vpop.f32.mrf.mxu0 }
 0x1ec   : > { %v4122_v7 = vpop.f32.mrf.mxu2  ;;  %v4435_v54 = vpop.f32.mrf.mxu3 }
 0x1ed   : > { %v4123_v9 = vadd.f32 %v4122_v7, %v3954_v56  ;;  %v3120_v56 = vshll.u32 %v10395_v60, 16  ;;  %v410_v60 = vld [vmem:[#allocation2 + $0x128] sm:$0x1] }
 0x1ef   : > { %v4436_v44 = vadd.f32 %v4435_v54, %v4123_v9  ;;  %v2887_v9 = vpack.c.b16 %v2855_v45, %v2855_v45  ;;  %v1749_v54 = vunpack.c.l.b16 %v1461_v52 }
 0x1f0   : > { %v3956_v20 = vpop.f32.mrf.mxu1 }
 0x1f1   : > { %4164 = vmatmul.bf16.gmra.mxu2 %v3466_v8  ;;  %v9426_v31 = vadd.f32 %v4604_v57, %v4436_v44  ;;  %v3957_v61 = vadd.f32 %v3956_v20, %v8977_v51  ;;  %4477 = vmatmul.bf16.gmra.mxu3 %v9402_v42  ;;  %v10396_v57 = vld [vmem:[#allocation19_spill] sm:$0xff]  ;;  %v1299_v8 = vld [vmem:[#allocation2 + $0x11c] sm:$0x1]  ;;  %v3122_v44 = vrot.slane %v3120_v56, 1  ;;  %v3125_v20 = vshll.u32 %v2887_v9, 16 }
 0x1f2   : > { %v8095_v35 = vor.u32 %v8094_v24, %v10396_v57  ;;  %v1300_v51 = vsel %vm8488_vm4, %v868_v49, %v1299_v8  ;;  %v3468_v17 = vrot.slane %v2887_v9, 1  ;;  %v9439_v24 = vpack.c.b16 %v1749_v54, %v1749_v54  ;;  %v2568_v57 = vld [vmem:[#allocation2 + $0x110] sm:$0x1] }
 0x1f3   : > { %3995 = vmatmul.bf16.gmra.mxu1 %v3116_v34  ;;  %v4607_v18 = vpop.f32.mrf.mxu0  ;;  %1301 = vst [vmem:[#allocation2 + $0x11c] sm:$0x1] %v1300_v51  ;;  %v411_v9 = vsel %vm8483_vm3, 0, %v410_v60  ;;  %v9448_v51 = vld [vmem:[#allocation2 + $0xfc] sm:$0xf0] }
 0x1f4   : > { %v4125_v7 = vpop.f32.mrf.mxu2  ;;  %v4438_v28 = vpop.f32.mrf.mxu3  ;;  %v3467_v45 = vrot.slane %v8095_v35, 1  ;;  %10398 = vst [vmem:[#allocation20_spill] sm:$0xff] %v9439_v24  ;;  %v2020_v35 = vshll.u32 %v9439_v24, 16  ;;  %v7848_v60 = vld [vmem:[#allocation2 + $0x108] sm:$0xe] }
 0x1f5   : > { %v4126_v41 = vadd.f32 %v4125_v7, %v3957_v61  ;;  %v3123_v7 = vor.u32 %v3122_v44, %v3118_v12  ;;  %10400 = vst [vmem:[#allocation24_spill] sm:$0xff] %v9448_v51  ;;  %v2856_v44 = vunpack.c.l.b16 %v2568_v57  ;;  %v8057_v51 = vld [vmem:[#allocation2 + $0x108] sm:$0xff]  }
 0x1f6   : > { %4646 = vmatmul.bf16.gmra.mxu0 %v2011_v33  ;;  %v3469_v33 = vsel %vm2308_vm9, %v3467_v45, %v3468_v17  ;;  %412 = vst [vmem:[#allocation2 + $0x128] sm:$0x1] %v411_v9  ;;  %v3132_v9 = vshll.u32 %v8057_v51, 16 }
 0x1f7   : > { %v4439_v36 = vadd.f32 %v4438_v28, %v4126_v41  ;;  %v3127_v41 = vrot.slane %v3125_v20, 1  ;;  %v2013_v28 = vshrl.u32 %v7749_v40, 16  ;;  %v10401_v20 = vld [vmem:[#allocation30_spill] sm:$0xff]  ;;  %v2888_v24 = vpack.c.b16 %v2856_v44, %v2856_v44 }
 0x1f8   : > { %v3958_v42 = vpop.f32.mrf.mxu1  ;;  %v7373_v44 = vld [vmem:[#allocation6 + $0x1d0] sm:$0xff] }
 0x1f9   : > { %v9437_v34 = vadd.f32 %v4607_v18, %v4439_v36  ;;  %v3959_v61 = vadd.f32 %v3958_v42, %v10399_v6  ;;  %v2017_v18 = vrot.slane %v2015_v4, 1  ;;  %v9446_v36 = vld [vmem:[#allocation2 + $0xfc] sm:$0xff]   ;;  %v3128_v12 = vsel %vm1795_vm10, %v3123_v7, %v3127_v41  ;;  %6314 = vmatpush.bf16.msra.mxu3 %v7373_v44 }
 0x1fa   : > { %v885_v6 = vrot.slane %v10401_v20, 4  ;;  %v2022_v4 = vrot.slane %v2020_v35, 1  ;;  %v3137_v20 = vshll.u32 %v2888_v24, 16 }
 0x1fb   : > { %10397 = vst [vmem:[#allocation13_spill] sm:$0xff] %v9437_v34  ;;  %v4609_v56 = vpop.f32.mrf.mxu0  ;;  %v2018_v17 = vor.u32 %v2017_v18, %v2013_v28 }
 0x1fc   : > { %v4127_v52 = vpop.f32.mrf.mxu2  ;;  %v4440_v8 = vpop.f32.mrf.mxu3 }
 0x1fd   : > { %v4128_v49 = vadd.f32 %v4127_v52, %v3959_v61  ;;  %v10402_v61 = vld [vmem:[#allocation51_spill] sm:$0xff]  ;;  %v2023_v57 = vsel %vm1795_vm10, %v2018_v17, %v2022_v4  ;;  %v3471_v17 = vrot.slane %v2888_v24, 1  ;;  %v2027_v4 = vshll.u32 %v9446_v36, 16 }
 0x1fe   : > { %v1306_v28 = vld [vmem:[#allocation2 + $0x128] sm:$0x1] }
 0x1ff   : > { %v4441_v54 = vadd.f32 %v4440_v8, %v4128_v49  ;;  %v7847_v49 = vld [vmem:[#allocation2 + $0x108] sm:$0xf0]  ;;  %v1462_v8 = vld [vmem:[#allocation2 + $0x104] sm:$0x1]  ;;  %v1307_v35 = vsel %vm8488_vm4, %v885_v6, %v1306_v28  ;;  %v413_v28 = vld [vmem:[#allocation2 + $0x134] sm:$0x1] }
 0x200   : > { %v3961_v42 = vpop.f32.mrf.mxu1  ;;  %1308 = vst [vmem:[#allocation2 + $0x128] sm:$0x1] %v1307_v35  ;;  %v7333_v35 = vld [vmem:[#allocation6 + $0x90] sm:$0xff] }
 0x201   : > { %4169 = vmatmul.bf16.gmra.mxu2 %v3469_v33  ;;  %v9452_v45 = vadd.f32 %v4609_v56, %v4441_v54  ;;  %v3962_v52 = vadd.f32 %v3961_v42, %v10402_v61  ;;  %4482 = vmatmul.bf16.gmra.mxu3 %v7749_v40  ;;  %v7849_v56 = vor.u32 %v7848_v60, %v7847_v49  ;;  %v1750_v54 = vunpack.c.l.b16 %v1462_v8  ;;  %v7365_v61 = vld [vmem:[#allocation6 + $0x190] sm:$0xff]  ;;  %v10405_v60 = vld [vmem:[#allocation53_spill] sm:$0xff] }
 0x202   : > { %v3130_v40 = vshrl.u32 %v8057_v51, 16  ;;  %v3134_v42 = vrot.slane %v3132_v9, 1  ;;  %6145 = vmatpush.bf16.msra.mxu2 %v7365_v61  ;;  %v3139_v9 = vrot.slane %v3137_v20, 1  ;;  %4727 = vmatpush.bf16.msra.mxu1 %v7333_v35 }
 0x203   : > { %4000 = vmatmul.bf16.gmra.mxu1 %v3128_v12  ;;  %v4612_v41 = vpop.f32.mrf.mxu0  ;;  %v9461_v49 = vpack.c.b16 %v1750_v54, %v1750_v54 }
 0x204   : > { %v4130_v34 = vpop.f32.mrf.mxu2  ;;  %v4443_v33 = vpop.f32.mrf.mxu3  ;;  %v3135_v51 = vor.u32 %v3134_v42, %v3130_v40  ;;  %v8097_v42 = vld [vmem:[#allocation2 + $0x114] sm:$0xe] }
 0x205   : > { %v4131_v7 = vadd.f32 %v4130_v34, %v3962_v52  ;;  %v3470_v52 = vrot.slane %v7849_v56, 1  ;;  %10404 = vst [vmem:[#allocation19_spill] sm:$0xff] %v9461_v49  ;;  %v2029_v56 = vrot.slane %v2027_v4, 1  ;;  %v2032_v54 = vshll.u32 %v9461_v49, 16  ;;  %v10407_v4 = vld [vmem:[#allocation32_spill] sm:$0xff] }
 0x206   : > { %4651 = vmatmul.bf16.gmra.mxu0 %v2023_v57  ;;  %v2025_v57 = vshrl.u32 %v9446_v36, 16  ;;  %v3140_v61 = vsel %vm1795_vm10, %v3135_v51, %v3139_v9 }
 0x207   : > { %v4444_v18 = vadd.f32 %v4443_v33, %v4131_v7  ;;  %v2569_v33 = vld [vmem:[#allocation2 + $0x11c] sm:$0x1]  ;;  %v3472_v24 = vsel %vm2308_vm9, %v3470_v52, %v3471_v17  ;;  %v2034_v17 = vrot.slane %v2032_v54, 1 }
 0x208   : > { %v3963_v12 = vpop.f32.mrf.mxu1  ;;  %v2857_v44 = vunpack.c.l.b16 %v2569_v33  ;;  %v2030_v52 = vor.u32 %v2029_v56, %v2025_v57 }
 0x209   : > { %v9458_v34 = vadd.f32 %v4612_v41, %v4444_v18  ;;  %v3964_v8 = vadd.f32 %v3963_v12, %v10405_v60  ;;  %v414_v12 = vsel %vm8483_vm3, 0, %v413_v28  ;;  %v10409_v28 = vld [vmem:[#allocation26_spill] sm:$0xff] }
 0x20a   : > { %415 = vst [vmem:[#allocation2 + $0x134] sm:$0x1] %v414_v12  ;;  %v2889_v51 = vpack.c.b16 %v2857_v44, %v2857_v44 }
 0x20b   : > { %10403 = vst [vmem:[#allocation18_spill] sm:$0xff] %v9458_v34  ;;  %v4614_v41 = vpop.f32.mrf.mxu0  ;;  %v7381_v34 = vld [vmem:[#allocation6 + $0x210] sm:$0xff] }
 0x20c   : > { %v4132_v6 = vpop.f32.mrf.mxu2  ;;  %v4445_v18 = vpop.f32.mrf.mxu3  ;;  %6483 = vmatpush.bf16.msra.mxu0 %v7381_v34  ;;  %v2035_v34 = vsel %vm1795_vm10, %v2030_v52, %v2034_v17  ;;  %v3474_v52 = vrot.slane %v2889_v51, 1 }
 0x20d   : > { %v4133_v7 = vadd.f32 %v4132_v6, %v3964_v8  ;;  %v902_v8 = vrot.slane %v10407_v4, 4  ;;  %v10408_v6 = vld [vmem:[#allocation57_spill] sm:$0xff] }
 0x20f   : > { %v4446_v40 = vadd.f32 %v4445_v18, %v4133_v7  ;;  %v1463_v7 = vld [vmem:[#allocation2 + $0x110] sm:$0x1]  ;;  %v3144_v18 = vshll.u32 %v10409_v28, 16 }
 0x210   : > { %v3966_v20 = vpop.f32.mrf.mxu1  ;;  %v1751_v56 = vunpack.c.l.b16 %v1463_v7 }
 0x211   : > { %4174 = vmatmul.bf16.gmra.mxu2 %v3472_v24  ;;  %v9470_v60 = vadd.f32 %v4614_v41, %v4446_v40  ;;  %v3967_v49 = vadd.f32 %v3966_v20, %v10408_v6  ;;  %4487 = vmatmul.bf16.gmra.mxu3 %v9446_v36  ;;  %v10410_v24 = vld [vmem:[#allocation27_spill] sm:$0xff]  ;;  %v1313_v54 = vld [vmem:[#allocation2 + $0x134] sm:$0x1]  ;;  %v3146_v4 = vrot.slane %v3144_v18, 1  ;;  %v3149_v6 = vshll.u32 %v2889_v51, 16 }
 0x212   : > { %v8098_v57 = vor.u32 %v8097_v42, %v10410_v24  ;;  %v7750_v40 = vld [vmem:[#allocation2 + $0x108] sm:$0xff]   ;;  %v1314_v20 = vsel %vm8488_vm4, %v902_v8, %v1313_v54  ;;  %v9483_v42 = vpack.c.b16 %v1751_v56, %v1751_v56 }
 0x213   : > { %10406 = vst [vmem:[#allocation47_spill] sm:$0xff] %v9470_v60  ;;  %4005 = vmatmul.bf16.gmra.mxu1 %v3140_v61  ;;  %v4617_v33 = vpop.f32.mrf.mxu0  ;;  %v3142_v61 = vshrl.u32 %v10409_v28, 16  ;;  %v2039_v17 = vshll.u32 %v7750_v40, 16  ;;  %v2037_v24 = vshrl.u32 %v7750_v40, 16  ;;  %v2570_v54 = vld [vmem:[#allocation2 + $0x128] sm:$0x1] }
 0x214   : > { %v4135_v12 = vpop.f32.mrf.mxu2  ;;  %v4448_v41 = vpop.f32.mrf.mxu3  ;;  %1315 = vst [vmem:[#allocation2 + $0x134] sm:$0x1] %v1314_v20  ;;  %v3473_v44 = vrot.slane %v8098_v57, 1  ;;  %v416_v28 = vld [vmem:[#allocation2 + $0x140] sm:$0x1]  ;;  %v2044_v57 = vshll.u32 %v9483_v42, 16 }
 0x215   : > { %v4136_v9 = vadd.f32 %v4135_v12, %v3967_v49  ;;  %v417_v51 = vsel %vm8483_vm3, 0, %v416_v28  ;;  %v8058_v28 = vld [vmem:[#allocation2 + $0x120] sm:$0xff]  }
 0x216   : > { %4656 = vmatmul.bf16.gmra.mxu0 %v2035_v34  ;;  %v3475_v34 = vsel %vm2308_vm9, %v3473_v44, %v3474_v52  ;;  %418 = vst [vmem:[#allocation2 + $0x140] sm:$0x1] %v417_v51  ;;  %v3156_v51 = vshll.u32 %v8058_v28, 16 }
 0x217   : > { %v4449_v35 = vadd.f32 %v4448_v41, %v4136_v9  ;;  %v3147_v9 = vor.u32 %v3146_v4, %v3142_v61  ;;  %v3151_v41 = vrot.slane %v3149_v6, 1  ;;  %v2858_v61 = vunpack.c.l.b16 %v2570_v54  ;;  %v10413_v4 = vld [vmem:[#allocation38_spill] sm:$0xff] }
 0x218   : > { %v3968_v36 = vpop.f32.mrf.mxu1  ;;  %v919_v6 = vrot.slane %v10413_v4, 4 }
 0x219   : > { %v9481_v49 = vadd.f32 %v4617_v33, %v4449_v35  ;;  %v3969_v7 = vadd.f32 %v3968_v36, %v9063_v59  ;;  %v2041_v33 = vrot.slane %v2039_v17, 1  ;;  %v9490_v35 = vld [vmem:[#allocation2 + $0x114] sm:$0xff]   ;;  %v3152_v36 = vsel %vm1795_vm10, %v3147_v9, %v3151_v41 }
 0x21a   : > { %v9492_v59 = vld [vmem:[#allocation2 + $0x114] sm:$0xf0]  ;;  %v2046_v17 = vrot.slane %v2044_v57, 1  ;;  %v3158_v57 = vrot.slane %v3156_v51, 1 }
 0x21b   : > { %10411 = vst [vmem:[#allocation30_spill] sm:$0xff] %v9481_v49  ;;  %v4619_v18 = vpop.f32.mrf.mxu0  ;;  %v2042_v52 = vor.u32 %v2041_v33, %v2037_v24  ;;  %v2890_v49 = vpack.c.b16 %v2858_v61, %v2858_v61  ;;  %v2571_v51 = vld [vmem:[#allocation2 + $0x134] sm:$0x1] }
 0x21c   : > { %v4137_v12 = vpop.f32.mrf.mxu2  ;;  %v4450_v60 = vpop.f32.mrf.mxu3  ;;  %10412 = vst [vmem:[#allocation51_spill] sm:$0xff] %v9492_v59 }
 0x21d   : > { %v4138_v8 = vadd.f32 %v4137_v12, %v3969_v7  ;;  %v7851_v12 = vld [vmem:[#allocation2 + $0x120] sm:$0xe]  ;;  %v2047_v54 = vsel %vm1795_vm10, %v2042_v52, %v2046_v17  ;;  %v1320_v24 = vld [vmem:[#allocation2 + $0x140] sm:$0x1]  ;;  %v3477_v61 = vrot.slane %v2890_v49, 1  ;;  %v2051_v52 = vshll.u32 %v9490_v35, 16 }
 0x21f   : > { %v4451_v56 = vadd.f32 %v4450_v60, %v4138_v8  ;;  %v7850_v60 = vld [vmem:[#allocation2 + $0x120] sm:$0xf0]  ;;  %v1464_v8 = vld [vmem:[#allocation2 + $0x11c] sm:$0x1] }
 0x220   : > { %v3971_v20 = vpop.f32.mrf.mxu1 }
 0x221   : > { %4179 = vmatmul.bf16.gmra.mxu2 %v3475_v34  ;;  %v9496_v44 = vadd.f32 %v4619_v18, %v4451_v56  ;;  %v3972_v7 = vadd.f32 %v3971_v20, %v9080_v11  ;;  %4492 = vmatmul.bf16.gmra.mxu3 %v7750_v40  ;;  %v7852_v18 = vor.u32 %v7851_v12, %v7850_v60  ;;  %v1752_v56 = vunpack.c.l.b16 %v1464_v8 }
 0x222   : > { %v1321_v11 = vsel %vm8488_vm4, %v919_v6, %v1320_v24  ;;  %v3154_v40 = vshrl.u32 %v8058_v28, 16  ;;  %v2049_v28 = vshrl.u32 %v9490_v35, 16 }
 0x223   : > { %10414 = vst [vmem:[#allocation53_spill] sm:$0xff] %v9496_v44  ;;  %4010 = vmatmul.bf16.gmra.mxu1 %v3152_v36  ;;  %v4622_v41 = vpop.f32.mrf.mxu0  ;;  %v3161_v36 = vshll.u32 %v2890_v49, 16  ;;  %v9505_v17 = vpack.c.b16 %v1752_v56, %v1752_v56 }
 0x224   : > { %v4140_v59 = vpop.f32.mrf.mxu2  ;;  %v4453_v34 = vpop.f32.mrf.mxu3  ;;  %1322 = vst [vmem:[#allocation2 + $0x140] sm:$0x1] %v1321_v11  ;;  %v3159_v60 = vor.u32 %v3158_v57, %v3154_v40  ;;  %v2859_v40 = vunpack.c.l.b16 %v2571_v51 }
 0x225   : > { %v4141_v9 = vadd.f32 %v4140_v59, %v3972_v7  ;;  %v3476_v59 = vrot.slane %v7852_v18, 1  ;;  %10416 = vst [vmem:[#allocation57_spill] sm:$0xff] %v9505_v17  ;;  %v3163_v8 = vrot.slane %v3161_v36, 1  ;;  %v2053_v18 = vrot.slane %v2051_v52, 1 }
 0x226   : > { %4661 = vmatmul.bf16.gmra.mxu0 %v2047_v54  ;;  %v2056_v49 = vshll.u32 %v9505_v17, 16 }
 0x227   : > { %v4454_v33 = vadd.f32 %v4453_v34, %v4141_v9  ;;  %v419_v9 = vld [vmem:[#allocation2 + $0x14c] sm:$0x1]  ;;  %v3164_v11 = vsel %vm1795_vm10, %v3159_v60, %v3163_v8 }
 0x228   : > { %v3973_v20 = vpop.f32.mrf.mxu1  ;;  %v420_v56 = vsel %vm8483_vm3, 0, %v419_v9  ;;  %v2058_v36 = vrot.slane %v2056_v49, 1 }
 0x229   : > { %v9502_v4 = vadd.f32 %v4622_v41, %v4454_v33  ;;  %v3974_v7 = vadd.f32 %v3973_v20, %v9098_v50  ;;  %v3478_v41 = vsel %vm2308_vm9, %v3476_v59, %v3477_v61  ;;  %v8100_v50 = vld [vmem:[#allocation2 + $0x12c] sm:$0xe]  ;;  %421 = vst [vmem:[#allocation2 + $0x14c] sm:$0x1] %v420_v56  ;;  %v2054_v20 = vor.u32 %v2053_v18, %v2049_v28  ;;  %v10419_v61 = vld [vmem:[#allocation70_spill] sm:$0xff] }
 0x22a   : > { %v2891_v56 = vpack.c.b16 %v2859_v40, %v2859_v40 }
 0x22b   : > { %10415 = vst [vmem:[#allocation32_spill] sm:$0xff] %v9502_v4  ;;  %v4624_v34 = vpop.f32.mrf.mxu0  ;;  %v2059_v8 = vsel %vm1795_vm10, %v2054_v20, %v2058_v36 }
 0x22c   : > { %v4142_v12 = vpop.f32.mrf.mxu2  ;;  %v4455_v54 = vpop.f32.mrf.mxu3  ;;  %v3480_v36 = vrot.slane %v2891_v56, 1 }
 0x22d   : > { %v4143_v6 = vadd.f32 %v4142_v12, %v3974_v7  ;;  %v10418_v7 = vld [vmem:[#allocation12_spill] sm:$0xff]  ;;  %v1465_v12 = vld [vmem:[#allocation2 + $0x128] sm:$0x1] }
 0x22e   : > { %v936_v59 = vrot.slane %v10418_v7, 4 }
 0x22f   : > { %v4456_v24 = vadd.f32 %v4455_v54, %v4143_v6  ;;  %v10420_v6 = vld [vmem:[#allocation34_spill] sm:$0xff] }
 0x230   : > { %v3976_v33 = vpop.f32.mrf.mxu1  ;;  %v3168_v9 = vshll.u32 %v10420_v6, 16  ;;  %v1327_v18 = vld [vmem:[#allocation2 + $0x14c] sm:$0x1] }
 0x231   : > { %4184 = vmatmul.bf16.gmra.mxu2 %v3478_v41  ;;  %v9514_v57 = vadd.f32 %v4624_v34, %v4456_v24  ;;  %v3977_v52 = vadd.f32 %v3976_v33, %v10419_v61  ;;  %4497 = vmatmul.bf16.gmra.mxu3 %v9490_v35  ;;  %v10421_v34 = vld [vmem:[#allocation35_spill] sm:$0xff]  ;;  %v1753_v41 = vunpack.c.l.b16 %v1465_v12  ;;  %v7751_v24 = vld [vmem:[#allocation2 + $0x120] sm:$0xff]   ;;  %v1328_v33 = vsel %vm8488_vm4, %v936_v59, %v1327_v18 }
 0x232   : > { %v8101_v28 = vor.u32 %v8100_v50, %v10421_v34  ;;  %v3170_v7 = vrot.slane %v3168_v9, 1  ;;  %v3173_v61 = vshll.u32 %v2891_v56, 16  ;;  %1329 = vst [vmem:[#allocation2 + $0x14c] sm:$0x1] %v1328_v33  ;;  %v10424_v12 = vld [vmem:[#allocation74_spill] sm:$0xff]  ;;  %v2061_v18 = vshrl.u32 %v7751_v24, 16 }
 0x233   : > { %10417 = vst [vmem:[#allocation26_spill] sm:$0xff] %v9514_v57  ;;  %4015 = vmatmul.bf16.gmra.mxu1 %v3164_v11  ;;  %v4627_v60 = vpop.f32.mrf.mxu0  ;;  %v3166_v11 = vshrl.u32 %v10420_v6, 16  ;;  %v9527_v50 = vpack.c.b16 %v1753_v41, %v1753_v41  ;;  %v2572_v57 = vld [vmem:[#allocation2 + $0x140] sm:$0x1]  ;;  %v422_v6 = vld [vmem:[#allocation2 + $0x158] sm:$0x1] }
 0x234   : > { %v4145_v54 = vpop.f32.mrf.mxu2  ;;  %v4458_v51 = vpop.f32.mrf.mxu3  ;;  %v3479_v20 = vrot.slane %v8101_v28, 1  ;;  %v3175_v34 = vrot.slane %v3173_v61, 1  ;;  %v423_v56 = vsel %vm8483_vm3, 0, %v422_v6  ;;  %v9536_v33 = vld [vmem:[#allocation2 + $0x12c] sm:$0xf0] }
 0x235   : > { %v4146_v4 = vadd.f32 %v4145_v54, %v3977_v52  ;;  %v2063_v52 = vshll.u32 %v7751_v24, 16  ;;  %10423 = vst [vmem:[#allocation38_spill] sm:$0xff] %v9527_v50  ;;  %v2068_v28 = vshll.u32 %v9527_v50, 16  ;;  %v10426_v61 = vld [vmem:[#allocation16_spill] sm:$0xff] }
 0x236   : > { %4666 = vmatmul.bf16.gmra.mxu0 %v2059_v8  ;;  %v3481_v8 = vsel %vm2308_vm9, %v3479_v20, %v3480_v36  ;;  %10425 = vst [vmem:[#allocation12_spill] sm:$0xff] %v9536_v33  ;;  %v1466_v6 = vld [vmem:[#allocation2 + $0x134] sm:$0x1]  ;;  %v8059_v33 = vld [vmem:[#allocation2 + $0x138] sm:$0xff]  }
 0x237   : > { %v4459_v49 = vadd.f32 %v4458_v51, %v4146_v4  ;;  %v3171_v51 = vor.u32 %v3170_v7, %v3166_v11  ;;  %424 = vst [vmem:[#allocation2 + $0x158] sm:$0x1] %v423_v56  ;;  %v2860_v7 = vunpack.c.l.b16 %v2572_v57  ;;  %v3180_v56 = vshll.u32 %v8059_v33, 16 }
 0x238   : > { %v3978_v35 = vpop.f32.mrf.mxu1 }
 0x239   : > { %v9525_v40 = vadd.f32 %v4627_v60, %v4459_v49  ;;  %v3979_v4 = vadd.f32 %v3978_v35, %v10424_v12  ;;  %v2065_v60 = vrot.slane %v2063_v52, 1  ;;  %v9534_v49 = vld [vmem:[#allocation2 + $0x12c] sm:$0xff]   ;;  %v3176_v11 = vsel %vm1795_vm10, %v3171_v51, %v3175_v34 }
 0x23a   : > { %v953_v12 = vrot.slane %v10426_v61, 4  ;;  %v2070_v52 = vrot.slane %v2068_v28, 1  ;;  %v2892_v50 = vpack.c.b16 %v2860_v7, %v2860_v7  ;;  %v7372_v7 = vld [vmem:[#allocation6 + $0x1c8] sm:$0xff] }
 0x23b   : > { %10422 = vst [vmem:[#allocation27_spill] sm:$0xff] %v9525_v40  ;;  %v4629_v9 = vpop.f32.mrf.mxu0  ;;  %v2066_v36 = vor.u32 %v2065_v60, %v2061_v18  ;;  %6315 = vmatpush.bf16.msra.mxu3 %v7372_v7 }
 0x23c   : > { %v4147_v54 = vpop.f32.mrf.mxu2  ;;  %v4460_v17 = vpop.f32.mrf.mxu3  ;;  %v3185_v61 = vshll.u32 %v2892_v50, 16 }
 0x23d   : > { %v4148_v59 = vadd.f32 %v4147_v54, %v3979_v4  ;;  %v10428_v4 = vld [vmem:[#allocation77_spill] sm:$0xff]  ;;  %v2071_v34 = vsel %vm1795_vm10, %v2066_v36, %v2070_v52  ;;  %v3483_v36 = vrot.slane %v2892_v50, 1  ;;  %v2075_v52 = vshll.u32 %v9534_v49, 16 }
 0x23e   : > { %v1334_v18 = vld [vmem:[#allocation2 + $0x158] sm:$0x1] }
 0x23f   : > { %v4461_v41 = vadd.f32 %v4460_v17, %v4148_v59  ;;  %v7853_v17 = vld [vmem:[#allocation2 + $0x138] sm:$0xf0]  ;;  %v7854_v59 = vld [vmem:[#allocation2 + $0x138] sm:$0xe]  ;;  %v1335_v28 = vsel %vm8488_vm4, %v953_v12, %v1334_v18  ;;  %v425_v18 = vld [vmem:[#allocation2 + $0x164] sm:$0x1] }
 0x240   : > { %v3981_v35 = vpop.f32.mrf.mxu1  ;;  %1336 = vst [vmem:[#allocation2 + $0x158] sm:$0x1] %v1335_v28  ;;  %v7332_v28 = vld [vmem:[#allocation6 + $0x88] sm:$0xff] }
 0x241   : > { %4189 = vmatmul.bf16.gmra.mxu2 %v3481_v8  ;;  %v9540_v20 = vadd.f32 %v4629_v9, %v4461_v41  ;;  %v3982_v54 = vadd.f32 %v3981_v35, %v10428_v4  ;;  %4502 = vmatmul.bf16.gmra.mxu3 %v7751_v24  ;;  %v7855_v9 = vor.u32 %v7854_v59, %v7853_v17  ;;  %v1754_v41 = vunpack.c.l.b16 %v1466_v6  ;;  %v7364_v4 = vld [vmem:[#allocation6 + $0x188] sm:$0xff]  ;;  %v10431_v59 = vld [vmem:[#allocation82_spill] sm:$0xff] }
 0x242   : > { %v3178_v24 = vshrl.u32 %v8059_v33, 16  ;;  %v3182_v35 = vrot.slane %v3180_v56, 1  ;;  %6146 = vmatpush.bf16.msra.mxu2 %v7364_v4  ;;  %v3187_v56 = vrot.slane %v3185_v61, 1  ;;  %4728 = vmatpush.bf16.msra.mxu1 %v7332_v28 }
 0x243   : > { %10427 = vst [vmem:[#allocation70_spill] sm:$0xff] %v9540_v20  ;;  %4020 = vmatmul.bf16.gmra.mxu1 %v3176_v11  ;;  %v4632_v57 = vpop.f32.mrf.mxu0  ;;  %v9549_v17 = vpack.c.b16 %v1754_v41, %v1754_v41 }
 0x244   : > { %v4150_v40 = vpop.f32.mrf.mxu2  ;;  %v4463_v8 = vpop.f32.mrf.mxu3  ;;  %v3183_v33 = vor.u32 %v3182_v35, %v3178_v24  ;;  %v8103_v35 = vld [vmem:[#allocation2 + $0x144] sm:$0xe] }
 0x245   : > { %v4151_v51 = vadd.f32 %v4150_v40, %v3982_v54  ;;  %v3482_v54 = vrot.slane %v7855_v9, 1  ;;  %10430 = vst [vmem:[#allocation35_spill] sm:$0xff] %v9549_v17  ;;  %v2077_v9 = vrot.slane %v2075_v52, 1  ;;  %v2080_v41 = vshll.u32 %v9549_v17, 16  ;;  %v10433_v52 = vld [vmem:[#allocation17_spill] sm:$0xff] }
 0x246   : > { %4671 = vmatmul.bf16.gmra.mxu0 %v2071_v34  ;;  %v2073_v34 = vshrl.u32 %v9534_v49, 16  ;;  %v3188_v4 = vsel %vm1795_vm10, %v3183_v33, %v3187_v56 }
 0x247   : > { %v4464_v60 = vadd.f32 %v4463_v8, %v4151_v51  ;;  %v2573_v8 = vld [vmem:[#allocation2 + $0x14c] sm:$0x1]  ;;  %v3484_v50 = vsel %vm2308_vm9, %v3482_v54, %v3483_v36  ;;  %v2082_v36 = vrot.slane %v2080_v41, 1 }
 0x248   : > { %v3983_v11 = vpop.f32.mrf.mxu1  ;;  %v2861_v7 = vunpack.c.l.b16 %v2573_v8  ;;  %v2078_v54 = vor.u32 %v2077_v9, %v2073_v34 }
 0x249   : > { %v9546_v40 = vadd.f32 %v4632_v57, %v4464_v60  ;;  %v3984_v6 = vadd.f32 %v3983_v11, %v10431_v59  ;;  %v426_v11 = vsel %vm8483_vm3, 0, %v425_v18  ;;  %v10435_v18 = vld [vmem:[#allocation14_spill] sm:$0xff] }
 0x24a   : > { %427 = vst [vmem:[#allocation2 + $0x164] sm:$0x1] %v426_v11  ;;  %v2893_v33 = vpack.c.b16 %v2861_v7, %v2861_v7 }
 0x24b   : > { %10429 = vst [vmem:[#allocation34_spill] sm:$0xff] %v9546_v40  ;;  %v4634_v57 = vpop.f32.mrf.mxu0  ;;  %v7380_v40 = vld [vmem:[#allocation6 + $0x208] sm:$0xff] }
 0x24c   : > { %v4152_v12 = vpop.f32.mrf.mxu2  ;;  %v4465_v60 = vpop.f32.mrf.mxu3  ;;  %6484 = vmatpush.bf16.msra.mxu0 %v7380_v40  ;;  %v2083_v40 = vsel %vm1795_vm10, %v2078_v54, %v2082_v36  ;;  %v3486_v54 = vrot.slane %v2893_v33, 1 }
 0x24d   : > { %v4153_v51 = vadd.f32 %v4152_v12, %v3984_v6  ;;  %v970_v6 = vrot.slane %v10433_v52, 4  ;;  %v10434_v12 = vld [vmem:[#allocation85_spill] sm:$0xff] }
 0x24f   : > { %v4466_v24 = vadd.f32 %v4465_v60, %v4153_v51  ;;  %v1467_v51 = vld [vmem:[#allocation2 + $0x140] sm:$0x1]  ;;  %v3192_v60 = vshll.u32 %v10435_v18, 16 }
 0x250   : > { %v3986_v61 = vpop.f32.mrf.mxu1  ;;  %v1755_v9 = vunpack.c.l.b16 %v1467_v51  ;;  %v10439_v51 = vld [vmem:[#allocation90_spill] sm:$0xff] }
 0x251   : > { %4194 = vmatmul.bf16.gmra.mxu2 %v3484_v50  ;;  %v9558_v59 = vadd.f32 %v4634_v57, %v4466_v24  ;;  %v3987_v17 = vadd.f32 %v3986_v61, %v10434_v12  ;;  %4507 = vmatmul.bf16.gmra.mxu3 %v9534_v49  ;;  %v10436_v50 = vld [vmem:[#allocation15_spill] sm:$0xff]  ;;  %v1341_v41 = vld [vmem:[#allocation2 + $0x164] sm:$0x1]  ;;  %v7752_v24 = vld [vmem:[#allocation2 + $0x138] sm:$0xff]   ;;  %v3194_v52 = vrot.slane %v3192_v60, 1  ;;  %v3197_v12 = vshll.u32 %v2893_v33, 16 }
 0x252   : > { %v8104_v34 = vor.u32 %v8103_v35, %v10436_v50  ;;  %v1342_v61 = vsel %vm8488_vm4, %v970_v6, %v1341_v41  ;;  %v2087_v36 = vshll.u32 %v7752_v24, 16  ;;  %v9571_v35 = vpack.c.b16 %v1755_v9, %v1755_v9 }
 0x253   : > { %10432 = vst [vmem:[#allocation74_spill] sm:$0xff] %v9558_v59  ;;  %4025 = vmatmul.bf16.gmra.mxu1 %v3188_v4  ;;  %v4637_v8 = vpop.f32.mrf.mxu0  ;;  %v3190_v4 = vshrl.u32 %v10435_v18, 16  ;;  %v3199_v50 = vrot.slane %v3197_v12, 1  ;;  %v2085_v41 = vshrl.u32 %v7752_v24, 16  ;;  %v2574_v59 = vld [vmem:[#allocation2 + $0x158] sm:$0x1] }
 0x254   : > { %v4155_v11 = vpop.f32.mrf.mxu2  ;;  %v4468_v57 = vpop.f32.mrf.mxu3  ;;  %1343 = vst [vmem:[#allocation2 + $0x164] sm:$0x1] %v1342_v61  ;;  %v3485_v7 = vrot.slane %v8104_v34, 1  ;;  %v428_v18 = vld [vmem:[#allocation2 + $0x170] sm:$0x1]  ;;  %v2092_v34 = vshll.u32 %v9571_v35, 16 }
 0x255   : > { %v4156_v56 = vadd.f32 %v4155_v11, %v3987_v17  ;;  %10438 = vst [vmem:[#allocation77_spill] sm:$0xff] %v9571_v35  ;;  %v429_v33 = vsel %vm8483_vm3, 0, %v428_v18  ;;  %v9580_v61 = vld [vmem:[#allocation2 + $0x144] sm:$0xf0]  ;;  %v1468_v18 = vld [vmem:[#allocation2 + $0x14c] sm:$0x1] }
 0x256   : > { %4676 = vmatmul.bf16.gmra.mxu0 %v2083_v40  ;;  %v3487_v40 = vsel %vm2308_vm9, %v3485_v7, %v3486_v54  ;;  %10440 = vst [vmem:[#allocation82_spill] sm:$0xff] %v9580_v61  ;;  %v10441_v12 = vld [vmem:[#allocation23_spill] sm:$0xff]  ;;  %v8060_v61 = vld [vmem:[#allocation2 + $0x150] sm:$0xff]  }
 0x257   : > { %v4469_v28 = vadd.f32 %v4468_v57, %v4156_v56  ;;  %v3195_v57 = vor.u32 %v3194_v52, %v3190_v4  ;;  %430 = vst [vmem:[#allocation2 + $0x170] sm:$0x1] %v429_v33  ;;  %v2862_v52 = vunpack.c.l.b16 %v2574_v59  ;;  %v3204_v33 = vshll.u32 %v8060_v61, 16 }
 0x258   : > { %v3988_v49 = vpop.f32.mrf.mxu1 }
 0x259   : > { %v9569_v17 = vadd.f32 %v4637_v8, %v4469_v28  ;;  %v3989_v11 = vadd.f32 %v3988_v49, %v10439_v51  ;;  %v2089_v8 = vrot.slane %v2087_v36, 1  ;;  %v9578_v28 = vld [vmem:[#allocation2 + $0x144] sm:$0xff]   ;;  %v3200_v4 = vsel %vm1795_vm10, %v3195_v57, %v3199_v50 }
 0x25a   : > { %v987_v51 = vrot.slane %v10441_v12, 4  ;;  %v2094_v36 = vrot.slane %v2092_v34, 1  ;;  %v2894_v35 = vpack.c.b16 %v2862_v52, %v2862_v52 }
 0x25b   : > { %10437 = vst [vmem:[#allocation16_spill] sm:$0xff] %v9569_v17  ;;  %v4639_v60 = vpop.f32.mrf.mxu0  ;;  %v2090_v54 = vor.u32 %v2089_v8, %v2085_v41 }
 0x25c   : > { %v4157_v56 = vpop.f32.mrf.mxu2  ;;  %v4470_v20 = vpop.f32.mrf.mxu3  ;;  %v3209_v12 = vshll.u32 %v2894_v35, 16  ;;  %v3489_v52 = vrot.slane %v2894_v35, 1 }
 0x25d   : > { %v4158_v6 = vadd.f32 %v4157_v56, %v3989_v11  ;;  %v10443_v11 = vld [vmem:[#allocation40_spill] sm:$0xff]  ;;  %v2095_v50 = vsel %vm1795_vm10, %v2090_v54, %v2094_v36  ;;  %v2099_v54 = vshll.u32 %v9578_v28, 16 }
 0x25e   : > { %v1348_v41 = vld [vmem:[#allocation2 + $0x170] sm:$0x1] }
 0x25f   : > { %v4471_v9 = vadd.f32 %v4470_v20, %v4158_v6  ;;  %v7856_v20 = vld [vmem:[#allocation2 + $0x150] sm:$0xf0]  ;;  %v7857_v6 = vld [vmem:[#allocation2 + $0x150] sm:$0xe]  ;;  %v1349_v34 = vsel %vm8488_vm4, %v987_v51, %v1348_v41 }
 0x260   : > { %v3991_v49 = vpop.f32.mrf.mxu1  ;;  %1350 = vst [vmem:[#allocation2 + $0x170] sm:$0x1] %v1349_v34  ;;  %v8106_v34 = vld [vmem:[#allocation2 + $0x15c] sm:$0xe] }
 0x261   : > { %4199 = vmatmul.bf16.gmra.mxu2 %v3487_v40  ;;  %v9584_v7 = vadd.f32 %v4639_v60, %v4471_v9  ;;  %v3992_v56 = vadd.f32 %v3991_v49, %v10443_v11  ;;  %4512 = vmatmul.bf16.gmra.mxu3 %v7752_v24  ;;  %v7858_v60 = vor.u32 %v7857_v6, %v7856_v20  ;;  %v1756_v9 = vunpack.c.l.b16 %v1468_v18 }
 0x262   : > { %v3202_v24 = vshrl.u32 %v8060_v61, 16  ;;  %v3206_v49 = vrot.slane %v3204_v33, 1  ;;  %v2097_v61 = vshrl.u32 %v9578_v28, 16  ;;  %v2575_v33 = vld [vmem:[#allocation2 + $0x164] sm:$0x1] }
 0x263   : > { %10442 = vst [vmem:[#allocation17_spill] sm:$0xff] %v9584_v7  ;;  %4030 = vmatmul.bf16.gmra.mxu1 %v3200_v4  ;;  %v4642_v59 = vpop.f32.mrf.mxu0  ;;  %v9593_v36 = vpack.c.b16 %v1756_v9, %v1756_v9 }
 0x264   : > { %v4160_v17 = vpop.f32.mrf.mxu2  ;;  %v4473_v40 = vpop.f32.mrf.mxu3  ;;  %v3207_v6 = vor.u32 %v3206_v49, %v3202_v24 }
 0x265   : > { %v4161_v57 = vadd.f32 %v4160_v17, %v3992_v56  ;;  %v3488_v17 = vrot.slane %v7858_v60, 1  ;;  %10445 = vst [vmem:[#allocation14_spill] sm:$0xff] %v9593_v36  ;;  %v10446_v56 = vld [vmem:[#allocation42_spill] sm:$0xff]  ;;  %v2101_v60 = vrot.slane %v2099_v54, 1  ;;  %v2104_v35 = vshll.u32 %v9593_v36, 16 }
 0x266   : > { %4681 = vmatmul.bf16.gmra.mxu0 %v2095_v50 }
 0x267   : > { %v4474_v8 = vadd.f32 %v4473_v40, %v4161_v57  ;;  %v3211_v57 = vrot.slane %v3209_v12, 1  ;;  %v431_v40 = vld [vmem:[#allocation2 + $0x17c] sm:$0x1] }
 0x268   : > { %v3993_v4 = vpop.f32.mrf.mxu1  ;;  %v432_v9 = vsel %vm8483_vm3, 0, %v431_v40  ;;  %v1469_v40 = vld [vmem:[#allocation2 + $0x158] sm:$0x1] }
 0x269   : > { %v9590_v11 = vadd.f32 %v4642_v59, %v4474_v8  ;;  %v3994_v20 = vadd.f32 %v3993_v4, %v10446_v56  ;;  %v3490_v59 = vsel %vm2308_vm9, %v3488_v17, %v3489_v52  ;;  %433 = vst [vmem:[#allocation2 + $0x17c] sm:$0x1] %v432_v9  ;;  %v3212_v49 = vsel %vm1795_vm10, %v3207_v6, %v3211_v57  ;;  %v10449_v52 = vld [vmem:[#allocation46_spill] sm:$0xff] }
 0x26a   : > { %v2863_v4 = vunpack.c.l.b16 %v2575_v33  ;;  %v2102_v56 = vor.u32 %v2101_v60, %v2097_v61 }
 0x26b   : > { %10444 = vst [vmem:[#allocation85_spill] sm:$0xff] %v9590_v11  ;;  %v4644_v41 = vpop.f32.mrf.mxu0 }
 0x26c   : > { %v4162_v18 = vpop.f32.mrf.mxu2  ;;  %v4475_v50 = vpop.f32.mrf.mxu3  ;;  %v2895_v11 = vpack.c.b16 %v2863_v4, %v2863_v4 }
 0x26d   : > { %v4163_v51 = vadd.f32 %v4162_v18, %v3994_v20  ;;  %v2106_v20 = vrot.slane %v2104_v35, 1  ;;  %v10448_v18 = vld [vmem:[#allocation25_spill] sm:$0xff] }
 0x26e   : > { %v1004_v17 = vrot.slane %v10448_v18, 4 }
 0x26f   : > { %v4476_v8 = vadd.f32 %v4475_v50, %v4163_v51  ;;  %v10450_v51 = vld [vmem:[#allocation21_spill] sm:$0xff]  ;;  %v2107_v57 = vsel %vm1795_vm10, %v2102_v56, %v2106_v20  ;;  %v3492_v20 = vrot.slane %v2895_v11, 1 }
 0x270   : > { %v3996_v24 = vpop.f32.mrf.mxu1  ;;  %v3216_v50 = vshll.u32 %v10450_v51, 16  ;;  %v1355_v60 = vld [vmem:[#allocation2 + $0x17c] sm:$0x1] }
 0x271   : > { %4204 = vmatmul.bf16.gmra.mxu2 %v3490_v59  ;;  %v9602_v12 = vadd.f32 %v4644_v41, %v4476_v8  ;;  %v3997_v54 = vadd.f32 %v3996_v24, %v10449_v52  ;;  %4517 = vmatmul.bf16.gmra.mxu3 %v9578_v28  ;;  %v10451_v41 = vld [vmem:[#allocation22_spill] sm:$0xff]  ;;  %v1757_v59 = vunpack.c.l.b16 %v1469_v40  ;;  %v7753_v8 = vld [vmem:[#allocation2 + $0x150] sm:$0xff]   ;;  %v1356_v24 = vsel %vm8488_vm4, %v1004_v17, %v1355_v60 }
 0x272   : > { %v8107_v61 = vor.u32 %v8106_v34, %v10451_v41  ;;  %v3218_v18 = vrot.slane %v3216_v50, 1  ;;  %v3221_v52 = vshll.u32 %v2895_v11, 16  ;;  %1357 = vst [vmem:[#allocation2 + $0x17c] sm:$0x1] %v1356_v24  ;;  %v10454_v40 = vld [vmem:[#allocation50_spill] sm:$0xff]  ;;  %v2109_v60 = vshrl.u32 %v7753_v8, 16 }
 0x273   : > { %10447 = vst [vmem:[#allocation15_spill] sm:$0xff] %v9602_v12  ;;  %4035 = vmatmul.bf16.gmra.mxu1 %v3212_v49  ;;  %v4647_v6 = vpop.f32.mrf.mxu0  ;;  %v3214_v49 = vshrl.u32 %v10450_v51, 16  ;;  %v9615_v34 = vpack.c.b16 %v1757_v59, %v1757_v59  ;;  %v2576_v12 = vld [vmem:[#allocation2 + $0x170] sm:$0x1]  ;;  %v434_v51 = vld [vmem:[#allocation2 + $0x188] sm:$0x1] }
 0x274   : > { %v4165_v9 = vpop.f32.mrf.mxu2  ;;  %v4478_v33 = vpop.f32.mrf.mxu3  ;;  %v3491_v56 = vrot.slane %v8107_v61, 1  ;;  %v3223_v41 = vrot.slane %v3221_v52, 1  ;;  %v435_v11 = vsel %vm8483_vm3, 0, %v434_v51  ;;  %v9624_v24 = vld [vmem:[#allocation2 + $0x15c] sm:$0xf0]  ;;  %v10456_v52 = vld [vmem:[#allocation31_spill] sm:$0xff] }
 0x275   : > { %v4166_v36 = vadd.f32 %v4165_v9, %v3997_v54  ;;  %v2111_v54 = vshll.u32 %v7753_v8, 16  ;;  %10453 = vst [vmem:[#allocation23_spill] sm:$0xff] %v9615_v34  ;;  %v2116_v61 = vshll.u32 %v9615_v34, 16  ;;  %v1470_v51 = vld [vmem:[#allocation2 + $0x164] sm:$0x1] }
 0x276   : > { %4686 = vmatmul.bf16.gmra.mxu0 %v2107_v57  ;;  %v3493_v57 = vsel %vm2308_vm9, %v3491_v56, %v3492_v20  ;;  %10455 = vst [vmem:[#allocation40_spill] sm:$0xff] %v9624_v24  ;;  %v8061_v24 = vld [vmem:[#allocation2 + $0x168] sm:$0xff]  }
 0x277   : > { %v4479_v35 = vadd.f32 %v4478_v33, %v4166_v36  ;;  %v3219_v33 = vor.u32 %v3218_v18, %v3214_v49  ;;  %436 = vst [vmem:[#allocation2 + $0x188] sm:$0x1] %v435_v11  ;;  %v2864_v18 = vunpack.c.l.b16 %v2576_v12  ;;  %v3228_v11 = vshll.u32 %v8061_v24, 16 }
 0x278   : > { %v3998_v28 = vpop.f32.mrf.mxu1 }
 0x279   : > { %v9613_v4 = vadd.f32 %v4647_v6, %v4479_v35  ;;  %v3999_v36 = vadd.f32 %v3998_v28, %v10454_v40  ;;  %v2113_v6 = vrot.slane %v2111_v54, 1  ;;  %v9622_v35 = vld [vmem:[#allocation2 + $0x15c] sm:$0xff]   ;;  %v3224_v49 = vsel %vm1795_vm10, %v3219_v33, %v3223_v41 }
 0x27a   : > { %v1021_v40 = vrot.slane %v10456_v52, 4  ;;  %v2118_v54 = vrot.slane %v2116_v61, 1  ;;  %v2896_v34 = vpack.c.b16 %v2864_v18, %v2864_v18  ;;  %v7371_v18 = vld [vmem:[#allocation6 + $0x1c0] sm:$0xff] }
 0x27b   : > { %10452 = vst [vmem:[#allocation90_spill] sm:$0xff] %v9613_v4  ;;  %v4649_v50 = vpop.f32.mrf.mxu0  ;;  %v2114_v20 = vor.u32 %v2113_v6, %v2109_v60  ;;  %6316 = vmatpush.bf16.msra.mxu3 %v7371_v18 }
 0x27c   : > { %v4167_v9 = vpop.f32.mrf.mxu2  ;;  %v4480_v7 = vpop.f32.mrf.mxu3  ;;  %v3233_v52 = vshll.u32 %v2896_v34, 16 }
 0x27d   : > { %v4168_v17 = vadd.f32 %v4167_v9, %v3999_v36  ;;  %v10458_v36 = vld [vmem:[#allocation54_spill] sm:$0xff]  ;;  %v2119_v41 = vsel %vm1795_vm10, %v2114_v20, %v2118_v54  ;;  %v3495_v20 = vrot.slane %v2896_v34, 1  ;;  %v2123_v54 = vshll.u32 %v9622_v35, 16 }
 0x27e   : > { %v1362_v60 = vld [vmem:[#allocation2 + $0x188] sm:$0x1] }
 0x27f   : > { %v4481_v59 = vadd.f32 %v4480_v7, %v4168_v17  ;;  %v7859_v7 = vld [vmem:[#allocation2 + $0x168] sm:$0xf0]  ;;  %v7860_v17 = vld [vmem:[#allocation2 + $0x168] sm:$0xe]  ;;  %v1363_v61 = vsel %vm8488_vm4, %v1021_v40, %v1362_v60  ;;  %v437_v60 = vld [vmem:[#allocation2 + $0x194] sm:$0x1] }
 0x280   : > { %v4001_v28 = vpop.f32.mrf.mxu1  ;;  %1364 = vst [vmem:[#allocation2 + $0x188] sm:$0x1] %v1363_v61  ;;  %v7331_v61 = vld [vmem:[#allocation6 + $0x80] sm:$0xff] }
 0x281   : > { %4209 = vmatmul.bf16.gmra.mxu2 %v3493_v57  ;;  %v9628_v56 = vadd.f32 %v4649_v50, %v4481_v59  ;;  %v4002_v9 = vadd.f32 %v4001_v28, %v10458_v36  ;;  %4522 = vmatmul.bf16.gmra.mxu3 %v7753_v8  ;;  %v7861_v50 = vor.u32 %v7860_v17, %v7859_v7  ;;  %v1758_v59 = vunpack.c.l.b16 %v1470_v51  ;;  %v7363_v36 = vld [vmem:[#allocation6 + $0x180] sm:$0xff]  ;;  %v10461_v17 = vld [vmem:[#allocation58_spill] sm:$0xff] }
 0x282   : > { %v3226_v8 = vshrl.u32 %v8061_v24, 16  ;;  %v3230_v28 = vrot.slane %v3228_v11, 1  ;;  %6147 = vmatpush.bf16.msra.mxu2 %v7363_v36  ;;  %v3235_v11 = vrot.slane %v3233_v52, 1  ;;  %4729 = vmatpush.bf16.msra.mxu1 %v7331_v61 }
 0x283   : > { %10457 = vst [vmem:[#allocation42_spill] sm:$0xff] %v9628_v56  ;;  %4040 = vmatmul.bf16.gmra.mxu1 %v3224_v49  ;;  %v4652_v12 = vpop.f32.mrf.mxu0  ;;  %v9637_v7 = vpack.c.b16 %v1758_v59, %v1758_v59 }
 0x284   : > { %v4170_v4 = vpop.f32.mrf.mxu2  ;;  %v4483_v57 = vpop.f32.mrf.mxu3  ;;  %v3231_v24 = vor.u32 %v3230_v28, %v3226_v8  ;;  %v8109_v28 = vld [vmem:[#allocation2 + $0x174] sm:$0xe] }
 0x285   : > { %v4171_v33 = vadd.f32 %v4170_v4, %v4002_v9  ;;  %v3494_v9 = vrot.slane %v7861_v50, 1  ;;  %10460 = vst [vmem:[#allocation46_spill] sm:$0xff] %v9637_v7  ;;  %v2125_v50 = vrot.slane %v2123_v54, 1  ;;  %v2128_v59 = vshll.u32 %v9637_v7, 16  ;;  %v10463_v54 = vld [vmem:[#allocation33_spill] sm:$0xff] }
 0x286   : > { %4691 = vmatmul.bf16.gmra.mxu0 %v2119_v41  ;;  %v2121_v41 = vshrl.u32 %v9622_v35, 16  ;;  %v3236_v36 = vsel %vm1795_vm10, %v3231_v24, %v3235_v11 }
 0x287   : > { %v4484_v6 = vadd.f32 %v4483_v57, %v4171_v33  ;;  %v2577_v57 = vld [vmem:[#allocation2 + $0x17c] sm:$0x1]  ;;  %v3496_v34 = vsel %vm2308_vm9, %v3494_v9, %v3495_v20  ;;  %v2130_v20 = vrot.slane %v2128_v59, 1 }
 0x288   : > { %v4003_v49 = vpop.f32.mrf.mxu1  ;;  %v2865_v18 = vunpack.c.l.b16 %v2577_v57  ;;  %v2126_v9 = vor.u32 %v2125_v50, %v2121_v41 }
 0x289   : > { %v9634_v4 = vadd.f32 %v4652_v12, %v4484_v6  ;;  %v4004_v51 = vadd.f32 %v4003_v49, %v10461_v17  ;;  %v438_v49 = vsel %vm8483_vm3, 0, %v437_v60  ;;  %v10465_v60 = vld [vmem:[#allocation28_spill] sm:$0xff] }
 0x28a   : > { %439 = vst [vmem:[#allocation2 + $0x194] sm:$0x1] %v438_v49  ;;  %v2897_v24 = vpack.c.b16 %v2865_v18, %v2865_v18 }
 0x28b   : > { %10459 = vst [vmem:[#allocation25_spill] sm:$0xff] %v9634_v4  ;;  %v4654_v12 = vpop.f32.mrf.mxu0  ;;  %v7379_v4 = vld [vmem:[#allocation6 + $0x200] sm:$0xff] }
 0x28c   : > { %v4172_v40 = vpop.f32.mrf.mxu2  ;;  %v4485_v6 = vpop.f32.mrf.mxu3  ;;  %6485 = vmatpush.bf16.msra.mxu0 %v7379_v4  ;;  %v2131_v4 = vsel %vm1795_vm10, %v2126_v9, %v2130_v20  ;;  %v3498_v9 = vrot.slane %v2897_v24, 1 }
 0x28d   : > { %v4173_v33 = vadd.f32 %v4172_v40, %v4004_v51  ;;  %v1038_v51 = vrot.slane %v10463_v54, 4  ;;  %v10464_v40 = vld [vmem:[#allocation61_spill] sm:$0xff] }
 0x28f   : > { %v4486_v8 = vadd.f32 %v4485_v6, %v4173_v33  ;;  %v1471_v33 = vld [vmem:[#allocation2 + $0x170] sm:$0x1]  ;;  %v3240_v6 = vshll.u32 %v10465_v60, 16 }
 0x290   : > { %v4006_v52 = vpop.f32.mrf.mxu1  ;;  %v1759_v50 = vunpack.c.l.b16 %v1471_v33  ;;  %v10469_v33 = vld [vmem:[#allocation64_spill] sm:$0xff] }
 0x291   : > { %4214 = vmatmul.bf16.gmra.mxu2 %v3496_v34  ;;  %v9646_v17 = vadd.f32 %v4654_v12, %v4486_v8  ;;  %v4007_v7 = vadd.f32 %v4006_v52, %v10464_v40  ;;  %4527 = vmatmul.bf16.gmra.mxu3 %v9622_v35  ;;  %v10466_v34 = vld [vmem:[#allocation29_spill] sm:$0xff]  ;;  %v1369_v59 = vld [vmem:[#allocation2 + $0x194] sm:$0x1]  ;;  %v7754_v8 = vld [vmem:[#allocation2 + $0x168] sm:$0xff]   ;;  %v3242_v54 = vrot.slane %v3240_v6, 1  ;;  %v3245_v40 = vshll.u32 %v2897_v24, 16 }
 0x292   : > { %v8110_v41 = vor.u32 %v8109_v28, %v10466_v34  ;;  %v1370_v52 = vsel %vm8488_vm4, %v1038_v51, %v1369_v59  ;;  %v2135_v20 = vshll.u32 %v7754_v8, 16  ;;  %v9659_v28 = vpack.c.b16 %v1759_v50, %v1759_v50 }
 0x293   : > { %10462 = vst [vmem:[#allocation21_spill] sm:$0xff] %v9646_v17  ;;  %4045 = vmatmul.bf16.gmra.mxu1 %v3236_v36  ;;  %v4657_v57 = vpop.f32.mrf.mxu0  ;;  %v3238_v36 = vshrl.u32 %v10465_v60, 16  ;;  %v3247_v34 = vrot.slane %v3245_v40, 1  ;;  %v2133_v59 = vshrl.u32 %v7754_v8, 16  ;;  %v2578_v17 = vld [vmem:[#allocation2 + $0x188] sm:$0x1] }
 0x294   : > { %v4175_v49 = vpop.f32.mrf.mxu2  ;;  %v4488_v12 = vpop.f32.mrf.mxu3  ;;  %1371 = vst [vmem:[#allocation2 + $0x194] sm:$0x1] %v1370_v52  ;;  %v3497_v18 = vrot.slane %v8110_v41, 1  ;;  %v440_v60 = vld [vmem:[#allocation2 + $0x1a0] sm:$0x1]  ;;  %v2140_v41 = vshll.u32 %v9659_v28, 16 }
 0x295   : > { %v4176_v11 = vadd.f32 %v4175_v49, %v4007_v7  ;;  %10468 = vst [vmem:[#allocation50_spill] sm:$0xff] %v9659_v28  ;;  %v441_v24 = vsel %vm8483_vm3, 0, %v440_v60  ;;  %v9668_v52 = vld [vmem:[#allocation2 + $0x174] sm:$0xf0]  ;;  %v10471_v40 = vld [vmem:[#allocation39_spill] sm:$0xff] }
 0x296   : > { %4696 = vmatmul.bf16.gmra.mxu0 %v2131_v4  ;;  %v3499_v4 = vsel %vm2308_vm9, %v3497_v18, %v3498_v9  ;;  %10470 = vst [vmem:[#allocation31_spill] sm:$0xff] %v9668_v52  ;;  %v1472_v60 = vld [vmem:[#allocation2 + $0x17c] sm:$0x1]  ;;  %v8062_v52 = vld [vmem:[#allocation2 + $0x180] sm:$0xff]  }
 0x297   : > { %v4489_v61 = vadd.f32 %v4488_v12, %v4176_v11  ;;  %v3243_v12 = vor.u32 %v3242_v54, %v3238_v36  ;;  %442 = vst [vmem:[#allocation2 + $0x1a0] sm:$0x1] %v441_v24  ;;  %v2866_v54 = vunpack.c.l.b16 %v2578_v17  ;;  %v3252_v24 = vshll.u32 %v8062_v52, 16 }
 0x298   : > { %v4008_v35 = vpop.f32.mrf.mxu1 }
 0x299   : > { %v9657_v7 = vadd.f32 %v4657_v57, %v4489_v61  ;;  %v4009_v49 = vadd.f32 %v4008_v35, %v10469_v33  ;;  %v2137_v57 = vrot.slane %v2135_v20, 1  ;;  %v9666_v61 = vld [vmem:[#allocation2 + $0x174] sm:$0xff]   ;;  %v3248_v36 = vsel %vm1795_vm10, %v3243_v12, %v3247_v34 }
 0x29a   : > { %v1055_v33 = vrot.slane %v10471_v40, 4  ;;  %v2142_v20 = vrot.slane %v2140_v41, 1  ;;  %v2898_v28 = vpack.c.b16 %v2866_v54, %v2866_v54 }
 0x29b   : > { %10467 = vst [vmem:[#allocation22_spill] sm:$0xff] %v9657_v7  ;;  %v4659_v6 = vpop.f32.mrf.mxu0  ;;  %v2138_v9 = vor.u32 %v2137_v57, %v2133_v59 }
 0x29c   : > { %v4177_v11 = vpop.f32.mrf.mxu2  ;;  %v4490_v56 = vpop.f32.mrf.mxu3  ;;  %v3257_v40 = vshll.u32 %v2898_v28, 16  ;;  %v3501_v54 = vrot.slane %v2898_v28, 1 }
 0x29d   : > { %v4178_v51 = vadd.f32 %v4177_v11, %v4009_v49  ;;  %v10473_v49 = vld [vmem:[#allocation67_spill] sm:$0xff]  ;;  %v2143_v34 = vsel %vm1795_vm10, %v2138_v9, %v2142_v20  ;;  %v2147_v9 = vshll.u32 %v9666_v61, 16 }
 0x29e   : > { %v1376_v59 = vld [vmem:[#allocation2 + $0x1a0] sm:$0x1] }
 0x29f   : > { %v4491_v50 = vadd.f32 %v4490_v56, %v4178_v51  ;;  %v7862_v56 = vld [vmem:[#allocation2 + $0x180] sm:$0xf0]  ;;  %v7863_v51 = vld [vmem:[#allocation2 + $0x180] sm:$0xe]  ;;  %v1377_v41 = vsel %vm8488_vm4, %v1055_v33, %v1376_v59 }
 0x2a0   : > { %v4011_v35 = vpop.f32.mrf.mxu1  ;;  %1378 = vst [vmem:[#allocation2 + $0x1a0] sm:$0x1] %v1377_v41 }
 0x2a1   : > { %4219 = vmatmul.bf16.gmra.mxu2 %v3499_v4  ;;  %v9672_v18 = vadd.f32 %v4659_v6, %v4491_v50  ;;  %v4012_v11 = vadd.f32 %v4011_v35, %v10473_v49  ;;  %4532 = vmatmul.bf16.gmra.mxu3 %v7754_v8  ;;  %v7864_v6 = vor.u32 %v7863_v51, %v7862_v56  ;;  %v1760_v50 = vunpack.c.l.b16 %v1472_v60 }
 0x2a2   : > { %v3250_v8 = vshrl.u32 %v8062_v52, 16  ;;  %v3254_v35 = vrot.slane %v3252_v24, 1  ;;  %v2579_v52 = vld [vmem:[#allocation2 + $0x194] sm:$0x1] }
 0x2a3   : > { %10472 = vst [vmem:[#allocation54_spill] sm:$0xff] %v9672_v18  ;;  %4050 = vmatmul.bf16.gmra.mxu1 %v3248_v36  ;;  %v4662_v17 = vpop.f32.mrf.mxu0  ;;  %v9681_v20 = vpack.c.b16 %v1760_v50, %v1760_v50 }
 0x2a4   : > { %v4180_v7 = vpop.f32.mrf.mxu2  ;;  %v4493_v4 = vpop.f32.mrf.mxu3  ;;  %v3255_v51 = vor.u32 %v3254_v35, %v3250_v8 }
 0x2a5   : > { %v4181_v12 = vadd.f32 %v4180_v7, %v4012_v11  ;;  %v3500_v7 = vrot.slane %v7864_v6, 1  ;;  %10475 = vst [vmem:[#allocation33_spill] sm:$0xff] %v9681_v20  ;;  %v10476_v11 = vld [vmem:[#allocation71_spill] sm:$0xff]  ;;  %v2152_v28 = vshll.u32 %v9681_v20, 16 }
 0x2a6   : > { %4701 = vmatmul.bf16.gmra.mxu0 %v2143_v34  ;;  %v2149_v34 = vrot.slane %v2147_v9, 1 }
 0x2a7   : > { %v4494_v57 = vadd.f32 %v4493_v4, %v4181_v12  ;;  %v3259_v12 = vrot.slane %v3257_v40, 1  ;;  %v3502_v59 = vsel %vm2308_vm9, %v3500_v7, %v3501_v54  ;;  %v2154_v40 = vrot.slane %v2152_v28, 1  ;;  %v1473_v7 = vld [vmem:[#allocation2 + $0x188] sm:$0x1]  ;;  %v10479_v54 = vld [vmem:[#allocation36_spill] sm:$0xff] }
 0x2a8   : > { %v4013_v36 = vpop.f32.mrf.mxu1  ;;  %v3264_v9 = vshll.u32 %v10479_v54, 16 }
 0x2a9   : > { %v9678_v49 = vadd.f32 %v4662_v17, %v4494_v57  ;;  %v4014_v56 = vadd.f32 %v4013_v36, %v10476_v11  ;;  %v2145_v17 = vshrl.u32 %v9666_v61, 16  ;;  %v8112_v57 = vld [vmem:[#allocation2 + $0x18c] sm:$0xe]  ;;  %v3260_v41 = vsel %vm1795_vm10, %v3255_v51, %v3259_v12 }
 0x2aa   : > { %v2867_v36 = vunpack.c.l.b16 %v2579_v52  ;;  %v10478_v11 = vld [vmem:[#allocation75_spill] sm:$0xff]  ;;  %v10480_v52 = vld [vmem:[#allocation37_spill] sm:$0xff] }
 0x2ab   : > { %10474 = vst [vmem:[#allocation58_spill] sm:$0xff] %v9678_v49  ;;  %v4664_v24 = vpop.f32.mrf.mxu0  ;;  %v2150_v35 = vor.u32 %v2149_v34, %v2145_v17  ;;  %v7755_v34 = vld [vmem:[#allocation2 + $0x180] sm:$0xff]  }
 0x2ac   : > { %v4182_v60 = vpop.f32.mrf.mxu2  ;;  %v4495_v4 = vpop.f32.mrf.mxu3 }
 0x2ad   : > { %v4183_v33 = vadd.f32 %v4182_v60, %v4014_v56  ;;  %v2155_v51 = vsel %vm1795_vm10, %v2150_v35, %v2154_v40  ;;  %v10483_v35 = vld [vmem:[#allocation78_spill] sm:$0xff] }
 0x2af   : > { %v4496_v6 = vadd.f32 %v4495_v4, %v4183_v33  ;;  %v2899_v33 = vpack.c.b16 %v2867_v36, %v2867_v36 }
 0x2b0   : > { %v4016_v50 = vpop.f32.mrf.mxu1 }
 0x2b1   : > { %4224 = vmatmul.bf16.gmra.mxu2 %v3502_v59  ;;  %v9688_v8 = vadd.f32 %v4664_v24, %v4496_v6  ;;  %v4017_v56 = vadd.f32 %v4016_v50, %v10478_v11  ;;  %4537 = vmatmul.bf16.gmra.mxu3 %v9666_v61  ;;  %v8113_v24 = vor.u32 %v8112_v57, %v10480_v52  ;;  %v1761_v59 = vunpack.c.l.b16 %v1473_v7 }
 0x2b2   : > { %v3262_v6 = vshrl.u32 %v10479_v54, 16  ;;  %v3266_v50 = vrot.slane %v3264_v9, 1  ;;  %v3269_v61 = vshll.u32 %v2899_v33, 16  ;;  %v3504_v36 = vrot.slane %v2899_v33, 1  ;;  %v1441_v33 = vld [vmem:[#allocation2 + $0x18c] sm:$0xff]  }
 0x2b3   : > { %10477 = vst [vmem:[#allocation61_spill] sm:$0xff] %v9688_v8  ;;  %4055 = vmatmul.bf16.gmra.mxu1 %v3260_v41  ;;  %v4667_v49 = vpop.f32.mrf.mxu0  ;;  %v3503_v11 = vrot.slane %v8113_v24, 1  ;;  %v2157_v9 = vshrl.u32 %v7755_v34, 16 }
 0x2b4   : > { %v4185_v60 = vpop.f32.mrf.mxu2  ;;  %v4498_v12 = vpop.f32.mrf.mxu3  ;;  %v3267_v57 = vor.u32 %v3266_v50, %v3262_v6  ;;  %v3271_v7 = vrot.slane %v3269_v61, 1  ;;  %v10486_v61 = vld [vmem:[#allocation83_spill] sm:$0xff] }
 0x2b5   : > { %v4186_v4 = vadd.f32 %v4185_v60, %v4017_v56  ;;  %v2159_v56 = vshll.u32 %v7755_v34, 16  ;;  %v9698_v60 = vpack.c.b16 %v1761_v59, %v1761_v59  ;;  %v3505_v54 = vsel %vm2308_vm9, %v3503_v11, %v3504_v36  ;;  %v7865_v11 = vld [vmem:[#allocation2 + $0x198] sm:$0xf0]  ;;  %v7866_v36 = vld [vmem:[#allocation2 + $0x198] sm:$0xe] }
 0x2b6   : > { %4706 = vmatmul.bf16.gmra.mxu0 %v2155_v51 }
 0x2b7   : > { %v4499_v17 = vadd.f32 %v4498_v12, %v4186_v4  ;;  %10482 = vst [vmem:[#allocation29_spill] sm:$0xff] %v9698_v60  ;;  %v2580_v12 = vld [vmem:[#allocation2 + $0x1a0] sm:$0x1]  ;;  %v2161_v51 = vrot.slane %v2159_v56, 1  ;;  %v1474_v56 = vld [vmem:[#allocation2 + $0x194] sm:$0x1] }
 0x2b8   : > { %v4018_v28 = vpop.f32.mrf.mxu1 }
 0x2b9   : > { %v9696_v41 = vadd.f32 %v4667_v49, %v4499_v17  ;;  %v4019_v40 = vadd.f32 %v4018_v28, %v10483_v35  ;;  %v2164_v49 = vshll.u32 %v9698_v60, 16  ;;  %v9703_v17 = vld [vmem:[#allocation2 + $0x18c] sm:$0xf0]  ;;  %v3272_v28 = vsel %vm1795_vm10, %v3267_v57, %v3271_v7 }
 0x2ba   : > { %10484 = vst [vmem:[#allocation64_spill] sm:$0xff] %v9703_v17  ;;  %v2868_v35 = vunpack.c.l.b16 %v2580_v12  ;;  %v7867_v12 = vor.u32 %v7866_v36, %v7865_v11  ;;  %v4956_v36 = vld [vmem:[#allocation2 + $0x20] sm:$0x1] }
 0x2bb   : > { %10481 = vst [vmem:[#allocation28_spill] sm:$0xff] %v9696_v41  ;;  %v4669_v52 = vpop.f32.mrf.mxu0  ;;  %v2166_v50 = vrot.slane %v2164_v49, 1 }
 0x2bc   : > { %v4187_v8 = vpop.f32.mrf.mxu2  ;;  %v4500_v20 = vpop.f32.mrf.mxu3  ;;  %v2900_v17 = vpack.c.b16 %v2868_v35, %v2868_v35 }
 0x2bd   : > { %v4188_v4 = vadd.f32 %v4187_v8, %v4019_v40  ;;  %v2162_v8 = vor.u32 %v2161_v51, %v2157_v9 }
 0x2bf   : > { %v4501_v24 = vadd.f32 %v4500_v20, %v4188_v4  ;;  %v8063_v20 = vld [vmem:[#allocation2 + $0x198] sm:$0xff]   ;;  %v2167_v57 = vsel %vm1795_vm10, %v2162_v8, %v2166_v50 }
 0x2c0   : > { %v4021_v59 = vpop.f32.mrf.mxu1  ;;  %v3276_v4 = vshll.u32 %v8063_v20, 16  ;;  %v3274_v9 = vshrl.u32 %v8063_v20, 16 }
 0x2c1   : > { %4229 = vmatmul.bf16.gmra.mxu2 %v3505_v54  ;;  %v9706_v6 = vadd.f32 %v4669_v52, %v4501_v24  ;;  %v4022_v40 = vadd.f32 %v4021_v59, %v10486_v61  ;;  %4542 = vmatmul.bf16.gmra.mxu3 %v7755_v34  ;;  %v1762_v52 = vunpack.c.l.b16 %v1474_v56  ;;  %v3281_v24 = vshll.u32 %v2900_v17, 16 }
 0x2c2   : > { %v3278_v51 = vrot.slane %v3276_v4, 1  ;;  %v3506_v59 = vrot.slane %v7867_v12, 1  ;;  %v2171_v61 = vshll.u32 %v1441_v33, 16  ;;  %v2169_v4 = vshrl.u32 %v1441_v33, 16 }
 0x2c3   : > { %10485 = vst [vmem:[#allocation39_spill] sm:$0xff] %v9706_v6  ;;  %4060 = vmatmul.bf16.gmra.mxu1 %v3272_v28  ;;  %v4672_v18 = vpop.f32.mrf.mxu0  ;;  %v3507_v28 = vrot.slane %v2900_v17, 1  ;;  %v9712_v6 = vpack.c.b16 %v1762_v52, %v1762_v52  ;;  %v3283_v50 = vrot.slane %v3281_v24, 1  ;;  %v5244_v52 = vunpack.c.l.b16 %v4956_v36  ;;  %v10491_v24 = vld [vmem:[#allocation89_spill] sm:$0xff] }
 0x2c4   : > { %v4190_v41 = vpop.f32.mrf.mxu2  ;;  %v4503_v7 = vpop.f32.mrf.mxu3 }
 0x2c5   : > { %v4191_v60 = vadd.f32 %v4190_v41, %v4022_v40  ;;  %10488 = vst [vmem:[#allocation71_spill] sm:$0xff] %v9712_v6  ;;  %v10489_v41 = vld [vmem:[#allocation87_spill] sm:$0xff]  ;;  %v3279_v40 = vor.u32 %v3278_v51, %v3274_v9  ;;  %v3508_v20 = vsel %vm2308_vm9, %v3506_v59, %v3507_v28  ;;  %v7756_v28 = vld [vmem:[#allocation2] sm:$0xf0] }
 0x2c6   : > { %4711 = vmatmul.bf16.gmra.mxu0 %v2167_v57  ;;  %v2173_v57 = vrot.slane %v2171_v61, 1  ;;  %v7757_v61 = vld [vmem:[#allocation2] sm:$0xe] }
 0x2c7   : > { %v4504_v54 = vadd.f32 %v4503_v7, %v4191_v60  ;;  %v3284_v12 = vsel %vm1795_vm10, %v3279_v40, %v3283_v50 }
 0x2c8   : > { %v4023_v49 = vpop.f32.mrf.mxu1  ;;  %v2174_v51 = vor.u32 %v2173_v57, %v2169_v4 }
 0x2c9   : > { %v9710_v34 = vadd.f32 %v4672_v18, %v4504_v54  ;;  %v4024_v35 = vadd.f32 %v4023_v49, %v10489_v41  ;;  %v2176_v18 = vshll.u32 %v9712_v6, 16  ;;  %v7518_v54 = vld [vmem:[#allocation2 + $0x18] sm:$0xff]  }
 0x2cb   : > { %10487 = vst [vmem:[#allocation67_spill] sm:$0xff] %v9710_v34  ;;  %v4674_v60 = vpop.f32.mrf.mxu0  ;;  %v2178_v49 = vrot.slane %v2176_v18, 1  ;;  %v4894_v18 = vld [vmem:[#allocation2 + $0x24] sm:$0xff]  }
 0x2cc   : > { %v4192_v8 = vpop.f32.mrf.mxu2  ;;  %v4505_v56 = vpop.f32.mrf.mxu3 }
 0x2cd   : > { %v4193_v11 = vadd.f32 %v4192_v8, %v4024_v35  ;;  %v5311_v35 = vshll.u32 %v7518_v54, 16  ;;  %v5276_v8 = vpack.c.b16 %v5244_v52, %v5244_v52  ;;  %v2179_v40 = vsel %vm1795_vm10, %v2174_v51, %v2178_v49  ;;  %v7884_v51 = vld [vmem:[#allocation2 + $0x18] sm:$0xe] }
 0x2cf   : > { %v4506_v7 = vadd.f32 %v4505_v56, %v4193_v11  ;;  %v5313_v4 = vrot.slane %v5311_v35, 1  ;;  %v5316_v57 = vshll.u32 %v5276_v8, 16 }
 0x2d0   : > { %v4026_v17 = vpop.f32.mrf.mxu1 }
 0x2d1   : > { %4234 = vmatmul.bf16.gmra.mxu2 %v3508_v20  ;;  %v9718_v9 = vadd.f32 %v4674_v60, %v4506_v7  ;;  %v4027_v41 = vadd.f32 %v4026_v17, %v10491_v24  ;;  %4547 = vmatmul.bf16.gmra.mxu3 %v1441_v33  ;;  %v7758_v20 = vor.u32 %v7757_v61, %v7756_v28  ;;  %v5309_v7 = vshrl.u32 %v7518_v54, 16  ;;  %v9722_v17 = vld [vmem:[#allocation2 + $0x24] sm:$0xf0] }
 0x2d2   : > { %v5318_v28 = vrot.slane %v5316_v57, 1 }
 0x2d3   : > { %10490 = vst [vmem:[#allocation75_spill] sm:$0xff] %v9718_v9  ;;  %4065 = vmatmul.bf16.gmra.mxu1 %v3284_v12  ;;  %v4677_v56 = vpop.f32.mrf.mxu0  ;;  %v10493_v12 = vld [vmem:[#allocation93_spill] sm:$0xff]  ;;  %v2309_v52 = vrot.slane %v7758_v20, 1  ;;  %v8115_v20 = vld [vmem:[#allocation2 + $0xc] sm:$0xe] }
 0x2d4   : > { %v4195_v59 = vpop.f32.mrf.mxu2  ;;  %v4508_v50 = vpop.f32.mrf.mxu3  ;;  %v7883_v9 = vld [vmem:[#allocation2 + $0x18] sm:$0xf0] }
 0x2d5   : > { %v4196_v11 = vadd.f32 %v4195_v59, %v4027_v41  ;;  %v10494_v41 = vld [vmem:[#allocation45_spill] sm:$0xff] }
 0x2d6   : > { %4716 = vmatmul.bf16.gmra.mxu0 %v2179_v40  ;;  %v2310_v59 = vrot.slane %v10494_v41, 1  ;;  %v7885_v40 = vor.u32 %v7884_v51, %v7883_v9 }
 0x2d7   : > { %v4509_v36 = vadd.f32 %v4508_v50, %v4196_v11  ;;  %v5314_v11 = vor.u32 %v5313_v4, %v5309_v7  ;;  %v4957_v50 = vld [vmem:[#allocation2 + $0x2c] sm:$0x1]  ;;  %v10496_v7 = vld [vmem:[#allocation41_spill] sm:$0xff] }
 0x2d8   : > { %v4028_v60 = vpop.f32.mrf.mxu1  ;;  %v5820_v41 = vrot.slane %v7885_v40, 1 }
 0x2d9   : > { %v9724_v33 = vadd.f32 %v4677_v56, %v4509_v36  ;;  %v4029_v24 = vadd.f32 %v4028_v60, %v10493_v12  ;;  %v2311_v56 = vsel %vm2308_vm9, %v2309_v52, %v2310_v59  ;;  %v5319_v36 = vsel %vm1795_vm10, %v5314_v11, %v5318_v28  ;;  %v8118_v11 = vld [vmem:[#allocation2 + $0x24] sm:$0xe]  ;;  %v10497_v28 = vld [vmem:[#allocation43_spill] sm:$0xff] }
 0x2da   : > { %v5245_v60 = vunpack.c.l.b16 %v4957_v50 }
 0x2db   : > { %10492 = vst [vmem:[#allocation36_spill] sm:$0xff] %v9724_v33  ;;  %v4679_v35 = vpop.f32.mrf.mxu0  ;;  %v5821_v33 = vrot.slane %v5276_v8, 1 }
 0x2dc   : > { %v4197_v49 = vpop.f32.mrf.mxu2  ;;  %v4510_v34 = vpop.f32.mrf.mxu3  ;;  %v5277_v9 = vpack.c.b16 %v5245_v60, %v5245_v60  ;;  %v10500_v60 = vld [vmem:[#allocation49_spill] sm:$0xff] }
 0x2dd   : > { %v4198_v61 = vadd.f32 %v4197_v49, %v4029_v24  ;;  %v5323_v24 = vshll.u32 %v4894_v18, 16  ;;  %v5822_v52 = vsel %vm2308_vm9, %v5820_v41, %v5821_v33 }
 0x2de   : > { %v5328_v8 = vshll.u32 %v5277_v9, 16 }
 0x2df   : > { %v4511_v6 = vadd.f32 %v4510_v34, %v4198_v61  ;;  %v5321_v61 = vshrl.u32 %v4894_v18, 16  ;;  %v5325_v50 = vrot.slane %v5323_v24, 1 }
 0x2e0   : > { %v4031_v44 = vpop.f32.mrf.mxu1  ;;  %v5330_v33 = vrot.slane %v5328_v8, 1 }
 0x2e1   : > { %6148 = vmatmul.bf16.vlgmr.msra.gmra.mxu2 %v7518_v54  ;;  %v9730_v12 = vadd.f32 %v4679_v35, %v4511_v6  ;;  %v4032_v4 = vadd.f32 %v4031_v44, %v10496_v7  ;;  %6317 = vmatmul.bf16.vlgmr.msra.gmra.mxu3 %v5319_v36  ;;  %v8116_v6 = vor.u32 %v8115_v20, %v10497_v28  ;;  %v10499_v35 = vld [vmem:[#allocation44_spill] sm:$0xff]  ;;  %v2313_v7 = vrot.slane %v10500_v60, 1 }
 0x2e2   : > { %v8119_v20 = vor.u32 %v8118_v11, %v9722_v17  ;;  %v7760_v17 = vld [vmem:[#allocation2 + $0x18] sm:$0xe] }
 0x2e3   : > { %10495 = vst [vmem:[#allocation37_spill] sm:$0xff] %v9730_v12  ;;  %4730 = vmatmul.bf16.vlgmr.msra.gmra.mxu1 %v2311_v56  ;;  %v4682_v51 = vpop.f32.mrf.mxu0  ;;  %v2312_v36 = vrot.slane %v8116_v6, 1 }
 0x2e4   : > { %v4200_v57 = vpop.f32.mrf.mxu2  ;;  %v4513_v59 = vpop.f32.mrf.mxu3 }
 0x2e5   : > { %v4201_v34 = vadd.f32 %v4200_v57, %v4032_v4  ;;  %v5326_v4 = vor.u32 %v5325_v50, %v5321_v61  ;;  %v4958_v57 = vld [vmem:[#allocation2 + $0x38] sm:$0x1]  ;;  %v5824_v61 = vrot.slane %v5277_v9, 1  ;;  %v10502_v50 = vld [vmem:[#allocation48_spill] sm:$0xff] }
 0x2e6   : > { %6486 = vmatmul.bf16.vlgmr.msra.gmra.mxu0 %v5822_v52  ;;  %v2314_v52 = vsel %vm2308_vm9, %v2312_v36, %v2313_v7 }
 0x2e7   : > { %v4514_v49 = vadd.f32 %v4513_v59, %v4201_v34 }
 0x2e8   : > { %v4033_v54 = vpop.f32.mrf.mxu1 }
 0x2e9   : > { %v9735_v44 = vadd.f32 %v4682_v51, %v4514_v49  ;;  %v4034_v40 = vadd.f32 %v4033_v54, %v10499_v35  ;;  %v5331_v51 = vsel %vm1795_vm10, %v5326_v4, %v5330_v33  ;;  %v5246_v49 = vunpack.c.l.b16 %v4958_v57  ;;  %v7868_v54 = vld [vmem:[#allocation2 + $0x30] sm:$0xff]  }
 0x2ea   : > { %v5823_v35 = vrot.slane %v8119_v20, 1  ;;  %v5335_v11 = vshll.u32 %v7868_v54, 16  ;;  %v4898_v20 = vld [vmem:[#allocation2 + $0x3c] sm:$0xff]  }
 0x2eb   : > { %10498 = vst [vmem:[#allocation78_spill] sm:$0xff] %v9735_v44  ;;  %v4684_v34 = vpop.f32.mrf.mxu0  ;;  %v5278_v60 = vpack.c.b16 %v5246_v49, %v5246_v49 }
 0x2ec   : > { %v4202_v56 = vpop.f32.mrf.mxu2  ;;  %v4515_v59 = vpop.f32.mrf.mxu3  ;;  %v5825_v7 = vsel %vm2308_vm9, %v5823_v35, %v5824_v61  ;;  %v7887_v35 = vld [vmem:[#allocation2 + $0x30] sm:$0xe] }
 0x2ed   : > { %v4203_v41 = vadd.f32 %v4202_v56, %v4034_v40  ;;  %v7759_v56 = vld [vmem:[#allocation2 + $0x18] sm:$0xf0]  ;;  %v5340_v9 = vshll.u32 %v5278_v60, 16 }
 0x2ee   : > { %v7761_v33 = vor.u32 %v7760_v17, %v7759_v56 }
 0x2ef   : > { %v4516_v28 = vadd.f32 %v4515_v59, %v4203_v41  ;;  %v5337_v59 = vrot.slane %v5335_v11, 1  ;;  %v5342_v56 = vrot.slane %v5340_v9, 1 }
 0x2f0   : > { %v4036_v24 = vpop.f32.mrf.mxu1  ;;  %v2315_v49 = vrot.slane %v7761_v33, 1  ;;  %v8121_v33 = vld [vmem:[#allocation2 + $0x24] sm:$0xe] }
 0x2f1   : > { %6153 = vmatmul.bf16.gmra.mxu2 %v4894_v18  ;;  %v9742_v6 = vadd.f32 %v4684_v34, %v4516_v28  ;;  %v4037_v8 = vadd.f32 %v4036_v24, %v10502_v50  ;;  %6322 = vmatmul.bf16.gmra.mxu3 %v5331_v51  ;;  %v5333_v34 = vshrl.u32 %v7868_v54, 16  ;;  %v9746_v28 = vld [vmem:[#allocation2 + $0x3c] sm:$0xf0]  ;;  %v10505_v50 = vld [vmem:[#allocation55_spill] sm:$0xff] }
 0x2f3   : > { %10501 = vst [vmem:[#allocation83_spill] sm:$0xff] %v9742_v6  ;;  %4735 = vmatmul.bf16.gmra.mxu1 %v2314_v52  ;;  %v4687_v36 = vpop.f32.mrf.mxu0  ;;  %v10504_v52 = vld [vmem:[#allocation52_spill] sm:$0xff] }
 0x2f4   : > { %v4205_v40 = vpop.f32.mrf.mxu2  ;;  %v4518_v4 = vpop.f32.mrf.mxu3 }
 0x2f5   : > { %v4206_v41 = vadd.f32 %v4205_v40, %v4037_v8  ;;  %v2316_v8 = vrot.slane %v10505_v50, 1  ;;  %v7886_v40 = vld [vmem:[#allocation2 + $0x30] sm:$0xf0] }
 0x2f6   : > { %6491 = vmatmul.bf16.gmra.mxu0 %v5825_v7  ;;  %v7888_v7 = vor.u32 %v7887_v35, %v7886_v40 }
 0x2f7   : > { %v4519_v18 = vadd.f32 %v4518_v4, %v4206_v41  ;;  %v5338_v41 = vor.u32 %v5337_v59, %v5333_v34  ;;  %v4959_v4 = vld [vmem:[#allocation2 + $0x44] sm:$0x1]  ;;  %v10507_v34 = vld [vmem:[#allocation56_spill] sm:$0xff] }
 0x2f8   : > { %v4038_v57 = vpop.f32.mrf.mxu1  ;;  %v5826_v50 = vrot.slane %v7888_v7, 1 }
 0x2f9   : > { %v9748_v24 = vadd.f32 %v4687_v36, %v4519_v18  ;;  %v4039_v51 = vadd.f32 %v4038_v57, %v10504_v52  ;;  %v2317_v36 = vsel %vm2308_vm9, %v2315_v49, %v2316_v8  ;;  %v5343_v18 = vsel %vm1795_vm10, %v5338_v41, %v5342_v56  ;;  %v8124_v41 = vld [vmem:[#allocation2 + $0x3c] sm:$0xe]  ;;  %v10508_v56 = vld [vmem:[#allocation59_spill] sm:$0xff] }
 0x2fa   : > { %v5247_v57 = vunpack.c.l.b16 %v4959_v4 }
 0x2fb   : > { %10503 = vst [vmem:[#allocation87_spill] sm:$0xff] %v9748_v24  ;;  %v4689_v11 = vpop.f32.mrf.mxu0  ;;  %v5827_v24 = vrot.slane %v5278_v60, 1 }
 0x2fc   : > { %v4207_v61 = vpop.f32.mrf.mxu2  ;;  %v4520_v6 = vpop.f32.mrf.mxu3  ;;  %v5279_v40 = vpack.c.b16 %v5247_v57, %v5247_v57  ;;  %v10511_v57 = vld [vmem:[#allocation62_spill] sm:$0xff] }
 0x2fd   : > { %v4208_v17 = vadd.f32 %v4207_v61, %v4039_v51  ;;  %v5347_v51 = vshll.u32 %v4898_v20, 16  ;;  %v5828_v49 = vsel %vm2308_vm9, %v5826_v50, %v5827_v24 }
 0x2fe   : > { %v5352_v60 = vshll.u32 %v5279_v40, 16 }
 0x2ff   : > { %v4521_v44 = vadd.f32 %v4520_v6, %v4208_v17  ;;  %v5345_v17 = vshrl.u32 %v4898_v20, 16  ;;  %v5349_v4 = vrot.slane %v5347_v51, 1 }
 0x300   : > { %v4041_v12 = vpop.f32.mrf.mxu1  ;;  %v5354_v24 = vrot.slane %v5352_v60, 1 }
 0x301   : > { %6158 = vmatmul.bf16.gmra.mxu2 %v7868_v54  ;;  %v9754_v52 = vadd.f32 %v4689_v11, %v4521_v44  ;;  %v4042_v59 = vadd.f32 %v4041_v12, %v10507_v34  ;;  %6327 = vmatmul.bf16.gmra.mxu3 %v5343_v18  ;;  %v8122_v44 = vor.u32 %v8121_v33, %v10508_v56  ;;  %v10510_v11 = vld [vmem:[#allocation60_spill] sm:$0xff]  ;;  %v2319_v34 = vrot.slane %v10511_v57, 1 }
 0x302   : > { %v8125_v33 = vor.u32 %v8124_v41, %v9746_v28  ;;  %v7763_v28 = vld [vmem:[#allocation2 + $0x30] sm:$0xe] }
 0x303   : > { %10506 = vst [vmem:[#allocation89_spill] sm:$0xff] %v9754_v52  ;;  %4740 = vmatmul.bf16.gmra.mxu1 %v2317_v36  ;;  %v4692_v35 = vpop.f32.mrf.mxu0  ;;  %v2318_v18 = vrot.slane %v8122_v44, 1 }
 0x304   : > { %v4210_v9 = vpop.f32.mrf.mxu2  ;;  %v4523_v8 = vpop.f32.mrf.mxu3 }
 0x305   : > { %v4211_v6 = vadd.f32 %v4210_v9, %v4042_v59  ;;  %v5350_v59 = vor.u32 %v5349_v4, %v5345_v17  ;;  %v4960_v9 = vld [vmem:[#allocation2 + $0x50] sm:$0x1]  ;;  %v5830_v17 = vrot.slane %v5279_v40, 1  ;;  %v10513_v4 = vld [vmem:[#allocation63_spill] sm:$0xff] }
 0x306   : > { %6496 = vmatmul.bf16.gmra.mxu0 %v5828_v49  ;;  %v2320_v49 = vsel %vm2308_vm9, %v2318_v18, %v2319_v34 }
 0x307   : > { %v4524_v61 = vadd.f32 %v4523_v8, %v4211_v6 }
 0x308   : > { %v4043_v54 = vpop.f32.mrf.mxu1 }
 0x309   : > { %v9759_v12 = vadd.f32 %v4692_v35, %v4524_v61  ;;  %v4044_v7 = vadd.f32 %v4043_v54, %v10510_v11  ;;  %v5355_v35 = vsel %vm1795_vm10, %v5350_v59, %v5354_v24  ;;  %v5248_v61 = vunpack.c.l.b16 %v4960_v9  ;;  %v7869_v54 = vld [vmem:[#allocation2 + $0x48] sm:$0xff]  }
 0x30a   : > { %v5829_v11 = vrot.slane %v8125_v33, 1  ;;  %v5359_v41 = vshll.u32 %v7869_v54, 16  ;;  %v4902_v33 = vld [vmem:[#allocation2 + $0x54] sm:$0xff]  }
 0x30b   : > { %10509 = vst [vmem:[#allocation93_spill] sm:$0xff] %v9759_v12  ;;  %v4694_v6 = vpop.f32.mrf.mxu0  ;;  %v5280_v57 = vpack.c.b16 %v5248_v61, %v5248_v61 }
 0x30c   : > { %v4212_v36 = vpop.f32.mrf.mxu2  ;;  %v4525_v8 = vpop.f32.mrf.mxu3  ;;  %v5831_v34 = vsel %vm2308_vm9, %v5829_v11, %v5830_v17  ;;  %v7890_v11 = vld [vmem:[#allocation2 + $0x48] sm:$0xe] }
 0x30d   : > { %v4213_v50 = vadd.f32 %v4212_v36, %v4044_v7  ;;  %v7762_v36 = vld [vmem:[#allocation2 + $0x30] sm:$0xf0]  ;;  %v5364_v40 = vshll.u32 %v5280_v57, 16 }
 0x30e   : > { %v7764_v24 = vor.u32 %v7763_v28, %v7762_v36 }
 0x30f   : > { %v4526_v56 = vadd.f32 %v4525_v8, %v4213_v50  ;;  %v5361_v8 = vrot.slane %v5359_v41, 1  ;;  %v5366_v36 = vrot.slane %v5364_v40, 1 }
 0x310   : > { %v4046_v51 = vpop.f32.mrf.mxu1  ;;  %v2321_v61 = vrot.slane %v7764_v24, 1  ;;  %v8127_v24 = vld [vmem:[#allocation2 + $0x3c] sm:$0xe] }
 0x311   : > { %6163 = vmatmul.bf16.gmra.mxu2 %v4898_v20  ;;  %v9766_v44 = vadd.f32 %v4694_v6, %v4526_v56  ;;  %v4047_v60 = vadd.f32 %v4046_v51, %v10513_v4  ;;  %6332 = vmatmul.bf16.gmra.mxu3 %v5355_v35  ;;  %v5357_v6 = vshrl.u32 %v7869_v54, 16  ;;  %v9770_v56 = vld [vmem:[#allocation2 + $0x54] sm:$0xf0]  ;;  %v10516_v4 = vld [vmem:[#allocation66_spill] sm:$0xff] }
 0x313   : > { %10512 = vst [vmem:[#allocation45_spill] sm:$0xff] %v9766_v44  ;;  %4745 = vmatmul.bf16.gmra.mxu1 %v2320_v49  ;;  %v4697_v18 = vpop.f32.mrf.mxu0  ;;  %v10515_v49 = vld [vmem:[#allocation65_spill] sm:$0xff] }
 0x314   : > { %v4215_v7 = vpop.f32.mrf.mxu2  ;;  %v4528_v59 = vpop.f32.mrf.mxu3 }
 0x315   : > { %v4216_v50 = vadd.f32 %v4215_v7, %v4047_v60  ;;  %v2322_v60 = vrot.slane %v10516_v4, 1  ;;  %v7889_v7 = vld [vmem:[#allocation2 + $0x48] sm:$0xf0] }
 0x316   : > { %6501 = vmatmul.bf16.gmra.mxu0 %v5831_v34  ;;  %v7891_v34 = vor.u32 %v7890_v11, %v7889_v7 }
 0x317   : > { %v4529_v20 = vadd.f32 %v4528_v59, %v4216_v50  ;;  %v5362_v50 = vor.u32 %v5361_v8, %v5357_v6  ;;  %v4961_v59 = vld [vmem:[#allocation2 + $0x5c] sm:$0x1] }
 0x318   : > { %v4048_v9 = vpop.f32.mrf.mxu1  ;;  %v5832_v4 = vrot.slane %v7891_v34, 1  ;;  %v10518_v6 = vld [vmem:[#allocation69_spill] sm:$0xff] }
 0x319   : > { %v9772_v51 = vadd.f32 %v4697_v18, %v4529_v20  ;;  %v4049_v35 = vadd.f32 %v4048_v9, %v10515_v49  ;;  %v2323_v18 = vsel %vm2308_vm9, %v2321_v61, %v2322_v60  ;;  %v5367_v20 = vsel %vm1795_vm10, %v5362_v50, %v5366_v36  ;;  %v8130_v50 = vld [vmem:[#allocation2 + $0x54] sm:$0xe] }
 0x31a   : > { %v5249_v9 = vunpack.c.l.b16 %v4961_v59  ;;  %v10519_v36 = vld [vmem:[#allocation68_spill] sm:$0xff] }
 0x31b   : > { %10514 = vst [vmem:[#allocation41_spill] sm:$0xff] %v9772_v51  ;;  %v4699_v41 = vpop.f32.mrf.mxu0  ;;  %v5833_v51 = vrot.slane %v5280_v57, 1 }
 0x31c   : > { %v4217_v17 = vpop.f32.mrf.mxu2  ;;  %v4530_v44 = vpop.f32.mrf.mxu3  ;;  %v5281_v7 = vpack.c.b16 %v5249_v9, %v5249_v9  ;;  %v10522_v9 = vld [vmem:[#allocation73_spill] sm:$0xff] }
 0x31d   : > { %v4218_v28 = vadd.f32 %v4217_v17, %v4049_v35  ;;  %v5371_v35 = vshll.u32 %v4902_v33, 16  ;;  %v5834_v61 = vsel %vm2308_vm9, %v5832_v4, %v5833_v51 }
 0x31e   : > { %v5376_v57 = vshll.u32 %v5281_v7, 16 }
 0x31f   : > { %v4531_v12 = vadd.f32 %v4530_v44, %v4218_v28  ;;  %v5369_v28 = vshrl.u32 %v4902_v33, 16  ;;  %v5373_v59 = vrot.slane %v5371_v35, 1 }
 0x320   : > { %v4051_v52 = vpop.f32.mrf.mxu1  ;;  %v5378_v51 = vrot.slane %v5376_v57, 1 }
 0x321   : > { %6168 = vmatmul.bf16.gmra.mxu2 %v7869_v54  ;;  %v9778_v49 = vadd.f32 %v4699_v41, %v4531_v12  ;;  %v4052_v8 = vadd.f32 %v4051_v52, %v10518_v6  ;;  %6337 = vmatmul.bf16.gmra.mxu3 %v5367_v20  ;;  %v8128_v12 = vor.u32 %v8127_v24, %v10519_v36  ;;  %v10521_v41 = vld [vmem:[#allocation72_spill] sm:$0xff]  ;;  %v2325_v6 = vrot.slane %v10522_v9, 1 }
 0x322   : > { %v8131_v24 = vor.u32 %v8130_v50, %v9770_v56  ;;  %v7766_v56 = vld [vmem:[#allocation2 + $0x48] sm:$0xe] }
 0x323   : > { %10517 = vst [vmem:[#allocation43_spill] sm:$0xff] %v9778_v49  ;;  %4750 = vmatmul.bf16.gmra.mxu1 %v2323_v18  ;;  %v4702_v11 = vpop.f32.mrf.mxu0  ;;  %v2324_v20 = vrot.slane %v8128_v12, 1 }
 0x324   : > { %v4220_v40 = vpop.f32.mrf.mxu2  ;;  %v4533_v60 = vpop.f32.mrf.mxu3 }
 0x325   : > { %v4221_v44 = vadd.f32 %v4220_v40, %v4052_v8  ;;  %v5374_v8 = vor.u32 %v5373_v59, %v5369_v28  ;;  %v4962_v40 = vld [vmem:[#allocation2 + $0x68] sm:$0x1]  ;;  %v5836_v28 = vrot.slane %v5281_v7, 1  ;;  %v10524_v59 = vld [vmem:[#allocation76_spill] sm:$0xff] }
 0x326   : > { %6506 = vmatmul.bf16.gmra.mxu0 %v5834_v61  ;;  %v2326_v61 = vsel %vm2308_vm9, %v2324_v20, %v2325_v6 }
 0x327   : > { %v4534_v17 = vadd.f32 %v4533_v60, %v4221_v44 }
 0x328   : > { %v4053_v54 = vpop.f32.mrf.mxu1 }
 0x329   : > { %v9783_v52 = vadd.f32 %v4702_v11, %v4534_v17  ;;  %v4054_v34 = vadd.f32 %v4053_v54, %v10521_v41  ;;  %v5379_v11 = vsel %vm1795_vm10, %v5374_v8, %v5378_v51  ;;  %v5250_v17 = vunpack.c.l.b16 %v4962_v40  ;;  %v7870_v54 = vld [vmem:[#allocation2 + $0x60] sm:$0xff]  }
 0x32a   : > { %v5835_v41 = vrot.slane %v8131_v24, 1  ;;  %v5383_v50 = vshll.u32 %v7870_v54, 16  ;;  %v4906_v24 = vld [vmem:[#allocation2 + $0x6c] sm:$0xff]  }
 0x32b   : > { %10520 = vst [vmem:[#allocation44_spill] sm:$0xff] %v9783_v52  ;;  %v4704_v44 = vpop.f32.mrf.mxu0  ;;  %v5282_v9 = vpack.c.b16 %v5250_v17, %v5250_v17 }
 0x32c   : > { %v4222_v18 = vpop.f32.mrf.mxu2  ;;  %v4535_v60 = vpop.f32.mrf.mxu3  ;;  %v5837_v6 = vsel %vm2308_vm9, %v5835_v41, %v5836_v28  ;;  %v7893_v41 = vld [vmem:[#allocation2 + $0x60] sm:$0xe] }
 0x32d   : > { %v4223_v4 = vadd.f32 %v4222_v18, %v4054_v34  ;;  %v7765_v18 = vld [vmem:[#allocation2 + $0x48] sm:$0xf0]  ;;  %v5388_v7 = vshll.u32 %v5282_v9, 16 }
 0x32e   : > { %v7767_v51 = vor.u32 %v7766_v56, %v7765_v18 }
 0x32f   : > { %v4536_v36 = vadd.f32 %v4535_v60, %v4223_v4  ;;  %v5385_v60 = vrot.slane %v5383_v50, 1  ;;  %v5390_v18 = vrot.slane %v5388_v7, 1 }
 0x330   : > { %v4056_v35 = vpop.f32.mrf.mxu1  ;;  %v2327_v17 = vrot.slane %v7767_v51, 1  ;;  %v8133_v51 = vld [vmem:[#allocation2 + $0x54] sm:$0xe] }
 0x331   : > { %6173 = vmatmul.bf16.gmra.mxu2 %v4902_v33  ;;  %v9790_v12 = vadd.f32 %v4704_v44, %v4536_v36  ;;  %v4057_v57 = vadd.f32 %v4056_v35, %v10524_v59  ;;  %6342 = vmatmul.bf16.gmra.mxu3 %v5379_v11  ;;  %v5381_v44 = vshrl.u32 %v7870_v54, 16  ;;  %v9794_v36 = vld [vmem:[#allocation2 + $0x6c] sm:$0xf0]  ;;  %v10527_v59 = vld [vmem:[#allocation79_spill] sm:$0xff] }
 0x333   : > { %10523 = vst [vmem:[#allocation49_spill] sm:$0xff] %v9790_v12  ;;  %4755 = vmatmul.bf16.gmra.mxu1 %v2326_v61  ;;  %v4707_v20 = vpop.f32.mrf.mxu0  ;;  %v10526_v61 = vld [vmem:[#allocation80_spill] sm:$0xff] }
 0x334   : > { %v4225_v34 = vpop.f32.mrf.mxu2  ;;  %v4538_v8 = vpop.f32.mrf.mxu3 }
 0x335   : > { %v4226_v4 = vadd.f32 %v4225_v34, %v4057_v57  ;;  %v2328_v57 = vrot.slane %v10527_v59, 1  ;;  %v7892_v34 = vld [vmem:[#allocation2 + $0x60] sm:$0xf0] }
 0x336   : > { %6511 = vmatmul.bf16.gmra.mxu0 %v5837_v6  ;;  %v7894_v6 = vor.u32 %v7893_v41, %v7892_v34 }
 0x337   : > { %v4539_v33 = vadd.f32 %v4538_v8, %v4226_v4  ;;  %v5386_v4 = vor.u32 %v5385_v60, %v5381_v44  ;;  %v4963_v8 = vld [vmem:[#allocation2 + $0x74] sm:$0x1] }
 0x338   : > { %v4058_v40 = vpop.f32.mrf.mxu1  ;;  %v5838_v59 = vrot.slane %v7894_v6, 1  ;;  %v10529_v44 = vld [vmem:[#allocation84_spill] sm:$0xff] }
 0x339   : > { %v9796_v35 = vadd.f32 %v4707_v20, %v4539_v33  ;;  %v4059_v11 = vadd.f32 %v4058_v40, %v10526_v61  ;;  %v2329_v20 = vsel %vm2308_vm9, %v2327_v17, %v2328_v57  ;;  %v5391_v33 = vsel %vm1795_vm10, %v5386_v4, %v5390_v18  ;;  %v8136_v4 = vld [vmem:[#allocation2 + $0x6c] sm:$0xe]  ;;  %v10530_v18 = vld [vmem:[#allocation81_spill] sm:$0xff] }
 0x33a   : > { %v5251_v40 = vunpack.c.l.b16 %v4963_v8 }
 0x33b   : > { %10525 = vst [vmem:[#allocation48_spill] sm:$0xff] %v9796_v35  ;;  %v4709_v50 = vpop.f32.mrf.mxu0  ;;  %v5839_v35 = vrot.slane %v5282_v9, 1 }
 0x33c   : > { %v4227_v28 = vpop.f32.mrf.mxu2  ;;  %v4540_v12 = vpop.f32.mrf.mxu3  ;;  %v5283_v34 = vpack.c.b16 %v5251_v40, %v5251_v40  ;;  %v10533_v40 = vld [vmem:[#allocation86_spill] sm:$0xff] }
 0x33d   : > { %v4228_v56 = vadd.f32 %v4227_v28, %v4059_v11  ;;  %v5395_v11 = vshll.u32 %v4906_v24, 16  ;;  %v5840_v17 = vsel %vm2308_vm9, %v5838_v59, %v5839_v35 }
 0x33e   : > { %v5400_v9 = vshll.u32 %v5283_v34, 16 }
 0x33f   : > { %v4541_v52 = vadd.f32 %v4540_v12, %v4228_v56  ;;  %v5393_v56 = vshrl.u32 %v4906_v24, 16  ;;  %v5397_v8 = vrot.slane %v5395_v11, 1 }
 0x340   : > { %v4061_v49 = vpop.f32.mrf.mxu1  ;;  %v5402_v35 = vrot.slane %v5400_v9, 1 }
 0x341   : > { %6178 = vmatmul.bf16.gmra.mxu2 %v7870_v54  ;;  %v9802_v61 = vadd.f32 %v4709_v50, %v4541_v52  ;;  %v4062_v60 = vadd.f32 %v4061_v49, %v10529_v44  ;;  %6347 = vmatmul.bf16.gmra.mxu3 %v5391_v33  ;;  %v8134_v52 = vor.u32 %v8133_v51, %v10530_v18  ;;  %v10532_v50 = vld [vmem:[#allocation88_spill] sm:$0xff]  ;;  %v2331_v44 = vrot.slane %v10533_v40, 1 }
 0x342   : > { %v8137_v51 = vor.u32 %v8136_v4, %v9794_v36  ;;  %v7769_v36 = vld [vmem:[#allocation2 + $0x60] sm:$0xe] }
 0x343   : > { %10528 = vst [vmem:[#allocation52_spill] sm:$0xff] %v9802_v61  ;;  %4760 = vmatmul.bf16.gmra.mxu1 %v2329_v20  ;;  %v4712_v41 = vpop.f32.mrf.mxu0  ;;  %v2330_v33 = vrot.slane %v8134_v52, 1 }
 0x344   : > { %v4230_v7 = vpop.f32.mrf.mxu2  ;;  %v4543_v57 = vpop.f32.mrf.mxu3 }
 0x345   : > { %v4231_v12 = vadd.f32 %v4230_v7, %v4062_v60  ;;  %v5398_v60 = vor.u32 %v5397_v8, %v5393_v56  ;;  %v4964_v7 = vld [vmem:[#allocation2 + $0x80] sm:$0x1]  ;;  %v5842_v56 = vrot.slane %v5283_v34, 1  ;;  %v10535_v8 = vld [vmem:[#allocation91_spill] sm:$0xff] }
 0x346   : > { %6516 = vmatmul.bf16.gmra.mxu0 %v5840_v17  ;;  %v2332_v17 = vsel %vm2308_vm9, %v2330_v33, %v2331_v44 }
 0x347   : > { %v4544_v28 = vadd.f32 %v4543_v57, %v4231_v12 }
 0x348   : > { %v4063_v54 = vpop.f32.mrf.mxu1 }
 0x349   : > { %v9807_v49 = vadd.f32 %v4712_v41, %v4544_v28  ;;  %v4064_v6 = vadd.f32 %v4063_v54, %v10532_v50  ;;  %v5403_v41 = vsel %vm1795_vm10, %v5398_v60, %v5402_v35  ;;  %v5252_v28 = vunpack.c.l.b16 %v4964_v7  ;;  %v7871_v54 = vld [vmem:[#allocation2 + $0x78] sm:$0xff]  }
 0x34a   : > { %v5841_v50 = vrot.slane %v8137_v51, 1  ;;  %v5407_v4 = vshll.u32 %v7871_v54, 16  ;;  %v4910_v51 = vld [vmem:[#allocation2 + $0x84] sm:$0xff]  }
 0x34b   : > { %10531 = vst [vmem:[#allocation55_spill] sm:$0xff] %v9807_v49  ;;  %v4714_v12 = vpop.f32.mrf.mxu0  ;;  %v5284_v40 = vpack.c.b16 %v5252_v28, %v5252_v28 }
 0x34c   : > { %v4232_v20 = vpop.f32.mrf.mxu2  ;;  %v4545_v57 = vpop.f32.mrf.mxu3  ;;  %v5843_v44 = vsel %vm2308_vm9, %v5841_v50, %v5842_v56  ;;  %v7896_v50 = vld [vmem:[#allocation2 + $0x78] sm:$0xe] }
 0x34d   : > { %v4233_v59 = vadd.f32 %v4232_v20, %v4064_v6  ;;  %v7768_v20 = vld [vmem:[#allocation2 + $0x60] sm:$0xf0]  ;;  %v5412_v34 = vshll.u32 %v5284_v40, 16 }
 0x34e   : > { %v7770_v35 = vor.u32 %v7769_v36, %v7768_v20 }
 0x34f   : > { %v4546_v18 = vadd.f32 %v4545_v57, %v4233_v59  ;;  %v5409_v57 = vrot.slane %v5407_v4, 1  ;;  %v5414_v20 = vrot.slane %v5412_v34, 1 }
 0x350   : > { %v4066_v11 = vpop.f32.mrf.mxu1  ;;  %v2333_v28 = vrot.slane %v7770_v35, 1  ;;  %v8139_v35 = vld [vmem:[#allocation2 + $0x6c] sm:$0xe] }
 0x351   : > { %6183 = vmatmul.bf16.gmra.mxu2 %v4906_v24  ;;  %v9814_v52 = vadd.f32 %v4714_v12, %v4546_v18  ;;  %v4067_v9 = vadd.f32 %v4066_v11, %v10535_v8  ;;  %6352 = vmatmul.bf16.gmra.mxu3 %v5403_v41  ;;  %v5405_v12 = vshrl.u32 %v7871_v54, 16  ;;  %v9818_v18 = vld [vmem:[#allocation2 + $0x84] sm:$0xf0]  ;;  %v10538_v8 = vld [vmem:[#allocation92_spill] sm:$0xff] }
 0x353   : > { %10534 = vst [vmem:[#allocation56_spill] sm:$0xff] %v9814_v52  ;;  %4765 = vmatmul.bf16.gmra.mxu1 %v2332_v17  ;;  %v4717_v33 = vpop.f32.mrf.mxu0  ;;  %v10537_v17 = vld [vmem:[#allocation94_spill] sm:$0xff] }
 0x354   : > { %v4235_v6 = vpop.f32.mrf.mxu2  ;;  %v4548_v60 = vpop.f32.mrf.mxu3 }
 0x355   : > { %v4236_v59 = vadd.f32 %v4235_v6, %v4067_v9  ;;  %v2334_v9 = vrot.slane %v10538_v8, 1  ;;  %v7895_v6 = vld [vmem:[#allocation2 + $0x78] sm:$0xf0] }
 0x356   : > { %6521 = vmatmul.bf16.gmra.mxu0 %v5843_v44  ;;  %v7897_v44 = vor.u32 %v7896_v50, %v7895_v6  ;;  %v8142_v50 = vld [vmem:[#allocation2 + $0x84] sm:$0xe] }
 0x357   : > { %v4549_v24 = vadd.f32 %v4548_v60, %v4236_v59  ;;  %v5410_v59 = vor.u32 %v5409_v57, %v5405_v12  ;;  %v4965_v60 = vld [vmem:[#allocation2 + $0x8c] sm:$0x1]  ;;  %v5419_v57 = vshll.u32 %v4910_v51, 16 }
 0x358   : > { %v4068_v7 = vpop.f32.mrf.mxu1  ;;  %v5844_v8 = vrot.slane %v7897_v44, 1 }
 0x359   : > { %v9820_v11 = vadd.f32 %v4717_v33, %v4549_v24  ;;  %v4069_v41 = vadd.f32 %v4068_v7, %v10537_v17  ;;  %v2335_v33 = vsel %vm2308_vm9, %v2333_v28, %v2334_v9  ;;  %v5415_v24 = vsel %vm1795_vm10, %v5410_v59, %v5414_v20  ;;  %v10540_v9 = vld [vmem:[#allocation95_spill] sm:$0xff] }
 0x35a   : > { %v5253_v7 = vunpack.c.l.b16 %v4965_v60  ;;  %v5417_v59 = vshrl.u32 %v4910_v51, 16  ;;  %v2337_v60 = vrot.slane %v9238_v13, 1  ;;  %v9838_v13 = vld [vmem:[%s10244_s2] ss:$0 sm:$0xff] }
 0x35b   : > { %10536 = vst [vmem:[#allocation59_spill] sm:$0xff] %v9820_v11  ;;  %v4719_v4 = vpop.f32.mrf.mxu0  ;;  %v5845_v11 = vrot.slane %v5284_v40, 1 }
 0x35c   : > { %v4237_v56 = vpop.f32.mrf.mxu2  ;;  %v4550_v52 = vpop.f32.mrf.mxu3  ;;  %v5285_v34 = vpack.c.b16 %v5253_v7, %v5253_v7 }
 0x35d   : > { %v4238_v36 = vadd.f32 %v4237_v56, %v4069_v41  ;;  %v8140_v56 = vor.u32 %v8139_v35, %v10540_v9 }
 0x35e   : > { %v5424_v20 = vshll.u32 %v5285_v34, 16 }
 0x35f   : > { %v4551_v49 = vadd.f32 %v4550_v52, %v4238_v36  ;;  %v5846_v52 = vsel %vm2308_vm9, %v5844_v8, %v5845_v11  ;;  %v2336_v40 = vrot.slane %v8140_v56, 1  ;;  %v8143_v8 = vor.u32 %v8142_v50, %v9818_v18  ;;  %v7872_v18 = vld [vmem:[#allocation2 + $0x90] sm:$0xff]  }
 0x360   : > { %v4731_v61 = vpop.f32.mrf.mxu1  ;;  %v5426_v44 = vrot.slane %v5424_v20, 1  ;;  %v7772_v20 = vld [vmem:[#allocation2 + $0x78] sm:$0xe] }
 0x361   : > { %6188 = vmatmul.bf16.gmra.mxu2 %v7871_v54  ;;  %v9826_v17 = vadd.f32 %v4719_v4, %v4551_v49  ;;  %6357 = vmatmul.bf16.gmra.mxu3 %v5415_v24  ;;  %v5421_v54 = vrot.slane %v5419_v57, 1  ;;  %v4966_v24 = vld [vmem:[#allocation2 + $0x98] sm:$0x1]  ;;  %v2338_v57 = vsel %vm2308_vm9, %v2336_v40, %v2337_v60  ;;  %v5847_v50 = vrot.slane %v8143_v8, 1  ;;  %v9851_v8 = vld [vmem:[#allocation2 + $0x9c] sm:$0xf0] }
 0x363   : > { %10539 = vst [vmem:[#allocation60_spill] sm:$0xff] %v9826_v17  ;;  %4770 = vmatmul.bf16.gmra.mxu1 %v2335_v33  ;;  %v6487_v41 = vpop.f32.mrf.mxu0  ;;  %v5422_v4 = vor.u32 %v5421_v54, %v5417_v59  ;;  %v4732_v17 = vadd.f32 %v4731_v61, %v9235_v5  ;;  %v5848_v5 = vrot.slane %v5285_v34, 1  ;;  %v7771_v54 = vld [vmem:[#allocation2 + $0x78] sm:$0xf0] }
 0x364   : > { %v6149_v12 = vpop.f32.mrf.mxu2  ;;  %v6318_v6 = vpop.f32.mrf.mxu3 }
 0x365   : > { %v6319_v49 = vadd.f32 %v6318_v6, %v6149_v12  ;;  %v5427_v12 = vsel %vm1795_vm10, %v5422_v4, %v5426_v44  ;;  %v7773_v4 = vor.u32 %v7772_v20, %v7771_v54  ;;  %v5429_v44 = vshrl.u32 %v7872_v18, 16 }
 0x366   : > { %6526 = vmatmul.bf16.gmra.mxu0 %v5846_v52  ;;  %v5254_v52 = vunpack.c.l.b16 %v4966_v24 }
 0x367   : > { %v6488_v33 = vadd.f32 %v6487_v41, %v6319_v49 }
 0x368   : > { %v4733_v28 = vpop.f32.mrf.mxu1  ;;  %v5286_v49 = vpack.c.b16 %v5254_v52, %v5254_v52  ;;  %v7899_v52 = vld [vmem:[#allocation2 + $0x90] sm:$0xe] }
 0x369   : > { %v6647_v6 = vadd.f32 %v6488_v33, %v4732_v17  ;;  %v4734_v41 = vadd.f32 %v4733_v28, %v9246_v62  ;;  %v5431_v17 = vshll.u32 %v7872_v18, 16  ;;  %v5849_v62 = vsel %vm2308_vm9, %v5847_v50, %v5848_v5  ;;  %v4967_v5 = vld [vmem:[#allocation2 + $0xa4] sm:$0x1] }
 0x36a   : > { %v5436_v24 = vshll.u32 %v5286_v49, 16 }
 0x36b   : > { %v6489_v7 = vpop.f32.mrf.mxu0  ;;  %v5433_v33 = vrot.slane %v5431_v17, 1 }
 0x36c   : > { %v6151_v36 = vpop.f32.mrf.mxu2  ;;  %v6320_v11 = vpop.f32.mrf.mxu3 }
 0x36d   : > { %v6321_v35 = vadd.f32 %v6320_v11, %v6151_v36  ;;  %v6715_v36 = vadd.f32 %v9838_v13, %v6647_v6  ;;  %v9849_v11 = vld [vmem:[#allocation2 + $0x9c] sm:$0xff]  }
 0x36f   : > { %v6490_v56 = vadd.f32 %v6489_v7, %v6321_v35  ;;  %v2339_v35 = vrot.slane %v7773_v4, 1 }
 0x370   : > { %v4736_v9 = vpop.f32.mrf.mxu1 }
 0x371   : > { %6193 = vmatmul.bf16.gmra.mxu2 %v4910_v51  ;;  %v6648_v61 = vadd.f32 %v6490_v56, %v4734_v41  ;;  %6362 = vmatmul.bf16.gmra.mxu3 %v5427_v12  ;;  %v7898_v12 = vld [vmem:[#allocation2 + $0x90] sm:$0xf0]  ;;  %v5434_v41 = vor.u32 %v5433_v33, %v5429_v44  ;;  %v5438_v56 = vrot.slane %v5436_v24, 1  ;;  %v4737_v17 = vadd.f32 %v4736_v9, %v9257_v3  ;;  %v8145_v44 = vld [vmem:[#allocation2 + $0x84] sm:$0xe] }
 0x372   : > { %v7900_v20 = vor.u32 %v7899_v52, %v7898_v12  ;;  %v5851_v33 = vrot.slane %v5286_v49, 1  ;;  %v5443_v9 = vshll.u32 %v9849_v11, 16  ;;  %v8148_v52 = vld [vmem:[#allocation2 + $0x9c] sm:$0xe]  ;;  %v8146_v49 = vor.u32 %v8145_v44, %v9268_v29 }
 0x373   : > { %4775 = vmatmul.bf16.gmra.mxu1 %v2338_v57  ;;  %v6716_v40 = vadd.f32 %v9838_v13, %v6648_v61  ;;  %v6492_v60 = vpop.f32.mrf.mxu0  ;;  %v2340_v57 = vrot.slane %v9259_v37, 1 }
 0x374   : > { %v6154_v59 = vpop.f32.mrf.mxu2  ;;  %v6323_v51 = vpop.f32.mrf.mxu3 }
 0x375   : > { %v7584_v28 = vpack.c.bf16 %v6716_v40, %v6715_v36  ;;  %v6324_v7 = vadd.f32 %v6323_v51, %v6154_v59  ;;  %v2341_v40 = vsel %vm2308_vm9, %v2339_v35, %v2340_v57  ;;  %v5255_v51 = vunpack.c.l.b16 %v4967_v5 }
 0x376   : > { %6531 = vmatmul.bf16.gmra.mxu0 %v5849_v62  ;;  %v5439_v62 = vsel %vm1795_vm10, %v5434_v41, %v5438_v56  ;;  %v5441_v41 = vshrl.u32 %v9849_v11, 16  ;;  %v5445_v56 = vrot.slane %v5443_v9, 1 }
 0x377   : > { %7585 = vst [vmem:[%s9846_s27] sm:$0xff] %v7584_v28   ;;  %v6493_v50 = vadd.f32 %v6492_v60, %v6324_v7  ;;  %v5850_v60 = vrot.slane %v7900_v20, 1  ;;  %v5287_v7 = vpack.c.b16 %v5255_v51, %v5255_v51  ;;  %v2343_v20 = vrot.slane %v9281_v19, 1 }
 0x378   : > { %v4738_v34 = vpop.f32.mrf.mxu1 }
 0x379   : > { %v6649_v37 = vadd.f32 %v6493_v50, %v4737_v17  ;;  %v4739_v28 = vadd.f32 %v4738_v34, %v9272_v21  ;;  %v5852_v21 = vsel %vm2308_vm9, %v5850_v60, %v5851_v33  ;;  %v5448_v50 = vshll.u32 %v5287_v7, 16 }
 0x37a   : > { %v5446_v17 = vor.u32 %v5445_v56, %v5441_v41 }
 0x37b   : > { %v6494_v61 = vpop.f32.mrf.mxu0  ;;  %v6717_v35 = vadd.f32 %v9838_v13, %v6649_v37 }
 0x37c   : > { %v6156_v6 = vpop.f32.mrf.mxu2  ;;  %v6325_v54 = vpop.f32.mrf.mxu3 }
 0x37d   : > { %v6326_v59 = vadd.f32 %v6325_v54, %v6156_v6  ;;  %v2342_v54 = vrot.slane %v8146_v49, 1 }
 0x37f   : > { %v6495_v4 = vadd.f32 %v6494_v61, %v6326_v59  ;;  %v5450_v59 = vrot.slane %v5448_v50, 1  ;;  %v2344_v60 = vsel %vm2308_vm9, %v2342_v54, %v2343_v20  ;;  %v9876_v20 = vld [vmem:[#allocation2 + $0xb4] sm:$0xff]  }
 0x380   : > { %v4741_v36 = vpop.f32.mrf.mxu1 }
 0x381   : > { %6198 = vmatmul.bf16.gmra.mxu2 %v7872_v18  ;;  %v6650_v24 = vadd.f32 %v6495_v4, %v4739_v28  ;;  %6367 = vmatmul.bf16.gmra.mxu3 %v5439_v62  ;;  %v4968_v62 = vld [vmem:[#allocation2 + $0xb0] sm:$0x1]  ;;  %v8149_v28 = vor.u32 %v8148_v52, %v9851_v8  ;;  %v4742_v29 = vadd.f32 %v4741_v36, %v9278_v22  ;;  %v7774_v8 = vld [vmem:[#allocation2 + $0x90] sm:$0xf0]  ;;  %v7775_v36 = vld [vmem:[#allocation2 + $0x90] sm:$0xe] }
 0x382   : > { %v5451_v33 = vsel %vm1795_vm10, %v5446_v17, %v5450_v59  ;;  %v7776_v56 = vor.u32 %v7775_v36, %v7774_v8  ;;  %v9878_v17 = vld [vmem:[#allocation2 + $0xb4] sm:$0xf0] }
 0x383   : > { %4780 = vmatmul.bf16.gmra.mxu1 %v2341_v40  ;;  %v6718_v57 = vadd.f32 %v9838_v13, %v6650_v24  ;;  %v6497_v12 = vpop.f32.mrf.mxu0  ;;  %v5256_v24 = vunpack.c.l.b16 %v4968_v62  ;;  %v7901_v62 = vld [vmem:[#allocation2 + $0xa8] sm:$0xf0] }
 0x384   : > { %v6159_v3 = vpop.f32.mrf.mxu2  ;;  %v6328_v34 = vpop.f32.mrf.mxu3  ;;  %v2345_v59 = vrot.slane %v7776_v56, 1  ;;  %v279_v56 = vld [vmem:[#allocation2 + $0xcc] sm:$0x1] }
 0x385   : > { %v7589_v18 = vpack.c.bf16 %v6718_v57, %v6717_v35  ;;  %v6329_v5 = vadd.f32 %v6328_v34, %v6159_v3  ;;  %v7873_v35 = vld [vmem:[#allocation2 + $0xa8] sm:$0xff]   ;;  %v5853_v57 = vrot.slane %v8149_v28, 1 }
 0x386   : > { %6536 = vmatmul.bf16.gmra.mxu0 %v5852_v21  ;;  %v5455_v34 = vshll.u32 %v7873_v35, 16  ;;  %v5453_v50 = vshrl.u32 %v7873_v35, 16 }
 0x387   : > { %7931 = vst [vmem:[%s9846_s27 + $0x8] sm:$0xff] %v7589_v18   ;;  %v6498_v40 = vadd.f32 %v6497_v12, %v6329_v5  ;;  %v5854_v12 = vrot.slane %v5287_v7, 1  ;;  %v5288_v18 = vpack.c.b16 %v5256_v24, %v5256_v24 }
 0x388   : > { %v4743_v6 = vpop.f32.mrf.mxu1  ;;  %v5457_v5 = vrot.slane %v5455_v34, 1 }
 0x389   : > { %v6651_v3 = vadd.f32 %v6498_v40, %v4742_v29  ;;  %v4744_v19 = vadd.f32 %v4743_v6, %v9290_v16  ;;  %v5855_v6 = vsel %vm2308_vm9, %v5853_v57, %v5854_v12  ;;  %v2346_v40 = vrot.slane %v9303_v38, 1 }
 0x38a   : > { %v5458_v28 = vor.u32 %v5457_v5, %v5453_v50 }
 0x38b   : > { %v6499_v51 = vpop.f32.mrf.mxu0  ;;  %v6719_v52 = vadd.f32 %v9838_v13, %v6651_v3  ;;  %v2347_v12 = vsel %vm2308_vm9, %v2345_v59, %v2346_v40 }
 0x38c   : > { %v6161_v61 = vpop.f32.mrf.mxu2  ;;  %v6330_v37 = vpop.f32.mrf.mxu3 }
 0x38d   : > { %v6331_v4 = vadd.f32 %v6330_v37, %v6161_v61  ;;  %v5460_v61 = vshll.u32 %v5288_v18, 16 }
 0x38f   : > { %v6500_v9 = vadd.f32 %v6499_v51, %v6331_v4  ;;  %v7902_v51 = vld [vmem:[#allocation2 + $0xa8] sm:$0xe]  ;;  %v5462_v29 = vrot.slane %v5460_v61, 1  ;;  %v5465_v61 = vshrl.u32 %v9876_v20, 16 }
 0x390   : > { %v4746_v44 = vpop.f32.mrf.mxu1  ;;  %v7903_v3 = vor.u32 %v7902_v51, %v7901_v62  ;;  %v280_v51 = vsel %vm8488_vm4, 0, %v279_v56 }
 0x391   : > { %6203 = vmatmul.bf16.gmra.mxu2 %v9849_v11  ;;  %v6652_v21 = vadd.f32 %v6500_v9, %v4744_v19  ;;  %6372 = vmatmul.bf16.gmra.mxu3 %v5451_v33  ;;  %v4747_v19 = vadd.f32 %v4746_v44, %v9301_v14  ;;  %v5467_v14 = vshll.u32 %v9876_v20, 16  ;;  %281 = vst [vmem:[#allocation2 + $0xcc] sm:$0x1] %v280_v51 }
 0x393   : > { %4785 = vmatmul.bf16.gmra.mxu1 %v2344_v60  ;;  %v6720_v49 = vadd.f32 %v9838_v13, %v6652_v21  ;;  %v6502_v16 = vpop.f32.mrf.mxu0  ;;  %v4969_v60 = vld [vmem:[#allocation2 + $0xbc] sm:$0x1]  ;;  %v5463_v21 = vsel %vm1795_vm10, %v5458_v28, %v5462_v29  ;;  %v5469_v40 = vrot.slane %v5467_v14, 1 }
 0x394   : > { %v6164_v22 = vpop.f32.mrf.mxu2  ;;  %v6333_v11 = vpop.f32.mrf.mxu3  ;;  %v5257_v38 = vunpack.c.l.b16 %v4969_v60 }
 0x395   : > { %v7594_v41 = vpack.c.bf16 %v6720_v49, %v6719_v52  ;;  %v6334_v54 = vadd.f32 %v6333_v11, %v6164_v22  ;;  %v8151_v22 = vld [vmem:[#allocation2 + $0x9c] sm:$0xe]  ;;  %v5856_v52 = vrot.slane %v7903_v3, 1  ;;  %v5857_v49 = vrot.slane %v5288_v18, 1  ;;  %v4970_v3 = vld [vmem:[#allocation2 + $0xc8] sm:$0x1] }
 0x396   : > { %6541 = vmatmul.bf16.gmra.mxu0 %v5855_v6  ;;  %v5289_v44 = vpack.c.b16 %v5257_v38, %v5257_v38  ;;  %v8152_v18 = vor.u32 %v8151_v22, %v9312_v27  ;;  %v2349_v27 = vrot.slane %v9325_v58, 1  ;;  %v5470_v60 = vor.u32 %v5469_v40, %v5465_v61 }
 0x397   : > { %7932 = vst [vmem:[%s9846_s27 + $0x10] sm:$0xff] %v7594_v41   ;;  %v6503_v4 = vadd.f32 %v6502_v16, %v6334_v54  ;;  %v8154_v54 = vld [vmem:[#allocation2 + $0xb4] sm:$0xe] }
 0x398   : > { %v4748_v7 = vpop.f32.mrf.mxu1  ;;  %v5472_v62 = vshll.u32 %v5289_v44, 16  ;;  %v5860_v14 = vrot.slane %v5289_v44, 1  ;;  %v9907_v40 = vld [vmem:[#allocation2 + $0xcc] sm:$0xff]  }
 0x399   : > { %v6653_v8 = vadd.f32 %v6503_v4, %v4747_v19  ;;  %v4749_v36 = vadd.f32 %v4748_v7, %v9316_v1  ;;  %v5858_v1 = vsel %vm2308_vm9, %v5856_v52, %v5857_v49  ;;  %v2348_v4 = vrot.slane %v8152_v18, 1 }
 0x39b   : > { %v6504_v33 = vpop.f32.mrf.mxu0  ;;  %v6721_v11 = vadd.f32 %v9838_v13, %v6653_v8  ;;  %v2350_v8 = vsel %vm2308_vm9, %v2348_v4, %v2349_v27 }
 0x39c   : > { %v6166_v37 = vpop.f32.mrf.mxu2  ;;  %v6335_v24 = vpop.f32.mrf.mxu3 }
 0x39d   : > { %v6336_v9 = vadd.f32 %v6335_v24, %v6166_v37 }
 0x39f   : > { %v6505_v34 = vadd.f32 %v6504_v33, %v6336_v9  ;;  %v5474_v33 = vrot.slane %v5472_v62, 1  ;;  %v9909_v62 = vld [vmem:[#allocation2 + $0xcc] sm:$0xf0] }
 0x3a0   : > { %v4751_v57 = vpop.f32.mrf.mxu1 }
 0x3a1   : > { %6208 = vmatmul.bf16.gmra.mxu2 %v7873_v35  ;;  %v6654_v16 = vadd.f32 %v6505_v34, %v4749_v36  ;;  %6377 = vmatmul.bf16.gmra.mxu3 %v5463_v21  ;;  %v389_v35 = vld [vmem:[#allocation2 + $0xd4] sm:$0x1]  ;;  %v4752_v21 = vadd.f32 %v4751_v57, %v9322_v26  ;;  %v5475_v36 = vsel %vm1795_vm10, %v5470_v60, %v5474_v33  ;;  %v5258_v34 = vunpack.c.l.b16 %v4970_v3  ;;  %v7778_v57 = vld [vmem:[#allocation2 + $0xa8] sm:$0xe] }
 0x3a2   : > { %v390_v37 = vsel %vm8483_vm3, 0, %v389_v35 }
 0x3a3   : > { %4790 = vmatmul.bf16.gmra.mxu1 %v2347_v12  ;;  %v6722_v41 = vadd.f32 %v9838_v13, %v6654_v16  ;;  %v6507_v50 = vpop.f32.mrf.mxu0  ;;  %391 = vst [vmem:[#allocation2 + $0xd4] sm:$0x1] %v390_v37  ;;  %v8155_v12 = vor.u32 %v8154_v54, %v9878_v17  ;;  %v7874_v16 = vld [vmem:[#allocation2 + $0xc0] sm:$0xff]   ;;  %v7777_v17 = vld [vmem:[#allocation2 + $0xa8] sm:$0xf0]  ;;  %v5290_v56 = vpack.c.b16 %v5258_v34, %v5258_v34  ;;  %v2352_v37 = vrot.slane %v9351_v43, 1 }
 0x3a4   : > { %v6169_v6 = vpop.f32.mrf.mxu2  ;;  %v6338_v7 = vpop.f32.mrf.mxu3  ;;  %v5477_v18 = vshrl.u32 %v7874_v16, 16 }
 0x3a5   : > { %v7599_v5 = vpack.c.bf16 %v6722_v41, %v6721_v11  ;;  %v6339_v28 = vadd.f32 %v6338_v7, %v6169_v6  ;;  %v5859_v6 = vrot.slane %v8155_v12, 1  ;;  %v5479_v41 = vshll.u32 %v7874_v16, 16 }
 0x3a6   : > { %6546 = vmatmul.bf16.gmra.mxu0 %v5858_v1  ;;  %v5484_v54 = vshll.u32 %v5290_v56, 16 }
 0x3a7   : > { %7933 = vst [vmem:[%s9846_s27 + $0x18] sm:$0xff] %v7599_v5   ;;  %v6508_v24 = vadd.f32 %v6507_v50, %v6339_v28  ;;  %v5861_v7 = vsel %vm2308_vm9, %v5859_v6, %v5860_v14  ;;  %v7779_v5 = vor.u32 %v7778_v57, %v7777_v17  ;;  %v5481_v61 = vrot.slane %v5479_v41, 1  ;;  %v7904_v28 = vld [vmem:[#allocation2 + $0xc0] sm:$0xf0] }
 0x3a8   : > { %v4753_v59 = vpop.f32.mrf.mxu1  ;;  %v5486_v60 = vrot.slane %v5484_v54, 1  ;;  %v5863_v14 = vrot.slane %v5290_v56, 1 }
 0x3a9   : > { %v6655_v52 = vadd.f32 %v6508_v24, %v4752_v21  ;;  %v4754_v58 = vadd.f32 %v4753_v59, %v9334_v53  ;;  %v2351_v51 = vrot.slane %v7779_v5, 1  ;;  %v5482_v27 = vor.u32 %v5481_v61, %v5477_v18 }
 0x3aa   : > { %v4971_v24 = vld [vmem:[#allocation2 + $0xd4] sm:$0x1]  ;;  %v2355_v61 = vrot.slane %v9373_v25, 1 }
 0x3ab   : > { %v6509_v19 = vpop.f32.mrf.mxu0  ;;  %v6723_v50 = vadd.f32 %v9838_v13, %v6655_v52  ;;  %v5259_v34 = vunpack.c.l.b16 %v4971_v24 }
 0x3ac   : > { %v6171_v29 = vpop.f32.mrf.mxu2  ;;  %v6340_v9 = vpop.f32.mrf.mxu3 }
 0x3ad   : > { %v6341_v22 = vadd.f32 %v6340_v9, %v6171_v29  ;;  %v7905_v29 = vld [vmem:[#allocation2 + $0xc0] sm:$0xe] }
 0x3ae   : > { %v7906_v9 = vor.u32 %v7905_v29, %v7904_v28 }
 0x3af   : > { %v6510_v49 = vadd.f32 %v6509_v19, %v6341_v22 }
 0x3b0   : > { %v4756_v38 = vpop.f32.mrf.mxu1  ;;  %v5862_v6 = vrot.slane %v7906_v9, 1 }
 0x3b1   : > { %6213 = vmatmul.bf16.gmra.mxu2 %v9876_v20  ;;  %v6656_v11 = vadd.f32 %v6510_v49, %v4754_v58  ;;  %6382 = vmatmul.bf16.gmra.mxu3 %v5475_v36  ;;  %v4757_v12 = vadd.f32 %v4756_v38, %v9349_v47  ;;  %v5487_v36 = vsel %vm1795_vm10, %v5482_v27, %v5486_v60  ;;  %v8157_v49 = vld [vmem:[#allocation2 + $0xb4] sm:$0xe]  ;;  %v5491_v38 = vshll.u32 %v9907_v40, 16 }
 0x3b2   : > { %v8158_v56 = vor.u32 %v8157_v49, %v9360_v39 }
 0x3b3   : > { %4795 = vmatmul.bf16.gmra.mxu1 %v2350_v8  ;;  %v6724_v1 = vadd.f32 %v9838_v13, %v6656_v11  ;;  %v6512_v53 = vpop.f32.mrf.mxu0  ;;  %v2353_v8 = vsel %vm2308_vm9, %v2351_v51, %v2352_v37  ;;  %v4972_v37 = vld [vmem:[#allocation2 + $0xf8] sm:$0x1] }
 0x3b4   : > { %v6174_v26 = vpop.f32.mrf.mxu2  ;;  %v6343_v20 = vpop.f32.mrf.mxu3  ;;  %v2354_v18 = vrot.slane %v8158_v56, 1 }
 0x3b5   : > { %v7604_v35 = vpack.c.bf16 %v6724_v1, %v6723_v50  ;;  %v6344_v59 = vadd.f32 %v6343_v20, %v6174_v26  ;;  %v5291_v26 = vpack.c.b16 %v5259_v34, %v5259_v34  ;;  %v8160_v1 = vld [vmem:[#allocation2 + $0xcc] sm:$0xe]  ;;  %v5493_v20 = vrot.slane %v5491_v38, 1 }
 0x3b6   : > { %6551 = vmatmul.bf16.gmra.mxu0 %v5861_v7  ;;  %v5489_v7 = vshrl.u32 %v9907_v40, 16 }
 0x3b7   : > { %7934 = vst [vmem:[%s9846_s27 + $0x20] sm:$0xff] %v7604_v35   ;;  %v6513_v33 = vadd.f32 %v6512_v53, %v6344_v59  ;;  %v5496_v35 = vshll.u32 %v5291_v26, 16 }
 0x3b8   : > { %v4758_v44 = vpop.f32.mrf.mxu1  ;;  %v5494_v54 = vor.u32 %v5493_v20, %v5489_v7 }
 0x3b9   : > { %v6657_v43 = vadd.f32 %v6513_v33, %v4757_v12  ;;  %v4759_v52 = vadd.f32 %v4758_v44, %v9364_v15  ;;  %v5864_v15 = vsel %vm2308_vm9, %v5862_v6, %v5863_v14  ;;  %v5498_v59 = vrot.slane %v5496_v35, 1  ;;  %v7875_v12 = vld [vmem:[#allocation2 + $0xf0] sm:$0xff]   ;;  %v4973_v35 = vld [vmem:[#allocation2 + $0x104] sm:$0x1] }
 0x3ba   : > { %v2356_v33 = vsel %vm2308_vm9, %v2354_v18, %v2355_v61  ;;  %v5503_v34 = vshll.u32 %v7875_v12, 16 }
 0x3bb   : > { %v6514_v3 = vpop.f32.mrf.mxu0  ;;  %v6725_v17 = vadd.f32 %v9838_v13, %v6657_v43  ;;  %v5499_v24 = vsel %vm1795_vm10, %v5494_v54, %v5498_v59 }
 0x3bc   : > { %v6176_v4 = vpop.f32.mrf.mxu2  ;;  %v6345_v19 = vpop.f32.mrf.mxu3  ;;  %v5505_v38 = vrot.slane %v5503_v34, 1 }
 0x3bd   : > { %v6346_v21 = vadd.f32 %v6345_v19, %v6176_v4  ;;  %v8161_v4 = vor.u32 %v8160_v1, %v9909_v62  ;;  %v7780_v62 = vld [vmem:[#allocation2 + $0xd8] sm:$0xf0]  ;;  %v7908_v1 = vld [vmem:[#allocation2 + $0xf0] sm:$0xe] }
 0x3bf   : > { %v6515_v58 = vadd.f32 %v6514_v3, %v6346_v21  ;;  %v5260_v3 = vunpack.c.l.b16 %v4972_v37  ;;  %v5865_v21 = vrot.slane %v8161_v4, 1 }
 0x3c0   : > { %v4761_v22 = vpop.f32.mrf.mxu1 }
 0x3c1   : > { %6218 = vmatmul.bf16.gmra.mxu2 %v7874_v16  ;;  %v6658_v11 = vadd.f32 %v6515_v58, %v4759_v52  ;;  %6387 = vmatmul.bf16.gmra.mxu3 %v5487_v36  ;;  %v4762_v39 = vadd.f32 %v4761_v22, %v9370_v30  ;;  %v7781_v22 = vld [vmem:[#allocation2 + $0xd8] sm:$0xe]  ;;  %v5292_v43 = vpack.c.b16 %v5260_v3, %v5260_v3 }
 0x3c2   : > { %v7782_v14 = vor.u32 %v7781_v22, %v7780_v62 }
 0x3c3   : > { %4800 = vmatmul.bf16.gmra.mxu1 %v2353_v8  ;;  %v6726_v57 = vadd.f32 %v9838_v13, %v6658_v11  ;;  %v6517_v41 = vpop.f32.mrf.mxu0  ;;  %v5866_v8 = vrot.slane %v5291_v26, 1  ;;  %v5508_v26 = vshll.u32 %v5292_v43, 16 }
 0x3c4   : > { %v6179_v47 = vpop.f32.mrf.mxu2  ;;  %v6348_v50 = vpop.f32.mrf.mxu3 }
 0x3c5   : > { %v7609_v16 = vpack.c.bf16 %v6726_v57, %v6725_v17  ;;  %v6349_v5 = vadd.f32 %v6348_v50, %v6179_v47  ;;  %v5867_v49 = vsel %vm2308_vm9, %v5865_v21, %v5866_v8  ;;  %v5501_v47 = vshrl.u32 %v7875_v12, 16  ;;  %v9934_v57 = vld [vmem:[#allocation2 + $0xfc] sm:$0xff]  }
 0x3c6   : > { %6556 = vmatmul.bf16.gmra.mxu0 %v5864_v15  ;;  %v2357_v15 = vrot.slane %v7782_v14, 1  ;;  %v2358_v50 = vrot.slane %v9395_v10, 1  ;;  %v5510_v7 = vrot.slane %v5508_v26, 1  ;;  %v8166_v8 = vld [vmem:[#allocation2 + $0xfc] sm:$0xe]  ;;  %v5513_v62 = vshrl.u32 %v9934_v57, 16 }
 0x3c7   : > { %7935 = vst [vmem:[%s9846_s27 + $0x28] sm:$0xff] %v7609_v16   ;;  %v6518_v51 = vadd.f32 %v6517_v41, %v6349_v5  ;;  %v9936_v41 = vld [vmem:[#allocation2 + $0xfc] sm:$0xf0]  ;;  %v7907_v16 = vld [vmem:[#allocation2 + $0xf0] sm:$0xf0]  ;;  %v5506_v56 = vor.u32 %v5505_v38, %v5501_v47 }
 0x3c8   : > { %v4763_v53 = vpop.f32.mrf.mxu1  ;;  %v7909_v18 = vor.u32 %v7908_v1, %v7907_v16  ;;  %v4974_v14 = vld [vmem:[#allocation2 + $0x110] sm:$0x1]  ;;  %v8167_v38 = vor.u32 %v8166_v8, %v9936_v41  ;;  %v7783_v41 = vld [vmem:[#allocation2 + $0xf0] sm:$0xf0] }
 0x3c9   : > { %v6659_v19 = vadd.f32 %v6518_v51, %v4762_v39  ;;  %v4764_v25 = vadd.f32 %v4763_v53, %v9382_v55  ;;  %v2359_v51 = vsel %vm2308_vm9, %v2357_v15, %v2358_v50  ;;  %v5511_v37 = vsel %vm1795_vm10, %v5506_v56, %v5510_v7  ;;  %v8163_v39 = vld [vmem:[#allocation2 + $0xe4] sm:$0xe]  ;;  %v7876_v56 = vld [vmem:[#allocation2 + $0x108] sm:$0xff]  }
 0x3ca   : > { %v5262_v16 = vunpack.c.l.b16 %v4974_v14  ;;  %v5871_v7 = vrot.slane %v8167_v38, 1  ;;  %v8169_v14 = vld [vmem:[#allocation2 + $0xfc] sm:$0xe] }
 0x3cb   : > { %v6519_v28 = vpop.f32.mrf.mxu0  ;;  %v6727_v52 = vadd.f32 %v9838_v13, %v6659_v19 }
 0x3cc   : > { %v6181_v44 = vpop.f32.mrf.mxu2  ;;  %v6350_v29 = vpop.f32.mrf.mxu3 }
 0x3cd   : > { %v6351_v27 = vadd.f32 %v6350_v29, %v6181_v44 }
 0x3cf   : > { %v6520_v9 = vadd.f32 %v6519_v28, %v6351_v27  ;;  %v5261_v28 = vunpack.c.l.b16 %v4973_v35  ;;  %v5868_v27 = vrot.slane %v7909_v18, 1  ;;  %v5294_v18 = vpack.c.b16 %v5262_v16, %v5262_v16 }
 0x3d0   : > { %v4766_v60 = vpop.f32.mrf.mxu1 }
 0x3d1   : > { %6223 = vmatmul.bf16.gmra.mxu2 %v9907_v40  ;;  %v6660_v36 = vadd.f32 %v6520_v9, %v4764_v25  ;;  %6392 = vmatmul.bf16.gmra.mxu3 %v5499_v24  ;;  %v4767_v61 = vadd.f32 %v4766_v60, %v9393_v46  ;;  %v5515_v60 = vshll.u32 %v9934_v57, 16  ;;  %v5293_v3 = vpack.c.b16 %v5261_v28, %v5261_v28 }
 0x3d3   : > { %4805 = vmatmul.bf16.gmra.mxu1 %v2356_v33  ;;  %v6728_v58 = vadd.f32 %v9838_v13, %v6660_v36  ;;  %v6522_v55 = vpop.f32.mrf.mxu0  ;;  %v5869_v33 = vrot.slane %v5292_v43, 1  ;;  %v5517_v22 = vrot.slane %v5515_v60, 1  ;;  %v5520_v34 = vshll.u32 %v5293_v3, 16 }
 0x3d4   : > { %v6184_v30 = vpop.f32.mrf.mxu2  ;;  %v6353_v40 = vpop.f32.mrf.mxu3 }
 0x3d5   : > { %v7614_v6 = vpack.c.bf16 %v6728_v58, %v6727_v52  ;;  %v6354_v17 = vadd.f32 %v6353_v40, %v6184_v30  ;;  %v8164_v30 = vor.u32 %v8163_v39, %v9404_v32  ;;  %v5522_v40 = vrot.slane %v5520_v34, 1 }
 0x3d6   : > { %6561 = vmatmul.bf16.gmra.mxu0 %v5867_v49  ;;  %v5518_v49 = vor.u32 %v5517_v22, %v5513_v62  ;;  %v10542_v62 = vld [vmem:[#allocation13_spill] sm:$0xff] }
 0x3d7   : > { %7936 = vst [vmem:[%s9846_s27 + $0x30] sm:$0xff] %v7614_v6   ;;  %v6523_v20 = vadd.f32 %v6522_v55, %v6354_v17  ;;  %v2360_v58 = vrot.slane %v8164_v30, 1  ;;  %v2361_v55 = vrot.slane %v9417_v23, 1 }
 0x3d8   : > { %v4768_v11 = vpop.f32.mrf.mxu1  ;;  %v5523_v50 = vsel %vm1795_vm10, %v5518_v49, %v5522_v40 }
 0x3d9   : > { %v6661_v10 = vadd.f32 %v6523_v20, %v4767_v61  ;;  %v4769_v29 = vadd.f32 %v4768_v11, %v9408_v48  ;;  %v5870_v48 = vsel %vm2308_vm9, %v5868_v27, %v5869_v33  ;;  %v2362_v15 = vsel %vm2308_vm9, %v2360_v58, %v2361_v55  ;;  %v9961_v27 = vld [vmem:[#allocation2 + $0x114] sm:$0xff]  }
 0x3da   : > { %v5872_v20 = vrot.slane %v5293_v3, 1  ;;  %v9963_v33 = vld [vmem:[#allocation2 + $0x114] sm:$0xf0]  ;;  %v7910_v3 = vld [vmem:[#allocation2 + $0x108] sm:$0xf0] }
 0x3db   : > { %v6524_v5 = vpop.f32.mrf.mxu0  ;;  %v6729_v19 = vadd.f32 %v9838_v13, %v6661_v10  ;;  %v5525_v10 = vshrl.u32 %v7876_v56, 16 }
 0x3dc   : > { %v6186_v53 = vpop.f32.mrf.mxu2  ;;  %v6355_v44 = vpop.f32.mrf.mxu3 }
 0x3dd   : > { %v6356_v54 = vadd.f32 %v6355_v44, %v6186_v53  ;;  %v5527_v44 = vshll.u32 %v7876_v56, 16 }
 0x3df   : > { %v6525_v4 = vadd.f32 %v6524_v5, %v6356_v54  ;;  %v7784_v5 = vld [vmem:[#allocation2 + $0xf0] sm:$0xe] }
 0x3e0   : > { %v4771_v59 = vpop.f32.mrf.mxu1 }
 0x3e1   : > { %6228 = vmatmul.bf16.gmra.mxu2 %v7875_v12  ;;  %v6662_v24 = vadd.f32 %v6525_v4, %v4769_v29  ;;  %6397 = vmatmul.bf16.gmra.mxu3 %v5511_v37  ;;  %v4772_v32 = vadd.f32 %v4771_v59, %v9414_v63  ;;  %v5873_v59 = vsel %vm2308_vm9, %v5871_v7, %v5872_v20  ;;  %v5529_v29 = vrot.slane %v5527_v44, 1  ;;  %v10543_v7 = vld [vmem:[#allocation24_spill] sm:$0xff] }
 0x3e2   : > { %v7785_v37 = vor.u32 %v7784_v5, %v7783_v41  ;;  %v5532_v4 = vshll.u32 %v5294_v18, 16  ;;  %v8170_v20 = vor.u32 %v8169_v14, %v10543_v7 }
 0x3e3   : > { %4810 = vmatmul.bf16.gmra.mxu1 %v2359_v51  ;;  %v6730_v25 = vadd.f32 %v9838_v13, %v6662_v24  ;;  %v6527_v9 = vpop.f32.mrf.mxu0 }
 0x3e4   : > { %v6189_v46 = vpop.f32.mrf.mxu2  ;;  %v6358_v21 = vpop.f32.mrf.mxu3  ;;  %v2363_v24 = vrot.slane %v7785_v37, 1 }
 0x3e5   : > { %v7619_v12 = vpack.c.bf16 %v6730_v25, %v6729_v19  ;;  %v6359_v43 = vadd.f32 %v6358_v21, %v6189_v46  ;;  %v10541_v46 = vld [vmem:[#allocation20_spill] sm:$0xff]  ;;  %v7911_v19 = vld [vmem:[#allocation2 + $0x108] sm:$0xe] }
 0x3e6   : > { %6566 = vmatmul.bf16.gmra.mxu0 %v5870_v48  ;;  %v2364_v60 = vrot.slane %v10541_v46, 1  ;;  %v5534_v48 = vrot.slane %v5532_v4, 1  ;;  %v7912_v30 = vor.u32 %v7911_v19, %v7910_v3 }
 0x3e7   : > { %7937 = vst [vmem:[%s9846_s27 + $0x38] sm:$0xff] %v7619_v12   ;;  %v6528_v6 = vadd.f32 %v6527_v9, %v6359_v43  ;;  %v5530_v9 = vor.u32 %v5529_v29, %v5525_v10  ;;  %v4975_v12 = vld [vmem:[#allocation2 + $0x11c] sm:$0x1]  ;;  %v10545_v29 = vld [vmem:[#allocation18_spill] sm:$0xff] }
 0x3e8   : > { %v4773_v36 = vpop.f32.mrf.mxu1  ;;  %v5263_v55 = vunpack.c.l.b16 %v4975_v12 }
 0x3e9   : > { %v6663_v1 = vadd.f32 %v6528_v6, %v4772_v32  ;;  %v4774_v23 = vadd.f32 %v4773_v36, %v9426_v31  ;;  %v5535_v58 = vsel %vm1795_vm10, %v5530_v9, %v5534_v48 }
 0x3eb   : > { %v6529_v11 = vpop.f32.mrf.mxu0  ;;  %v6731_v61 = vadd.f32 %v9838_v13, %v6663_v1 }
 0x3ec   : > { %v6191_v52 = vpop.f32.mrf.mxu2  ;;  %v6360_v47 = vpop.f32.mrf.mxu3 }
 0x3ed   : > { %v6361_v26 = vadd.f32 %v6360_v47, %v6191_v52  ;;  %v2365_v52 = vsel %vm2308_vm9, %v2363_v24, %v2364_v60  ;;  %v5875_v47 = vrot.slane %v5294_v18, 1  ;;  %v2366_v18 = vrot.slane %v8170_v20, 1 }
 0x3ef   : > { %v6530_v53 = vadd.f32 %v6529_v11, %v6361_v26  ;;  %v5874_v11 = vrot.slane %v7912_v30, 1  ;;  %v5539_v26 = vshll.u32 %v9961_v27, 16  ;;  %v7786_v30 = vld [vmem:[#allocation2 + $0x108] sm:$0xf0] }
 0x3f0   : > { %v4776_v17 = vpop.f32.mrf.mxu1 }
 0x3f1   : > { %6233 = vmatmul.bf16.gmra.mxu2 %v9934_v57  ;;  %v6664_v35 = vadd.f32 %v6530_v53, %v4774_v23  ;;  %6402 = vmatmul.bf16.gmra.mxu3 %v5523_v50  ;;  %v4777_v22 = vadd.f32 %v4776_v17, %v10542_v62  ;;  %v5295_v17 = vpack.c.b16 %v5263_v55, %v5263_v55  ;;  %v8172_v53 = vld [vmem:[#allocation2 + $0x114] sm:$0xe]  ;;  %v7787_v62 = vld [vmem:[#allocation2 + $0x108] sm:$0xe] }
 0x3f2   : > { %v8173_v10 = vor.u32 %v8172_v53, %v9963_v33  ;;  %v4977_v53 = vld [vmem:[#allocation2 + $0x134] sm:$0x1] }
 0x3f3   : > { %4815 = vmatmul.bf16.gmra.mxu1 %v2362_v15  ;;  %v6732_v54 = vadd.f32 %v9838_v13, %v6664_v35  ;;  %v6532_v31 = vpop.f32.mrf.mxu0  ;;  %v5537_v35 = vshrl.u32 %v9961_v27, 16  ;;  %v5544_v41 = vshll.u32 %v5295_v17, 16 }
 0x3f4   : > { %v6194_v63 = vpop.f32.mrf.mxu2  ;;  %v6363_v57 = vpop.f32.mrf.mxu3  ;;  %v5877_v12 = vrot.slane %v8173_v10, 1 }
 0x3f5   : > { %v7624_v51 = vpack.c.bf16 %v6732_v54, %v6731_v61  ;;  %v6364_v39 = vadd.f32 %v6363_v57, %v6194_v63  ;;  %v5541_v63 = vrot.slane %v5539_v26, 1  ;;  %v10544_v61 = vld [vmem:[#allocation19_spill] sm:$0xff]  ;;  %v9990_v26 = vld [vmem:[#allocation2 + $0x12c] sm:$0xf0] }
 0x3f6   : > { %6571 = vmatmul.bf16.gmra.mxu0 %v5873_v59  ;;  %v2367_v54 = vrot.slane %v10544_v61, 1  ;;  %v5546_v59 = vrot.slane %v5544_v41, 1  ;;  %v5265_v61 = vunpack.c.l.b16 %v4977_v53 }
 0x3f7   : > { %7938 = vst [vmem:[%s9846_s27 + $0x40] sm:$0xff] %v7624_v51   ;;  %v6533_v21 = vadd.f32 %v6532_v31, %v6364_v39  ;;  %v5542_v31 = vor.u32 %v5541_v63, %v5537_v35  ;;  %v4976_v51 = vld [vmem:[#allocation2 + $0x128] sm:$0x1]  ;;  %v10547_v35 = vld [vmem:[#allocation30_spill] sm:$0xff] }
 0x3f8   : > { %v4778_v28 = vpop.f32.mrf.mxu1  ;;  %v2368_v46 = vsel %vm2308_vm9, %v2366_v18, %v2367_v54  ;;  %v5264_v3 = vunpack.c.l.b16 %v4976_v51  ;;  %v10548_v54 = vld [vmem:[#allocation53_spill] sm:$0xff] }
 0x3f9   : > { %v6665_v49 = vadd.f32 %v6533_v21, %v4777_v22  ;;  %v4779_v40 = vadd.f32 %v4778_v28, %v9452_v45  ;;  %v5876_v45 = vsel %vm2308_vm9, %v5874_v11, %v5875_v47  ;;  %v5547_v60 = vsel %vm1795_vm10, %v5542_v31, %v5546_v59  ;;  %v7877_v21 = vld [vmem:[#allocation2 + $0x120] sm:$0xff]  }
 0x3fa   : > { %v5551_v22 = vshll.u32 %v7877_v21, 16  ;;  %v5549_v14 = vshrl.u32 %v7877_v21, 16 }
 0x3fb   : > { %v6534_v8 = vpop.f32.mrf.mxu0  ;;  %v6733_v15 = vadd.f32 %v9838_v13, %v6665_v49 }
 0x3fc   : > { %v6196_v25 = vpop.f32.mrf.mxu2  ;;  %v6365_v36 = vpop.f32.mrf.mxu3  ;;  %v5553_v11 = vrot.slane %v5551_v22, 1 }
 0x3fd   : > { %v6366_v34 = vadd.f32 %v6365_v36, %v6196_v25  ;;  %v10546_v25 = vld [vmem:[#allocation47_spill] sm:$0xff] }
 0x3ff   : > { %v6535_v6 = vadd.f32 %v6534_v8, %v6366_v34  ;;  %v5878_v8 = vrot.slane %v5295_v17, 1  ;;  %v5296_v34 = vpack.c.b16 %v5264_v3, %v5264_v3 }
 0x400   : > { %v4781_v43 = vpop.f32.mrf.mxu1 }
 0x401   : > { %6238 = vmatmul.bf16.gmra.mxu2 %v7876_v56  ;;  %v6666_v38 = vadd.f32 %v6535_v6, %v4779_v40  ;;  %6407 = vmatmul.bf16.gmra.mxu3 %v5535_v58  ;;  %v4782_v4 = vadd.f32 %v4781_v43, %v10545_v29  ;;  %v5879_v55 = vsel %vm2308_vm9, %v5877_v12, %v5878_v8  ;;  %v5556_v47 = vshll.u32 %v5296_v34, 16 }
 0x402   : > { %v7788_v40 = vor.u32 %v7787_v62, %v7786_v30 }
 0x403   : > { %4820 = vmatmul.bf16.gmra.mxu1 %v2365_v52  ;;  %v6734_v50 = vadd.f32 %v9838_v13, %v6666_v38  ;;  %v6537_v16 = vpop.f32.mrf.mxu0 }
 0x404   : > { %v6199_v32 = vpop.f32.mrf.mxu2  ;;  %v6368_v1 = vpop.f32.mrf.mxu3  ;;  %v2369_v17 = vrot.slane %v7788_v40, 1 }
 0x405   : > { %v7629_v23 = vpack.c.bf16 %v6734_v50, %v6733_v15  ;;  %v6369_v5 = vadd.f32 %v6368_v1, %v6199_v32  ;;  %v9988_v32 = vld [vmem:[#allocation2 + $0x12c] sm:$0xff]   ;;  %v7913_v15 = vld [vmem:[#allocation2 + $0x120] sm:$0xf0]  ;;  %v7914_v50 = vld [vmem:[#allocation2 + $0x120] sm:$0xe]  ;;  %v5558_v1 = vrot.slane %v5556_v47, 1 }
 0x406   : > { %6576 = vmatmul.bf16.gmra.mxu0 %v5876_v45  ;;  %v5554_v45 = vor.u32 %v5553_v11, %v5549_v14  ;;  %v7915_v20 = vor.u32 %v7914_v50, %v7913_v15  ;;  %v5563_v29 = vshll.u32 %v9988_v32, 16  ;;  %v5561_v8 = vshrl.u32 %v9988_v32, 16  ;;  %v10551_v14 = vld [vmem:[#allocation32_spill] sm:$0xff] }
 0x407   : > { %7939 = vst [vmem:[%s9846_s27 + $0x48] sm:$0xff] %v7629_v23   ;;  %v6538_v57 = vadd.f32 %v6537_v16, %v6369_v5 }
 0x408   : > { %v4783_v56 = vpop.f32.mrf.mxu1  ;;  %v5559_v18 = vsel %vm1795_vm10, %v5554_v45, %v5558_v1  ;;  %v5880_v51 = vrot.slane %v7915_v20, 1  ;;  %v7789_v20 = vld [vmem:[#allocation2 + $0x120] sm:$0xf0] }
 0x409   : > { %v6667_v19 = vadd.f32 %v6538_v57, %v4782_v4  ;;  %v4784_v9 = vadd.f32 %v4783_v56, %v10546_v25  ;;  %v8175_v57 = vld [vmem:[#allocation2 + $0x114] sm:$0xe]  ;;  %v5297_v4 = vpack.c.b16 %v5265_v61, %v5265_v61 }
 0x40b   : > { %v6539_v37 = vpop.f32.mrf.mxu0  ;;  %v6735_v43 = vadd.f32 %v9838_v13, %v6667_v19 }
 0x40c   : > { %v6201_v44 = vpop.f32.mrf.mxu2  ;;  %v6370_v28 = vpop.f32.mrf.mxu3 }
 0x40d   : > { %v6371_v39 = vadd.f32 %v6370_v28, %v6201_v44 }
 0x40f   : > { %v6540_v48 = vadd.f32 %v6539_v37, %v6371_v39  ;;  %v5881_v37 = vrot.slane %v5296_v34, 1  ;;  %v10001_v39 = vld [vmem:[%s10244_s2] ss:$0 sm:$0xff]  ;;  %v10550_v34 = vld [vmem:[#allocation57_spill] sm:$0xff] }
 0x410   : > { %v4786_v24 = vpop.f32.mrf.mxu1 }
 0x411   : > { %6243 = vmatmul.bf16.gmra.mxu2 %v9961_v27  ;;  %v6668_v36 = vadd.f32 %v6540_v48, %v4784_v9  ;;  %6412 = vmatmul.bf16.gmra.mxu3 %v5547_v60  ;;  %v4787_v63 = vadd.f32 %v4786_v24, %v10547_v35  ;;  %v5882_v3 = vsel %vm2308_vm9, %v5880_v51, %v5881_v37  ;;  %v8178_v9 = vld [vmem:[#allocation2 + $0x12c] sm:$0xe]  ;;  %v7790_v35 = vld [vmem:[#allocation2 + $0x120] sm:$0xe] }
 0x413   : > { %4825 = vmatmul.bf16.gmra.mxu1 %v2368_v46  ;;  %v6736_v52 = vadd.f32 %v9838_v13, %v6668_v36  ;;  %v6542_v58 = vpop.f32.mrf.mxu0  ;;  %v2370_v13 = vrot.slane %v9483_v42, 1  ;;  %v5565_v36 = vrot.slane %v5563_v29, 1 }
 0x414   : > { %v6204_v33 = vpop.f32.mrf.mxu2  ;;  %v6373_v27 = vpop.f32.mrf.mxu3 }
 0x415   : > { %v7634_v49 = vpack.c.bf16 %v6736_v52, %v6735_v43  ;;  %v6374_v38 = vadd.f32 %v6373_v27, %v6204_v33  ;;  %v2371_v44 = vsel %vm2308_vm9, %v2369_v17, %v2370_v13  ;;  %v5568_v33 = vshll.u32 %v5297_v4, 16  ;;  %v4978_v27 = vld [vmem:[#allocation2 + $0x140] sm:$0x1] }
 0x416   : > { %6581 = vmatmul.bf16.gmra.mxu0 %v5879_v55  ;;  %v2373_v43 = vrot.slane %v10550_v34, 1  ;;  %v5566_v52 = vor.u32 %v5565_v36, %v5561_v8  ;;  %v5266_v15 = vunpack.c.l.b16 %v4978_v27  ;;  %v10554_v36 = vld [vmem:[#allocation27_spill] sm:$0xff] }
 0x417   : > { %7940 = vst [vmem:[%s9846_s27 + $0x50] sm:$0xff] %v7634_v49   ;;  %v6543_v23 = vadd.f32 %v6542_v58, %v6374_v38  ;;  %v5570_v58 = vrot.slane %v5568_v33, 1 }
 0x418   : > { %v4788_v6 = vpop.f32.mrf.mxu1 }
 0x419   : > { %v6669_v42 = vadd.f32 %v6543_v23, %v4787_v63  ;;  %v4789_v31 = vadd.f32 %v4788_v6, %v10548_v54  ;;  %v8179_v6 = vor.u32 %v8178_v9, %v9990_v26  ;;  %v5571_v13 = vsel %vm1795_vm10, %v5566_v52, %v5570_v58  ;;  %v7878_v23 = vld [vmem:[#allocation2 + $0x138] sm:$0xff]   ;;  %v10555_v58 = vld [vmem:[#allocation70_spill] sm:$0xff] }
 0x41a   : > { %v5575_v63 = vshll.u32 %v7878_v23, 16  ;;  %v7791_v54 = vor.u32 %v7790_v35, %v7789_v20 }
 0x41b   : > { %v6544_v56 = vpop.f32.mrf.mxu0  ;;  %v6737_v24 = vadd.f32 %v10001_v39, %v6669_v42  ;;  %v5883_v53 = vrot.slane %v8179_v6, 1 }
 0x41c   : > { %v6206_v16 = vpop.f32.mrf.mxu2  ;;  %v6375_v7 = vpop.f32.mrf.mxu3  ;;  %v2375_v29 = vrot.slane %v7791_v54, 1 }
 0x41d   : > { %v6376_v41 = vadd.f32 %v6375_v7, %v6206_v16  ;;  %v10552_v16 = vld [vmem:[#allocation26_spill] sm:$0xff] }
 0x41f   : > { %v6545_v59 = vadd.f32 %v6544_v56, %v6376_v41  ;;  %v5884_v56 = vrot.slane %v5297_v4, 1  ;;  %v5298_v41 = vpack.c.b16 %v5266_v15, %v5266_v15  ;;  %v10553_v4 = vld [vmem:[#allocation38_spill] sm:$0xff] }
 0x420   : > { %v4791_v5 = vpop.f32.mrf.mxu1 }
 0x421   : > { %6248 = vmatmul.bf16.gmra.mxu2 %v7877_v21  ;;  %v6670_v28 = vadd.f32 %v6545_v59, %v4789_v31  ;;  %6417 = vmatmul.bf16.gmra.mxu3 %v5559_v18  ;;  %v10549_v21 = vld [vmem:[#allocation51_spill] sm:$0xff]  ;;  %v4792_v11 = vadd.f32 %v4791_v5, %v10551_v14  ;;  %v5885_v61 = vsel %vm2308_vm9, %v5883_v53, %v5884_v56  ;;  %v5573_v59 = vshrl.u32 %v7878_v23, 16  ;;  %v10556_v53 = vld [vmem:[#allocation12_spill] sm:$0xff] }
 0x422   : > { %v8176_v12 = vor.u32 %v8175_v57, %v10549_v21  ;;  %v5577_v57 = vrot.slane %v5575_v63, 1  ;;  %v5580_v51 = vshll.u32 %v5298_v41, 16  ;;  %v5887_v6 = vrot.slane %v5298_v41, 1 }
 0x423   : > { %4830 = vmatmul.bf16.gmra.mxu1 %v2371_v44  ;;  %v6738_v46 = vadd.f32 %v10001_v39, %v6670_v28  ;;  %v6547_v60 = vpop.f32.mrf.mxu0  ;;  %v10020_v28 = vld [vmem:[#allocation2 + $0x144] sm:$0xff]  }
 0x424   : > { %v6209_v10 = vpop.f32.mrf.mxu2  ;;  %v6378_v19 = vpop.f32.mrf.mxu3  ;;  %v2372_v22 = vrot.slane %v8176_v12, 1 }
 0x425   : > { %v7639_v25 = vpack.c.bf16 %v6738_v46, %v6737_v24  ;;  %v6379_v30 = vadd.f32 %v6378_v19, %v6209_v10  ;;  %v10022_v10 = vld [vmem:[#allocation2 + $0x144] sm:$0xf0]  ;;  %v2376_v24 = vrot.slane %v10553_v4, 1  ;;  %v7916_v46 = vld [vmem:[#allocation2 + $0x138] sm:$0xf0]  ;;  %v5578_v19 = vor.u32 %v5577_v57, %v5573_v59  ;;  %v10558_v57 = vld [vmem:[#allocation34_spill] sm:$0xff] }
 0x426   : > { %6586 = vmatmul.bf16.gmra.mxu0 %v5882_v3  ;;  %v2374_v17 = vsel %vm2308_vm9, %v2372_v22, %v2373_v43 }
 0x427   : > { %7941 = vst [vmem:[%s9846_s27 + $0x58] sm:$0xff] %v7639_v25   ;;  %v6548_v55 = vadd.f32 %v6547_v60, %v6379_v30  ;;  %v7917_v60 = vld [vmem:[#allocation2 + $0x138] sm:$0xe]  ;;  %v5582_v25 = vrot.slane %v5580_v51, 1  ;;  %v2377_v22 = vsel %vm2308_vm9, %v2375_v29, %v2376_v24 }
 0x428   : > { %v4793_v48 = vpop.f32.mrf.mxu1  ;;  %v7918_v8 = vor.u32 %v7917_v60, %v7916_v46 }
 0x429   : > { %v6671_v50 = vadd.f32 %v6548_v55, %v4792_v11  ;;  %v4794_v45 = vadd.f32 %v4793_v48, %v10552_v16  ;;  %v4979_v48 = vld [vmem:[#allocation2 + $0x14c] sm:$0x1]  ;;  %v5583_v34 = vsel %vm1795_vm10, %v5578_v19, %v5582_v25 }
 0x42a   : > { %v5267_v43 = vunpack.c.l.b16 %v4979_v48 }
 0x42b   : > { %v6549_v49 = vpop.f32.mrf.mxu0  ;;  %v6739_v5 = vadd.f32 %v10001_v39, %v6671_v50 }
 0x42c   : > { %v6211_v62 = vpop.f32.mrf.mxu2  ;;  %v6380_v40 = vpop.f32.mrf.mxu3 }
 0x42d   : > { %v6381_v47 = vadd.f32 %v6380_v40, %v6211_v62  ;;  %v5886_v40 = vrot.slane %v7918_v8, 1  ;;  %v7792_v8 = vld [vmem:[#allocation2 + $0x138] sm:$0xf0] }
 0x42f   : > { %v6550_v1 = vadd.f32 %v6549_v49, %v6381_v47  ;;  %v8181_v49 = vld [vmem:[#allocation2 + $0x12c] sm:$0xe]  ;;  %v5587_v47 = vshll.u32 %v10020_v28, 16  ;;  %v5888_v50 = vsel %vm2308_vm9, %v5886_v40, %v5887_v6 }
 0x430   : > { %v4796_v38 = vpop.f32.mrf.mxu1  ;;  %v8182_v56 = vor.u32 %v8181_v49, %v10556_v53 }
 0x431   : > { %6253 = vmatmul.bf16.gmra.mxu2 %v9988_v32  ;;  %v6672_v7 = vadd.f32 %v6550_v1, %v4794_v45  ;;  %6422 = vmatmul.bf16.gmra.mxu3 %v5571_v13  ;;  %v4797_v33 = vadd.f32 %v4796_v38, %v10554_v36  ;;  %v5299_v38 = vpack.c.b16 %v5267_v43, %v5267_v43  ;;  %v8184_v1 = vld [vmem:[#allocation2 + $0x144] sm:$0xe]  ;;  %v7793_v36 = vld [vmem:[#allocation2 + $0x138] sm:$0xe] }
 0x432   : > { %v2378_v41 = vrot.slane %v8182_v56, 1  ;;  %v8185_v59 = vor.u32 %v8184_v1, %v10022_v10 }
 0x433   : > { %4835 = vmatmul.bf16.gmra.mxu1 %v2374_v17  ;;  %v6740_v44 = vadd.f32 %v10001_v39, %v6672_v7  ;;  %v6552_v18 = vpop.f32.mrf.mxu0  ;;  %v5585_v7 = vshrl.u32 %v10020_v28, 16  ;;  %v5592_v20 = vshll.u32 %v5299_v38, 16 }
 0x434   : > { %v6214_v26 = vpop.f32.mrf.mxu2  ;;  %v6383_v32 = vpop.f32.mrf.mxu3  ;;  %v5889_v48 = vrot.slane %v8185_v59, 1 }
 0x435   : > { %v7644_v42 = vpack.c.bf16 %v6740_v44, %v6739_v5  ;;  %v6384_v37 = vadd.f32 %v6383_v32, %v6214_v26  ;;  %v5589_v26 = vrot.slane %v5587_v47, 1  ;;  %v10557_v5 = vld [vmem:[#allocation35_spill] sm:$0xff] }
 0x436   : > { %6591 = vmatmul.bf16.gmra.mxu0 %v5885_v61  ;;  %v2379_v44 = vrot.slane %v10557_v5, 1  ;;  %v5594_v61 = vrot.slane %v5592_v20, 1 }
 0x437   : > { %7942 = vst [vmem:[%s9846_s27 + $0x60] sm:$0xff] %v7644_v42   ;;  %v6553_v9 = vadd.f32 %v6552_v18, %v6384_v37  ;;  %v5590_v18 = vor.u32 %v5589_v26, %v5585_v7  ;;  %v4980_v42 = vld [vmem:[#allocation2 + $0x158] sm:$0x1]  ;;  %v10561_v26 = vld [vmem:[#allocation16_spill] sm:$0xff] }
 0x438   : > { %v4798_v31 = vpop.f32.mrf.mxu1  ;;  %v2380_v4 = vsel %vm2308_vm9, %v2378_v41, %v2379_v44  ;;  %v5268_v46 = vunpack.c.l.b16 %v4980_v42 }
 0x439   : > { %v6673_v52 = vadd.f32 %v6553_v9, %v4797_v33  ;;  %v4799_v55 = vadd.f32 %v4798_v31, %v10555_v58  ;;  %v5595_v24 = vsel %vm1795_vm10, %v5590_v18, %v5594_v61  ;;  %v7879_v9 = vld [vmem:[#allocation2 + $0x150] sm:$0xff]   ;;  %v7794_v58 = vor.u32 %v7793_v36, %v7792_v8  ;;  %v10562_v61 = vld [vmem:[#allocation17_spill] sm:$0xff] }
 0x43a   : > { %v5599_v33 = vshll.u32 %v7879_v9, 16 }
 0x43b   : > { %v6554_v21 = vpop.f32.mrf.mxu0  ;;  %v6741_v17 = vadd.f32 %v10001_v39, %v6673_v52  ;;  %v2381_v47 = vrot.slane %v7794_v58, 1 }
 0x43c   : > { %v6216_v3 = vpop.f32.mrf.mxu2  ;;  %v6385_v12 = vpop.f32.mrf.mxu3  ;;  %v5601_v49 = vrot.slane %v5599_v33, 1 }
 0x43d   : > { %v6386_v30 = vadd.f32 %v6385_v12, %v6216_v3  ;;  %v10559_v3 = vld [vmem:[#allocation74_spill] sm:$0xff] }
 0x43f   : > { %v6555_v27 = vadd.f32 %v6554_v21, %v6386_v30  ;;  %v5890_v21 = vrot.slane %v5299_v38, 1  ;;  %v5300_v30 = vpack.c.b16 %v5268_v46, %v5268_v46  ;;  %v10560_v38 = vld [vmem:[#allocation77_spill] sm:$0xff] }
 0x440   : > { %v4801_v62 = vpop.f32.mrf.mxu1 }
 0x441   : > { %6258 = vmatmul.bf16.gmra.mxu2 %v7878_v23  ;;  %v6674_v14 = vadd.f32 %v6555_v27, %v4799_v55  ;;  %6427 = vmatmul.bf16.gmra.mxu3 %v5583_v34  ;;  %v4802_v51 = vadd.f32 %v4801_v62, %v10558_v57  ;;  %v5891_v43 = vsel %vm2308_vm9, %v5889_v48, %v5890_v21  ;;  %v5597_v27 = vshrl.u32 %v7879_v9, 16  ;;  %v10563_v48 = vld [vmem:[#allocation82_spill] sm:$0xff] }
 0x442   : > { %v5604_v40 = vshll.u32 %v5300_v30, 16  ;;  %v5893_v59 = vrot.slane %v5300_v30, 1 }
 0x443   : > { %4840 = vmatmul.bf16.gmra.mxu1 %v2377_v22  ;;  %v6742_v13 = vadd.f32 %v10001_v39, %v6674_v14  ;;  %v6557_v15 = vpop.f32.mrf.mxu0  ;;  %v10047_v14 = vld [vmem:[#allocation2 + $0x15c] sm:$0xff]  }
 0x444   : > { %v6219_v11 = vpop.f32.mrf.mxu2  ;;  %v6388_v16 = vpop.f32.mrf.mxu3 }
 0x445   : > { %v7649_v45 = vpack.c.bf16 %v6742_v13, %v6741_v17  ;;  %v6389_v35 = vadd.f32 %v6388_v16, %v6219_v11  ;;  %v10049_v11 = vld [vmem:[#allocation2 + $0x15c] sm:$0xf0]  ;;  %v2382_v17 = vrot.slane %v10560_v38, 1  ;;  %v7919_v13 = vld [vmem:[#allocation2 + $0x150] sm:$0xf0]  ;;  %v5602_v16 = vor.u32 %v5601_v49, %v5597_v27  ;;  %v10565_v49 = vld [vmem:[#allocation85_spill] sm:$0xff] }
 0x446   : > { %6596 = vmatmul.bf16.gmra.mxu0 %v5888_v50 }
 0x447   : > { %7943 = vst [vmem:[%s9846_s27 + $0x68] sm:$0xff] %v7649_v45   ;;  %v6558_v32 = vadd.f32 %v6557_v15, %v6389_v35  ;;  %v7920_v15 = vld [vmem:[#allocation2 + $0x150] sm:$0xe]  ;;  %v5606_v45 = vrot.slane %v5604_v40, 1  ;;  %v2383_v41 = vsel %vm2308_vm9, %v2381_v47, %v2382_v17 }
 0x448   : > { %v4803_v23 = vpop.f32.mrf.mxu1  ;;  %v7921_v7 = vor.u32 %v7920_v15, %v7919_v13 }
 0x449   : > { %v6675_v60 = vadd.f32 %v6558_v32, %v4802_v51  ;;  %v4804_v19 = vadd.f32 %v4803_v23, %v10559_v3  ;;  %v4981_v23 = vld [vmem:[#allocation2 + $0x164] sm:$0x1]  ;;  %v5607_v5 = vsel %vm1795_vm10, %v5602_v16, %v5606_v45 }
 0x44a   : > { %v5269_v44 = vunpack.c.l.b16 %v4981_v23 }
 0x44b   : > { %v6559_v54 = vpop.f32.mrf.mxu0  ;;  %v6743_v62 = vadd.f32 %v10001_v39, %v6675_v60 }
 0x44c   : > { %v6221_v63 = vpop.f32.mrf.mxu2  ;;  %v6390_v31 = vpop.f32.mrf.mxu3 }
 0x44d   : > { %v6391_v37 = vadd.f32 %v6390_v31, %v6221_v63  ;;  %v5892_v31 = vrot.slane %v7921_v7, 1  ;;  %v7795_v7 = vld [vmem:[#allocation2 + $0x150] sm:$0xf0] }
 0x44f   : > { %v6560_v25 = vadd.f32 %v6559_v54, %v6391_v37  ;;  %v8187_v54 = vld [vmem:[#allocation2 + $0x144] sm:$0xe]  ;;  %v5611_v37 = vshll.u32 %v10047_v14, 16  ;;  %v5894_v60 = vsel %vm2308_vm9, %v5892_v31, %v5893_v59 }
 0x450   : > { %v4806_v29 = vpop.f32.mrf.mxu1  ;;  %v8188_v21 = vor.u32 %v8187_v54, %v10563_v48 }
 0x451   : > { %6263 = vmatmul.bf16.gmra.mxu2 %v10020_v28  ;;  %v6676_v12 = vadd.f32 %v6560_v25, %v4804_v19  ;;  %6432 = vmatmul.bf16.gmra.mxu3 %v5595_v24  ;;  %v4807_v20 = vadd.f32 %v4806_v29, %v10561_v26  ;;  %v5301_v29 = vpack.c.b16 %v5269_v44, %v5269_v44  ;;  %v8190_v25 = vld [vmem:[#allocation2 + $0x15c] sm:$0xe]  ;;  %v7796_v26 = vld [vmem:[#allocation2 + $0x150] sm:$0xe] }
 0x452   : > { %v2384_v30 = vrot.slane %v8188_v21, 1  ;;  %v8191_v27 = vor.u32 %v8190_v25, %v10049_v11 }
 0x453   : > { %4845 = vmatmul.bf16.gmra.mxu1 %v2380_v4  ;;  %v6744_v22 = vadd.f32 %v10001_v39, %v6676_v12  ;;  %v6562_v34 = vpop.f32.mrf.mxu0  ;;  %v5609_v12 = vshrl.u32 %v10047_v14, 16  ;;  %v5616_v8 = vshll.u32 %v5301_v29, 16 }
 0x454   : > { %v6224_v10 = vpop.f32.mrf.mxu2  ;;  %v6393_v28 = vpop.f32.mrf.mxu3  ;;  %v5895_v23 = vrot.slane %v8191_v27, 1 }
 0x455   : > { %v7654_v52 = vpack.c.bf16 %v6744_v22, %v6743_v62  ;;  %v6394_v6 = vadd.f32 %v6393_v28, %v6224_v10  ;;  %v5613_v10 = vrot.slane %v5611_v37, 1  ;;  %v10564_v62 = vld [vmem:[#allocation14_spill] sm:$0xff] }
 0x456   : > { %6601 = vmatmul.bf16.gmra.mxu0 %v5891_v43  ;;  %v2385_v22 = vrot.slane %v10564_v62, 1  ;;  %v5618_v43 = vrot.slane %v5616_v8, 1 }
 0x457   : > { %7944 = vst [vmem:[%s9846_s27 + $0x70] sm:$0xff] %v7654_v52   ;;  %v6563_v1 = vadd.f32 %v6562_v34, %v6394_v6  ;;  %v5614_v34 = vor.u32 %v5613_v10, %v5609_v12  ;;  %v4982_v52 = vld [vmem:[#allocation2 + $0x170] sm:$0x1]  ;;  %v10568_v10 = vld [vmem:[#allocation90_spill] sm:$0xff] }
 0x458   : > { %v4808_v55 = vpop.f32.mrf.mxu1  ;;  %v2386_v38 = vsel %vm2308_vm9, %v2384_v30, %v2385_v22  ;;  %v5270_v13 = vunpack.c.l.b16 %v4982_v52 }
 0x459   : > { %v6677_v18 = vadd.f32 %v6563_v1, %v4807_v20  ;;  %v4809_v32 = vadd.f32 %v4808_v55, %v10562_v61  ;;  %v5619_v17 = vsel %vm1795_vm10, %v5614_v34, %v5618_v43  ;;  %v7880_v1 = vld [vmem:[#allocation2 + $0x168] sm:$0xff]   ;;  %v7797_v61 = vor.u32 %v7796_v26, %v7795_v7  ;;  %v10569_v43 = vld [vmem:[#allocation42_spill] sm:$0xff] }
 0x45a   : > { %v5623_v20 = vshll.u32 %v7880_v1, 16 }
 0x45b   : > { %v6564_v53 = vpop.f32.mrf.mxu0  ;;  %v6745_v4 = vadd.f32 %v10001_v39, %v6677_v18  ;;  %v2387_v37 = vrot.slane %v7797_v61, 1 }
 0x45c   : > { %v6226_v50 = vpop.f32.mrf.mxu2  ;;  %v6395_v56 = vpop.f32.mrf.mxu3  ;;  %v5625_v54 = vrot.slane %v5623_v20, 1 }
 0x45d   : > { %v6396_v35 = vadd.f32 %v6395_v56, %v6226_v50  ;;  %v10566_v50 = vld [vmem:[#allocation15_spill] sm:$0xff] }
 0x45f   : > { %v6565_v42 = vadd.f32 %v6564_v53, %v6396_v35  ;;  %v5896_v53 = vrot.slane %v5301_v29, 1  ;;  %v5302_v35 = vpack.c.b16 %v5270_v13, %v5270_v13  ;;  %v10567_v29 = vld [vmem:[#allocation23_spill] sm:$0xff] }
 0x460   : > { %v4811_v63 = vpop.f32.mrf.mxu1 }
 0x461   : > { %6268 = vmatmul.bf16.gmra.mxu2 %v7879_v9  ;;  %v6678_v57 = vadd.f32 %v6565_v42, %v4809_v32  ;;  %6437 = vmatmul.bf16.gmra.mxu3 %v5607_v5  ;;  %v4812_v40 = vadd.f32 %v4811_v63, %v10565_v49  ;;  %v5897_v44 = vsel %vm2308_vm9, %v5895_v23, %v5896_v53  ;;  %v5621_v42 = vshrl.u32 %v7880_v1, 16  ;;  %v10570_v23 = vld [vmem:[#allocation40_spill] sm:$0xff] }
 0x462   : > { %v5628_v31 = vshll.u32 %v5302_v35, 16  ;;  %v5899_v27 = vrot.slane %v5302_v35, 1 }
 0x463   : > { %4850 = vmatmul.bf16.gmra.mxu1 %v2383_v41  ;;  %v6746_v24 = vadd.f32 %v10001_v39, %v6678_v57  ;;  %v6567_v46 = vpop.f32.mrf.mxu0  ;;  %v10074_v57 = vld [vmem:[#allocation2 + $0x174] sm:$0xff]  }
 0x464   : > { %v6229_v51 = vpop.f32.mrf.mxu2  ;;  %v6398_v3 = vpop.f32.mrf.mxu3 }
 0x465   : > { %v7659_v19 = vpack.c.bf16 %v6746_v24, %v6745_v4  ;;  %v6399_v36 = vadd.f32 %v6398_v3, %v6229_v51  ;;  %v10076_v51 = vld [vmem:[#allocation2 + $0x174] sm:$0xf0]  ;;  %v2388_v4 = vrot.slane %v10567_v29, 1  ;;  %v7922_v24 = vld [vmem:[#allocation2 + $0x168] sm:$0xf0]  ;;  %v5626_v3 = vor.u32 %v5625_v54, %v5621_v42 }
 0x466   : > { %6606 = vmatmul.bf16.gmra.mxu0 %v5894_v60  ;;  %v10572_v54 = vld [vmem:[#allocation25_spill] sm:$0xff] }
 0x467   : > { %7945 = vst [vmem:[%s9846_s27 + $0x78] sm:$0xff] %v7659_v19   ;;  %v6568_v28 = vadd.f32 %v6567_v46, %v6399_v36  ;;  %v7923_v46 = vld [vmem:[#allocation2 + $0x168] sm:$0xe]  ;;  %v5630_v19 = vrot.slane %v5628_v31, 1  ;;  %v2389_v30 = vsel %vm2308_vm9, %v2387_v37, %v2388_v4 }
 0x468   : > { %v4813_v9 = vpop.f32.mrf.mxu1  ;;  %v7924_v12 = vor.u32 %v7923_v46, %v7922_v24 }
 0x469   : > { %v6679_v15 = vadd.f32 %v6568_v28, %v4812_v40  ;;  %v4814_v16 = vadd.f32 %v4813_v9, %v10566_v50  ;;  %v4983_v9 = vld [vmem:[#allocation2 + $0x17c] sm:$0x1]  ;;  %v5631_v62 = vsel %vm1795_vm10, %v5626_v3, %v5630_v19 }
 0x46a   : > { %v5271_v22 = vunpack.c.l.b16 %v4983_v9 }
 0x46b   : > { %v6569_v58 = vpop.f32.mrf.mxu0  ;;  %v6747_v63 = vadd.f32 %v10001_v39, %v6679_v15 }
 0x46c   : > { %v6231_v33 = vpop.f32.mrf.mxu2  ;;  %v6400_v55 = vpop.f32.mrf.mxu3 }
 0x46d   : > { %v6401_v6 = vadd.f32 %v6400_v55, %v6231_v33  ;;  %v5898_v55 = vrot.slane %v7924_v12, 1  ;;  %v7798_v12 = vld [vmem:[#allocation2 + $0x168] sm:$0xf0] }
 0x46f   : > { %v6570_v45 = vadd.f32 %v6569_v58, %v6401_v6  ;;  %v8193_v58 = vld [vmem:[#allocation2 + $0x15c] sm:$0xe]  ;;  %v5635_v6 = vshll.u32 %v10074_v57, 16  ;;  %v5900_v15 = vsel %vm2308_vm9, %v5898_v55, %v5899_v27 }
 0x470   : > { %v4816_v47 = vpop.f32.mrf.mxu1  ;;  %v8194_v53 = vor.u32 %v8193_v58, %v10570_v23 }
 0x471   : > { %6273 = vmatmul.bf16.gmra.mxu2 %v10047_v14  ;;  %v6680_v56 = vadd.f32 %v6570_v45, %v4814_v16  ;;  %6442 = vmatmul.bf16.gmra.mxu3 %v5619_v17  ;;  %v4817_v8 = vadd.f32 %v4816_v47, %v10568_v10  ;;  %v5303_v47 = vpack.c.b16 %v5271_v22, %v5271_v22  ;;  %v8196_v45 = vld [vmem:[#allocation2 + $0x174] sm:$0xe]  ;;  %v7799_v10 = vld [vmem:[#allocation2 + $0x168] sm:$0xe] }
 0x472   : > { %v2390_v35 = vrot.slane %v8194_v53, 1  ;;  %v8197_v42 = vor.u32 %v8196_v45, %v10076_v51 }
 0x473   : > { %4855 = vmatmul.bf16.gmra.mxu1 %v2386_v38  ;;  %v6748_v41 = vadd.f32 %v10001_v39, %v6680_v56  ;;  %v6572_v5 = vpop.f32.mrf.mxu0  ;;  %v5633_v56 = vshrl.u32 %v10074_v57, 16  ;;  %v5640_v7 = vshll.u32 %v5303_v47, 16 }
 0x474   : > { %v6234_v11 = vpop.f32.mrf.mxu2  ;;  %v6403_v14 = vpop.f32.mrf.mxu3  ;;  %v5901_v9 = vrot.slane %v8197_v42, 1 }
 0x475   : > { %v7664_v18 = vpack.c.bf16 %v6748_v41, %v6747_v63  ;;  %v6404_v59 = vadd.f32 %v6403_v14, %v6234_v11  ;;  %v5637_v11 = vrot.slane %v5635_v6, 1  ;;  %v10571_v63 = vld [vmem:[#allocation46_spill] sm:$0xff] }
 0x476   : > { %6611 = vmatmul.bf16.gmra.mxu0 %v5897_v44  ;;  %v2391_v41 = vrot.slane %v10571_v63, 1  ;;  %v5642_v44 = vrot.slane %v5640_v7, 1 }
 0x477   : > { %7946 = vst [vmem:[%s9846_s27 + $0x80] sm:$0xff] %v7664_v18   ;;  %v6573_v25 = vadd.f32 %v6572_v5, %v6404_v59  ;;  %v5638_v5 = vor.u32 %v5637_v11, %v5633_v56  ;;  %v4984_v18 = vld [vmem:[#allocation2 + $0x188] sm:$0x1]  ;;  %v10575_v11 = vld [vmem:[#allocation22_spill] sm:$0xff] }
 0x478   : > { %v4818_v32 = vpop.f32.mrf.mxu1  ;;  %v2392_v29 = vsel %vm2308_vm9, %v2390_v35, %v2391_v41  ;;  %v5272_v24 = vunpack.c.l.b16 %v4984_v18  ;;  %v8199_v41 = vld [vmem:[#allocation2 + $0x174] sm:$0xe] }
 0x479   : > { %v6681_v34 = vadd.f32 %v6573_v25, %v4817_v8  ;;  %v4819_v28 = vadd.f32 %v4818_v32, %v10569_v43  ;;  %v5643_v4 = vsel %vm1795_vm10, %v5638_v5, %v5642_v44  ;;  %v7881_v25 = vld [vmem:[#allocation2 + $0x180] sm:$0xff]   ;;  %v7800_v43 = vor.u32 %v7799_v10, %v7798_v12 }
 0x47a   : > { %v5647_v8 = vshll.u32 %v7881_v25, 16 }
 0x47b   : > { %v6574_v48 = vpop.f32.mrf.mxu0  ;;  %v6749_v38 = vadd.f32 %v10001_v39, %v6681_v34  ;;  %v2393_v6 = vrot.slane %v7800_v43, 1 }
 0x47c   : > { %v6236_v60 = vpop.f32.mrf.mxu2  ;;  %v6405_v21 = vpop.f32.mrf.mxu3  ;;  %v5649_v58 = vrot.slane %v5647_v8, 1 }
 0x47d   : > { %v6406_v36 = vadd.f32 %v6405_v21, %v6236_v60  ;;  %v10573_v60 = vld [vmem:[#allocation21_spill] sm:$0xff] }
 0x47f   : > { %v6575_v52 = vadd.f32 %v6574_v48, %v6406_v36  ;;  %v5902_v48 = vrot.slane %v5303_v47, 1  ;;  %v5304_v36 = vpack.c.b16 %v5272_v24, %v5272_v24  ;;  %v10574_v47 = vld [vmem:[#allocation50_spill] sm:$0xff] }
 0x480   : > { %v4821_v33 = vpop.f32.mrf.mxu1  ;;  %v333_v24 = vld [vmem:[#allocation2 + $0x1a4] sm:$0x1] }
 0x481   : > { %6278 = vmatmul.bf16.gmra.mxu2 %v7880_v1  ;;  %v6682_v49 = vadd.f32 %v6575_v52, %v4819_v28  ;;  %6447 = vmatmul.bf16.gmra.mxu3 %v5631_v62  ;;  %v4822_v31 = vadd.f32 %v4821_v33, %v10572_v54  ;;  %v5903_v22 = vsel %vm2308_vm9, %v5901_v9, %v5902_v48  ;;  %v5645_v52 = vshrl.u32 %v7881_v25, 16  ;;  %v10577_v9 = vld [vmem:[#allocation31_spill] sm:$0xff] }
 0x482   : > { %v5652_v55 = vshll.u32 %v5304_v36, 16  ;;  %v5905_v42 = vrot.slane %v5304_v36, 1  ;;  %v8200_v48 = vor.u32 %v8199_v41, %v10577_v9  ;;  %v334_v36 = vsel %vm8488_vm4, 0, %v333_v24 }
 0x483   : > { %4860 = vmatmul.bf16.gmra.mxu1 %v2389_v30  ;;  %v6750_v17 = vadd.f32 %v10001_v39, %v6682_v49  ;;  %v6577_v13 = vpop.f32.mrf.mxu0  ;;  %v10101_v49 = vld [vmem:[#allocation2 + $0x18c] sm:$0xff]   ;;  %335 = vst [vmem:[#allocation2 + $0x1a4] sm:$0x1] %v334_v36 }
 0x484   : > { %v6239_v40 = vpop.f32.mrf.mxu2  ;;  %v6408_v50 = vpop.f32.mrf.mxu3 }
 0x485   : > { %v7669_v16 = vpack.c.bf16 %v6750_v17, %v6749_v38  ;;  %v6409_v26 = vadd.f32 %v6408_v50, %v6239_v40  ;;  %v10103_v40 = vld [vmem:[#allocation2 + $0x18c] sm:$0xf0]  ;;  %v2394_v38 = vrot.slane %v10574_v47, 1  ;;  %v7925_v17 = vld [vmem:[#allocation2 + $0x180] sm:$0xf0]  ;;  %v5650_v50 = vor.u32 %v5649_v58, %v5645_v52 }
 0x486   : > { %6616 = vmatmul.bf16.gmra.mxu0 %v5900_v15  ;;  %v4986_v58 = vld [vmem:[#allocation2 + $0x1a0] sm:$0x1] }
 0x487   : > { %7947 = vst [vmem:[%s9846_s27 + $0x88] sm:$0xff] %v7669_v16   ;;  %v6578_v14 = vadd.f32 %v6577_v13, %v6409_v26  ;;  %v7926_v13 = vld [vmem:[#allocation2 + $0x180] sm:$0xe]  ;;  %v5654_v16 = vrot.slane %v5652_v55, 1  ;;  %v2395_v35 = vsel %vm2308_vm9, %v2393_v6, %v2394_v38 }
 0x488   : > { %v4823_v1 = vpop.f32.mrf.mxu1  ;;  %v7927_v56 = vor.u32 %v7926_v13, %v7925_v17  ;;  %v10579_v6 = vld [vmem:[#allocation58_spill] sm:$0xff] }
 0x489   : > { %v6683_v46 = vadd.f32 %v6578_v14, %v4822_v31  ;;  %v4824_v3 = vadd.f32 %v4823_v1, %v10573_v60  ;;  %v4985_v1 = vld [vmem:[#allocation2 + $0x194] sm:$0x1]  ;;  %v5655_v63 = vsel %vm1795_vm10, %v5650_v50, %v5654_v16  ;;  %v10576_v14 = vld [vmem:[#allocation54_spill] sm:$0xff]  ;;  %v10580_v16 = vld [vmem:[#allocation61_spill] sm:$0xff] }
 0x48a   : > { %v5273_v5 = vunpack.c.l.b16 %v4985_v1 }
 0x48b   : > { %v6579_v61 = vpop.f32.mrf.mxu0  ;;  %v6751_v33 = vadd.f32 %v10001_v39, %v6683_v46 }
 0x48c   : > { %v6241_v20 = vpop.f32.mrf.mxu2  ;;  %v6410_v32 = vpop.f32.mrf.mxu3 }
 0x48d   : > { %v6411_v59 = vadd.f32 %v6410_v32, %v6241_v20  ;;  %v5904_v32 = vrot.slane %v7927_v56, 1 }
 0x48f   : > { %v6580_v19 = vadd.f32 %v6579_v61, %v6411_v59  ;;  %v5659_v59 = vshll.u32 %v10101_v49, 16  ;;  %v5906_v60 = vsel %vm2308_vm9, %v5904_v32, %v5905_v42 }
 0x490   : > { %v4826_v37 = vpop.f32.mrf.mxu1 }
 0x491   : > { %6283 = vmatmul.bf16.gmra.mxu2 %v10074_v57  ;;  %v6684_v21 = vadd.f32 %v6580_v19, %v4824_v3  ;;  %6452 = vmatmul.bf16.gmra.mxu3 %v5643_v4  ;;  %v4827_v7 = vadd.f32 %v4826_v37, %v10575_v11  ;;  %v5305_v37 = vpack.c.b16 %v5273_v5, %v5273_v5  ;;  %v443_v19 = vld [vmem:[#allocation2 + $0x1ac] sm:$0x1]  ;;  %v5661_v10 = vrot.slane %v5659_v59, 1  ;;  %v10132_v59 = vld [vmem:[#allocation2 + $0x1a4] sm:$0xff]  }
 0x493   : > { %4865 = vmatmul.bf16.gmra.mxu1 %v2392_v29  ;;  %v6752_v30 = vadd.f32 %v10001_v39, %v6684_v21  ;;  %v6582_v62 = vpop.f32.mrf.mxu0  ;;  %v5657_v21 = vshrl.u32 %v10101_v49, 16  ;;  %v5664_v8 = vshll.u32 %v5305_v37, 16  ;;  %v5908_v56 = vrot.slane %v5305_v37, 1  ;;  %v10134_v37 = vld [vmem:[#allocation2 + $0x1a4] sm:$0xf0] }
 0x494   : > { %v6244_v51 = vpop.f32.mrf.mxu2  ;;  %v6413_v57 = vpop.f32.mrf.mxu3 }
 0x495   : > { %v7674_v34 = vpack.c.bf16 %v6752_v30, %v6751_v33  ;;  %v6414_v27 = vadd.f32 %v6413_v57, %v6244_v51  ;;  %v8202_v51 = vld [vmem:[#allocation2 + $0x18c] sm:$0xe]  ;;  %v444_v33 = vsel %vm8483_vm3, 0, %v443_v19  ;;  %v10578_v57 = vld [vmem:[#allocation33_spill] sm:$0xff]  ;;  %v5662_v43 = vor.u32 %v5661_v10, %v5657_v21  ;;  %v10582_v10 = vld [vmem:[#allocation28_spill] sm:$0xff] }
 0x496   : > { %6621 = vmatmul.bf16.gmra.mxu0 %v5903_v22  ;;  %445 = vst [vmem:[#allocation2 + $0x1ac] sm:$0x1] %v444_v33  ;;  %v2396_v22 = vrot.slane %v8200_v48, 1  ;;  %v8203_v2 = vor.u32 %v8202_v51, %v10103_v40 }
 0x497   : > { %7948 = vst [vmem:[%s9846_s27 + $0x90] sm:$0xff] %v7674_v34   ;;  %v6583_v45 = vadd.f32 %v6582_v62, %v6414_v27  ;;  %v2397_v34 = vrot.slane %v10578_v57, 1 }
 0x498   : > { %v4828_v28 = vpop.f32.mrf.mxu1 }
 0x499   : > { %v6685_v44 = vadd.f32 %v6583_v45, %v4827_v7  ;;  %v4829_v18 = vadd.f32 %v4828_v28, %v10576_v14  ;;  %v5666_v28 = vrot.slane %v5664_v8, 1  ;;  %v2398_v17 = vsel %vm2308_vm9, %v2396_v22, %v2397_v34  ;;  %v7801_v7 = vld [vmem:[#allocation2 + $0x180] sm:$0xf0]  ;;  %v10583_v34 = vld [vmem:[#allocation39_spill] sm:$0xff] }
 0x49b   : > { %v6584_v23 = vpop.f32.mrf.mxu0  ;;  %v6753_v29 = vadd.f32 %v10001_v39, %v6685_v44  ;;  %v5667_v13 = vsel %vm1795_vm10, %v5662_v43, %v5666_v28 }
 0x49c   : > { %v6246_v15 = vpop.f32.mrf.mxu2  ;;  %v6415_v53 = vpop.f32.mrf.mxu3 }
 0x49d   : > { %v6416_v26 = vadd.f32 %v6415_v53, %v6246_v15  ;;  %v5274_v15 = vunpack.c.l.b16 %v4986_v58  ;;  %v5907_v53 = vrot.slane %v8203_v2, 1  ;;  %v4987_v48 = vld [vmem:[#allocation2 + $0x1ac] sm:$0x1] }
 0x49e   : > { %v5275_v22 = vunpack.c.l.b16 %v4987_v48 }
 0x49f   : > { %v6585_v61 = vadd.f32 %v6584_v23, %v6416_v26  ;;  %v7882_v23 = vld [vmem:[#allocation2 + $0x198] sm:$0xff]   ;;  %v7802_v26 = vld [vmem:[#allocation2 + $0x180] sm:$0xe]  ;;  %v5909_v44 = vsel %vm2308_vm9, %v5907_v53, %v5908_v56  ;;  %v5681_v53 = vshrl.u32 %v10132_v59, 16 }
 0x4a0   : > { %v4831_v20 = vpop.f32.mrf.mxu1  ;;  %v5669_v32 = vshrl.u32 %v7882_v23, 16 }
 0x4a1   : > { %6288 = vmatmul.bf16.gmra.mxu2 %v7881_v25  ;;  %v6686_v54 = vadd.f32 %v6585_v61, %v4829_v18  ;;  %6457 = vmatmul.bf16.gmra.mxu3 %v5655_v63  ;;  %v4832_v0 = vadd.f32 %v4831_v20, %v10579_v6  ;;  %v5671_v20 = vshll.u32 %v7882_v23, 16  ;;  %v7803_v18 = vor.u32 %v7802_v26, %v7801_v7 }
 0x4a2   : > { %v5683_v6 = vshll.u32 %v10132_v59, 16 }
 0x4a3   : > { %4870 = vmatmul.bf16.gmra.mxu1 %v2395_v35  ;;  %v6754_v4 = vadd.f32 %v10001_v39, %v6686_v54  ;;  %v6587_v46 = vpop.f32.mrf.mxu0  ;;  %v5306_v35 = vpack.c.b16 %v5274_v15, %v5274_v15  ;;  %v5673_v42 = vrot.slane %v5671_v20, 1  ;;  %v10585_v20 = vld [vmem:[#allocation71_spill] sm:$0xff] }
 0x4a4   : > { %v6249_v31 = vpop.f32.mrf.mxu2  ;;  %v6418_v3 = vpop.f32.mrf.mxu3  ;;  %v5685_v56 = vrot.slane %v5683_v6, 1 }
 0x4a5   : > { %v7679_v25 = vpack.c.bf16 %v6754_v4, %v6753_v29  ;;  %v6419_v30 = vadd.f32 %v6418_v3, %v6249_v31  ;;  %v5676_v54 = vshll.u32 %v5306_v35, 16  ;;  %v2399_v29 = vrot.slane %v7803_v18, 1  ;;  %v10581_v4 = vld [vmem:[#allocation29_spill] sm:$0xff] }
 0x4a6   : > { %6626 = vmatmul.bf16.gmra.mxu0 %v5906_v60  ;;  %v2400_v24 = vrot.slane %v10581_v4, 1  ;;  %v7929_v60 = vld [vmem:[#allocation2 + $0x198] sm:$0xe]  ;;  %v5674_v19 = vor.u32 %v5673_v42, %v5669_v32 }
 0x4a7   : > { %7949 = vst [vmem:[%s9846_s27 + $0x98] sm:$0xff] %v7679_v25   ;;  %v6588_v52 = vadd.f32 %v6587_v46, %v6419_v30  ;;  %v7928_v46 = vld [vmem:[#allocation2 + $0x198] sm:$0xf0]  ;;  %v5678_v25 = vrot.slane %v5676_v54, 1 }
 0x4a8   : > { %v4833_v12 = vpop.f32.mrf.mxu1  ;;  %v2401_v30 = vsel %vm2308_vm9, %v2399_v29, %v2400_v24  ;;  %v10587_v29 = vld [vmem:[#allocation75_spill] sm:$0xff] }
 0x4a9   : > { %v6687_v50 = vadd.f32 %v6588_v52, %v4832_v0  ;;  %v4834_v45 = vadd.f32 %v4833_v12, %v10580_v16  ;;  %v7930_v12 = vor.u32 %v7929_v60, %v7928_v46  ;;  %v8205_v52 = vld [vmem:[#allocation2 + $0x18c] sm:$0xe]  ;;  %v5307_v0 = vpack.c.b16 %v5275_v22, %v5275_v22  ;;  %v8208_v16 = vld [vmem:[#allocation2 + $0x1a4] sm:$0xe] }
 0x4ab   : > { %v6589_v55 = vpop.f32.mrf.mxu0  ;;  %v6755_v63 = vadd.f32 %v10001_v39, %v6687_v50  ;;  %v5910_v58 = vrot.slane %v7930_v12, 1  ;;  %v5914_v60 = vrot.slane %v5307_v0, 1 }
 0x4ac   : > { %v6251_v62 = vpop.f32.mrf.mxu2  ;;  %v6420_v27 = vpop.f32.mrf.mxu3 }
 0x4ad   : > { %v6421_v47 = vadd.f32 %v6420_v27, %v6251_v62  ;;  %v5679_v62 = vsel %vm1795_vm10, %v5674_v19, %v5678_v25  ;;  %v10158_v19 = vld [vmem:[%s10244_s2] ss:$0 sm:$0xff] }
 0x4af   : > { %v6590_v1 = vadd.f32 %v6589_v55, %v6421_v47  ;;  %v5911_v55 = vrot.slane %v5306_v35, 1  ;;  %v5686_v35 = vor.u32 %v5685_v56, %v5681_v53 }
 0x4b0   : > { %v4836_v38 = vpop.f32.mrf.mxu1 }
 0x4b1   : > { %6293 = vmatmul.bf16.gmra.mxu2 %v10101_v49  ;;  %v6688_v11 = vadd.f32 %v6590_v1, %v4834_v45  ;;  %6462 = vmatmul.bf16.gmra.mxu3 %v5667_v13  ;;  %v4837_v8 = vadd.f32 %v4836_v38, %v10582_v10  ;;  %v5912_v13 = vsel %vm2308_vm9, %v5910_v58, %v5911_v55  ;;  %v10584_v1 = vld [vmem:[#allocation64_spill] sm:$0xff] }
 0x4b3   : > { %4875 = vmatmul.bf16.gmra.mxu1 %v2398_v17  ;;  %v6756_v41 = vadd.f32 %v10001_v39, %v6688_v11  ;;  %v6592_v5 = vpop.f32.mrf.mxu0  ;;  %v5688_v11 = vshll.u32 %v5307_v0, 16 }
 0x4b4   : > { %v6254_v40 = vpop.f32.mrf.mxu2  ;;  %v6423_v49 = vpop.f32.mrf.mxu3 }
 0x4b5   : > { %v7684_v14 = vpack.c.bf16 %v6756_v41, %v6755_v63  ;;  %v6424_v31 = vadd.f32 %v6423_v49, %v6254_v40  ;;  %v5690_v63 = vrot.slane %v5688_v11, 1  ;;  %v8209_v49 = vor.u32 %v8208_v16, %v10134_v37 }
 0x4b6   : > { %6631 = vmatmul.bf16.gmra.mxu0 %v5909_v44 }
 0x4b7   : > { %7950 = vst [vmem:[%s9846_s27 + $0xa0] sm:$0xff] %v7684_v14   ;;  %v6593_v9 = vadd.f32 %v6592_v5, %v6424_v31  ;;  %v10586_v14 = vld [vmem:[#allocation67_spill] sm:$0xff]  ;;  %v5691_v54 = vsel %vm1795_vm10, %v5686_v35, %v5690_v63  ;;  %v5913_v46 = vrot.slane %v8209_v49, 1 }
 0x4b8   : > { %v4838_v61 = vpop.f32.mrf.mxu1 }
 0x4b9   : > { %v6689_v57 = vadd.f32 %v6593_v9, %v4837_v8  ;;  %v4839_v43 = vadd.f32 %v4838_v61, %v10583_v34 }
 0x4bb   : > { %v6594_v21 = vpop.f32.mrf.mxu0  ;;  %v6757_v47 = vadd.f32 %v10001_v39, %v6689_v57 }
 0x4bc   : > { %v6256_v3 = vpop.f32.mrf.mxu2  ;;  %v6425_v51 = vpop.f32.mrf.mxu3 }
 0x4bd   : > { %v6426_v36 = vadd.f32 %v6425_v51, %v6256_v3 }
 0x4bf   : > { %v6595_v28 = vadd.f32 %v6594_v21, %v6426_v36  ;;  %v5915_v21 = vsel %vm2308_vm9, %v5913_v46, %v5914_v60  ;;  %v10593_v46 = vld [vmem:[#allocation89_spill] sm:$0xff] }
 0x4c0   : > { %v4841_v33 = vpop.f32.mrf.mxu1 }
 0x4c1   : > { %6298 = vmatmul.bf16.gmra.mxu2 %v7882_v23  ;;  %v6690_v27 = vadd.f32 %v6595_v28, %v4839_v43  ;;  %6467 = vmatmul.bf16.gmra.mxu3 %v5679_v62  ;;  %v8206_v23 = vor.u32 %v8205_v52, %v10584_v1  ;;  %v4842_v18 = vadd.f32 %v4841_v33, %v10586_v14  ;;  %v10588_v62 = vld [vmem:[#allocation36_spill] sm:$0xff]  ;;  %v10589_v28 = vld [vmem:[#allocation37_spill] sm:$0xff]  ;;  %v10590_v1 = vld [vmem:[#allocation78_spill] sm:$0xff] }
 0x4c3   : > { %4880 = vmatmul.bf16.gmra.mxu1 %v2401_v30  ;;  %v6758_v38 = vadd.f32 %v10001_v39, %v6690_v27  ;;  %v6597_v17 = vpop.f32.mrf.mxu0  ;;  %v2402_v26 = vrot.slane %v8206_v23, 1  ;;  %v2403_v39 = vrot.slane %v10585_v20, 1 }
 0x4c4   : > { %v6259_v2 = vpop.f32.mrf.mxu2  ;;  %v6428_v15 = vpop.f32.mrf.mxu3 }
 0x4c5   : > { %v7689_v50 = vpack.c.bf16 %v6758_v38, %v6757_v47  ;;  %v6429_v40 = vadd.f32 %v6428_v15, %v6259_v2  ;;  %v2404_v42 = vsel %vm2308_vm9, %v2402_v26, %v2403_v39 }
 0x4c6   : > { %6636 = vmatmul.bf16.gmra.mxu0 %v5912_v13 }
 0x4c7   : > { %7951 = vst [vmem:[%s9846_s27 + $0xa8] sm:$0xff] %v7689_v50   ;;  %v6598_v41 = vadd.f32 %v6597_v17, %v6429_v40  ;;  %v10591_v40 = vld [vmem:[#allocation83_spill] sm:$0xff] }
 0x4c8   : > { %v4843_v45 = vpop.f32.mrf.mxu1 }
 0x4c9   : > { %v6691_v31 = vadd.f32 %v6598_v41, %v4842_v18  ;;  %v4844_v4 = vadd.f32 %v4843_v45, %v10587_v29 }
 0x4cb   : > { %v6599_v5 = vpop.f32.mrf.mxu0  ;;  %v6759_v25 = vadd.f32 %v10158_v19, %v6691_v31 }
 0x4cc   : > { %v6261_v7 = vpop.f32.mrf.mxu2  ;;  %v6430_v44 = vpop.f32.mrf.mxu3 }
 0x4cd   : > { %v6431_v61 = vadd.f32 %v6430_v44, %v6261_v7 }
 0x4cf   : > { %v6600_v24 = vadd.f32 %v6599_v5, %v6431_v61 }
 0x4d0   : > { %v4846_v32 = vpop.f32.mrf.mxu1 }
 0x4d1   : > { %6303 = vmatmul.bf16.gmra.mxu2 %v10132_v59  ;;  %v6692_v3 = vadd.f32 %v6600_v24, %v4844_v4  ;;  %6472 = vmatmul.bf16.gmra.mxu3 %v5691_v54  ;;  %v4847_v22 = vadd.f32 %v4846_v32, %v10588_v62  ;;  %v10592_v54 = vld [vmem:[#allocation87_spill] sm:$0xff]  ;;  %v10594_v62 = vld [vmem:[#allocation93_spill] sm:$0xff] }
 0x4d3   : > { %4885 = vmatmul.bf16.gmra.mxu1 %v2404_v42  ;;  %v6760_v9 = vadd.f32 %v10158_v19, %v6692_v3  ;;  %v6602_v48 = vpop.f32.mrf.mxu0 }
 0x4d4   : > { %v6264_v37 = vpop.f32.mrf.mxu2  ;;  %v6433_v51 = vpop.f32.mrf.mxu3 }
 0x4d5   : > { %v7694_v59 = vpack.c.bf16 %v6760_v9, %v6759_v25  ;;  %v6434_v10 = vadd.f32 %v6433_v51, %v6264_v37 }
 0x4d6   : > { %6641 = vmatmul.bf16.gmra.mxu0 %v5915_v21 }
 0x4d7   : > { %7952 = vst [vmem:[%s9846_s27 + $0xb0] sm:$0xff] %v7694_v59   ;;  %v6603_v36 = vadd.f32 %v6602_v48, %v6434_v10 }
 0x4d8   : > { %v4848_v12 = vpop.f32.mrf.mxu1 }
 0x4d9   : > { %v6693_v43 = vadd.f32 %v6603_v36, %v4847_v22  ;;  %v4849_v52 = vadd.f32 %v4848_v12, %v10589_v28  ;;  %v10595_v28 = vld [vmem:[#allocation45_spill] sm:$0xff] }
 0x4db   : > { %v6604_v33 = vpop.f32.mrf.mxu0  ;;  %v6761_v2 = vadd.f32 %v10158_v19, %v6693_v43 }
 0x4dc   : > { %v6266_v8 = vpop.f32.mrf.mxu2  ;;  %v6435_v30 = vpop.f32.mrf.mxu3 }
 0x4dd   : > { %v6436_v57 = vadd.f32 %v6435_v30, %v6266_v8 }
 0x4df   : > { %v6605_v58 = vadd.f32 %v6604_v33, %v6436_v57 }
 0x4e0   : > { %v4851_v34 = vpop.f32.mrf.mxu1 }
 0x4e1   : > { %v6694_v55 = vadd.f32 %v6605_v58, %v4849_v52  ;;  %v4852_v23 = vadd.f32 %v4851_v34, %v10590_v1  ;;  %v10596_v1 = vld [vmem:[#allocation41_spill] sm:$0xff] }
 0x4e3   : > { %v6762_v6 = vadd.f32 %v10158_v19, %v6694_v55  ;;  %v6607_v0 = vpop.f32.mrf.mxu0 }
 0x4e4   : > { %v6269_v27 = vpop.f32.mrf.mxu2  ;;  %v6438_v47 = vpop.f32.mrf.mxu3 }
 0x4e5   : > { %v7699_v38 = vpack.c.bf16 %v6762_v6, %v6761_v2  ;;  %v6439_v13 = vadd.f32 %v6438_v47, %v6269_v27 }
 0x4e7   : > { %7953 = vst [vmem:[%s9846_s27 + $0xb8] sm:$0xff] %v7699_v38   ;;  %v6608_v50 = vadd.f32 %v6607_v0, %v6439_v13 }
 0x4e8   : > { %v4853_v17 = vpop.f32.mrf.mxu1 }
 0x4e9   : > { %v6695_v11 = vadd.f32 %v6608_v50, %v4852_v23  ;;  %v4854_v7 = vadd.f32 %v4853_v17, %v10591_v40  ;;  %v10597_v40 = vld [vmem:[#allocation43_spill] sm:$0xff] }
 0x4eb   : > { %v6609_v16 = vpop.f32.mrf.mxu0  ;;  %v6763_v35 = vadd.f32 %v10158_v19, %v6695_v11 }
 0x4ec   : > { %v6271_v15 = vpop.f32.mrf.mxu2  ;;  %v6440_v45 = vpop.f32.mrf.mxu3 }
 0x4ed   : > { %v6441_v53 = vadd.f32 %v6440_v45, %v6271_v15 }
 0x4ef   : > { %v6610_v26 = vadd.f32 %v6609_v16, %v6441_v53 }
 0x4f0   : > { %v4856_v56 = vpop.f32.mrf.mxu1 }
 0x4f1   : > { %v6696_v20 = vadd.f32 %v6610_v26, %v4854_v7  ;;  %v4857_v31 = vadd.f32 %v4856_v56, %v10592_v54  ;;  %v10598_v54 = vld [vmem:[#allocation44_spill] sm:$0xff] }
 0x4f3   : > { %v6764_v63 = vadd.f32 %v10158_v19, %v6696_v20  ;;  %v6612_v41 = vpop.f32.mrf.mxu0 }
 0x4f4   : > { %v6274_v39 = vpop.f32.mrf.mxu2  ;;  %v6443_v5 = vpop.f32.mrf.mxu3 }
 0x4f5   : > { %v7704_v44 = vpack.c.bf16 %v6764_v63, %v6763_v35  ;;  %v6444_v14 = vadd.f32 %v6443_v5, %v6274_v39 }
 0x4f7   : > { %7954 = vst [vmem:[%s9846_s27 + $0xc0] sm:$0xff] %v7704_v44   ;;  %v6613_v61 = vadd.f32 %v6612_v41, %v6444_v14 }
 0x4f8   : > { %v4858_v49 = vpop.f32.mrf.mxu1 }
 0x4f9   : > { %v6697_v24 = vadd.f32 %v6613_v61, %v4857_v31  ;;  %v4859_v60 = vadd.f32 %v4858_v49, %v10593_v46  ;;  %v10599_v46 = vld [vmem:[#allocation49_spill] sm:$0xff] }
 0x4fb   : > { %v6614_v32 = vpop.f32.mrf.mxu0  ;;  %v6765_v9 = vadd.f32 %v10158_v19, %v6697_v24 }
 0x4fc   : > { %v6276_v18 = vpop.f32.mrf.mxu2  ;;  %v6445_v42 = vpop.f32.mrf.mxu3 }
 0x4fd   : > { %v6446_v29 = vadd.f32 %v6445_v42, %v6276_v18 }
 0x4ff   : > { %v6615_v3 = vadd.f32 %v6614_v32, %v6446_v29 }
 0x500   : > { %v4861_v4 = vpop.f32.mrf.mxu1 }
 0x501   : > { %v6698_v37 = vadd.f32 %v6615_v3, %v4859_v60  ;;  %v4862_v22 = vadd.f32 %v4861_v4, %v10594_v62  ;;  %v10600_v62 = vld [vmem:[#allocation48_spill] sm:$0xff] }
 0x503   : > { %v6766_v48 = vadd.f32 %v10158_v19, %v6698_v37  ;;  %v6617_v21 = vpop.f32.mrf.mxu0 }
 0x504   : > { %v6279_v25 = vpop.f32.mrf.mxu2  ;;  %v6448_v51 = vpop.f32.mrf.mxu3 }
 0x505   : > { %v7709_v59 = vpack.c.bf16 %v6766_v48, %v6765_v9  ;;  %v6449_v10 = vadd.f32 %v6448_v51, %v6279_v25 }
 0x507   : > { %7955 = vst [vmem:[%s9846_s27 + $0xc8] sm:$0xff] %v7709_v59   ;;  %v6618_v36 = vadd.f32 %v6617_v21, %v6449_v10 }
 0x508   : > { %v4863_v12 = vpop.f32.mrf.mxu1 }
 0x509   : > { %v6699_v43 = vadd.f32 %v6618_v36, %v4862_v22  ;;  %v4864_v52 = vadd.f32 %v4863_v12, %v10595_v28  ;;  %v10601_v28 = vld [vmem:[#allocation52_spill] sm:$0xff] }
 0x50b   : > { %v6619_v33 = vpop.f32.mrf.mxu0  ;;  %v6767_v2 = vadd.f32 %v10158_v19, %v6699_v43 }
 0x50c   : > { %v6281_v8 = vpop.f32.mrf.mxu2  ;;  %v6450_v30 = vpop.f32.mrf.mxu3 }
 0x50d   : > { %v6451_v57 = vadd.f32 %v6450_v30, %v6281_v8 }
 0x50f   : > { %v6620_v58 = vadd.f32 %v6619_v33, %v6451_v57 }
 0x510   : > { %v4866_v34 = vpop.f32.mrf.mxu1 }
 0x511   : > { %v6700_v55 = vadd.f32 %v6620_v58, %v4864_v52  ;;  %v4867_v23 = vadd.f32 %v4866_v34, %v10596_v1  ;;  %v10602_v1 = vld [vmem:[#allocation55_spill] sm:$0xff] }
 0x513   : > { %v6768_v6 = vadd.f32 %v10158_v19, %v6700_v55  ;;  %v6622_v0 = vpop.f32.mrf.mxu0 }
 0x514   : > { %v6284_v27 = vpop.f32.mrf.mxu2  ;;  %v6453_v47 = vpop.f32.mrf.mxu3 }
 0x515   : > { %v7714_v38 = vpack.c.bf16 %v6768_v6, %v6767_v2  ;;  %v6454_v13 = vadd.f32 %v6453_v47, %v6284_v27 }
 0x517   : > { %7956 = vst [vmem:[%s9846_s27 + $0xd0] sm:$0xff] %v7714_v38   ;;  %v6623_v50 = vadd.f32 %v6622_v0, %v6454_v13 }
 0x518   : > { %v4868_v17 = vpop.f32.mrf.mxu1 }
 0x519   : > { %v6701_v11 = vadd.f32 %v6623_v50, %v4867_v23  ;;  %v4869_v7 = vadd.f32 %v4868_v17, %v10597_v40 }
 0x51b   : > { %v6624_v16 = vpop.f32.mrf.mxu0  ;;  %v6769_v35 = vadd.f32 %v10158_v19, %v6701_v11  ;;  %v10603_v11 = vld [vmem:[#allocation56_spill] sm:$0xff] }
 0x51c   : > { %v6286_v15 = vpop.f32.mrf.mxu2  ;;  %v6455_v45 = vpop.f32.mrf.mxu3 }
 0x51d   : > { %v6456_v53 = vadd.f32 %v6455_v45, %v6286_v15 }
 0x51f   : > { %v6625_v26 = vadd.f32 %v6624_v16, %v6456_v53 }
 0x520   : > { %v4871_v56 = vpop.f32.mrf.mxu1 }
 0x521   : > { %v6702_v20 = vadd.f32 %v6625_v26, %v4869_v7  ;;  %v4872_v31 = vadd.f32 %v4871_v56, %v10598_v54 }
 0x523   : > { %v6770_v63 = vadd.f32 %v10158_v19, %v6702_v20  ;;  %v6627_v41 = vpop.f32.mrf.mxu0 }
 0x524   : > { %v6289_v39 = vpop.f32.mrf.mxu2  ;;  %v6458_v5 = vpop.f32.mrf.mxu3 }
 0x525   : > { %v7719_v44 = vpack.c.bf16 %v6770_v63, %v6769_v35  ;;  %v6459_v14 = vadd.f32 %v6458_v5, %v6289_v39 }
 0x527   : > { %7957 = vst [vmem:[%s9846_s27 + $0xd8] sm:$0xff] %v7719_v44   ;;  %v6628_v61 = vadd.f32 %v6627_v41, %v6459_v14 }
 0x528   : > { %v4873_v49 = vpop.f32.mrf.mxu1 }
 0x529   : > { %v6703_v24 = vadd.f32 %v6628_v61, %v4872_v31  ;;  %v4874_v60 = vadd.f32 %v4873_v49, %v10599_v46 }
 0x52b   : > { %v6629_v32 = vpop.f32.mrf.mxu0  ;;  %v6771_v9 = vadd.f32 %v10158_v19, %v6703_v24  ;;  %v10605_v24 = vld [vmem:[#allocation60_spill] sm:$0xff] }
 0x52c   : > { %v6291_v18 = vpop.f32.mrf.mxu2  ;;  %v6460_v42 = vpop.f32.mrf.mxu3 }
 0x52d   : > { %v6461_v29 = vadd.f32 %v6460_v42, %v6291_v18  ;;  %v10604_v42 = vld [vmem:[#allocation59_spill] sm:$0xff] }
 0x52f   : > { %v6630_v3 = vadd.f32 %v6629_v32, %v6461_v29 }
 0x530   : > { %v4876_v4 = vpop.f32.mrf.mxu1 }
 0x531   : > { %v6704_v37 = vadd.f32 %v6630_v3, %v4874_v60  ;;  %v4877_v22 = vadd.f32 %v4876_v4, %v10600_v62 }
 0x533   : > { %v6772_v48 = vadd.f32 %v10158_v19, %v6704_v37  ;;  %v6632_v21 = vpop.f32.mrf.mxu0 }
 0x534   : > { %v6294_v25 = vpop.f32.mrf.mxu2  ;;  %v6463_v51 = vpop.f32.mrf.mxu3 }
 0x535   : > { %v7724_v59 = vpack.c.bf16 %v6772_v48, %v6771_v9  ;;  %v6464_v10 = vadd.f32 %v6463_v51, %v6294_v25 }
 0x537   : > { %7958 = vst [vmem:[%s9846_s27 + $0xe0] sm:$0xff] %v7724_v59   ;;  %v6633_v36 = vadd.f32 %v6632_v21, %v6464_v10 }
 0x538   : > { %v4878_v12 = vpop.f32.mrf.mxu1 }
 0x539   : > { %v6705_v43 = vadd.f32 %v6633_v36, %v4877_v22  ;;  %v4879_v52 = vadd.f32 %v4878_v12, %v10601_v28 }
 0x53b   : > { %v6634_v33 = vpop.f32.mrf.mxu0  ;;  %v6773_v2 = vadd.f32 %v10158_v19, %v6705_v43 }
 0x53c   : > { %v6296_v8 = vpop.f32.mrf.mxu2  ;;  %v6465_v30 = vpop.f32.mrf.mxu3 }
 0x53d   : > { %v6466_v57 = vadd.f32 %v6465_v30, %v6296_v8 }
 0x53f   : > { %v6635_v58 = vadd.f32 %v6634_v33, %v6466_v57 }
 0x540   : > { %v4881_v34 = vpop.f32.mrf.mxu1 }
 0x541   : > { %v6706_v55 = vadd.f32 %v6635_v58, %v4879_v52  ;;  %v4882_v23 = vadd.f32 %v4881_v34, %v10602_v1 }
 0x543   : > { %v6774_v6 = vadd.f32 %v10158_v19, %v6706_v55  ;;  %v6637_v0 = vpop.f32.mrf.mxu0 }
 0x544   : > { %v6299_v27 = vpop.f32.mrf.mxu2  ;;  %v6468_v47 = vpop.f32.mrf.mxu3 }
 0x545   : > { %v7729_v38 = vpack.c.bf16 %v6774_v6, %v6773_v2  ;;  %v6469_v17 = vadd.f32 %v6468_v47, %v6299_v27 }
 0x547   : > { %7959 = vst [vmem:[%s9846_s27 + $0xe8] sm:$0xff] %v7729_v38   ;;  %v6638_v50 = vadd.f32 %v6637_v0, %v6469_v17 }
 0x548   : > { %v4883_v13 = vpop.f32.mrf.mxu1 }
 0x549   : > { %v6707_v56 = vadd.f32 %v6638_v50, %v4882_v23  ;;  %v4884_v40 = vadd.f32 %v4883_v13, %v10603_v11 }
 0x54b   : > { %v6639_v16 = vpop.f32.mrf.mxu0  ;;  %v6775_v35 = vadd.f32 %v10158_v19, %v6707_v56 }
 0x54c   : > { %v6301_v15 = vpop.f32.mrf.mxu2  ;;  %v6470_v45 = vpop.f32.mrf.mxu3 }
 0x54d   : > { %v6471_v53 = vadd.f32 %v6470_v45, %v6301_v15 }
 0x54f   : > { %v6640_v7 = vadd.f32 %v6639_v16, %v6471_v53 }
 0x550   : > { %v4886_v20 = vpop.f32.mrf.mxu1 }
 0x551   : > { %v6708_v26 = vadd.f32 %v6640_v7, %v4884_v40  ;;  %v4887_v54 = vadd.f32 %v4886_v20, %v10604_v42 }
 0x553   : > { %v6776_v63 = vadd.f32 %v10158_v19, %v6708_v26  ;;  %v6642_v41 = vpop.f32.mrf.mxu0 }
 0x554   : > { %v6304_v39 = vpop.f32.mrf.mxu2  ;;  %v6473_v5 = vpop.f32.mrf.mxu3 }
 0x555   : > { %v7734_v44 = vpack.c.bf16 %v6776_v63, %v6775_v35  ;;  %v6474_v49 = vadd.f32 %v6473_v5, %v6304_v39 }
 0x557   : > { %7960 = vst [vmem:[%s9846_s27 + $0xf0] sm:$0xff] %v7734_v44   ;;  %v6643_v18 = vadd.f32 %v6642_v41, %v6474_v49 }
 0x558   : > { %v4888_v61 = vpop.f32.mrf.mxu1 }
 0x559   : > { %v6709_v4 = vadd.f32 %v6643_v18, %v4887_v54  ;;  %v4889_v46 = vadd.f32 %v4888_v61, %v10605_v24 }
 0x55b   : > { %v6644_v29 = vpop.f32.mrf.mxu0  ;;  %v6777_v37 = vadd.f32 %v10158_v19, %v6709_v4 }
 0x55c   : > { %v6306_v14 = vpop.f32.mrf.mxu2  ;;  %v6475_v32 = vpop.f32.mrf.mxu3 }
 0x55d   : > { %v6476_v31 = vadd.f32 %v6475_v32, %v6306_v14 }
 0x55f   : > { %v6645_v60 = vadd.f32 %v6644_v29, %v6476_v31 }
 0x561   : > { %v6710_v3 = vadd.f32 %v6645_v60, %v4889_v46 }
 0x563   : > { %v6778_v25 = vadd.f32 %v10158_v19, %v6710_v3 }
 0x565   : > { %v7739_v9 = vpack.c.bf16 %v6778_v25, %v6777_v37 }
 0x567   : > { %7961 = vst [vmem:[%s9846_s27 + $0xf8] sm:$0xff] %v7739_v9  }
 0x568   : > { %8297 = shalt.err (!%p8294_p10)
}
 0x569   : > { %s8346_s6 = smov 64   ;;  %s8347_s27 = smov 4  }
 0x56a   : > { %7992 = dma.vmem_to_hbm [thread:$0]  (%p8436_p0), %s6922_s8, 4096, %s6924_s16, %s6908_s9, %s8346_s6, %s8346_s6, %s8347_s27  }
 0x56b PF: > { %p8009_p11 = scmp.ge.s32.totalorder %s8340_s15, 2  ;;  %s6938_s17 = sand.u32 1, %s8328_s12  }
 0x56c   : > { %s6939_s21 = scalar_lea.sflag [#allocation5], %s6938_s17 }
 0x56d   : > { %p8003_p12 = pnand %p8009_p11, %p8403_p6 }
 0x56f   : > { %p8004_p13 = pneg %p8003_p12 }
 0x571   : > { %8323 = dma.done.wait (%p8004_p13), %s6939_s21, 4096  }
 0x572   : > { %8325 = vsyncadd (%p8004_p13), %s6939_s21, 4294963200  ;;  %p17_p3 = scmp.ge.s32.totalorder %s8420_s26, 6   ;;  %s10606_s12 = smov %s8332_s13 }
 0x573   : > { %s10607_s13 = smov %s8336_s14  ;;  %s10608_s14 = smov %s8432_s4 }
 0x574   : > { %s10609_s15 = smov %s8420_s26  ;;  %19 = sbr.rel (!%p17_p3) target bundleno = 6 (0x6), region = 84 }
 0x579   :  { %6945 = vsyncpa [#allocation4], 1 }
 0x57a   :  { %6947 = vsyncpa [#allocation4 + $0x1], 1 }
 0x57b   :  { %6948 = vsyncpa [#allocation7], 1 }
 0x57c   :  { %6949 = vsyncpa [#allocation5], 1 }
 0x57d   :  { %6951 = vsyncpa [#allocation5 + $0x1], 1 }

</bundles_post_ra>
